<compile_context>
chip_gen: v6e
topology: v6e:2x2x1
jax: 0.10.0
libtpu: 0.0.40
codegen_flags: <defaults>
</compile_context>

<pallas_src>
import functools
import numpy as np

import jax
import jax.numpy as jnp
from jax import lax
from jax.experimental import pallas as pl
from jax.experimental.pallas import tpu as pltpu


# ----------------------------------------------------------------------------
# Small helpers shared by the kernels
# ----------------------------------------------------------------------------

def _pick_tile(m, maxt=512):
    # Single big tile when it fits (v5e/v6e are single-TC: splitting tiny M is
    # pure per-step overhead); only split genuinely large row counts.
    if m <= maxt:
        return m
    for t in (maxt, 256, 128, 64, 32, 16, 8):
        if m % t == 0:
            return t
    return m


def _layernorm_f32(x, g, b, eps=1e-5):
    x = x.astype(jnp.float32)
    mu = jnp.mean(x, axis=-1, keepdims=True)
    xc = x - mu
    var = jnp.mean(xc * xc, axis=-1, keepdims=True)
    return xc * lax.rsqrt(var + eps) * g.astype(jnp.float32) + b.astype(jnp.float32)


def _erf_poly(x):
    # Abramowitz & Stegun 7.1.26 (~1.5e-7 abs error == f32 eps level) so the
    # erf-GELU matches torch's exact GELU to f32 tolerance without relying on
    # lax.erf lowering inside Mosaic.
    t = 1.0 / (1.0 + 0.3275911 * jnp.abs(x))
    poly = t * (0.254829592 + t * (-0.284496736 + t * (1.421413741 +
               t * (-1.453152027 + t * 1.061405429))))
    y = 1.0 - poly * jnp.exp(-x * x)
    return jnp.where(x >= 0, y, -y)


def _gelu_exact(x):
    return 0.5 * x * (1.0 + _erf_poly(x * 0.7071067811865476))


def _mha_f32(q, k, v, w_out, b_out, heads):
    """Multi-head attention on lane-dense 2-D operands (all f32).

    q: (Nq, inner), k/v: (Nk, inner).  Heads are split via static lane slices
    inside the kernel; per-head contexts are concatenated back to (Nq, inner)
    so the output projection is a single K=inner matmul."""
    inner = q.shape[-1]
    d = inner // heads
    scale = float(d) ** -0.5
    ctxs = []
    for h in range(heads):
        sl = slice(h * d, (h + 1) * d)
        qh, kh, vh = q[:, sl], k[:, sl], v[:, sl]
        sim = lax.dot_general(qh, kh, (((1,), (1,)), ((), ())),
                              preferred_element_type=jnp.float32) * scale
        sim = sim - jnp.max(sim, axis=-1, keepdims=True)
        p = jnp.exp(sim)
        attn = p / jnp.sum(p, axis=-1, keepdims=True)
        ctxs.append(jnp.dot(attn, vh, preferred_element_type=jnp.float32))
    ctx = ctxs[0] if heads == 1 else jnp.concatenate(ctxs, axis=-1)
    return jnp.dot(ctx, w_out, preferred_element_type=jnp.float32) + b_out


def _ff_f32(x, g, b, w1, b1, w2, b2):
    """PreNorm FeedForward: LN -> l1 -> GEGLU (exact-erf GELU) -> l2 (all f32)."""
    xn = _layernorm_f32(x, g, b)
    h = jnp.dot(xn, w1, preferred_element_type=jnp.float32) + b1
    half = h.shape[-1] // 2
    act = h[:, :half] * _gelu_exact(h[:, half:])
    return jnp.dot(act, w2, preferred_element_type=jnp.float32) + b2


# ----------------------------------------------------------------------------
# Pallas kernels
# ----------------------------------------------------------------------------

def _linear_bias_kernel(x_ref, w_ref, b_ref, o_ref):
    acc = jnp.dot(x_ref[...].astype(jnp.float32), w_ref[...].astype(jnp.float32),
                  preferred_element_type=jnp.float32)
    o_ref[...] = (acc + b_ref[...].astype(jnp.float32)).astype(o_ref.dtype)


def linear_pallas(x, w, b2d):
    """y = x @ w + b.  x: (..., K), w: (K, N), b2d: (1, N) (pre-reshaped)."""
    lead = x.shape[:-1]
    K = x.shape[-1]
    N = w.shape[1]
    M = int(np.prod(lead))
    x2 = x.reshape(M, K)
    tm = _pick_tile(M)
    steps = M // tm
    out = pl.pallas_call(
        _linear_bias_kernel,
        out_shape=jax.ShapeDtypeStruct((M, N), x.dtype),
        grid=(steps,),
        in_specs=[pl.BlockSpec((tm, K), lambda i: (i, 0)),
                  pl.BlockSpec((K, N), lambda i: (0, 0)),
                  pl.BlockSpec((1, N), lambda i: (0, 0))],
        out_specs=pl.BlockSpec((tm, N), lambda i: (i, 0)),
        compiler_params=pltpu.CompilerParams(
            dimension_semantics=("arbitrary",) if steps == 1 else ("parallel",)),
    )(x2, w, b2d)
    return out.reshape(*lead, N)


def _encoder_kernel(x_ref, ctx_ref,
                    lnx_g, lnx_b, lnc_g, lnc_b,
                    wq_ref, wkv_ref, wo_ref, bo_ref,
                    ffg_ref, ffb_ref, w1_ref, b1_ref, w2_ref, b2_ref,
                    wml_ref, bml_ref,
                    ml_ref, kl_ref, *, latent_dim):
    # One grid step = one batch element.  Fused: LN->q, LN->kv, cross-attention
    # (heads=1), out-proj, residual, PreNorm FF, residual, mean|logvar matmul,
    # per-batch KL reduction (lane-dense output).
    f32 = jnp.float32
    x = x_ref[0].astype(f32)                 # (Nl, dim)
    ctx = ctx_ref[0].astype(f32)             # (Npc, dim)
    inner = wq_ref.shape[1]

    xn = _layernorm_f32(x, lnx_g[...], lnx_b[...])
    cn = _layernorm_f32(ctx, lnc_g[...], lnc_b[...])
    q = jnp.dot(xn, wq_ref[...].astype(f32), preferred_element_type=f32)
    kv = jnp.dot(cn, wkv_ref[...].astype(f32), preferred_element_type=f32)
    k, v = kv[:, :inner], kv[:, inner:]
    x = x + _mha_f32(q, k, v, wo_ref[...].astype(f32), bo_ref[...].astype(f32), heads=1)

    x = x + _ff_f32(x, ffg_ref[...], ffb_ref[...],
                    w1_ref[...].astype(f32), b1_ref[...].astype(f32),
                    w2_ref[...].astype(f32), b2_ref[...].astype(f32))

    ml = jnp.dot(x, wml_ref[...].astype(f32),
                 preferred_element_type=f32) + bml_ref[...].astype(f32)
    ml_ref[0] = ml.astype(ml_ref.dtype)

    mean = ml[:, :latent_dim]
    lv = jnp.clip(ml[:, latent_dim:], -30.0, 20.0)
    kl_terms = mean * mean + jnp.exp(lv) - 1.0 - lv             # (Nl, L)
    coef = 0.5 / float(kl_terms.shape[0] * kl_terms.shape[1])   # 0.5 * mean over (N, L)
    kl_val = jnp.sum(kl_terms, axis=1, keepdims=True)           # (Nl, 1)
    kl_val = jnp.sum(kl_val, axis=0, keepdims=True) * coef      # (1, 1)
    kl_ref[0] = jnp.broadcast_to(kl_val, (1, 128)).astype(kl_ref.dtype)


def encoder_block_pallas(x, context, p, *, latent_dim):
    B, Nl, dim = x.shape
    Npc = context.shape[1]
    inner = p['wq'].shape[1]
    twoL = p['w_ml'].shape[1]
    H = p['w1'].shape[1]
    ml, kl = pl.pallas_call(
        functools.partial(_encoder_kernel, latent_dim=latent_dim),
        out_shape=(jax.ShapeDtypeStruct((B, Nl, twoL), x.dtype),
                   jax.ShapeDtypeStruct((B, 1, 128), jnp.float32)),
        grid=(B,),
        in_specs=[
            pl.BlockSpec((1, Nl, dim), lambda b: (b, 0, 0)),
            pl.BlockSpec((1, Npc, dim), lambda b: (b, 0, 0)),
            pl.BlockSpec((1, dim), lambda b: (0, 0)),
            pl.BlockSpec((1, dim), lambda b: (0, 0)),
            pl.BlockSpec((1, dim), lambda b: (0, 0)),
            pl.BlockSpec((1, dim), lambda b: (0, 0)),
            pl.BlockSpec((dim, inner), lambda b: (0, 0)),
            pl.BlockSpec((dim, 2 * inner), lambda b: (0, 0)),
            pl.BlockSpec((inner, dim), lambda b: (0, 0)),
            pl.BlockSpec((1, dim), lambda b: (0, 0)),
            pl.BlockSpec((1, dim), lambda b: (0, 0)),
            pl.BlockSpec((1, dim), lambda b: (0, 0)),
            pl.BlockSpec((dim, H), lambda b: (0, 0)),
            pl.BlockSpec((1, H), lambda b: (0, 0)),
            pl.BlockSpec((H // 2, dim), lambda b: (0, 0)),
            pl.BlockSpec((1, dim), lambda b: (0, 0)),
            pl.BlockSpec((dim, twoL), lambda b: (0, 0)),
            pl.BlockSpec((1, twoL), lambda b: (0, 0)),
        ],
        out_specs=(pl.BlockSpec((1, Nl, twoL), lambda b: (b, 0, 0)),
                   pl.BlockSpec((1, 1, 128), lambda b: (b, 0, 0))),
        compiler_params=pltpu.CompilerParams(dimension_semantics=("parallel",)),
    )(x, context,
      p['ln_x_g'], p['ln_x_b'], p['ln_c_g'], p['ln_c_b'],
      p['wq'], p['wkv'], p['wo'], p['bo'],
      p['ff_ln_g'], p['ff_ln_b'], p['w1'], p['b1'], p['w2'], p['b2'],
      p['w_ml'], p['b_ml'])
    return ml, kl[:, 0, 0]


def _decoder_layer_kernel(x_ref, ln1_g, ln1_b, wqkv_ref, wo_ref, bo_ref,
                          ln2_g, ln2_b, w1_ref, b1_ref, w2_ref, b2_ref,
                          o_ref, *, heads):
    # One grid step = one batch element.  Fused transformer layer:
    # LN -> (Wq|Wkv) matmul -> MHA (in-kernel head split) -> out-proj ->
    # residual -> LN -> FF/GEGLU -> residual.
    f32 = jnp.float32
    x = x_ref[0].astype(f32)                 # (N, dim)
    inner = wqkv_ref.shape[1] // 3

    xn = _layernorm_f32(x, ln1_g[...], ln1_b[...])
    qkv = jnp.dot(xn, wqkv_ref[...].astype(f32), preferred_element_type=f32)
    q = qkv[:, :inner]
    k = qkv[:, inner:2 * inner]
    v = qkv[:, 2 * inner:]
    x = x + _mha_f32(q, k, v, wo_ref[...].astype(f32), bo_ref[...].astype(f32), heads)

    x = x + _ff_f32(x, ln2_g[...], ln2_b[...],
                    w1_ref[...].astype(f32), b1_ref[...].astype(f32),
                    w2_ref[...].astype(f32), b2_ref[...].astype(f32))
    o_ref[0] = x.astype(o_ref.dtype)


def decoder_layer_pallas(x, p, *, heads):
    B, N, dim = x.shape
    inner3 = p['w_qkv'].shape[1]
    inner = inner3 // 3
    H = p['w1'].shape[1]
    return pl.pallas_call(
        functools.partial(_decoder_layer_kernel, heads=heads),
        out_shape=jax.ShapeDtypeStruct((B, N, dim), x.dtype),
        grid=(B,),
        in_specs=[
            pl.BlockSpec((1, N, dim), lambda b: (b, 0, 0)),
            pl.BlockSpec((1, dim), lambda b: (0, 0)),
            pl.BlockSpec((1, dim), lambda b: (0, 0)),
            pl.BlockSpec((dim, inner3), lambda b: (0, 0)),
            pl.BlockSpec((inner, dim), lambda b: (0, 0)),
            pl.BlockSpec((1, dim), lambda b: (0, 0)),
            pl.BlockSpec((1, dim), lambda b: (0, 0)),
            pl.BlockSpec((1, dim), lambda b: (0, 0)),
            pl.BlockSpec((dim, H), lambda b: (0, 0)),
            pl.BlockSpec((1, H), lambda b: (0, 0)),
            pl.BlockSpec((H // 2, dim), lambda b: (0, 0)),
            pl.BlockSpec((1, dim), lambda b: (0, 0)),
        ],
        out_specs=pl.BlockSpec((1, N, dim), lambda b: (b, 0, 0)),
        compiler_params=pltpu.CompilerParams(dimension_semantics=("parallel",)),
    )(x, p['ln1_g'], p['ln1_b'], p['w_qkv'], p['wo'], p['bo'],
      p['ln2_g'], p['ln2_b'], p['w1'], p['b1'], p['w2'], p['b2'])


def _cross_attn_kernel(x_ref, ctx_ref, lnx_g, lnx_b, lnc_g, lnc_b,
                       wq_ref, wkv_ref, wo_ref, bo_ref, o_ref):
    # Decoder cross-attention (heads=1, no residual, no decoder FF).
    f32 = jnp.float32
    x = x_ref[0].astype(f32)
    ctx = ctx_ref[0].astype(f32)
    inner = wq_ref.shape[1]
    xn = _layernorm_f32(x, lnx_g[...], lnx_b[...])
    cn = _layernorm_f32(ctx, lnc_g[...], lnc_b[...])
    q = jnp.dot(xn, wq_ref[...].astype(f32), preferred_element_type=f32)
    kv = jnp.dot(cn, wkv_ref[...].astype(f32), preferred_element_type=f32)
    k, v = kv[:, :inner], kv[:, inner:]
    out = _mha_f32(q, k, v, wo_ref[...].astype(f32), bo_ref[...].astype(f32), heads=1)
    o_ref[0] = out.astype(o_ref.dtype)


def cross_attn_pallas(x, context, p):
    B, Nq, qdim = x.shape
    Nk, dim = context.shape[1], context.shape[2]
    inner = p['wq'].shape[1]
    return pl.pallas_call(
        _cross_attn_kernel,
        out_shape=jax.ShapeDtypeStruct((B, Nq, qdim), x.dtype),
        grid=(B,),
        in_specs=[
            pl.BlockSpec((1, Nq, qdim), lambda b: (b, 0, 0)),
            pl.BlockSpec((1, Nk, dim), lambda b: (b, 0, 0)),
            pl.BlockSpec((1, qdim), lambda b: (0, 0)),
            pl.BlockSpec((1, qdim), lambda b: (0, 0)),
            pl.BlockSpec((1, dim), lambda b: (0, 0)),
            pl.BlockSpec((1, dim), lambda b: (0, 0)),
            pl.BlockSpec((qdim, inner), lambda b: (0, 0)),
            pl.BlockSpec((dim, 2 * inner), lambda b: (0, 0)),
            pl.BlockSpec((inner, qdim), lambda b: (0, 0)),
            pl.BlockSpec((1, qdim), lambda b: (0, 0)),
        ],
        out_specs=pl.BlockSpec((1, Nq, qdim), lambda b: (b, 0, 0)),
        compiler_params=pltpu.CompilerParams(dimension_semantics=("parallel",)),
    )(x, context, p['ln_x_g'], p['ln_x_b'], p['ln_c_g'], p['ln_c_b'],
      p['wq'], p['wkv'], p['wo'], p['bo'])


# ----------------------------------------------------------------------------
# Non-kernel glue
# ----------------------------------------------------------------------------

def point_embed(pc, p):
    # TODO(synk): sin/cos feature construction stays in XLA (guaranteed
    # lowering); only the MLP projection runs as a Pallas kernel.
    proj = jnp.einsum('bnd,de->bne', pc, p['basis'])
    emb = jnp.concatenate([jnp.sin(proj), jnp.cos(proj), pc], axis=-1)
    return linear_pallas(emb, p['w'], p['b'])


def fps(pc, num_samples):
    # TODO(synk): torch_cluster.fps uses a random start point; here FPS starts
    # deterministically at index 0 of each batch (plain-JAX sequential loop).
    B, N, _ = pc.shape

    def one(pts):
        def body(i, carry):
            idxs, dists = carry
            last = pts[idxs[i - 1]]
            d = jnp.sum((pts - last[None, :]) ** 2, axis=-1)
            dists = jnp.minimum(dists, d)
            nxt = jnp.argmax(dists).astype(jnp.int32)
            return idxs.at[i].set(nxt), dists

        idxs0 = jnp.zeros((num_samples,), jnp.int32)
        dists0 = jnp.full((N,), jnp.inf, jnp.float32)
        idxs, _ = jax.lax.fori_loop(1, num_samples, body, (idxs0, dists0))
        return pts[idxs]

    return jax.vmap(one)(pc)


def kl_autoencoder_forward(params, pc, queries, sample_key, cfg):
    L = cfg['latent_dim']
    pe = params['point_embed']

    # ---------------- encode ----------------
    sampled_pc = fps(pc, cfg['num_latents'])                   # (B, num_latents, 3)
    # Batch the two encoder point-embeds into one kernel launch.
    combined = jnp.concatenate([sampled_pc, pc], axis=1)
    emb = point_embed(combined, pe)
    sampled_emb = emb[:, :cfg['num_latents']]
    pc_emb = emb[:, cfg['num_latents']:]

    # Fused: cross-attn block + residual + FF + residual + mean|logvar + KL.
    ml, kl = encoder_block_pallas(sampled_emb, pc_emb, params['encoder'],
                                  latent_dim=L)
    mean, logvar = ml[..., :L], ml[..., L:]

    # posterior.sample(): mean + exp(0.5*clamped_logvar) * eps  (plain JAX RNG)
    logvar_c = jnp.clip(logvar, -30.0, 20.0)
    std = jnp.exp(0.5 * logvar_c)
    eps = jax.random.normal(sample_key, mean.shape, mean.dtype)
    z = mean + std * eps

    # ---------------- decode ----------------
    x = linear_pallas(z, params['proj_w'], params['proj_b'])
    for lyr in params['layers']:
        x = decoder_layer_pallas(x, lyr, heads=cfg['heads'])   # fully fused layer

    q_emb = point_embed(queries, pe)
    latents = cross_attn_pallas(q_emb, x, params['dec_cross_attn'])
    # decoder_ff=False (module default).  Width-1 to_outputs stays in XLA
    # (a 1-lane Pallas store wastes 127/128 lanes).
    o = jnp.einsum('bnd,do->bno', latents, params['out_w']) + params['out_b']
    return {'logits': o[..., 0], 'kl': kl}


# ----------------------------------------------------------------------------
# Parameter init (synthetic weights; torch Linear -> (in, out) here) + one-shot
# kernel-layout preparation (weight concats / bias reshapes hoisted out of jit).
# ----------------------------------------------------------------------------

def init_params(key, cfg):
    dim, ldim, qdim = cfg['dim'], cfg['latent_dim'], cfg['queries_dim']
    heads, dh, hd = cfg['heads'], cfg['dim_head'], cfg['point_hidden']
    kit = iter(jax.random.split(key, 256))

    def nk():
        return next(kit)

    def lin(din, dout, bias=True):
        p = {'w': (jax.random.normal(nk(), (din, dout)) * 0.02).astype(jnp.float32)}
        if bias:
            p['b'] = (jax.random.normal(nk(), (dout,)) * 0.02).astype(jnp.float32)
        return p

    def ln(d):
        return {'g': jnp.ones((d,), jnp.float32), 'b': jnp.zeros((d,), jnp.float32)}

    def attn(dq, dctx, inner):
        return {'wq': (jax.random.normal(nk(), (dq, inner)) * 0.02).astype(jnp.float32),
                'wkv': (jax.random.normal(nk(), (dctx, 2 * inner)) * 0.02).astype(jnp.float32),
                'out': lin(inner, dq)}

    def ff(d, mult=4):
        return {'l1': lin(d, d * mult * 2), 'l2': lin(d * mult, d)}

    # PointEmbed fixed basis (3, hidden//2), hidden % 6 == 0
    e = (2.0 ** np.arange(hd // 6)).astype(np.float32) * np.pi
    z = np.zeros(hd // 6, np.float32)
    basis = np.stack([np.concatenate([e, z, z]),
                      np.concatenate([z, e, z]),
                      np.concatenate([z, z, e])]).astype(np.float32)

    return {
        'point_embed': {'basis': jnp.asarray(basis), 'mlp': lin(hd + 3, dim)},
        'cross_attn': {'ln': ln(dim), 'ln_ctx': ln(dim), 'attn': attn(dim, dim, dim)},
        'cross_ff': {'ln': ln(dim), 'ff': ff(dim)},
        'mean_fc': lin(dim, ldim),
        'logvar_fc': lin(dim, ldim),
        'proj': lin(ldim, dim),
        'layers': [{'attn_ln': ln(dim), 'attn': attn(dim, dim, heads * dh),
                    'ff_ln': ln(dim), 'ff': ff(dim)} for _ in range(cfg['depth'])],
        'dec_cross_attn': {'ln': ln(qdim), 'ln_ctx': ln(dim), 'attn': attn(qdim, dim, dim)},
        'to_outputs': lin(qdim, cfg['output_dim']),
    }


def prepare_params(p):
    """One-shot, outside jit: hoist weight concats and (1, D) bias reshapes."""
    def r(v):
        return v.reshape(1, -1)

    enc = {
        'ln_x_g': r(p['cross_attn']['ln']['g']), 'ln_x_b': r(p['cross_attn']['ln']['b']),
        'ln_c_g': r(p['cross_attn']['ln_ctx']['g']), 'ln_c_b': r(p['cross_attn']['ln_ctx']['b']),
        'wq': p['cross_attn']['attn']['wq'], 'wkv': p['cross_attn']['attn']['wkv'],
        'wo': p['cross_attn']['attn']['out']['w'], 'bo': r(p['cross_attn']['attn']['out']['b']),
        'ff_ln_g': r(p['cross_ff']['ln']['g']), 'ff_ln_b': r(p['cross_ff']['ln']['b']),
        'w1': p['cross_ff']['ff']['l1']['w'], 'b1': r(p['cross_ff']['ff']['l1']['b']),
        'w2': p['cross_ff']['ff']['l2']['w'], 'b2': r(p['cross_ff']['ff']['l2']['b']),
        'w_ml': jnp.concatenate([p['mean_fc']['w'], p['logvar_fc']['w']], axis=1),
        'b_ml': jnp.concatenate([p['mean_fc']['b'], p['logvar_fc']['b']], axis=0).reshape(1, -1),
    }
    layers = []
    for lyr in p['layers']:
        layers.append({
            'ln1_g': r(lyr['attn_ln']['g']), 'ln1_b': r(lyr['attn_ln']['b']),
            'w_qkv': jnp.concatenate([lyr['attn']['wq'], lyr['attn']['wkv']], axis=1),
            'wo': lyr['attn']['out']['w'], 'bo': r(lyr['attn']['out']['b']),
            'ln2_g': r(lyr['ff_ln']['g']), 'ln2_b': r(lyr['ff_ln']['b']),
            'w1': lyr['ff']['l1']['w'], 'b1': r(lyr['ff']['l1']['b']),
            'w2': lyr['ff']['l2']['w'], 'b2': r(lyr['ff']['l2']['b']),
        })
    dec_ca = {
        'ln_x_g': r(p['dec_cross_attn']['ln']['g']), 'ln_x_b': r(p['dec_cross_attn']['ln']['b']),
        'ln_c_g': r(p['dec_cross_attn']['ln_ctx']['g']), 'ln_c_b': r(p['dec_cross_attn']['ln_ctx']['b']),
        'wq': p['dec_cross_attn']['attn']['wq'], 'wkv': p['dec_cross_attn']['attn']['wkv'],
        'wo': p['dec_cross_attn']['attn']['out']['w'], 'bo': r(p['dec_cross_attn']['attn']['out']['b']),
    }
    return {
        'point_embed': {'basis': p['point_embed']['basis'],
                        'w': p['point_embed']['mlp']['w'],
                        'b': r(p['point_embed']['mlp']['b'])},
        'encoder': enc,
        'proj_w': p['proj']['w'], 'proj_b': r(p['proj']['b']),
        'layers': layers,
        'dec_cross_attn': dec_ca,
        'out_w': p['to_outputs']['w'], 'out_b': p['to_outputs']['b'],
    }


# ----------------------------------------------------------------------------

if __name__ == "__main__":
    # Small configuration consistent with the module's hyper-parameters.
    cfg = dict(depth=2, dim=64, queries_dim=64, output_dim=1,
               num_inputs=128, num_latents=32, latent_dim=16,
               heads=8, dim_head=8, point_hidden=48)

    root = jax.random.PRNGKey(0)
    k_param, k_pc, k_q, k_sample = jax.random.split(root, 4)

    params = prepare_params(init_params(k_param, cfg))
    pc = jax.random.normal(k_pc, (2, cfg['num_inputs'], 3), jnp.float32)
    queries = jax.random.normal(k_q, (2, 64, 3), jnp.float32)

    fwd = jax.jit(functools.partial(kl_autoencoder_forward, cfg=cfg))
    out = fwd(params, pc, queries, k_sample)
    jax.block_until_ready(out)

    assert out['logits'].shape == (2, 64)
    assert out['kl'].shape == (2,)
    assert bool(jnp.all(jnp.isfinite(out['logits']))) and bool(jnp.all(jnp.isfinite(out['kl'])))
    print("KERNEL_OK")
</pallas_src>

<mosaic_0001>
module attributes {stable_mosaic.version = 11 : i64} {
  func.func @_linear_bias_kernel(%arg0: i32, %arg1: memref<320x51xf32, #tpu.memory_space<vmem>>, %arg2: memref<51x64xf32, #tpu.memory_space<vmem>>, %arg3: memref<1x64xf32, #tpu.memory_space<vmem>>, %arg4: memref<320x64xf32, #tpu.memory_space<vmem>>) attributes {dimension_semantics = [#tpu.dimension_semantics<arbitrary>], iteration_bounds = array<i64: 1>, scalar_prefetch = 0 : i64, scratch_operands = 0 : i64, tpu.core_type = #tpu.core_type<tc>, window_params = [{transform_indices = @transform_0, window_bounds = array<i64: 320, 51>}, {pipeline_mode = #tpu.pipeline_mode<synchronous>, transform_indices = @transform_1, window_bounds = array<i64: 51, 64>}, {pipeline_mode = #tpu.pipeline_mode<synchronous>, transform_indices = @transform_2, window_bounds = array<i64: 1, 64>}, {transform_indices = @transform_3, window_bounds = array<i64: 320, 64>}]} {
    %c0 = arith.constant 0 : index
    %c0_0 = arith.constant 0 : index
    %0 = vector.load %arg1[%c0, %c0_0] : memref<320x51xf32, #tpu.memory_space<vmem>>, vector<320x51xf32>
    %c0_1 = arith.constant 0 : index
    %c0_2 = arith.constant 0 : index
    %1 = vector.load %arg2[%c0_1, %c0_2] : memref<51x64xf32, #tpu.memory_space<vmem>>, vector<51x64xf32>
    %cst = arith.constant dense<0.000000e+00> : vector<320x64xf32>
    %2 = tpu.matmul %0, %1, %cst {dimension_numbers = #tpu.dot_dimension_numbers<[1], [0], [0], [1], [0, 0, 1, 1], [], []>} : vector<320x51xf32>, vector<51x64xf32>, vector<320x64xf32> -> vector<320x64xf32>
    %c0_3 = arith.constant 0 : index
    %c0_4 = arith.constant 0 : index
    %3 = vector.load %arg3[%c0_3, %c0_4] : memref<1x64xf32, #tpu.memory_space<vmem>>, vector<1x64xf32>
    %4 = vector.broadcast %3 : vector<1x64xf32> to vector<320x64xf32>
    %5 = arith.addf %2, %4 : vector<320x64xf32>
    %c0_5 = arith.constant 0 : index
    %c0_6 = arith.constant 0 : index
    %6 = vector.load %arg4[%c0_5, %c0_6] : memref<320x64xf32, #tpu.memory_space<vmem>>, vector<320x64xf32>
    tpu.vector_store %arg4[%c0_5, %c0_6], %5 {strides = array<i32>} : memref<320x64xf32, #tpu.memory_space<vmem>>, vector<320x64xf32>,
    return
  }
  func.func @transform_0(%arg0: i32) -> (i32, i32) {
    %c0_i32 = arith.constant 0 : i32
    %c0_i32_0 = arith.constant 0 : i32
    return %arg0, %c0_i32 : i32, i32
  }
  func.func @transform_1(%arg0: i32) -> (i32, i32) {
    %c0_i32 = arith.constant 0 : i32
    %c0_i32_0 = arith.constant 0 : i32
    %c0_i32_1 = arith.constant 0 : i32
    return %c0_i32, %c0_i32_0 : i32, i32
  }
  func.func @transform_2(%arg0: i32) -> (i32, i32) {
    %c0_i32 = arith.constant 0 : i32
    %c0_i32_0 = arith.constant 0 : i32
    %c0_i32_1 = arith.constant 0 : i32
    return %c0_i32, %c0_i32_0 : i32, i32
  }
  func.func @transform_3(%arg0: i32) -> (i32, i32) {
    %c0_i32 = arith.constant 0 : i32
    %c0_i32_0 = arith.constant 0 : i32
    return %arg0, %c0_i32 : i32, i32
  }
}

module attributes {stable_mosaic.version = 11 : i64} {
  func.func @_encoder_kernel(%arg0: i32, %arg1: memref<1x32x64xf32, #tpu.memory_space<vmem>>, %arg2: memref<1x128x64xf32, #tpu.memory_space<vmem>>, %arg3: memref<1x64xf32, #tpu.memory_space<vmem>>, %arg4: memref<1x64xf32, #tpu.memory_space<vmem>>, %arg5: memref<1x64xf32, #tpu.memory_space<vmem>>, %arg6: memref<1x64xf32, #tpu.memory_space<vmem>>, %arg7: memref<64x64xf32, #tpu.memory_space<vmem>>, %arg8: memref<64x128xf32, #tpu.memory_space<vmem>>, %arg9: memref<64x64xf32, #tpu.memory_space<vmem>>, %arg10: memref<1x64xf32, #tpu.memory_space<vmem>>, %arg11: memref<1x64xf32, #tpu.memory_space<vmem>>, %arg12: memref<1x64xf32, #tpu.memory_space<vmem>>, %arg13: memref<64x512xf32, #tpu.memory_space<vmem>>, %arg14: memref<1x512xf32, #tpu.memory_space<vmem>>, %arg15: memref<256x64xf32, #tpu.memory_space<vmem>>, %arg16: memref<1x64xf32, #tpu.memory_space<vmem>>, %arg17: memref<64x32xf32, #tpu.memory_space<vmem>>, %arg18: memref<1x32xf32, #tpu.memory_space<vmem>>, %arg19: memref<1x32x32xf32, #tpu.memory_space<vmem>>, %arg20: memref<1x1x128xf32, #tpu.memory_space<vmem>>) attributes {dimension_semantics = [#tpu.dimension_semantics<parallel>], iteration_bounds = array<i64: 2>, scalar_prefetch = 0 : i64, scratch_operands = 0 : i64, tpu.core_type = #tpu.core_type<tc>, window_params = [{transform_indices = @transform_0, window_bounds = array<i64: 1, 32, 64>}, {transform_indices = @transform_1, window_bounds = array<i64: 1, 128, 64>}, {pipeline_mode = #tpu.pipeline_mode<synchronous>, transform_indices = @transform_2, window_bounds = array<i64: 1, 64>}, {pipeline_mode = #tpu.pipeline_mode<synchronous>, transform_indices = @transform_3, window_bounds = array<i64: 1, 64>}, {pipeline_mode = #tpu.pipeline_mode<synchronous>, transform_indices = @transform_4, window_bounds = array<i64: 1, 64>}, {pipeline_mode = #tpu.pipeline_mode<synchronous>, transform_indices = @transform_5, window_bounds = array<i64: 1, 64>}, {pipeline_mode = #tpu.pipeline_mode<synchronous>, transform_indices = @transform_6, window_bounds = array<i64: 64, 64>}, {pipeline_mode = #tpu.pipeline_mode<synchronous>, transform_indices = @transform_7, window_bounds = array<i64: 64, 128>}, {pipeline_mode = #tpu.pipeline_mode<synchronous>, transform_indices = @transform_8, window_bounds = array<i64: 64, 64>}, {pipeline_mode = #tpu.pipeline_mode<synchronous>, transform_indices = @transform_9, window_bounds = array<i64: 1, 64>}, {pipeline_mode = #tpu.pipeline_mode<synchronous>, transform_indices = @transform_10, window_bounds = array<i64: 1, 64>}, {pipeline_mode = #tpu.pipeline_mode<synchronous>, transform_indices = @transform_11, window_bounds = array<i64: 1, 64>}, {pipeline_mode = #tpu.pipeline_mode<synchronous>, transform_indices = @transform_12, window_bounds = array<i64: 64, 512>}, {pipeline_mode = #tpu.pipeline_mode<synchronous>, transform_indices = @transform_13, window_bounds = array<i64: 1, 512>}, {pipeline_mode = #tpu.pipeline_mode<synchronous>, transform_indices = @transform_14, window_bounds = array<i64: 256, 64>}, {pipeline_mode = #tpu.pipeline_mode<synchronous>, transform_indices = @transform_15, window_bounds = array<i64: 1, 64>}, {pipeline_mode = #tpu.pipeline_mode<synchronous>, transform_indices = @transform_16, window_bounds = array<i64: 64, 32>}, {pipeline_mode = #tpu.pipeline_mode<synchronous>, transform_indices = @transform_17, window_bounds = array<i64: 1, 32>}, {transform_indices = @transform_18, window_bounds = array<i64: 1, 32, 32>}, {transform_indices = @transform_19, window_bounds = array<i64: 1, 1, 128>}]} {
    %c0 = arith.constant 0 : index
    %c0_0 = arith.constant 0 : index
    %c0_1 = arith.constant 0 : index
    %0 = vector.load %arg1[%c0, %c0_0, %c0_1] : memref<1x32x64xf32, #tpu.memory_space<vmem>>, vector<1x32x64xf32>
    %1 = vector.shape_cast %0 : vector<1x32x64xf32> to vector<32x64xf32>
    %c0_2 = arith.constant 0 : index
    %c0_3 = arith.constant 0 : index
    %c0_4 = arith.constant 0 : index
    %2 = vector.load %arg2[%c0_2, %c0_3, %c0_4] : memref<1x128x64xf32, #tpu.memory_space<vmem>>, vector<1x128x64xf32>
    %3 = vector.shape_cast %2 : vector<1x128x64xf32> to vector<128x64xf32>
    %c0_5 = arith.constant 0 : index
    %c0_6 = arith.constant 0 : index
    %4 = vector.load %arg3[%c0_5, %c0_6] : memref<1x64xf32, #tpu.memory_space<vmem>>, vector<1x64xf32>
    %c0_7 = arith.constant 0 : index
    %c0_8 = arith.constant 0 : index
    %5 = vector.load %arg4[%c0_7, %c0_8] : memref<1x64xf32, #tpu.memory_space<vmem>>, vector<1x64xf32>
    %cst = arith.constant dense<0.000000e+00> : vector<32xf32>
    %6 = vector.multi_reduction <add>, %1, %cst [1] : vector<32x64xf32> to vector<32xf32>
    %7 = vector.shape_cast %6 : vector<32xf32> to vector<32x1xf32>
    %cst_9 = arith.constant 6.400000e+01 : f32
    %8 = vector.broadcast %cst_9 : f32 to vector<32x1xf32>
    %9 = arith.divf %7, %8 : vector<32x1xf32>
    %10 = vector.broadcast %9 : vector<32x1xf32> to vector<32x64xf32>
    %11 = arith.subf %1, %10 : vector<32x64xf32>
    %12 = arith.mulf %11, %11 : vector<32x64xf32>
    %cst_10 = arith.constant dense<0.000000e+00> : vector<32xf32>
    %13 = vector.multi_reduction <add>, %12, %cst_10 [1] : vector<32x64xf32> to vector<32xf32>
    %14 = vector.shape_cast %13 : vector<32xf32> to vector<32x1xf32>
    %cst_11 = arith.constant 6.400000e+01 : f32
    %15 = vector.broadcast %cst_11 : f32 to vector<32x1xf32>
    %16 = arith.divf %14, %15 : vector<32x1xf32>
    %cst_12 = arith.constant 9.99999974E-6 : f32
    %17 = vector.broadcast %cst_12 : f32 to vector<32x1xf32>
    %18 = arith.addf %16, %17 : vector<32x1xf32>
    %19 = math.rsqrt %18 : vector<32x1xf32>
    %20 = vector.broadcast %19 : vector<32x1xf32> to vector<32x64xf32>
    %21 = arith.mulf %11, %20 : vector<32x64xf32>
    %22 = vector.broadcast %4 : vector<1x64xf32> to vector<32x64xf32>
    %23 = arith.mulf %21, %22 : vector<32x64xf32>
    %24 = vector.broadcast %5 : vector<1x64xf32> to vector<32x64xf32>
    %25 = arith.addf %23, %24 : vector<32x64xf32>
    %c0_13 = arith.constant 0 : index
    %c0_14 = arith.constant 0 : index
    %26 = vector.load %arg5[%c0_13, %c0_14] : memref<1x64xf32, #tpu.memory_space<vmem>>, vector<1x64xf32>
    %c0_15 = arith.constant 0 : index
    %c0_16 = arith.constant 0 : index
    %27 = vector.load %arg6[%c0_15, %c0_16] : memref<1x64xf32, #tpu.memory_space<vmem>>, vector<1x64xf32>
    %cst_17 = arith.constant dense<0.000000e+00> : vector<128xf32>
    %28 = vector.multi_reduction <add>, %3, %cst_17 [1] : vector<128x64xf32> to vector<128xf32>
    %29 = vector.shape_cast %28 : vector<128xf32> to vector<128x1xf32>
    %cst_18 = arith.constant 6.400000e+01 : f32
    %30 = vector.broadcast %cst_18 : f32 to vector<128x1xf32>
    %31 = arith.divf %29, %30 : vector<128x1xf32>
    %32 = vector.broadcast %31 : vector<128x1xf32> to vector<128x64xf32>
    %33 = arith.subf %3, %32 : vector<128x64xf32>
    %34 = arith.mulf %33, %33 : vector<128x64xf32>
    %cst_19 = arith.constant dense<0.000000e+00> : vector<128xf32>
    %35 = vector.multi_reduction <add>, %34, %cst_19 [1] : vector<128x64xf32> to vector<128xf32>
    %36 = vector.shape_cast %35 : vector<128xf32> to vector<128x1xf32>
    %cst_20 = arith.constant 6.400000e+01 : f32
    %37 = vector.broadcast %cst_20 : f32 to vector<128x1xf32>
    %38 = arith.divf %36, %37 : vector<128x1xf32>
    %cst_21 = arith.constant 9.99999974E-6 : f32
    %39 = vector.broadcast %cst_21 : f32 to vector<128x1xf32>
    %40 = arith.addf %38, %39 : vector<128x1xf32>
    %41 = math.rsqrt %40 : vector<128x1xf32>
    %42 = vector.broadcast %41 : vector<128x1xf32> to vector<128x64xf32>
    %43 = arith.mulf %33, %42 : vector<128x64xf32>
    %44 = vector.broadcast %26 : vector<1x64xf32> to vector<128x64xf32>
    %45 = arith.mulf %43, %44 : vector<128x64xf32>
    %46 = vector.broadcast %27 : vector<1x64xf32> to vector<128x64xf32>
    %47 = arith.addf %45, %46 : vector<128x64xf32>
    %c0_22 = arith.constant 0 : index
    %c0_23 = arith.constant 0 : index
    %48 = vector.load %arg7[%c0_22, %c0_23] : memref<64x64xf32, #tpu.memory_space<vmem>>, vector<64x64xf32>
    %cst_24 = arith.constant dense<0.000000e+00> : vector<32x64xf32>
    %49 = tpu.matmul %25, %48, %cst_24 {dimension_numbers = #tpu.dot_dimension_numbers<[1], [0], [0], [1], [0, 0, 1, 1], [], []>} : vector<32x64xf32>, vector<64x64xf32>, vector<32x64xf32> -> vector<32x64xf32>
    %c0_25 = arith.constant 0 : index
    %c0_26 = arith.constant 0 : index
    %50 = vector.load %arg8[%c0_25, %c0_26] : memref<64x128xf32, #tpu.memory_space<vmem>>, vector<64x128xf32>
    %cst_27 = arith.constant dense<0.000000e+00> : vector<128x128xf32>
    %51 = tpu.matmul %47, %50, %cst_27 {dimension_numbers = #tpu.dot_dimension_numbers<[1], [0], [0], [1], [0, 0, 1, 1], [], []>} : vector<128x64xf32>, vector<64x128xf32>, vector<128x128xf32> -> vector<128x128xf32>
    %52 = vector.extract_strided_slice %51 {offsets = [0, 0], sizes = [128, 64], strides = [1, 1]} : vector<128x128xf32> to vector<128x64xf32>
    %53 = vector.extract_strided_slice %51 {offsets = [0, 64], sizes = [128, 64], strides = [1, 1]} : vector<128x128xf32> to vector<128x64xf32>
    %c0_28 = arith.constant 0 : index
    %c0_29 = arith.constant 0 : index
    %54 = vector.load %arg9[%c0_28, %c0_29] : memref<64x64xf32, #tpu.memory_space<vmem>>, vector<64x64xf32>
    %c0_30 = arith.constant 0 : index
    %c0_31 = arith.constant 0 : index
    %55 = vector.load %arg10[%c0_30, %c0_31] : memref<1x64xf32, #tpu.memory_space<vmem>>, vector<1x64xf32>
    %cst_32 = arith.constant dense<0.000000e+00> : vector<32x128xf32>
    %56 = tpu.matmul %49, %52, %cst_32 {dimension_numbers = #tpu.dot_dimension_numbers<[1], [1], [0], [0], [0, 0, 1, 0], [], []>} : vector<32x64xf32>, vector<128x64xf32>, vector<32x128xf32> -> vector<32x128xf32>
    %cst_33 = arith.constant 1.250000e-01 : f32
    %57 = vector.broadcast %cst_33 : f32 to vector<32x128xf32>
    %58 = arith.mulf %56, %57 : vector<32x128xf32>
    %cst_34 = arith.constant dense<0xFF800000> : vector<32xf32>
    %59 = vector.multi_reduction <maximumf>, %58, %cst_34 [1] : vector<32x128xf32> to vector<32xf32>
    %60 = vector.shape_cast %59 : vector<32xf32> to vector<32x1xf32>
    %61 = vector.broadcast %60 : vector<32x1xf32> to vector<32x128xf32>
    %62 = arith.subf %58, %61 : vector<32x128xf32>
    %63 = math.exp %62 : vector<32x128xf32>
    %cst_35 = arith.constant dense<0.000000e+00> : vector<32xf32>
    %64 = vector.multi_reduction <add>, %63, %cst_35 [1] : vector<32x128xf32> to vector<32xf32>
    %65 = vector.shape_cast %64 : vector<32xf32> to vector<32x1xf32>
    %66 = vector.broadcast %65 : vector<32x1xf32> to vector<32x128xf32>
    %67 = arith.divf %63, %66 : vector<32x128xf32>
    %cst_36 = arith.constant dense<0.000000e+00> : vector<32x64xf32>
    %68 = tpu.matmul %67, %53, %cst_36 {dimension_numbers = #tpu.dot_dimension_numbers<[1], [0], [0], [1], [0, 0, 1, 1], [], []>} : vector<32x128xf32>, vector<128x64xf32>, vector<32x64xf32> -> vector<32x64xf32>
    %cst_37 = arith.constant dense<0.000000e+00> : vector<32x64xf32>
    %69 = tpu.matmul %68, %54, %cst_37 {dimension_numbers = #tpu.dot_dimension_numbers<[1], [0], [0], [1], [0, 0, 1, 1], [], []>} : vector<32x64xf32>, vector<64x64xf32>, vector<32x64xf32> -> vector<32x64xf32>
    %70 = vector.broadcast %55 : vector<1x64xf32> to vector<32x64xf32>
    %71 = arith.addf %69, %70 : vector<32x64xf32>
    %72 = arith.addf %1, %71 : vector<32x64xf32>
    %c0_38 = arith.constant 0 : index
    %c0_39 = arith.constant 0 : index
    %73 = vector.load %arg11[%c0_38, %c0_39] : memref<1x64xf32, #tpu.memory_space<vmem>>, vector<1x64xf32>
    %c0_40 = arith.constant 0 : index
    %c0_41 = arith.constant 0 : index
    %74 = vector.load %arg12[%c0_40, %c0_41] : memref<1x64xf32, #tpu.memory_space<vmem>>, vector<1x64xf32>
    %c0_42 = arith.constant 0 : index
    %c0_43 = arith.constant 0 : index
    %75 = vector.load %arg13[%c0_42, %c0_43] : memref<64x512xf32, #tpu.memory_space<vmem>>, vector<64x512xf32>
    %c0_44 = arith.constant 0 : index
    %c0_45 = arith.constant 0 : index
    %76 = vector.load %arg14[%c0_44, %c0_45] : memref<1x512xf32, #tpu.memory_space<vmem>>, vector<1x512xf32>
    %c0_46 = arith.constant 0 : index
    %c0_47 = arith.constant 0 : index
    %77 = vector.load %arg15[%c0_46, %c0_47] : memref<256x64xf32, #tpu.memory_space<vmem>>, vector<256x64xf32>
    %c0_48 = arith.constant 0 : index
    %c0_49 = arith.constant 0 : index
    %78 = vector.load %arg16[%c0_48, %c0_49] : memref<1x64xf32, #tpu.memory_space<vmem>>, vector<1x64xf32>
    %cst_50 = arith.constant dense<0.000000e+00> : vector<32xf32>
    %79 = vector.multi_reduction <add>, %72, %cst_50 [1] : vector<32x64xf32> to vector<32xf32>
    %80 = vector.shape_cast %79 : vector<32xf32> to vector<32x1xf32>
    %cst_51 = arith.constant 6.400000e+01 : f32
    %81 = vector.broadcast %cst_51 : f32 to vector<32x1xf32>
    %82 = arith.divf %80, %81 : vector<32x1xf32>
    %83 = vector.broadcast %82 : vector<32x1xf32> to vector<32x64xf32>
    %84 = arith.subf %72, %83 : vector<32x64xf32>
    %85 = arith.mulf %84, %84 : vector<32x64xf32>
    %cst_52 = arith.constant dense<0.000000e+00> : vector<32xf32>
    %86 = vector.multi_reduction <add>, %85, %cst_52 [1] : vector<32x64xf32> to vector<32xf32>
    %87 = vector.shape_cast %86 : vector<32xf32> to vector<32x1xf32>
    %cst_53 = arith.constant 6.400000e+01 : f32
    %88 = vector.broadcast %cst_53 : f32 to vector<32x1xf32>
    %89 = arith.divf %87, %88 : vector<32x1xf32>
    %cst_54 = arith.constant 9.99999974E-6 : f32
    %90 = vector.broadcast %cst_54 : f32 to vector<32x1xf32>
    %91 = arith.addf %89, %90 : vector<32x1xf32>
    %92 = math.rsqrt %91 : vector<32x1xf32>
    %93 = vector.broadcast %92 : vector<32x1xf32> to vector<32x64xf32>
    %94 = arith.mulf %84, %93 : vector<32x64xf32>
    %95 = vector.broadcast %73 : vector<1x64xf32> to vector<32x64xf32>
    %96 = arith.mulf %94, %95 : vector<32x64xf32>
    %97 = vector.broadcast %74 : vector<1x64xf32> to vector<32x64xf32>
    %98 = arith.addf %96, %97 : vector<32x64xf32>
    %cst_55 = arith.constant dense<0.000000e+00> : vector<32x512xf32>
    %99 = tpu.matmul %98, %75, %cst_55 {dimension_numbers = #tpu.dot_dimension_numbers<[1], [0], [0], [1], [0, 0, 1, 1], [], []>} : vector<32x64xf32>, vector<64x512xf32>, vector<32x512xf32> -> vector<32x512xf32>
    %100 = vector.broadcast %76 : vector<1x512xf32> to vector<32x512xf32>
    %101 = arith.addf %99, %100 : vector<32x512xf32>
    %102 = vector.extract_strided_slice %101 {offsets = [0, 0], sizes = [32, 256], strides = [1, 1]} : vector<32x512xf32> to vector<32x256xf32>
    %103 = vector.extract_strided_slice %101 {offsets = [0, 256], sizes = [32, 256], strides = [1, 1]} : vector<32x512xf32> to vector<32x256xf32>
    %cst_56 = arith.constant 5.000000e-01 : f32
    %104 = vector.broadcast %cst_56 : f32 to vector<32x256xf32>
    %105 = arith.mulf %104, %103 : vector<32x256xf32>
    %cst_57 = arith.constant 0.707106769 : f32
    %106 = vector.broadcast %cst_57 : f32 to vector<32x256xf32>
    %107 = arith.mulf %103, %106 : vector<32x256xf32>
    %108 = math.absf %107 : vector<32x256xf32>
    %cst_58 = arith.constant 0.327591091 : f32
    %109 = vector.broadcast %cst_58 : f32 to vector<32x256xf32>
    %110 = arith.mulf %109, %108 : vector<32x256xf32>
    %cst_59 = arith.constant 1.000000e+00 : f32
    %111 = vector.broadcast %cst_59 : f32 to vector<32x256xf32>
    %112 = arith.addf %111, %110 : vector<32x256xf32>
    %cst_60 = arith.constant 1.000000e+00 : f32
    %113 = vector.broadcast %cst_60 : f32 to vector<32x256xf32>
    %114 = arith.divf %113, %112 : vector<32x256xf32>
    %cst_61 = arith.constant 1.06140542 : f32
    %115 = vector.broadcast %cst_61 : f32 to vector<32x256xf32>
    %116 = arith.mulf %114, %115 : vector<32x256xf32>
    %cst_62 = arith.constant -1.45315206 : f32
    %117 = vector.broadcast %cst_62 : f32 to vector<32x256xf32>
    %118 = arith.addf %117, %116 : vector<32x256xf32>
    %119 = arith.mulf %114, %118 : vector<32x256xf32>
    %cst_63 = arith.constant 1.42141378 : f32
    %120 = vector.broadcast %cst_63 : f32 to vector<32x256xf32>
    %121 = arith.addf %120, %119 : vector<32x256xf32>
    %122 = arith.mulf %114, %121 : vector<32x256xf32>
    %cst_64 = arith.constant -0.284496725 : f32
    %123 = vector.broadcast %cst_64 : f32 to vector<32x256xf32>
    %124 = arith.addf %123, %122 : vector<32x256xf32>
    %125 = arith.mulf %114, %124 : vector<32x256xf32>
    %cst_65 = arith.constant 0.254829586 : f32
    %126 = vector.broadcast %cst_65 : f32 to vector<32x256xf32>
    %127 = arith.addf %126, %125 : vector<32x256xf32>
    %128 = arith.mulf %114, %127 : vector<32x256xf32>
    %cst_66 = arith.constant 0.000000e+00 : f32
    %129 = vector.broadcast %cst_66 : f32 to vector<32x256xf32>
    %130 = arith.subf %129, %107 : vector<32x256xf32>
    %131 = arith.mulf %130, %107 : vector<32x256xf32>
    %132 = math.exp %131 : vector<32x256xf32>
    %133 = arith.mulf %128, %132 : vector<32x256xf32>
    %cst_67 = arith.constant 1.000000e+00 : f32
    %134 = vector.broadcast %cst_67 : f32 to vector<32x256xf32>
    %135 = arith.subf %134, %133 : vector<32x256xf32>
    %cst_68 = arith.constant 0.000000e+00 : f32
    %136 = vector.broadcast %cst_68 : f32 to vector<32x256xf32>
    %137 = arith.cmpf oge, %107, %136 : vector<32x256xf32>
    %cst_69 = arith.constant 0.000000e+00 : f32
    %138 = vector.broadcast %cst_69 : f32 to vector<32x256xf32>
    %139 = arith.subf %138, %135 : vector<32x256xf32>
    %140 = arith.select %137, %135, %139 : vector<32x256xi1>, vector<32x256xf32>
    %cst_70 = arith.constant 1.000000e+00 : f32
    %141 = vector.broadcast %cst_70 : f32 to vector<32x256xf32>
    %142 = arith.addf %141, %140 : vector<32x256xf32>
    %143 = arith.mulf %105, %142 : vector<32x256xf32>
    %144 = arith.mulf %102, %143 : vector<32x256xf32>
    %cst_71 = arith.constant dense<0.000000e+00> : vector<32x64xf32>
    %145 = tpu.matmul %144, %77, %cst_71 {dimension_numbers = #tpu.dot_dimension_numbers<[1], [0], [0], [1], [0, 0, 1, 1], [], []>} : vector<32x256xf32>, vector<256x64xf32>, vector<32x64xf32> -> vector<32x64xf32>
    %146 = vector.broadcast %78 : vector<1x64xf32> to vector<32x64xf32>
    %147 = arith.addf %145, %146 : vector<32x64xf32>
    %148 = arith.addf %72, %147 : vector<32x64xf32>
    %c0_72 = arith.constant 0 : index
    %c0_73 = arith.constant 0 : index
    %149 = vector.load %arg17[%c0_72, %c0_73] : memref<64x32xf32, #tpu.memory_space<vmem>>, vector<64x32xf32>
    %cst_74 = arith.constant dense<0.000000e+00> : vector<32x32xf32>
    %150 = tpu.matmul %148, %149, %cst_74 {dimension_numbers = #tpu.dot_dimension_numbers<[1], [0], [0], [1], [0, 0, 1, 1], [], []>} : vector<32x64xf32>, vector<64x32xf32>, vector<32x32xf32> -> vector<32x32xf32>
    %c0_75 = arith.constant 0 : index
    %c0_76 = arith.constant 0 : index
    %151 = vector.load %arg18[%c0_75, %c0_76] : memref<1x32xf32, #tpu.memory_space<vmem>>, vector<1x32xf32>
    %152 = vector.broadcast %151 : vector<1x32xf32> to vector<32x32xf32>
    %153 = arith.addf %150, %152 : vector<32x32xf32>
    %c0_77 = arith.constant 0 : index
    %c0_78 = arith.constant 0 : index
    %c0_79 = arith.constant 0 : index
    %154 = vector.load %arg19[%c0_77, %c0_78, %c0_79] : memref<1x32x32xf32, #tpu.memory_space<vmem>>, vector<1x32x32xf32>
    %155 = vector.shape_cast %154 : vector<1x32x32xf32> to vector<32x32xf32>
    %156 = vector.shape_cast %153 : vector<32x32xf32> to vector<1x32x32xf32>
    tpu.vector_store %arg19[%c0_77, %c0_78, %c0_79], %156 {strides = array<i32>} : memref<1x32x32xf32, #tpu.memory_space<vmem>>, vector<1x32x32xf32>,
    %157 = vector.extract_strided_slice %153 {offsets = [0, 0], sizes = [32, 16], strides = [1, 1]} : vector<32x32xf32> to vector<32x16xf32>
    %158 = vector.extract_strided_slice %153 {offsets = [0, 16], sizes = [32, 16], strides = [1, 1]} : vector<32x32xf32> to vector<32x16xf32>
    %cst_80 = arith.constant -3.000000e+01 : f32
    %cst_81 = arith.constant 2.000000e+01 : f32
    %159 = vector.broadcast %cst_80 : f32 to vector<32x16xf32>
    %160 = arith.maximumf %159, %158 : vector<32x16xf32>
    %161 = vector.broadcast %cst_81 : f32 to vector<32x16xf32>
    %162 = arith.minimumf %161, %160 : vector<32x16xf32>
    %163 = arith.mulf %157, %157 : vector<32x16xf32>
    %164 = math.exp %162 : vector<32x16xf32>
    %165 = arith.addf %163, %164 : vector<32x16xf32>
    %cst_82 = arith.constant 1.000000e+00 : f32
    %166 = vector.broadcast %cst_82 : f32 to vector<32x16xf32>
    %167 = arith.subf %165, %166 : vector<32x16xf32>
    %168 = arith.subf %167, %162 : vector<32x16xf32>
    %cst_83 = arith.constant dense<0.000000e+00> : vector<32xf32>
    %169 = vector.multi_reduction <add>, %168, %cst_83 [1] : vector<32x16xf32> to vector<32xf32>
    %170 = vector.shape_cast %169 : vector<32xf32> to vector<32x1xf32>
    %cst_84 = arith.constant dense<0.000000e+00> : vector<1xf32>
    %171 = vector.multi_reduction <add>, %170, %cst_84 [0] : vector<32x1xf32> to vector<1xf32>
    %172 = vector.shape_cast %171 : vector<1xf32> to vector<1x1xf32>
    %cst_85 = arith.constant 9.765625E-4 : f32
    %173 = vector.broadcast %cst_85 : f32 to vector<1x1xf32>
    %174 = arith.mulf %172, %173 : vector<1x1xf32>
    %175 = vector.shape_cast %174 : vector<1x1xf32> to vector<1x1xf32>
    %176 = vector.broadcast %175 : vector<1x1xf32> to vector<1x128xf32>
    %c0_86 = arith.constant 0 : index
    %c0_87 = arith.constant 0 : index
    %c0_88 = arith.constant 0 : index
    %177 = vector.load %arg20[%c0_86, %c0_87, %c0_88] : memref<1x1x128xf32, #tpu.memory_space<vmem>>, vector<1x1x128xf32>
    %178 = vector.shape_cast %177 : vector<1x1x128xf32> to vector<1x128xf32>
    %179 = vector.shape_cast %176 : vector<1x128xf32> to vector<1x1x128xf32>
    tpu.vector_store %arg20[%c0_86, %c0_87, %c0_88], %179 {strides = array<i32>} : memref<1x1x128xf32, #tpu.memory_space<vmem>>, vector<1x1x128xf32>,
    return
  }
  func.func @transform_0(%arg0: i32) -> (i32, i32, i32) {
    %c0_i32 = arith.constant 0 : i32
    %c0_i32_0 = arith.constant 0 : i32
    %c0_i32_1 = arith.constant 0 : i32
    return %arg0, %c0_i32, %c0_i32_0 : i32, i32, i32
  }
  func.func @transform_1(%arg0: i32) -> (i32, i32, i32) {
    %c0_i32 = arith.constant 0 : i32
    %c0_i32_0 = arith.constant 0 : i32
    %c0_i32_1 = arith.constant 0 : i32
    return %arg0, %c0_i32, %c0_i32_0 : i32, i32, i32
  }
  func.func @transform_2(%arg0: i32) -> (i32, i32) {
    %c0_i32 = arith.constant 0 : i32
    %c0_i32_0 = arith.constant 0 : i32
    %c0_i32_1 = arith.constant 0 : i32
    return %c0_i32, %c0_i32_0 : i32, i32
  }
  func.func @transform_3(%arg0: i32) -> (i32, i32) {
    %c0_i32 = arith.constant 0 : i32
    %c0_i32_0 = arith.constant 0 : i32
    %c0_i32_1 = arith.constant 0 : i32
    return %c0_i32, %c0_i32_0 : i32, i32
  }
  func.func @transform_4(%arg0: i32) -> (i32, i32) {
    %c0_i32 = arith.constant 0 : i32
    %c0_i32_0 = arith.constant 0 : i32
    %c0_i32_1 = arith.constant 0 : i32
    return %c0_i32, %c0_i32_0 : i32, i32
  }
  func.func @transform_5(%arg0: i32) -> (i32, i32) {
    %c0_i32 = arith.constant 0 : i32
    %c0_i32_0 = arith.constant 0 : i32
    %c0_i32_1 = arith.constant 0 : i32
    return %c0_i32, %c0_i32_0 : i32, i32
  }
  func.func @transform_6(%arg0: i32) -> (i32, i32) {
    %c0_i32 = arith.constant 0 : i32
    %c0_i32_0 = arith.constant 0 : i32
    %c0_i32_1 = arith.constant 0 : i32
    return %c0_i32, %c0_i32_0 : i32, i32
  }
  func.func @transform_7(%arg0: i32) -> (i32, i32) {
    %c0_i32 = arith.constant 0 : i32
    %c0_i32_0 = arith.constant 0 : i32
    %c0_i32_1 = arith.constant 0 : i32
    return %c0_i32, %c0_i32_0 : i32, i32
  }
  func.func @transform_8(%arg0: i32) -> (i32, i32) {
    %c0_i32 = arith.constant 0 : i32
    %c0_i32_0 = arith.constant 0 : i32
    %c0_i32_1 = arith.constant 0 : i32
    return %c0_i32, %c0_i32_0 : i32, i32
  }
  func.func @transform_9(%arg0: i32) -> (i32, i32) {
    %c0_i32 = arith.constant 0 : i32
    %c0_i32_0 = arith.constant 0 : i32
    %c0_i32_1 = arith.constant 0 : i32
    return %c0_i32, %c0_i32_0 : i32, i32
  }
  func.func @transform_10(%arg0: i32) -> (i32, i32) {
    %c0_i32 = arith.constant 0 : i32
    %c0_i32_0 = arith.constant 0 : i32
    %c0_i32_1 = arith.constant 0 : i32
    return %c0_i32, %c0_i32_0 : i32, i32
  }
  func.func @transform_11(%arg0: i32) -> (i32, i32) {
    %c0_i32 = arith.constant 0 : i32
    %c0_i32_0 = arith.constant 0 : i32
    %c0_i32_1 = arith.constant 0 : i32
    return %c0_i32, %c0_i32_0 : i32, i32
  }
  func.func @transform_12(%arg0: i32) -> (i32, i32) {
    %c0_i32 = arith.constant 0 : i32
    %c0_i32_0 = arith.constant 0 : i32
    %c0_i32_1 = arith.constant 0 : i32
    return %c0_i32, %c0_i32_0 : i32, i32
  }
  func.func @transform_13(%arg0: i32) -> (i32, i32) {
    %c0_i32 = arith.constant 0 : i32
    %c0_i32_0 = arith.constant 0 : i32
    %c0_i32_1 = arith.constant 0 : i32
    return %c0_i32, %c0_i32_0 : i32, i32
  }
  func.func @transform_14(%arg0: i32) -> (i32, i32) {
    %c0_i32 = arith.constant 0 : i32
    %c0_i32_0 = arith.constant 0 : i32
    %c0_i32_1 = arith.constant 0 : i32
    return %c0_i32, %c0_i32_0 : i32, i32
  }
  func.func @transform_15(%arg0: i32) -> (i32, i32) {
    %c0_i32 = arith.constant 0 : i32
    %c0_i32_0 = arith.constant 0 : i32
    %c0_i32_1 = arith.constant 0 : i32
    return %c0_i32, %c0_i32_0 : i32, i32
  }
  func.func @transform_16(%arg0: i32) -> (i32, i32) {
    %c0_i32 = arith.constant 0 : i32
    %c0_i32_0 = arith.constant 0 : i32
    %c0_i32_1 = arith.constant 0 : i32
    return %c0_i32, %c0_i32_0 : i32, i32
  }
  func.func @transform_17(%arg0: i32) -> (i32, i32) {
    %c0_i32 = arith.constant 0 : i32
    %c0_i32_0 = arith.constant 0 : i32
    %c0_i32_1 = arith.constant 0 : i32
    return %c0_i32, %c0_i32_0 : i32, i32
  }
  func.func @transform_18(%arg0: i32) -> (i32, i32, i32) {
    %c0_i32 = arith.constant 0 : i32
    %c0_i32_0 = arith.constant 0 : i32
    %c0_i32_1 = arith.constant 0 : i32
    return %arg0, %c0_i32, %c0_i32_0 : i32, i32, i32
  }
  func.func @transform_19(%arg0: i32) -> (i32, i32, i32) {
    %c0_i32 = arith.constant 0 : i32
    %c0_i32_0 = arith.constant 0 : i32
    %c0_i32_1 = arith.constant 0 : i32
    return %arg0, %c0_i32, %c0_i32_0 : i32, i32, i32
  }
}

module attributes {stable_mosaic.version = 11 : i64} {
  func.func @_linear_bias_kernel(%arg0: i32, %arg1: memref<64x16xf32, #tpu.memory_space<vmem>>, %arg2: memref<16x64xf32, #tpu.memory_space<vmem>>, %arg3: memref<1x64xf32, #tpu.memory_space<vmem>>, %arg4: memref<64x64xf32, #tpu.memory_space<vmem>>) attributes {dimension_semantics = [#tpu.dimension_semantics<arbitrary>], iteration_bounds = array<i64: 1>, scalar_prefetch = 0 : i64, scratch_operands = 0 : i64, tpu.core_type = #tpu.core_type<tc>, window_params = [{transform_indices = @transform_0, window_bounds = array<i64: 64, 16>}, {pipeline_mode = #tpu.pipeline_mode<synchronous>, transform_indices = @transform_1, window_bounds = array<i64: 16, 64>}, {pipeline_mode = #tpu.pipeline_mode<synchronous>, transform_indices = @transform_2, window_bounds = array<i64: 1, 64>}, {transform_indices = @transform_3, window_bounds = array<i64: 64, 64>}]} {
    %c0 = arith.constant 0 : index
    %c0_0 = arith.constant 0 : index
    %0 = vector.load %arg1[%c0, %c0_0] : memref<64x16xf32, #tpu.memory_space<vmem>>, vector<64x16xf32>
    %c0_1 = arith.constant 0 : index
    %c0_2 = arith.constant 0 : index
    %1 = vector.load %arg2[%c0_1, %c0_2] : memref<16x64xf32, #tpu.memory_space<vmem>>, vector<16x64xf32>
    %cst = arith.constant dense<0.000000e+00> : vector<64x64xf32>
    %2 = tpu.matmul %0, %1, %cst {dimension_numbers = #tpu.dot_dimension_numbers<[1], [0], [0], [1], [0, 0, 1, 1], [], []>} : vector<64x16xf32>, vector<16x64xf32>, vector<64x64xf32> -> vector<64x64xf32>
    %c0_3 = arith.constant 0 : index
    %c0_4 = arith.constant 0 : index
    %3 = vector.load %arg3[%c0_3, %c0_4] : memref<1x64xf32, #tpu.memory_space<vmem>>, vector<1x64xf32>
    %4 = vector.broadcast %3 : vector<1x64xf32> to vector<64x64xf32>
    %5 = arith.addf %2, %4 : vector<64x64xf32>
    %c0_5 = arith.constant 0 : index
    %c0_6 = arith.constant 0 : index
    %6 = vector.load %arg4[%c0_5, %c0_6] : memref<64x64xf32, #tpu.memory_space<vmem>>, vector<64x64xf32>
    tpu.vector_store %arg4[%c0_5, %c0_6], %5 {strides = array<i32>} : memref<64x64xf32, #tpu.memory_space<vmem>>, vector<64x64xf32>,
    return
  }
  func.func @transform_0(%arg0: i32) -> (i32, i32) {
    %c0_i32 = arith.constant 0 : i32
    %c0_i32_0 = arith.constant 0 : i32
    return %arg0, %c0_i32 : i32, i32
  }
  func.func @transform_1(%arg0: i32) -> (i32, i32) {
    %c0_i32 = arith.constant 0 : i32
    %c0_i32_0 = arith.constant 0 : i32
    %c0_i32_1 = arith.constant 0 : i32
    return %c0_i32, %c0_i32_0 : i32, i32
  }
  func.func @transform_2(%arg0: i32) -> (i32, i32) {
    %c0_i32 = arith.constant 0 : i32
    %c0_i32_0 = arith.constant 0 : i32
    %c0_i32_1 = arith.constant 0 : i32
    return %c0_i32, %c0_i32_0 : i32, i32
  }
  func.func @transform_3(%arg0: i32) -> (i32, i32) {
    %c0_i32 = arith.constant 0 : i32
    %c0_i32_0 = arith.constant 0 : i32
    return %arg0, %c0_i32 : i32, i32
  }
}

module attributes {stable_mosaic.version = 11 : i64} {
  func.func @_decoder_layer_kernel(%arg0: i32, %arg1: memref<1x32x64xf32, #tpu.memory_space<vmem>>, %arg2: memref<1x64xf32, #tpu.memory_space<vmem>>, %arg3: memref<1x64xf32, #tpu.memory_space<vmem>>, %arg4: memref<64x192xf32, #tpu.memory_space<vmem>>, %arg5: memref<64x64xf32, #tpu.memory_space<vmem>>, %arg6: memref<1x64xf32, #tpu.memory_space<vmem>>, %arg7: memref<1x64xf32, #tpu.memory_space<vmem>>, %arg8: memref<1x64xf32, #tpu.memory_space<vmem>>, %arg9: memref<64x512xf32, #tpu.memory_space<vmem>>, %arg10: memref<1x512xf32, #tpu.memory_space<vmem>>, %arg11: memref<256x64xf32, #tpu.memory_space<vmem>>, %arg12: memref<1x64xf32, #tpu.memory_space<vmem>>, %arg13: memref<1x32x64xf32, #tpu.memory_space<vmem>>) attributes {dimension_semantics = [#tpu.dimension_semantics<parallel>], iteration_bounds = array<i64: 2>, scalar_prefetch = 0 : i64, scratch_operands = 0 : i64, tpu.core_type = #tpu.core_type<tc>, window_params = [{transform_indices = @transform_0, window_bounds = array<i64: 1, 32, 64>}, {pipeline_mode = #tpu.pipeline_mode<synchronous>, transform_indices = @transform_1, window_bounds = array<i64: 1, 64>}, {pipeline_mode = #tpu.pipeline_mode<synchronous>, transform_indices = @transform_2, window_bounds = array<i64: 1, 64>}, {pipeline_mode = #tpu.pipeline_mode<synchronous>, transform_indices = @transform_3, window_bounds = array<i64: 64, 192>}, {pipeline_mode = #tpu.pipeline_mode<synchronous>, transform_indices = @transform_4, window_bounds = array<i64: 64, 64>}, {pipeline_mode = #tpu.pipeline_mode<synchronous>, transform_indices = @transform_5, window_bounds = array<i64: 1, 64>}, {pipeline_mode = #tpu.pipeline_mode<synchronous>, transform_indices = @transform_6, window_bounds = array<i64: 1, 64>}, {pipeline_mode = #tpu.pipeline_mode<synchronous>, transform_indices = @transform_7, window_bounds = array<i64: 1, 64>}, {pipeline_mode = #tpu.pipeline_mode<synchronous>, transform_indices = @transform_8, window_bounds = array<i64: 64, 512>}, {pipeline_mode = #tpu.pipeline_mode<synchronous>, transform_indices = @transform_9, window_bounds = array<i64: 1, 512>}, {pipeline_mode = #tpu.pipeline_mode<synchronous>, transform_indices = @transform_10, window_bounds = array<i64: 256, 64>}, {pipeline_mode = #tpu.pipeline_mode<synchronous>, transform_indices = @transform_11, window_bounds = array<i64: 1, 64>}, {transform_indices = @transform_12, window_bounds = array<i64: 1, 32, 64>}]} {
    %c0 = arith.constant 0 : index
    %c0_0 = arith.constant 0 : index
    %c0_1 = arith.constant 0 : index
    %0 = vector.load %arg1[%c0, %c0_0, %c0_1] : memref<1x32x64xf32, #tpu.memory_space<vmem>>, vector<1x32x64xf32>
    %1 = vector.shape_cast %0 : vector<1x32x64xf32> to vector<32x64xf32>
    %c0_2 = arith.constant 0 : index
    %c0_3 = arith.constant 0 : index
    %2 = vector.load %arg2[%c0_2, %c0_3] : memref<1x64xf32, #tpu.memory_space<vmem>>, vector<1x64xf32>
    %c0_4 = arith.constant 0 : index
    %c0_5 = arith.constant 0 : index
    %3 = vector.load %arg3[%c0_4, %c0_5] : memref<1x64xf32, #tpu.memory_space<vmem>>, vector<1x64xf32>
    %cst = arith.constant dense<0.000000e+00> : vector<32xf32>
    %4 = vector.multi_reduction <add>, %1, %cst [1] : vector<32x64xf32> to vector<32xf32>
    %5 = vector.shape_cast %4 : vector<32xf32> to vector<32x1xf32>
    %cst_6 = arith.constant 6.400000e+01 : f32
    %6 = vector.broadcast %cst_6 : f32 to vector<32x1xf32>
    %7 = arith.divf %5, %6 : vector<32x1xf32>
    %8 = vector.broadcast %7 : vector<32x1xf32> to vector<32x64xf32>
    %9 = arith.subf %1, %8 : vector<32x64xf32>
    %10 = arith.mulf %9, %9 : vector<32x64xf32>
    %cst_7 = arith.constant dense<0.000000e+00> : vector<32xf32>
    %11 = vector.multi_reduction <add>, %10, %cst_7 [1] : vector<32x64xf32> to vector<32xf32>
    %12 = vector.shape_cast %11 : vector<32xf32> to vector<32x1xf32>
    %cst_8 = arith.constant 6.400000e+01 : f32
    %13 = vector.broadcast %cst_8 : f32 to vector<32x1xf32>
    %14 = arith.divf %12, %13 : vector<32x1xf32>
    %cst_9 = arith.constant 9.99999974E-6 : f32
    %15 = vector.broadcast %cst_9 : f32 to vector<32x1xf32>
    %16 = arith.addf %14, %15 : vector<32x1xf32>
    %17 = math.rsqrt %16 : vector<32x1xf32>
    %18 = vector.broadcast %17 : vector<32x1xf32> to vector<32x64xf32>
    %19 = arith.mulf %9, %18 : vector<32x64xf32>
    %20 = vector.broadcast %2 : vector<1x64xf32> to vector<32x64xf32>
    %21 = arith.mulf %19, %20 : vector<32x64xf32>
    %22 = vector.broadcast %3 : vector<1x64xf32> to vector<32x64xf32>
    %23 = arith.addf %21, %22 : vector<32x64xf32>
    %c0_10 = arith.constant 0 : index
    %c0_11 = arith.constant 0 : index
    %24 = vector.load %arg4[%c0_10, %c0_11] : memref<64x192xf32, #tpu.memory_space<vmem>>, vector<64x192xf32>
    %cst_12 = arith.constant dense<0.000000e+00> : vector<32x192xf32>
    %25 = tpu.matmul %23, %24, %cst_12 {dimension_numbers = #tpu.dot_dimension_numbers<[1], [0], [0], [1], [0, 0, 1, 1], [], []>} : vector<32x64xf32>, vector<64x192xf32>, vector<32x192xf32> -> vector<32x192xf32>
    %26 = vector.extract_strided_slice %25 {offsets = [0, 0], sizes = [32, 64], strides = [1, 1]} : vector<32x192xf32> to vector<32x64xf32>
    %27 = vector.extract_strided_slice %25 {offsets = [0, 64], sizes = [32, 64], strides = [1, 1]} : vector<32x192xf32> to vector<32x64xf32>
    %28 = vector.extract_strided_slice %25 {offsets = [0, 128], sizes = [32, 64], strides = [1, 1]} : vector<32x192xf32> to vector<32x64xf32>
    %c0_13 = arith.constant 0 : index
    %c0_14 = arith.constant 0 : index
    %29 = vector.load %arg5[%c0_13, %c0_14] : memref<64x64xf32, #tpu.memory_space<vmem>>, vector<64x64xf32>
    %c0_15 = arith.constant 0 : index
    %c0_16 = arith.constant 0 : index
    %30 = vector.load %arg6[%c0_15, %c0_16] : memref<1x64xf32, #tpu.memory_space<vmem>>, vector<1x64xf32>
    %31 = vector.extract_strided_slice %26 {offsets = [0, 0], sizes = [32, 8], strides = [1, 1]} : vector<32x64xf32> to vector<32x8xf32>
    %32 = vector.extract_strided_slice %27 {offsets = [0, 0], sizes = [32, 8], strides = [1, 1]} : vector<32x64xf32> to vector<32x8xf32>
    %33 = vector.extract_strided_slice %28 {offsets = [0, 0], sizes = [32, 8], strides = [1, 1]} : vector<32x64xf32> to vector<32x8xf32>
    %cst_17 = arith.constant dense<0.000000e+00> : vector<32x32xf32>
    %34 = tpu.matmul %31, %32, %cst_17 {dimension_numbers = #tpu.dot_dimension_numbers<[1], [1], [0], [0], [0, 0, 1, 0], [], []>} : vector<32x8xf32>, vector<32x8xf32>, vector<32x32xf32> -> vector<32x32xf32>
    %cst_18 = arith.constant 0.353553385 : f32
    %35 = vector.broadcast %cst_18 : f32 to vector<32x32xf32>
    %36 = arith.mulf %34, %35 : vector<32x32xf32>
    %cst_19 = arith.constant dense<0xFF800000> : vector<32xf32>
    %37 = vector.multi_reduction <maximumf>, %36, %cst_19 [1] : vector<32x32xf32> to vector<32xf32>
    %38 = vector.shape_cast %37 : vector<32xf32> to vector<32x1xf32>
    %39 = vector.broadcast %38 : vector<32x1xf32> to vector<32x32xf32>
    %40 = arith.subf %36, %39 : vector<32x32xf32>
    %41 = math.exp %40 : vector<32x32xf32>
    %cst_20 = arith.constant dense<0.000000e+00> : vector<32xf32>
    %42 = vector.multi_reduction <add>, %41, %cst_20 [1] : vector<32x32xf32> to vector<32xf32>
    %43 = vector.shape_cast %42 : vector<32xf32> to vector<32x1xf32>
    %44 = vector.broadcast %43 : vector<32x1xf32> to vector<32x32xf32>
    %45 = arith.divf %41, %44 : vector<32x32xf32>
    %cst_21 = arith.constant dense<0.000000e+00> : vector<32x8xf32>
    %46 = tpu.matmul %45, %33, %cst_21 {dimension_numbers = #tpu.dot_dimension_numbers<[1], [0], [0], [1], [0, 0, 1, 1], [], []>} : vector<32x32xf32>, vector<32x8xf32>, vector<32x8xf32> -> vector<32x8xf32>
    %47 = vector.extract_strided_slice %26 {offsets = [0, 8], sizes = [32, 8], strides = [1, 1]} : vector<32x64xf32> to vector<32x8xf32>
    %48 = vector.extract_strided_slice %27 {offsets = [0, 8], sizes = [32, 8], strides = [1, 1]} : vector<32x64xf32> to vector<32x8xf32>
    %49 = vector.extract_strided_slice %28 {offsets = [0, 8], sizes = [32, 8], strides = [1, 1]} : vector<32x64xf32> to vector<32x8xf32>
    %cst_22 = arith.constant dense<0.000000e+00> : vector<32x32xf32>
    %50 = tpu.matmul %47, %48, %cst_22 {dimension_numbers = #tpu.dot_dimension_numbers<[1], [1], [0], [0], [0, 0, 1, 0], [], []>} : vector<32x8xf32>, vector<32x8xf32>, vector<32x32xf32> -> vector<32x32xf32>
    %cst_23 = arith.constant 0.353553385 : f32
    %51 = vector.broadcast %cst_23 : f32 to vector<32x32xf32>
    %52 = arith.mulf %50, %51 : vector<32x32xf32>
    %cst_24 = arith.constant dense<0xFF800000> : vector<32xf32>
    %53 = vector.multi_reduction <maximumf>, %52, %cst_24 [1] : vector<32x32xf32> to vector<32xf32>
    %54 = vector.shape_cast %53 : vector<32xf32> to vector<32x1xf32>
    %55 = vector.broadcast %54 : vector<32x1xf32> to vector<32x32xf32>
    %56 = arith.subf %52, %55 : vector<32x32xf32>
    %57 = math.exp %56 : vector<32x32xf32>
    %cst_25 = arith.constant dense<0.000000e+00> : vector<32xf32>
    %58 = vector.multi_reduction <add>, %57, %cst_25 [1] : vector<32x32xf32> to vector<32xf32>
    %59 = vector.shape_cast %58 : vector<32xf32> to vector<32x1xf32>
    %60 = vector.broadcast %59 : vector<32x1xf32> to vector<32x32xf32>
    %61 = arith.divf %57, %60 : vector<32x32xf32>
    %cst_26 = arith.constant dense<0.000000e+00> : vector<32x8xf32>
    %62 = tpu.matmul %61, %49, %cst_26 {dimension_numbers = #tpu.dot_dimension_numbers<[1], [0], [0], [1], [0, 0, 1, 1], [], []>} : vector<32x32xf32>, vector<32x8xf32>, vector<32x8xf32> -> vector<32x8xf32>
    %63 = vector.extract_strided_slice %26 {offsets = [0, 16], sizes = [32, 8], strides = [1, 1]} : vector<32x64xf32> to vector<32x8xf32>
    %64 = vector.extract_strided_slice %27 {offsets = [0, 16], sizes = [32, 8], strides = [1, 1]} : vector<32x64xf32> to vector<32x8xf32>
    %65 = vector.extract_strided_slice %28 {offsets = [0, 16], sizes = [32, 8], strides = [1, 1]} : vector<32x64xf32> to vector<32x8xf32>
    %cst_27 = arith.constant dense<0.000000e+00> : vector<32x32xf32>
    %66 = tpu.matmul %63, %64, %cst_27 {dimension_numbers = #tpu.dot_dimension_numbers<[1], [1], [0], [0], [0, 0, 1, 0], [], []>} : vector<32x8xf32>, vector<32x8xf32>, vector<32x32xf32> -> vector<32x32xf32>
    %cst_28 = arith.constant 0.353553385 : f32
    %67 = vector.broadcast %cst_28 : f32 to vector<32x32xf32>
    %68 = arith.mulf %66, %67 : vector<32x32xf32>
    %cst_29 = arith.constant dense<0xFF800000> : vector<32xf32>
    %69 = vector.multi_reduction <maximumf>, %68, %cst_29 [1] : vector<32x32xf32> to vector<32xf32>
    %70 = vector.shape_cast %69 : vector<32xf32> to vector<32x1xf32>
    %71 = vector.broadcast %70 : vector<32x1xf32> to vector<32x32xf32>
    %72 = arith.subf %68, %71 : vector<32x32xf32>
    %73 = math.exp %72 : vector<32x32xf32>
    %cst_30 = arith.constant dense<0.000000e+00> : vector<32xf32>
    %74 = vector.multi_reduction <add>, %73, %cst_30 [1] : vector<32x32xf32> to vector<32xf32>
    %75 = vector.shape_cast %74 : vector<32xf32> to vector<32x1xf32>
    %76 = vector.broadcast %75 : vector<32x1xf32> to vector<32x32xf32>
    %77 = arith.divf %73, %76 : vector<32x32xf32>
    %cst_31 = arith.constant dense<0.000000e+00> : vector<32x8xf32>
    %78 = tpu.matmul %77, %65, %cst_31 {dimension_numbers = #tpu.dot_dimension_numbers<[1], [0], [0], [1], [0, 0, 1, 1], [], []>} : vector<32x32xf32>, vector<32x8xf32>, vector<32x8xf32> -> vector<32x8xf32>
    %79 = vector.extract_strided_slice %26 {offsets = [0, 24], sizes = [32, 8], strides = [1, 1]} : vector<32x64xf32> to vector<32x8xf32>
    %80 = vector.extract_strided_slice %27 {offsets = [0, 24], sizes = [32, 8], strides = [1, 1]} : vector<32x64xf32> to vector<32x8xf32>
    %81 = vector.extract_strided_slice %28 {offsets = [0, 24], sizes = [32, 8], strides = [1, 1]} : vector<32x64xf32> to vector<32x8xf32>
    %cst_32 = arith.constant dense<0.000000e+00> : vector<32x32xf32>
    %82 = tpu.matmul %79, %80, %cst_32 {dimension_numbers = #tpu.dot_dimension_numbers<[1], [1], [0], [0], [0, 0, 1, 0], [], []>} : vector<32x8xf32>, vector<32x8xf32>, vector<32x32xf32> -> vector<32x32xf32>
    %cst_33 = arith.constant 0.353553385 : f32
    %83 = vector.broadcast %cst_33 : f32 to vector<32x32xf32>
    %84 = arith.mulf %82, %83 : vector<32x32xf32>
    %cst_34 = arith.constant dense<0xFF800000> : vector<32xf32>
    %85 = vector.multi_reduction <maximumf>, %84, %cst_34 [1] : vector<32x32xf32> to vector<32xf32>
    %86 = vector.shape_cast %85 : vector<32xf32> to vector<32x1xf32>
    %87 = vector.broadcast %86 : vector<32x1xf32> to vector<32x32xf32>
    %88 = arith.subf %84, %87 : vector<32x32xf32>
    %89 = math.exp %88 : vector<32x32xf32>
    %cst_35 = arith.constant dense<0.000000e+00> : vector<32xf32>
    %90 = vector.multi_reduction <add>, %89, %cst_35 [1] : vector<32x32xf32> to vector<32xf32>
    %91 = vector.shape_cast %90 : vector<32xf32> to vector<32x1xf32>
    %92 = vector.broadcast %91 : vector<32x1xf32> to vector<32x32xf32>
    %93 = arith.divf %89, %92 : vector<32x32xf32>
    %cst_36 = arith.constant dense<0.000000e+00> : vector<32x8xf32>
    %94 = tpu.matmul %93, %81, %cst_36 {dimension_numbers = #tpu.dot_dimension_numbers<[1], [0], [0], [1], [0, 0, 1, 1], [], []>} : vector<32x32xf32>, vector<32x8xf32>, vector<32x8xf32> -> vector<32x8xf32>
    %95 = vector.extract_strided_slice %26 {offsets = [0, 32], sizes = [32, 8], strides = [1, 1]} : vector<32x64xf32> to vector<32x8xf32>
    %96 = vector.extract_strided_slice %27 {offsets = [0, 32], sizes = [32, 8], strides = [1, 1]} : vector<32x64xf32> to vector<32x8xf32>
    %97 = vector.extract_strided_slice %28 {offsets = [0, 32], sizes = [32, 8], strides = [1, 1]} : vector<32x64xf32> to vector<32x8xf32>
    %cst_37 = arith.constant dense<0.000000e+00> : vector<32x32xf32>
    %98 = tpu.matmul %95, %96, %cst_37 {dimension_numbers = #tpu.dot_dimension_numbers<[1], [1], [0], [0], [0, 0, 1, 0], [], []>} : vector<32x8xf32>, vector<32x8xf32>, vector<32x32xf32> -> vector<32x32xf32>
    %cst_38 = arith.constant 0.353553385 : f32
    %99 = vector.broadcast %cst_38 : f32 to vector<32x32xf32>
    %100 = arith.mulf %98, %99 : vector<32x32xf32>
    %cst_39 = arith.constant dense<0xFF800000> : vector<32xf32>
    %101 = vector.multi_reduction <maximumf>, %100, %cst_39 [1] : vector<32x32xf32> to vector<32xf32>
    %102 = vector.shape_cast %101 : vector<32xf32> to vector<32x1xf32>
    %103 = vector.broadcast %102 : vector<32x1xf32> to vector<32x32xf32>
    %104 = arith.subf %100, %103 : vector<32x32xf32>
    %105 = math.exp %104 : vector<32x32xf32>
    %cst_40 = arith.constant dense<0.000000e+00> : vector<32xf32>
    %106 = vector.multi_reduction <add>, %105, %cst_40 [1] : vector<32x32xf32> to vector<32xf32>
    %107 = vector.shape_cast %106 : vector<32xf32> to vector<32x1xf32>
    %108 = vector.broadcast %107 : vector<32x1xf32> to vector<32x32xf32>
    %109 = arith.divf %105, %108 : vector<32x32xf32>
    %cst_41 = arith.constant dense<0.000000e+00> : vector<32x8xf32>
    %110 = tpu.matmul %109, %97, %cst_41 {dimension_numbers = #tpu.dot_dimension_numbers<[1], [0], [0], [1], [0, 0, 1, 1], [], []>} : vector<32x32xf32>, vector<32x8xf32>, vector<32x8xf32> -> vector<32x8xf32>
    %111 = vector.extract_strided_slice %26 {offsets = [0, 40], sizes = [32, 8], strides = [1, 1]} : vector<32x64xf32> to vector<32x8xf32>
    %112 = vector.extract_strided_slice %27 {offsets = [0, 40], sizes = [32, 8], strides = [1, 1]} : vector<32x64xf32> to vector<32x8xf32>
    %113 = vector.extract_strided_slice %28 {offsets = [0, 40], sizes = [32, 8], strides = [1, 1]} : vector<32x64xf32> to vector<32x8xf32>
    %cst_42 = arith.constant dense<0.000000e+00> : vector<32x32xf32>
    %114 = tpu.matmul %111, %112, %cst_42 {dimension_numbers = #tpu.dot_dimension_numbers<[1], [1], [0], [0], [0, 0, 1, 0], [], []>} : vector<32x8xf32>, vector<32x8xf32>, vector<32x32xf32> -> vector<32x32xf32>
    %cst_43 = arith.constant 0.353553385 : f32
    %115 = vector.broadcast %cst_43 : f32 to vector<32x32xf32>
    %116 = arith.mulf %114, %115 : vector<32x32xf32>
    %cst_44 = arith.constant dense<0xFF800000> : vector<32xf32>
    %117 = vector.multi_reduction <maximumf>, %116, %cst_44 [1] : vector<32x32xf32> to vector<32xf32>
    %118 = vector.shape_cast %117 : vector<32xf32> to vector<32x1xf32>
    %119 = vector.broadcast %118 : vector<32x1xf32> to vector<32x32xf32>
    %120 = arith.subf %116, %119 : vector<32x32xf32>
    %121 = math.exp %120 : vector<32x32xf32>
    %cst_45 = arith.constant dense<0.000000e+00> : vector<32xf32>
    %122 = vector.multi_reduction <add>, %121, %cst_45 [1] : vector<32x32xf32> to vector<32xf32>
    %123 = vector.shape_cast %122 : vector<32xf32> to vector<32x1xf32>
    %124 = vector.broadcast %123 : vector<32x1xf32> to vector<32x32xf32>
    %125 = arith.divf %121, %124 : vector<32x32xf32>
    %cst_46 = arith.constant dense<0.000000e+00> : vector<32x8xf32>
    %126 = tpu.matmul %125, %113, %cst_46 {dimension_numbers = #tpu.dot_dimension_numbers<[1], [0], [0], [1], [0, 0, 1, 1], [], []>} : vector<32x32xf32>, vector<32x8xf32>, vector<32x8xf32> -> vector<32x8xf32>
    %127 = vector.extract_strided_slice %26 {offsets = [0, 48], sizes = [32, 8], strides = [1, 1]} : vector<32x64xf32> to vector<32x8xf32>
    %128 = vector.extract_strided_slice %27 {offsets = [0, 48], sizes = [32, 8], strides = [1, 1]} : vector<32x64xf32> to vector<32x8xf32>
    %129 = vector.extract_strided_slice %28 {offsets = [0, 48], sizes = [32, 8], strides = [1, 1]} : vector<32x64xf32> to vector<32x8xf32>
    %cst_47 = arith.constant dense<0.000000e+00> : vector<32x32xf32>
    %130 = tpu.matmul %127, %128, %cst_47 {dimension_numbers = #tpu.dot_dimension_numbers<[1], [1], [0], [0], [0, 0, 1, 0], [], []>} : vector<32x8xf32>, vector<32x8xf32>, vector<32x32xf32> -> vector<32x32xf32>
    %cst_48 = arith.constant 0.353553385 : f32
    %131 = vector.broadcast %cst_48 : f32 to vector<32x32xf32>
    %132 = arith.mulf %130, %131 : vector<32x32xf32>
    %cst_49 = arith.constant dense<0xFF800000> : vector<32xf32>
    %133 = vector.multi_reduction <maximumf>, %132, %cst_49 [1] : vector<32x32xf32> to vector<32xf32>
    %134 = vector.shape_cast %133 : vector<32xf32> to vector<32x1xf32>
    %135 = vector.broadcast %134 : vector<32x1xf32> to vector<32x32xf32>
    %136 = arith.subf %132, %135 : vector<32x32xf32>
    %137 = math.exp %136 : vector<32x32xf32>
    %cst_50 = arith.constant dense<0.000000e+00> : vector<32xf32>
    %138 = vector.multi_reduction <add>, %137, %cst_50 [1] : vector<32x32xf32> to vector<32xf32>
    %139 = vector.shape_cast %138 : vector<32xf32> to vector<32x1xf32>
    %140 = vector.broadcast %139 : vector<32x1xf32> to vector<32x32xf32>
    %141 = arith.divf %137, %140 : vector<32x32xf32>
    %cst_51 = arith.constant dense<0.000000e+00> : vector<32x8xf32>
    %142 = tpu.matmul %141, %129, %cst_51 {dimension_numbers = #tpu.dot_dimension_numbers<[1], [0], [0], [1], [0, 0, 1, 1], [], []>} : vector<32x32xf32>, vector<32x8xf32>, vector<32x8xf32> -> vector<32x8xf32>
    %143 = vector.extract_strided_slice %26 {offsets = [0, 56], sizes = [32, 8], strides = [1, 1]} : vector<32x64xf32> to vector<32x8xf32>
    %144 = vector.extract_strided_slice %27 {offsets = [0, 56], sizes = [32, 8], strides = [1, 1]} : vector<32x64xf32> to vector<32x8xf32>
    %145 = vector.extract_strided_slice %28 {offsets = [0, 56], sizes = [32, 8], strides = [1, 1]} : vector<32x64xf32> to vector<32x8xf32>
    %cst_52 = arith.constant dense<0.000000e+00> : vector<32x32xf32>
    %146 = tpu.matmul %143, %144, %cst_52 {dimension_numbers = #tpu.dot_dimension_numbers<[1], [1], [0], [0], [0, 0, 1, 0], [], []>} : vector<32x8xf32>, vector<32x8xf32>, vector<32x32xf32> -> vector<32x32xf32>
    %cst_53 = arith.constant 0.353553385 : f32
    %147 = vector.broadcast %cst_53 : f32 to vector<32x32xf32>
    %148 = arith.mulf %146, %147 : vector<32x32xf32>
    %cst_54 = arith.constant dense<0xFF800000> : vector<32xf32>
    %149 = vector.multi_reduction <maximumf>, %148, %cst_54 [1] : vector<32x32xf32> to vector<32xf32>
    %150 = vector.shape_cast %149 : vector<32xf32> to vector<32x1xf32>
    %151 = vector.broadcast %150 : vector<32x1xf32> to vector<32x32xf32>
    %152 = arith.subf %148, %151 : vector<32x32xf32>
    %153 = math.exp %152 : vector<32x32xf32>
    %cst_55 = arith.constant dense<0.000000e+00> : vector<32xf32>
    %154 = vector.multi_reduction <add>, %153, %cst_55 [1] : vector<32x32xf32> to vector<32xf32>
    %155 = vector.shape_cast %154 : vector<32xf32> to vector<32x1xf32>
    %156 = vector.broadcast %155 : vector<32x1xf32> to vector<32x32xf32>
    %157 = arith.divf %153, %156 : vector<32x32xf32>
    %cst_56 = arith.constant dense<0.000000e+00> : vector<32x8xf32>
    %158 = tpu.matmul %157, %145, %cst_56 {dimension_numbers = #tpu.dot_dimension_numbers<[1], [0], [0], [1], [0, 0, 1, 1], [], []>} : vector<32x32xf32>, vector<32x8xf32>, vector<32x8xf32> -> vector<32x8xf32>
    %159 = tpu.concatenate %46, %62, %78, %94, %110, %126, %142, %158 in 1 : vector<32x8xf32>, vector<32x8xf32>, vector<32x8xf32>, vector<32x8xf32>, vector<32x8xf32>, vector<32x8xf32>, vector<32x8xf32>, vector<32x8xf32> -> vector<32x64xf32>
    %cst_57 = arith.constant dense<0.000000e+00> : vector<32x64xf32>
    %160 = tpu.matmul %159, %29, %cst_57 {dimension_numbers = #tpu.dot_dimension_numbers<[1], [0], [0], [1], [0, 0, 1, 1], [], []>} : vector<32x64xf32>, vector<64x64xf32>, vector<32x64xf32> -> vector<32x64xf32>
    %161 = vector.broadcast %30 : vector<1x64xf32> to vector<32x64xf32>
    %162 = arith.addf %160, %161 : vector<32x64xf32>
    %163 = arith.addf %1, %162 : vector<32x64xf32>
    %c0_58 = arith.constant 0 : index
    %c0_59 = arith.constant 0 : index
    %164 = vector.load %arg7[%c0_58, %c0_59] : memref<1x64xf32, #tpu.memory_space<vmem>>, vector<1x64xf32>
    %c0_60 = arith.constant 0 : index
    %c0_61 = arith.constant 0 : index
    %165 = vector.load %arg8[%c0_60, %c0_61] : memref<1x64xf32, #tpu.memory_space<vmem>>, vector<1x64xf32>
    %c0_62 = arith.constant 0 : index
    %c0_63 = arith.constant 0 : index
    %166 = vector.load %arg9[%c0_62, %c0_63] : memref<64x512xf32, #tpu.memory_space<vmem>>, vector<64x512xf32>
    %c0_64 = arith.constant 0 : index
    %c0_65 = arith.constant 0 : index
    %167 = vector.load %arg10[%c0_64, %c0_65] : memref<1x512xf32, #tpu.memory_space<vmem>>, vector<1x512xf32>
    %c0_66 = arith.constant 0 : index
    %c0_67 = arith.constant 0 : index
    %168 = vector.load %arg11[%c0_66, %c0_67] : memref<256x64xf32, #tpu.memory_space<vmem>>, vector<256x64xf32>
    %c0_68 = arith.constant 0 : index
    %c0_69 = arith.constant 0 : index
    %169 = vector.load %arg12[%c0_68, %c0_69] : memref<1x64xf32, #tpu.memory_space<vmem>>, vector<1x64xf32>
    %cst_70 = arith.constant dense<0.000000e+00> : vector<32xf32>
    %170 = vector.multi_reduction <add>, %163, %cst_70 [1] : vector<32x64xf32> to vector<32xf32>
    %171 = vector.shape_cast %170 : vector<32xf32> to vector<32x1xf32>
    %cst_71 = arith.constant 6.400000e+01 : f32
    %172 = vector.broadcast %cst_71 : f32 to vector<32x1xf32>
    %173 = arith.divf %171, %172 : vector<32x1xf32>
    %174 = vector.broadcast %173 : vector<32x1xf32> to vector<32x64xf32>
    %175 = arith.subf %163, %174 : vector<32x64xf32>
    %176 = arith.mulf %175, %175 : vector<32x64xf32>
    %cst_72 = arith.constant dense<0.000000e+00> : vector<32xf32>
    %177 = vector.multi_reduction <add>, %176, %cst_72 [1] : vector<32x64xf32> to vector<32xf32>
    %178 = vector.shape_cast %177 : vector<32xf32> to vector<32x1xf32>
    %cst_73 = arith.constant 6.400000e+01 : f32
    %179 = vector.broadcast %cst_73 : f32 to vector<32x1xf32>
    %180 = arith.divf %178, %179 : vector<32x1xf32>
    %cst_74 = arith.constant 9.99999974E-6 : f32
    %181 = vector.broadcast %cst_74 : f32 to vector<32x1xf32>
    %182 = arith.addf %180, %181 : vector<32x1xf32>
    %183 = math.rsqrt %182 : vector<32x1xf32>
    %184 = vector.broadcast %183 : vector<32x1xf32> to vector<32x64xf32>
    %185 = arith.mulf %175, %184 : vector<32x64xf32>
    %186 = vector.broadcast %164 : vector<1x64xf32> to vector<32x64xf32>
    %187 = arith.mulf %185, %186 : vector<32x64xf32>
    %188 = vector.broadcast %165 : vector<1x64xf32> to vector<32x64xf32>
    %189 = arith.addf %187, %188 : vector<32x64xf32>
    %cst_75 = arith.constant dense<0.000000e+00> : vector<32x512xf32>
    %190 = tpu.matmul %189, %166, %cst_75 {dimension_numbers = #tpu.dot_dimension_numbers<[1], [0], [0], [1], [0, 0, 1, 1], [], []>} : vector<32x64xf32>, vector<64x512xf32>, vector<32x512xf32> -> vector<32x512xf32>
    %191 = vector.broadcast %167 : vector<1x512xf32> to vector<32x512xf32>
    %192 = arith.addf %190, %191 : vector<32x512xf32>
    %193 = vector.extract_strided_slice %192 {offsets = [0, 0], sizes = [32, 256], strides = [1, 1]} : vector<32x512xf32> to vector<32x256xf32>
    %194 = vector.extract_strided_slice %192 {offsets = [0, 256], sizes = [32, 256], strides = [1, 1]} : vector<32x512xf32> to vector<32x256xf32>
    %cst_76 = arith.constant 5.000000e-01 : f32
    %195 = vector.broadcast %cst_76 : f32 to vector<32x256xf32>
    %196 = arith.mulf %195, %194 : vector<32x256xf32>
    %cst_77 = arith.constant 0.707106769 : f32
    %197 = vector.broadcast %cst_77 : f32 to vector<32x256xf32>
    %198 = arith.mulf %194, %197 : vector<32x256xf32>
    %199 = math.absf %198 : vector<32x256xf32>
    %cst_78 = arith.constant 0.327591091 : f32
    %200 = vector.broadcast %cst_78 : f32 to vector<32x256xf32>
    %201 = arith.mulf %200, %199 : vector<32x256xf32>
    %cst_79 = arith.constant 1.000000e+00 : f32
    %202 = vector.broadcast %cst_79 : f32 to vector<32x256xf32>
    %203 = arith.addf %202, %201 : vector<32x256xf32>
    %cst_80 = arith.constant 1.000000e+00 : f32
    %204 = vector.broadcast %cst_80 : f32 to vector<32x256xf32>
    %205 = arith.divf %204, %203 : vector<32x256xf32>
    %cst_81 = arith.constant 1.06140542 : f32
    %206 = vector.broadcast %cst_81 : f32 to vector<32x256xf32>
    %207 = arith.mulf %205, %206 : vector<32x256xf32>
    %cst_82 = arith.constant -1.45315206 : f32
    %208 = vector.broadcast %cst_82 : f32 to vector<32x256xf32>
    %209 = arith.addf %208, %207 : vector<32x256xf32>
    %210 = arith.mulf %205, %209 : vector<32x256xf32>
    %cst_83 = arith.constant 1.42141378 : f32
    %211 = vector.broadcast %cst_83 : f32 to vector<32x256xf32>
    %212 = arith.addf %211, %210 : vector<32x256xf32>
    %213 = arith.mulf %205, %212 : vector<32x256xf32>
    %cst_84 = arith.constant -0.284496725 : f32
    %214 = vector.broadcast %cst_84 : f32 to vector<32x256xf32>
    %215 = arith.addf %214, %213 : vector<32x256xf32>
    %216 = arith.mulf %205, %215 : vector<32x256xf32>
    %cst_85 = arith.constant 0.254829586 : f32
    %217 = vector.broadcast %cst_85 : f32 to vector<32x256xf32>
    %218 = arith.addf %217, %216 : vector<32x256xf32>
    %219 = arith.mulf %205, %218 : vector<32x256xf32>
    %cst_86 = arith.constant 0.000000e+00 : f32
    %220 = vector.broadcast %cst_86 : f32 to vector<32x256xf32>
    %221 = arith.subf %220, %198 : vector<32x256xf32>
    %222 = arith.mulf %221, %198 : vector<32x256xf32>
    %223 = math.exp %222 : vector<32x256xf32>
    %224 = arith.mulf %219, %223 : vector<32x256xf32>
    %cst_87 = arith.constant 1.000000e+00 : f32
    %225 = vector.broadcast %cst_87 : f32 to vector<32x256xf32>
    %226 = arith.subf %225, %224 : vector<32x256xf32>
    %cst_88 = arith.constant 0.000000e+00 : f32
    %227 = vector.broadcast %cst_88 : f32 to vector<32x256xf32>
    %228 = arith.cmpf oge, %198, %227 : vector<32x256xf32>
    %cst_89 = arith.constant 0.000000e+00 : f32
    %229 = vector.broadcast %cst_89 : f32 to vector<32x256xf32>
    %230 = arith.subf %229, %226 : vector<32x256xf32>
    %231 = arith.select %228, %226, %230 : vector<32x256xi1>, vector<32x256xf32>
    %cst_90 = arith.constant 1.000000e+00 : f32
    %232 = vector.broadcast %cst_90 : f32 to vector<32x256xf32>
    %233 = arith.addf %232, %231 : vector<32x256xf32>
    %234 = arith.mulf %196, %233 : vector<32x256xf32>
    %235 = arith.mulf %193, %234 : vector<32x256xf32>
    %cst_91 = arith.constant dense<0.000000e+00> : vector<32x64xf32>
    %236 = tpu.matmul %235, %168, %cst_91 {dimension_numbers = #tpu.dot_dimension_numbers<[1], [0], [0], [1], [0, 0, 1, 1], [], []>} : vector<32x256xf32>, vector<256x64xf32>, vector<32x64xf32> -> vector<32x64xf32>
    %237 = vector.broadcast %169 : vector<1x64xf32> to vector<32x64xf32>
    %238 = arith.addf %236, %237 : vector<32x64xf32>
    %239 = arith.addf %163, %238 : vector<32x64xf32>
    %c0_92 = arith.constant 0 : index
    %c0_93 = arith.constant 0 : index
    %c0_94 = arith.constant 0 : index
    %240 = vector.load %arg13[%c0_92, %c0_93, %c0_94] : memref<1x32x64xf32, #tpu.memory_space<vmem>>, vector<1x32x64xf32>
    %241 = vector.shape_cast %240 : vector<1x32x64xf32> to vector<32x64xf32>
    %242 = vector.shape_cast %239 : vector<32x64xf32> to vector<1x32x64xf32>
    tpu.vector_store %arg13[%c0_92, %c0_93, %c0_94], %242 {strides = array<i32>} : memref<1x32x64xf32, #tpu.memory_space<vmem>>, vector<1x32x64xf32>,
    return
  }
  func.func @transform_0(%arg0: i32) -> (i32, i32, i32) {
    %c0_i32 = arith.constant 0 : i32
    %c0_i32_0 = arith.constant 0 : i32
    %c0_i32_1 = arith.constant 0 : i32
    return %arg0, %c0_i32, %c0_i32_0 : i32, i32, i32
  }
  func.func @transform_1(%arg0: i32) -> (i32, i32) {
    %c0_i32 = arith.constant 0 : i32
    %c0_i32_0 = arith.constant 0 : i32
    %c0_i32_1 = arith.constant 0 : i32
    return %c0_i32, %c0_i32_0 : i32, i32
  }
  func.func @transform_2(%arg0: i32) -> (i32, i32) {
    %c0_i32 = arith.constant 0 : i32
    %c0_i32_0 = arith.constant 0 : i32
    %c0_i32_1 = arith.constant 0 : i32
    return %c0_i32, %c0_i32_0 : i32, i32
  }
  func.func @transform_3(%arg0: i32) -> (i32, i32) {
    %c0_i32 = arith.constant 0 : i32
    %c0_i32_0 = arith.constant 0 : i32
    %c0_i32_1 = arith.constant 0 : i32
    return %c0_i32, %c0_i32_0 : i32, i32
  }
  func.func @transform_4(%arg0: i32) -> (i32, i32) {
    %c0_i32 = arith.constant 0 : i32
    %c0_i32_0 = arith.constant 0 : i32
    %c0_i32_1 = arith.constant 0 : i32
    return %c0_i32, %c0_i32_0 : i32, i32
  }
  func.func @transform_5(%arg0: i32) -> (i32, i32) {
    %c0_i32 = arith.constant 0 : i32
    %c0_i32_0 = arith.constant 0 : i32
    %c0_i32_1 = arith.constant 0 : i32
    return %c0_i32, %c0_i32_0 : i32, i32
  }
  func.func @transform_6(%arg0: i32) -> (i32, i32) {
    %c0_i32 = arith.constant 0 : i32
    %c0_i32_0 = arith.constant 0 : i32
    %c0_i32_1 = arith.constant 0 : i32
    return %c0_i32, %c0_i32_0 : i32, i32
  }
  func.func @transform_7(%arg0: i32) -> (i32, i32) {
    %c0_i32 = arith.constant 0 : i32
    %c0_i32_0 = arith.constant 0 : i32
    %c0_i32_1 = arith.constant 0 : i32
    return %c0_i32, %c0_i32_0 : i32, i32
  }
  func.func @transform_8(%arg0: i32) -> (i32, i32) {
    %c0_i32 = arith.constant 0 : i32
    %c0_i32_0 = arith.constant 0 : i32
    %c0_i32_1 = arith.constant 0 : i32
    return %c0_i32, %c0_i32_0 : i32, i32
  }
  func.func @transform_9(%arg0: i32) -> (i32, i32) {
    %c0_i32 = arith.constant 0 : i32
    %c0_i32_0 = arith.constant 0 : i32
    %c0_i32_1 = arith.constant 0 : i32
    return %c0_i32, %c0_i32_0 : i32, i32
  }
  func.func @transform_10(%arg0: i32) -> (i32, i32) {
    %c0_i32 = arith.constant 0 : i32
    %c0_i32_0 = arith.constant 0 : i32
    %c0_i32_1 = arith.constant 0 : i32
    return %c0_i32, %c0_i32_0 : i32, i32
  }
  func.func @transform_11(%arg0: i32) -> (i32, i32) {
    %c0_i32 = arith.constant 0 : i32
    %c0_i32_0 = arith.constant 0 : i32
    %c0_i32_1 = arith.constant 0 : i32
    return %c0_i32, %c0_i32_0 : i32, i32
  }
  func.func @transform_12(%arg0: i32) -> (i32, i32, i32) {
    %c0_i32 = arith.constant 0 : i32
    %c0_i32_0 = arith.constant 0 : i32
    %c0_i32_1 = arith.constant 0 : i32
    return %arg0, %c0_i32, %c0_i32_0 : i32, i32, i32
  }
}

module attributes {stable_mosaic.version = 11 : i64} {
  func.func @_linear_bias_kernel(%arg0: i32, %arg1: memref<128x51xf32, #tpu.memory_space<vmem>>, %arg2: memref<51x64xf32, #tpu.memory_space<vmem>>, %arg3: memref<1x64xf32, #tpu.memory_space<vmem>>, %arg4: memref<128x64xf32, #tpu.memory_space<vmem>>) attributes {dimension_semantics = [#tpu.dimension_semantics<arbitrary>], iteration_bounds = array<i64: 1>, scalar_prefetch = 0 : i64, scratch_operands = 0 : i64, tpu.core_type = #tpu.core_type<tc>, window_params = [{transform_indices = @transform_0, window_bounds = array<i64: 128, 51>}, {pipeline_mode = #tpu.pipeline_mode<synchronous>, transform_indices = @transform_1, window_bounds = array<i64: 51, 64>}, {pipeline_mode = #tpu.pipeline_mode<synchronous>, transform_indices = @transform_2, window_bounds = array<i64: 1, 64>}, {transform_indices = @transform_3, window_bounds = array<i64: 128, 64>}]} {
    %c0 = arith.constant 0 : index
    %c0_0 = arith.constant 0 : index
    %0 = vector.load %arg1[%c0, %c0_0] : memref<128x51xf32, #tpu.memory_space<vmem>>, vector<128x51xf32>
    %c0_1 = arith.constant 0 : index
    %c0_2 = arith.constant 0 : index
    %1 = vector.load %arg2[%c0_1, %c0_2] : memref<51x64xf32, #tpu.memory_space<vmem>>, vector<51x64xf32>
    %cst = arith.constant dense<0.000000e+00> : vector<128x64xf32>
    %2 = tpu.matmul %0, %1, %cst {dimension_numbers = #tpu.dot_dimension_numbers<[1], [0], [0], [1], [0, 0, 1, 1], [], []>} : vector<128x51xf32>, vector<51x64xf32>, vector<128x64xf32> -> vector<128x64xf32>
    %c0_3 = arith.constant 0 : index
    %c0_4 = arith.constant 0 : index
    %3 = vector.load %arg3[%c0_3, %c0_4] : memref<1x64xf32, #tpu.memory_space<vmem>>, vector<1x64xf32>
    %4 = vector.broadcast %3 : vector<1x64xf32> to vector<128x64xf32>
    %5 = arith.addf %2, %4 : vector<128x64xf32>
    %c0_5 = arith.constant 0 : index
    %c0_6 = arith.constant 0 : index
    %6 = vector.load %arg4[%c0_5, %c0_6] : memref<128x64xf32, #tpu.memory_space<vmem>>, vector<128x64xf32>
    tpu.vector_store %arg4[%c0_5, %c0_6], %5 {strides = array<i32>} : memref<128x64xf32, #tpu.memory_space<vmem>>, vector<128x64xf32>,
    return
  }
  func.func @transform_0(%arg0: i32) -> (i32, i32) {
    %c0_i32 = arith.constant 0 : i32
    %c0_i32_0 = arith.constant 0 : i32
    return %arg0, %c0_i32 : i32, i32
  }
  func.func @transform_1(%arg0: i32) -> (i32, i32) {
    %c0_i32 = arith.constant 0 : i32
    %c0_i32_0 = arith.constant 0 : i32
    %c0_i32_1 = arith.constant 0 : i32
    return %c0_i32, %c0_i32_0 : i32, i32
  }
  func.func @transform_2(%arg0: i32) -> (i32, i32) {
    %c0_i32 = arith.constant 0 : i32
    %c0_i32_0 = arith.constant 0 : i32
    %c0_i32_1 = arith.constant 0 : i32
    return %c0_i32, %c0_i32_0 : i32, i32
  }
  func.func @transform_3(%arg0: i32) -> (i32, i32) {
    %c0_i32 = arith.constant 0 : i32
    %c0_i32_0 = arith.constant 0 : i32
    return %arg0, %c0_i32 : i32, i32
  }
}

module attributes {stable_mosaic.version = 11 : i64} {
  func.func @_cross_attn_kernel(%arg0: i32, %arg1: memref<1x64x64xf32, #tpu.memory_space<vmem>>, %arg2: memref<1x32x64xf32, #tpu.memory_space<vmem>>, %arg3: memref<1x64xf32, #tpu.memory_space<vmem>>, %arg4: memref<1x64xf32, #tpu.memory_space<vmem>>, %arg5: memref<1x64xf32, #tpu.memory_space<vmem>>, %arg6: memref<1x64xf32, #tpu.memory_space<vmem>>, %arg7: memref<64x64xf32, #tpu.memory_space<vmem>>, %arg8: memref<64x128xf32, #tpu.memory_space<vmem>>, %arg9: memref<64x64xf32, #tpu.memory_space<vmem>>, %arg10: memref<1x64xf32, #tpu.memory_space<vmem>>, %arg11: memref<1x64x64xf32, #tpu.memory_space<vmem>>) attributes {dimension_semantics = [#tpu.dimension_semantics<parallel>], iteration_bounds = array<i64: 2>, scalar_prefetch = 0 : i64, scratch_operands = 0 : i64, tpu.core_type = #tpu.core_type<tc>, window_params = [{transform_indices = @transform_0, window_bounds = array<i64: 1, 64, 64>}, {transform_indices = @transform_1, window_bounds = array<i64: 1, 32, 64>}, {pipeline_mode = #tpu.pipeline_mode<synchronous>, transform_indices = @transform_2, window_bounds = array<i64: 1, 64>}, {pipeline_mode = #tpu.pipeline_mode<synchronous>, transform_indices = @transform_3, window_bounds = array<i64: 1, 64>}, {pipeline_mode = #tpu.pipeline_mode<synchronous>, transform_indices = @transform_4, window_bounds = array<i64: 1, 64>}, {pipeline_mode = #tpu.pipeline_mode<synchronous>, transform_indices = @transform_5, window_bounds = array<i64: 1, 64>}, {pipeline_mode = #tpu.pipeline_mode<synchronous>, transform_indices = @transform_6, window_bounds = array<i64: 64, 64>}, {pipeline_mode = #tpu.pipeline_mode<synchronous>, transform_indices = @transform_7, window_bounds = array<i64: 64, 128>}, {pipeline_mode = #tpu.pipeline_mode<synchronous>, transform_indices = @transform_8, window_bounds = array<i64: 64, 64>}, {pipeline_mode = #tpu.pipeline_mode<synchronous>, transform_indices = @transform_9, window_bounds = array<i64: 1, 64>}, {transform_indices = @transform_10, window_bounds = array<i64: 1, 64, 64>}]} {
    %c0 = arith.constant 0 : index
    %c0_0 = arith.constant 0 : index
    %c0_1 = arith.constant 0 : index
    %0 = vector.load %arg1[%c0, %c0_0, %c0_1] : memref<1x64x64xf32, #tpu.memory_space<vmem>>, vector<1x64x64xf32>
    %1 = vector.shape_cast %0 : vector<1x64x64xf32> to vector<64x64xf32>
    %c0_2 = arith.constant 0 : index
    %c0_3 = arith.constant 0 : index
    %c0_4 = arith.constant 0 : index
    %2 = vector.load %arg2[%c0_2, %c0_3, %c0_4] : memref<1x32x64xf32, #tpu.memory_space<vmem>>, vector<1x32x64xf32>
    %3 = vector.shape_cast %2 : vector<1x32x64xf32> to vector<32x64xf32>
    %c0_5 = arith.constant 0 : index
    %c0_6 = arith.constant 0 : index
    %4 = vector.load %arg3[%c0_5, %c0_6] : memref<1x64xf32, #tpu.memory_space<vmem>>, vector<1x64xf32>
    %c0_7 = arith.constant 0 : index
    %c0_8 = arith.constant 0 : index
    %5 = vector.load %arg4[%c0_7, %c0_8] : memref<1x64xf32, #tpu.memory_space<vmem>>, vector<1x64xf32>
    %cst = arith.constant dense<0.000000e+00> : vector<64xf32>
    %6 = vector.multi_reduction <add>, %1, %cst [1] : vector<64x64xf32> to vector<64xf32>
    %7 = vector.shape_cast %6 : vector<64xf32> to vector<64x1xf32>
    %cst_9 = arith.constant 6.400000e+01 : f32
    %8 = vector.broadcast %cst_9 : f32 to vector<64x1xf32>
    %9 = arith.divf %7, %8 : vector<64x1xf32>
    %10 = vector.broadcast %9 : vector<64x1xf32> to vector<64x64xf32>
    %11 = arith.subf %1, %10 : vector<64x64xf32>
    %12 = arith.mulf %11, %11 : vector<64x64xf32>
    %cst_10 = arith.constant dense<0.000000e+00> : vector<64xf32>
    %13 = vector.multi_reduction <add>, %12, %cst_10 [1] : vector<64x64xf32> to vector<64xf32>
    %14 = vector.shape_cast %13 : vector<64xf32> to vector<64x1xf32>
    %cst_11 = arith.constant 6.400000e+01 : f32
    %15 = vector.broadcast %cst_11 : f32 to vector<64x1xf32>
    %16 = arith.divf %14, %15 : vector<64x1xf32>
    %cst_12 = arith.constant 9.99999974E-6 : f32
    %17 = vector.broadcast %cst_12 : f32 to vector<64x1xf32>
    %18 = arith.addf %16, %17 : vector<64x1xf32>
    %19 = math.rsqrt %18 : vector<64x1xf32>
    %20 = vector.broadcast %19 : vector<64x1xf32> to vector<64x64xf32>
    %21 = arith.mulf %11, %20 : vector<64x64xf32>
    %22 = vector.broadcast %4 : vector<1x64xf32> to vector<64x64xf32>
    %23 = arith.mulf %21, %22 : vector<64x64xf32>
    %24 = vector.broadcast %5 : vector<1x64xf32> to vector<64x64xf32>
    %25 = arith.addf %23, %24 : vector<64x64xf32>
    %c0_13 = arith.constant 0 : index
    %c0_14 = arith.constant 0 : index
    %26 = vector.load %arg5[%c0_13, %c0_14] : memref<1x64xf32, #tpu.memory_space<vmem>>, vector<1x64xf32>
    %c0_15 = arith.constant 0 : index
    %c0_16 = arith.constant 0 : index
    %27 = vector.load %arg6[%c0_15, %c0_16] : memref<1x64xf32, #tpu.memory_space<vmem>>, vector<1x64xf32>
    %cst_17 = arith.constant dense<0.000000e+00> : vector<32xf32>
    %28 = vector.multi_reduction <add>, %3, %cst_17 [1] : vector<32x64xf32> to vector<32xf32>
    %29 = vector.shape_cast %28 : vector<32xf32> to vector<32x1xf32>
    %cst_18 = arith.constant 6.400000e+01 : f32
    %30 = vector.broadcast %cst_18 : f32 to vector<32x1xf32>
    %31 = arith.divf %29, %30 : vector<32x1xf32>
    %32 = vector.broadcast %31 : vector<32x1xf32> to vector<32x64xf32>
    %33 = arith.subf %3, %32 : vector<32x64xf32>
    %34 = arith.mulf %33, %33 : vector<32x64xf32>
    %cst_19 = arith.constant dense<0.000000e+00> : vector<32xf32>
    %35 = vector.multi_reduction <add>, %34, %cst_19 [1] : vector<32x64xf32> to vector<32xf32>
    %36 = vector.shape_cast %35 : vector<32xf32> to vector<32x1xf32>
    %cst_20 = arith.constant 6.400000e+01 : f32
    %37 = vector.broadcast %cst_20 : f32 to vector<32x1xf32>
    %38 = arith.divf %36, %37 : vector<32x1xf32>
    %cst_21 = arith.constant 9.99999974E-6 : f32
    %39 = vector.broadcast %cst_21 : f32 to vector<32x1xf32>
    %40 = arith.addf %38, %39 : vector<32x1xf32>
    %41 = math.rsqrt %40 : vector<32x1xf32>
    %42 = vector.broadcast %41 : vector<32x1xf32> to vector<32x64xf32>
    %43 = arith.mulf %33, %42 : vector<32x64xf32>
    %44 = vector.broadcast %26 : vector<1x64xf32> to vector<32x64xf32>
    %45 = arith.mulf %43, %44 : vector<32x64xf32>
    %46 = vector.broadcast %27 : vector<1x64xf32> to vector<32x64xf32>
    %47 = arith.addf %45, %46 : vector<32x64xf32>
    %c0_22 = arith.constant 0 : index
    %c0_23 = arith.constant 0 : index
    %48 = vector.load %arg7[%c0_22, %c0_23] : memref<64x64xf32, #tpu.memory_space<vmem>>, vector<64x64xf32>
    %cst_24 = arith.constant dense<0.000000e+00> : vector<64x64xf32>
    %49 = tpu.matmul %25, %48, %cst_24 {dimension_numbers = #tpu.dot_dimension_numbers<[1], [0], [0], [1], [0, 0, 1, 1], [], []>} : vector<64x64xf32>, vector<64x64xf32>, vector<64x64xf32> -> vector<64x64xf32>
    %c0_25 = arith.constant 0 : index
    %c0_26 = arith.constant 0 : index
    %50 = vector.load %arg8[%c0_25, %c0_26] : memref<64x128xf32, #tpu.memory_space<vmem>>, vector<64x128xf32>
    %cst_27 = arith.constant dense<0.000000e+00> : vector<32x128xf32>
    %51 = tpu.matmul %47, %50, %cst_27 {dimension_numbers = #tpu.dot_dimension_numbers<[1], [0], [0], [1], [0, 0, 1, 1], [], []>} : vector<32x64xf32>, vector<64x128xf32>, vector<32x128xf32> -> vector<32x128xf32>
    %52 = vector.extract_strided_slice %51 {offsets = [0, 0], sizes = [32, 64], strides = [1, 1]} : vector<32x128xf32> to vector<32x64xf32>
    %53 = vector.extract_strided_slice %51 {offsets = [0, 64], sizes = [32, 64], strides = [1, 1]} : vector<32x128xf32> to vector<32x64xf32>
    %c0_28 = arith.constant 0 : index
    %c0_29 = arith.constant 0 : index
    %54 = vector.load %arg9[%c0_28, %c0_29] : memref<64x64xf32, #tpu.memory_space<vmem>>, vector<64x64xf32>
    %c0_30 = arith.constant 0 : index
    %c0_31 = arith.constant 0 : index
    %55 = vector.load %arg10[%c0_30, %c0_31] : memref<1x64xf32, #tpu.memory_space<vmem>>, vector<1x64xf32>
    %cst_32 = arith.constant dense<0.000000e+00> : vector<64x32xf32>
    %56 = tpu.matmul %49, %52, %cst_32 {dimension_numbers = #tpu.dot_dimension_numbers<[1], [1], [0], [0], [0, 0, 1, 0], [], []>} : vector<64x64xf32>, vector<32x64xf32>, vector<64x32xf32> -> vector<64x32xf32>
    %cst_33 = arith.constant 1.250000e-01 : f32
    %57 = vector.broadcast %cst_33 : f32 to vector<64x32xf32>
    %58 = arith.mulf %56, %57 : vector<64x32xf32>
    %cst_34 = arith.constant dense<0xFF800000> : vector<64xf32>
    %59 = vector.multi_reduction <maximumf>, %58, %cst_34 [1] : vector<64x32xf32> to vector<64xf32>
    %60 = vector.shape_cast %59 : vector<64xf32> to vector<64x1xf32>
    %61 = vector.broadcast %60 : vector<64x1xf32> to vector<64x32xf32>
    %62 = arith.subf %58, %61 : vector<64x32xf32>
    %63 = math.exp %62 : vector<64x32xf32>
    %cst_35 = arith.constant dense<0.000000e+00> : vector<64xf32>
    %64 = vector.multi_reduction <add>, %63, %cst_35 [1] : vector<64x32xf32> to vector<64xf32>
    %65 = vector.shape_cast %64 : vector<64xf32> to vector<64x1xf32>
    %66 = vector.broadcast %65 : vector<64x1xf32> to vector<64x32xf32>
    %67 = arith.divf %63, %66 : vector<64x32xf32>
    %cst_36 = arith.constant dense<0.000000e+00> : vector<64x64xf32>
    %68 = tpu.matmul %67, %53, %cst_36 {dimension_numbers = #tpu.dot_dimension_numbers<[1], [0], [0], [1], [0, 0, 1, 1], [], []>} : vector<64x32xf32>, vector<32x64xf32>, vector<64x64xf32> -> vector<64x64xf32>
    %cst_37 = arith.constant dense<0.000000e+00> : vector<64x64xf32>
    %69 = tpu.matmul %68, %54, %cst_37 {dimension_numbers = #tpu.dot_dimension_numbers<[1], [0], [0], [1], [0, 0, 1, 1], [], []>} : vector<64x64xf32>, vector<64x64xf32>, vector<64x64xf32> -> vector<64x64xf32>
    %70 = vector.broadcast %55 : vector<1x64xf32> to vector<64x64xf32>
    %71 = arith.addf %69, %70 : vector<64x64xf32>
    %c0_38 = arith.constant 0 : index
    %c0_39 = arith.constant 0 : index
    %c0_40 = arith.constant 0 : index
    %72 = vector.load %arg11[%c0_38, %c0_39, %c0_40] : memref<1x64x64xf32, #tpu.memory_space<vmem>>, vector<1x64x64xf32>
    %73 = vector.shape_cast %72 : vector<1x64x64xf32> to vector<64x64xf32>
    %74 = vector.shape_cast %71 : vector<64x64xf32> to vector<1x64x64xf32>
    tpu.vector_store %arg11[%c0_38, %c0_39, %c0_40], %74 {strides = array<i32>} : memref<1x64x64xf32, #tpu.memory_space<vmem>>, vector<1x64x64xf32>,
    return
  }
  func.func @transform_0(%arg0: i32) -> (i32, i32, i32) {
    %c0_i32 = arith.constant 0 : i32
    %c0_i32_0 = arith.constant 0 : i32
    %c0_i32_1 = arith.constant 0 : i32
    return %arg0, %c0_i32, %c0_i32_0 : i32, i32, i32
  }
  func.func @transform_1(%arg0: i32) -> (i32, i32, i32) {
    %c0_i32 = arith.constant 0 : i32
    %c0_i32_0 = arith.constant 0 : i32
    %c0_i32_1 = arith.constant 0 : i32
    return %arg0, %c0_i32, %c0_i32_0 : i32, i32, i32
  }
  func.func @transform_2(%arg0: i32) -> (i32, i32) {
    %c0_i32 = arith.constant 0 : i32
    %c0_i32_0 = arith.constant 0 : i32
    %c0_i32_1 = arith.constant 0 : i32
    return %c0_i32, %c0_i32_0 : i32, i32
  }
  func.func @transform_3(%arg0: i32) -> (i32, i32) {
    %c0_i32 = arith.constant 0 : i32
    %c0_i32_0 = arith.constant 0 : i32
    %c0_i32_1 = arith.constant 0 : i32
    return %c0_i32, %c0_i32_0 : i32, i32
  }
  func.func @transform_4(%arg0: i32) -> (i32, i32) {
    %c0_i32 = arith.constant 0 : i32
    %c0_i32_0 = arith.constant 0 : i32
    %c0_i32_1 = arith.constant 0 : i32
    return %c0_i32, %c0_i32_0 : i32, i32
  }
  func.func @transform_5(%arg0: i32) -> (i32, i32) {
    %c0_i32 = arith.constant 0 : i32
    %c0_i32_0 = arith.constant 0 : i32
    %c0_i32_1 = arith.constant 0 : i32
    return %c0_i32, %c0_i32_0 : i32, i32
  }
  func.func @transform_6(%arg0: i32) -> (i32, i32) {
    %c0_i32 = arith.constant 0 : i32
    %c0_i32_0 = arith.constant 0 : i32
    %c0_i32_1 = arith.constant 0 : i32
    return %c0_i32, %c0_i32_0 : i32, i32
  }
  func.func @transform_7(%arg0: i32) -> (i32, i32) {
    %c0_i32 = arith.constant 0 : i32
    %c0_i32_0 = arith.constant 0 : i32
    %c0_i32_1 = arith.constant 0 : i32
    return %c0_i32, %c0_i32_0 : i32, i32
  }
  func.func @transform_8(%arg0: i32) -> (i32, i32) {
    %c0_i32 = arith.constant 0 : i32
    %c0_i32_0 = arith.constant 0 : i32
    %c0_i32_1 = arith.constant 0 : i32
    return %c0_i32, %c0_i32_0 : i32, i32
  }
  func.func @transform_9(%arg0: i32) -> (i32, i32) {
    %c0_i32 = arith.constant 0 : i32
    %c0_i32_0 = arith.constant 0 : i32
    %c0_i32_1 = arith.constant 0 : i32
    return %c0_i32, %c0_i32_0 : i32, i32
  }
  func.func @transform_10(%arg0: i32) -> (i32, i32, i32) {
    %c0_i32 = arith.constant 0 : i32
    %c0_i32_0 = arith.constant 0 : i32
    %c0_i32_1 = arith.constant 0 : i32
    return %arg0, %c0_i32, %c0_i32_0 : i32, i32, i32
  }
}

</mosaic_0001>

<bundles_post_ra>
// kernel: custom-call.4
= control target key start
LH: loop header
LB: loop body
LE: loop exit
PB: predicated region body
PF: predicated region fallthrough
CT: control target
= control target key end

     0   :  { %s6_s0 = inlined_call_operand.vmem [shape: f32[2,128], index: 0, kind: output, shape index: {}]  }

// kernel: kl_autoencoder_forward.7
= control target key start
LH: loop header
LB: loop body
LE: loop exit
PB: predicated region body
PF: predicated region fallthrough
CT: control target
= control target key end

     0   :  { %vm189_vm0 = vcmask 1042432   ;;  %vm68_vm1 = vcmask 416768   ;;  %vm458_vm2 = vcmask 523264   ;;  %s1086_s1 = inlined_call_operand.vmem [shape: f32[51,64], index: 1, kind: input, shape index: {}]   ;;  %s1087_s0 = inlined_call_operand.vmem [shape: f32[320,51], index: 0, kind: input, shape index: {}]   ;;  %s1088_s2 = inlined_call_operand.vmem [shape: f32[1,64], index: 2, kind: input, shape index: {}]   ;;  %s1089_s3 = inlined_call_operand.vmem [shape: f32[320,64], index: 3, kind: output, shape index: {}]  }
   0x1   :  { %v60_v0 = vld [vmem:[%s1086_s1 + $0x30] sm:$0x7]  ;;  %v59_v1 = vld [vmem:[%s1086_s1 + $0x28] sm:$0xff]  ;;  %v58_v2 = vld [vmem:[%s1086_s1 + $0x20] sm:$0xff] }
   0x2   :  { %592 = vmatprep.subr.msk.mxu0 %vm189_vm0, %v60_v0  ;;  %666 = vmatprep.subr.msk.mxu1 %vm189_vm0, %v60_v0  ;;  %v57_v3 = vld [vmem:[%s1086_s1 + $0x18] sm:$0xff]  ;;  %v56_v4 = vld [vmem:[%s1086_s1 + $0x10] sm:$0xff]  ;;  %v55_v5 = vld [vmem:[%s1086_s1 + $0x8] sm:$0xff] }
   0x3   :  { %593 = vmatpush3.msk.msra.mxu0 %vm189_vm0, %v60_v0  ;;  %673 = vmatpush3.msk.msra.mxu1 %vm189_vm0, %v60_v0  ;;  %v54_v6 = vld [vmem:[%s1086_s1] sm:$0xff]  ;;  %v15_v9 = vld [vmem:[%s1087_s0 + $0x8] sm:$0xff]  ;;  %v16_v11 = vld [vmem:[%s1087_s0 + $0x10] sm:$0xff] }
   0x4   :  { %594 = vmatprep.subr.mxu0 %v59_v1  ;;  %667 = vmatprep.subr.mxu1 %v59_v1  ;;  %v14_v7 = vld [vmem:[%s1087_s0] sm:$0xff]  ;;  %v35_v10 = vld [vmem:[%s1087_s0 + $0xa8] sm:$0xff]  ;;  %v36_v12 = vld [vmem:[%s1087_s0 + $0xb0] sm:$0xff] }
   0x5   :  { %595 = vmatpush3.msra.mxu0 %v59_v1  ;;  %674 = vmatpush3.msra.mxu1 %v59_v1  ;;  %v34_v8 = vld [vmem:[%s1087_s0 + $0xa0] sm:$0xff]  ;;  %v17_v13 = vld [vmem:[%s1087_s0 + $0x18] sm:$0xff]  ;;  %v19_v17 = vld [vmem:[%s1087_s0 + $0x28] sm:$0xff] }
   0x6   :  { %596 = vmatprep.subr.mxu0 %v58_v2  ;;  %668 = vmatprep.subr.mxu1 %v58_v2  ;;  %v37_v14 = vld [vmem:[%s1087_s0 + $0xb8] sm:$0xff]  ;;  %v18_v15 = vld [vmem:[%s1087_s0 + $0x20] sm:$0xff]  ;;  %v39_v18 = vld [vmem:[%s1087_s0 + $0xc8] sm:$0xff] }
   0x7   :  { %597 = vmatpush3.msra.mxu0 %v58_v2  ;;  %675 = vmatpush3.msra.mxu1 %v58_v2  ;;  %v38_v16 = vld [vmem:[%s1087_s0 + $0xc0] sm:$0xff]  ;;  %v20_v19 = vld [vmem:[%s1087_s0 + $0x30] sm:$0xff]  ;;  %v21_v21 = vld [vmem:[%s1087_s0 + $0x38] sm:$0xff] }
   0x8   :  { %598 = vmatprep.subr.mxu0 %v57_v3  ;;  %669 = vmatprep.subr.mxu1 %v57_v3  ;;  %v40_v20 = vld [vmem:[%s1087_s0 + $0xd0] sm:$0xff]  ;;  %v41_v22 = vld [vmem:[%s1087_s0 + $0xd8] sm:$0xff]  ;;  %v22_v23 = vld [vmem:[%s1087_s0 + $0x40] sm:$0xff] }
   0x9   :  { %599 = vmatpush3.msra.mxu0 %v57_v3  ;;  %676 = vmatpush3.msra.mxu1 %v57_v3  ;;  %v42_v24 = vld [vmem:[%s1087_s0 + $0xe0] sm:$0xff]  ;;  %v23_v25 = vld [vmem:[%s1087_s0 + $0x48] sm:$0xff]  ;;  %v24_v27 = vld [vmem:[%s1087_s0 + $0x50] sm:$0xff] }
   0xa   :  { %600 = vmatprep.subr.mxu0 %v56_v4  ;;  %670 = vmatprep.subr.mxu1 %v56_v4  ;;  %v43_v26 = vld [vmem:[%s1087_s0 + $0xe8] sm:$0xff]  ;;  %v44_v28 = vld [vmem:[%s1087_s0 + $0xf0] sm:$0xff]  ;;  %v25_v29 = vld [vmem:[%s1087_s0 + $0x58] sm:$0xff] }
   0xb   :  { %601 = vmatpush3.msra.mxu0 %v56_v4  ;;  %677 = vmatpush3.msra.mxu1 %v56_v4  ;;  %v45_v30 = vld [vmem:[%s1087_s0 + $0xf8] sm:$0xff]  ;;  %v26_v31 = vld [vmem:[%s1087_s0 + $0x60] sm:$0xff]  ;;  %v27_v33 = vld [vmem:[%s1087_s0 + $0x68] sm:$0xff] }
   0xc   :  { %602 = vmatprep.subr.mxu0 %v55_v5  ;;  %671 = vmatprep.subr.mxu1 %v55_v5  ;;  %v46_v32 = vld [vmem:[%s1087_s0 + $0x100] sm:$0xff]  ;;  %v47_v34 = vld [vmem:[%s1087_s0 + $0x108] sm:$0xff]  ;;  %v28_v35 = vld [vmem:[%s1087_s0 + $0x70] sm:$0xff] }
   0xd   :  { %603 = vmatpush3.msra.mxu0 %v55_v5  ;;  %678 = vmatpush3.msra.mxu1 %v55_v5  ;;  %v48_v36 = vld [vmem:[%s1087_s0 + $0x110] sm:$0xff]  ;;  %v29_v37 = vld [vmem:[%s1087_s0 + $0x78] sm:$0xff]  ;;  %v30_v39 = vld [vmem:[%s1087_s0 + $0x80] sm:$0xff] }
   0xe   :  { %604 = vmatprep.subr.mxu0 %v54_v6  ;;  %672 = vmatprep.subr.mxu1 %v54_v6  ;;  %v49_v38 = vld [vmem:[%s1087_s0 + $0x118] sm:$0xff]  ;;  %v50_v40 = vld [vmem:[%s1087_s0 + $0x120] sm:$0xff]  ;;  %v31_v41 = vld [vmem:[%s1087_s0 + $0x88] sm:$0xff] }
   0xf   :  { %605 = vmatpush3.msra.mxu0 %v54_v6  ;;  %679 = vmatpush3.msra.mxu1 %v54_v6  ;;  %v51_v42 = vld [vmem:[%s1087_s0 + $0x128] sm:$0xff]  ;;  %v32_v43 = vld [vmem:[%s1087_s0 + $0x90] sm:$0xff]  ;;  %v33_v45 = vld [vmem:[%s1087_s0 + $0x98] sm:$0xff] }
  0x10   :  { %606 = vmatprep.mubr.msk.f32.mxu0 %vm68_vm1, %v14_v7  ;;  %636 = vmatprep.mubr.msk.f32.mxu1 %vm68_vm1, %v34_v8  ;;  %v52_v44 = vld [vmem:[%s1087_s0 + $0x130] sm:$0xff]  ;;  %v53_v46 = vld [vmem:[%s1087_s0 + $0x138] sm:$0xff]  ;;  %v884_v47 = vld [vmem:[%s1088_s2] ss:$0 sm:$0xff] }
  0x11   :  { %607 = vmatmul.mubr.msk.f32.vlgmr.msra.gmra.mxu0 %vm68_vm1, %v15_v9  ;;  %637 = vmatmul.mubr.msk.f32.vlgmr.msra.gmra.mxu1 %vm68_vm1, %v35_v10 }
  0x12   :  { %609 = vmatprep.mubr.msk.f32.mxu0 %vm68_vm1, %v16_v11  ;;  %639 = vmatprep.mubr.msk.f32.mxu1 %vm68_vm1, %v36_v12 }
  0x15   :  { %610 = vmatmul.mubr.msk.f32.gmra.mxu0 %vm68_vm1, %v17_v13  ;;  %640 = vmatmul.mubr.msk.f32.gmra.mxu1 %vm68_vm1, %v37_v14 }
  0x16   :  { %612 = vmatprep.mubr.msk.f32.mxu0 %vm68_vm1, %v18_v15  ;;  %642 = vmatprep.mubr.msk.f32.mxu1 %vm68_vm1, %v38_v16 }
  0x19   :  { %613 = vmatmul.mubr.msk.f32.gmra.mxu0 %vm68_vm1, %v19_v17  ;;  %643 = vmatmul.mubr.msk.f32.gmra.mxu1 %vm68_vm1, %v39_v18 }
  0x1a   :  { %615 = vmatprep.mubr.msk.f32.mxu0 %vm68_vm1, %v20_v19  ;;  %645 = vmatprep.mubr.msk.f32.mxu1 %vm68_vm1, %v40_v20 }
  0x1d   :  { %616 = vmatmul.mubr.msk.f32.gmra.mxu0 %vm68_vm1, %v21_v21  ;;  %646 = vmatmul.mubr.msk.f32.gmra.mxu1 %vm68_vm1, %v41_v22 }
  0x1e   :  { %618 = vmatprep.mubr.msk.f32.mxu0 %vm68_vm1, %v22_v23  ;;  %648 = vmatprep.mubr.msk.f32.mxu1 %vm68_vm1, %v42_v24 }
  0x21   :  { %619 = vmatmul.mubr.msk.f32.gmra.mxu0 %vm68_vm1, %v23_v25  ;;  %649 = vmatmul.mubr.msk.f32.gmra.mxu1 %vm68_vm1, %v43_v26 }
  0x22   :  { %621 = vmatprep.mubr.msk.f32.mxu0 %vm68_vm1, %v24_v27  ;;  %651 = vmatprep.mubr.msk.f32.mxu1 %vm68_vm1, %v44_v28 }
  0x25   :  { %622 = vmatmul.mubr.msk.f32.gmra.mxu0 %vm68_vm1, %v25_v29  ;;  %652 = vmatmul.mubr.msk.f32.gmra.mxu1 %vm68_vm1, %v45_v30 }
  0x26   :  { %624 = vmatprep.mubr.msk.f32.mxu0 %vm68_vm1, %v26_v31  ;;  %654 = vmatprep.mubr.msk.f32.mxu1 %vm68_vm1, %v46_v32 }
  0x29   :  { %625 = vmatmul.mubr.msk.f32.gmra.mxu0 %vm68_vm1, %v27_v33  ;;  %655 = vmatmul.mubr.msk.f32.gmra.mxu1 %vm68_vm1, %v47_v34 }
  0x2a   :  { %627 = vmatprep.mubr.msk.f32.mxu0 %vm68_vm1, %v28_v35  ;;  %657 = vmatprep.mubr.msk.f32.mxu1 %vm68_vm1, %v48_v36 }
  0x2d   :  { %628 = vmatmul.mubr.msk.f32.gmra.mxu0 %vm68_vm1, %v29_v37  ;;  %658 = vmatmul.mubr.msk.f32.gmra.mxu1 %vm68_vm1, %v49_v38 }
  0x2e   :  { %630 = vmatprep.mubr.msk.f32.mxu0 %vm68_vm1, %v30_v39  ;;  %660 = vmatprep.mubr.msk.f32.mxu1 %vm68_vm1, %v50_v40 }
  0x31   :  { %631 = vmatmul.mubr.msk.f32.gmra.mxu0 %vm68_vm1, %v31_v41  ;;  %661 = vmatmul.mubr.msk.f32.gmra.mxu1 %vm68_vm1, %v51_v42 }
  0x32   :  { %633 = vmatprep.mubr.msk.f32.mxu0 %vm68_vm1, %v32_v43  ;;  %663 = vmatprep.mubr.msk.f32.mxu1 %vm68_vm1, %v52_v44 }
  0x35   :  { %634 = vmatmul.mubr.msk.f32.gmra.mxu0 %vm68_vm1, %v33_v45  ;;  %664 = vmatmul.mubr.msk.f32.gmra.mxu1 %vm68_vm1, %v53_v46 }
  0xd1   :  { %v608_v48 = vpop.f32.mrf.mxu0  ;;  %v638_v49 = vpop.f32.mrf.mxu1 }
  0xd2   :  { %v265_v50 = vadd.f32 %v608_v48, %v884_v47  ;;  %v365_v51 = vadd.f32 %v638_v49, %v884_v47 }
  0xd3   :  { %v259_v52 = vpop.f32.mrf.mxu0  ;;  %v359_v53 = vpop.f32.mrf.mxu1 }
  0xd4   :  { %460 = vst.msk [vmem:[%s1089_s3 + $0x8] sm:$0xff] %vm458_vm2, %v265_v50  ;;  %480 = vst.msk [vmem:[%s1089_s3 + $0xa8] sm:$0xff] %vm458_vm2, %v365_v51  ;;  %v260_v54 = vadd.f32 %v884_v47, %v259_v52  ;;  %v360_v55 = vadd.f32 %v884_v47, %v359_v53 }
  0xd5   :  { %v611_v56 = vpop.f32.mrf.mxu0  ;;  %v641_v57 = vpop.f32.mrf.mxu1 }
  0xd6   :  { %459 = vst.msk [vmem:[%s1089_s3] sm:$0xff] %vm458_vm2, %v260_v54  ;;  %479 = vst.msk [vmem:[%s1089_s3 + $0xa0] sm:$0xff] %vm458_vm2, %v360_v55  ;;  %v275_v58 = vadd.f32 %v611_v56, %v884_v47  ;;  %v375_v59 = vadd.f32 %v641_v57, %v884_v47 }
  0xd7   :  { %v269_v60 = vpop.f32.mrf.mxu0  ;;  %v369_v61 = vpop.f32.mrf.mxu1 }
  0xd8   :  { %462 = vst.msk [vmem:[%s1089_s3 + $0x18] sm:$0xff] %vm458_vm2, %v275_v58  ;;  %482 = vst.msk [vmem:[%s1089_s3 + $0xb8] sm:$0xff] %vm458_vm2, %v375_v59  ;;  %v270_v62 = vadd.f32 %v884_v47, %v269_v60  ;;  %v370_v63 = vadd.f32 %v884_v47, %v369_v61 }
  0xd9   :  { %v614_v0 = vpop.f32.mrf.mxu0  ;;  %v644_v1 = vpop.f32.mrf.mxu1 }
  0xda   :  { %461 = vst.msk [vmem:[%s1089_s3 + $0x10] sm:$0xff] %vm458_vm2, %v270_v62  ;;  %481 = vst.msk [vmem:[%s1089_s3 + $0xb0] sm:$0xff] %vm458_vm2, %v370_v63  ;;  %v285_v2 = vadd.f32 %v614_v0, %v884_v47  ;;  %v385_v3 = vadd.f32 %v644_v1, %v884_v47 }
  0xdb   :  { %v279_v4 = vpop.f32.mrf.mxu0  ;;  %v379_v5 = vpop.f32.mrf.mxu1 }
  0xdc   :  { %464 = vst.msk [vmem:[%s1089_s3 + $0x28] sm:$0xff] %vm458_vm2, %v285_v2  ;;  %484 = vst.msk [vmem:[%s1089_s3 + $0xc8] sm:$0xff] %vm458_vm2, %v385_v3  ;;  %v280_v6 = vadd.f32 %v884_v47, %v279_v4  ;;  %v380_v7 = vadd.f32 %v884_v47, %v379_v5 }
  0xdd   :  { %v617_v8 = vpop.f32.mrf.mxu0  ;;  %v647_v9 = vpop.f32.mrf.mxu1 }
  0xde   :  { %463 = vst.msk [vmem:[%s1089_s3 + $0x20] sm:$0xff] %vm458_vm2, %v280_v6  ;;  %483 = vst.msk [vmem:[%s1089_s3 + $0xc0] sm:$0xff] %vm458_vm2, %v380_v7  ;;  %v295_v10 = vadd.f32 %v617_v8, %v884_v47  ;;  %v395_v11 = vadd.f32 %v647_v9, %v884_v47 }
  0xdf   :  { %v289_v12 = vpop.f32.mrf.mxu0  ;;  %v389_v13 = vpop.f32.mrf.mxu1 }
  0xe0   :  { %466 = vst.msk [vmem:[%s1089_s3 + $0x38] sm:$0xff] %vm458_vm2, %v295_v10  ;;  %486 = vst.msk [vmem:[%s1089_s3 + $0xd8] sm:$0xff] %vm458_vm2, %v395_v11  ;;  %v290_v14 = vadd.f32 %v884_v47, %v289_v12  ;;  %v390_v15 = vadd.f32 %v884_v47, %v389_v13 }
  0xe1   :  { %v620_v16 = vpop.f32.mrf.mxu0  ;;  %v650_v17 = vpop.f32.mrf.mxu1 }
  0xe2   :  { %465 = vst.msk [vmem:[%s1089_s3 + $0x30] sm:$0xff] %vm458_vm2, %v290_v14  ;;  %485 = vst.msk [vmem:[%s1089_s3 + $0xd0] sm:$0xff] %vm458_vm2, %v390_v15  ;;  %v305_v18 = vadd.f32 %v620_v16, %v884_v47  ;;  %v405_v19 = vadd.f32 %v650_v17, %v884_v47 }
  0xe3   :  { %v299_v20 = vpop.f32.mrf.mxu0  ;;  %v399_v21 = vpop.f32.mrf.mxu1 }
  0xe4   :  { %468 = vst.msk [vmem:[%s1089_s3 + $0x48] sm:$0xff] %vm458_vm2, %v305_v18  ;;  %488 = vst.msk [vmem:[%s1089_s3 + $0xe8] sm:$0xff] %vm458_vm2, %v405_v19  ;;  %v300_v22 = vadd.f32 %v884_v47, %v299_v20  ;;  %v400_v23 = vadd.f32 %v884_v47, %v399_v21 }
  0xe5   :  { %v623_v24 = vpop.f32.mrf.mxu0  ;;  %v653_v25 = vpop.f32.mrf.mxu1 }
  0xe6   :  { %467 = vst.msk [vmem:[%s1089_s3 + $0x40] sm:$0xff] %vm458_vm2, %v300_v22  ;;  %487 = vst.msk [vmem:[%s1089_s3 + $0xe0] sm:$0xff] %vm458_vm2, %v400_v23  ;;  %v315_v26 = vadd.f32 %v623_v24, %v884_v47  ;;  %v415_v27 = vadd.f32 %v653_v25, %v884_v47 }
  0xe7   :  { %v309_v28 = vpop.f32.mrf.mxu0  ;;  %v409_v29 = vpop.f32.mrf.mxu1 }
  0xe8   :  { %470 = vst.msk [vmem:[%s1089_s3 + $0x58] sm:$0xff] %vm458_vm2, %v315_v26  ;;  %490 = vst.msk [vmem:[%s1089_s3 + $0xf8] sm:$0xff] %vm458_vm2, %v415_v27  ;;  %v310_v30 = vadd.f32 %v884_v47, %v309_v28  ;;  %v410_v31 = vadd.f32 %v884_v47, %v409_v29 }
  0xe9   :  { %v626_v32 = vpop.f32.mrf.mxu0  ;;  %v656_v33 = vpop.f32.mrf.mxu1 }
  0xea   :  { %469 = vst.msk [vmem:[%s1089_s3 + $0x50] sm:$0xff] %vm458_vm2, %v310_v30  ;;  %489 = vst.msk [vmem:[%s1089_s3 + $0xf0] sm:$0xff] %vm458_vm2, %v410_v31  ;;  %v325_v34 = vadd.f32 %v626_v32, %v884_v47  ;;  %v425_v35 = vadd.f32 %v656_v33, %v884_v47 }
  0xeb   :  { %v319_v36 = vpop.f32.mrf.mxu0  ;;  %v419_v37 = vpop.f32.mrf.mxu1 }
  0xec   :  { %472 = vst.msk [vmem:[%s1089_s3 + $0x68] sm:$0xff] %vm458_vm2, %v325_v34  ;;  %492 = vst.msk [vmem:[%s1089_s3 + $0x108] sm:$0xff] %vm458_vm2, %v425_v35  ;;  %v320_v38 = vadd.f32 %v884_v47, %v319_v36  ;;  %v420_v39 = vadd.f32 %v884_v47, %v419_v37 }
  0xed   :  { %v629_v40 = vpop.f32.mrf.mxu0  ;;  %v659_v41 = vpop.f32.mrf.mxu1 }
  0xee   :  { %471 = vst.msk [vmem:[%s1089_s3 + $0x60] sm:$0xff] %vm458_vm2, %v320_v38  ;;  %491 = vst.msk [vmem:[%s1089_s3 + $0x100] sm:$0xff] %vm458_vm2, %v420_v39  ;;  %v335_v42 = vadd.f32 %v629_v40, %v884_v47  ;;  %v435_v43 = vadd.f32 %v659_v41, %v884_v47 }
  0xef   :  { %v329_v44 = vpop.f32.mrf.mxu0  ;;  %v429_v45 = vpop.f32.mrf.mxu1 }
  0xf0   :  { %474 = vst.msk [vmem:[%s1089_s3 + $0x78] sm:$0xff] %vm458_vm2, %v335_v42  ;;  %494 = vst.msk [vmem:[%s1089_s3 + $0x118] sm:$0xff] %vm458_vm2, %v435_v43  ;;  %v330_v46 = vadd.f32 %v884_v47, %v329_v44  ;;  %v430_v48 = vadd.f32 %v884_v47, %v429_v45 }
  0xf1   :  { %v632_v49 = vpop.f32.mrf.mxu0  ;;  %v662_v50 = vpop.f32.mrf.mxu1 }
  0xf2   :  { %473 = vst.msk [vmem:[%s1089_s3 + $0x70] sm:$0xff] %vm458_vm2, %v330_v46  ;;  %493 = vst.msk [vmem:[%s1089_s3 + $0x110] sm:$0xff] %vm458_vm2, %v430_v48  ;;  %v345_v51 = vadd.f32 %v632_v49, %v884_v47  ;;  %v445_v52 = vadd.f32 %v662_v50, %v884_v47 }
  0xf3   :  { %v339_v53 = vpop.f32.mrf.mxu0  ;;  %v439_v54 = vpop.f32.mrf.mxu1 }
  0xf4   :  { %476 = vst.msk [vmem:[%s1089_s3 + $0x88] sm:$0xff] %vm458_vm2, %v345_v51  ;;  %496 = vst.msk [vmem:[%s1089_s3 + $0x128] sm:$0xff] %vm458_vm2, %v445_v52  ;;  %v340_v55 = vadd.f32 %v884_v47, %v339_v53  ;;  %v440_v56 = vadd.f32 %v884_v47, %v439_v54 }
  0xf5   :  { %v635_v57 = vpop.f32.mrf.mxu0  ;;  %v665_v58 = vpop.f32.mrf.mxu1 }
  0xf6   :  { %475 = vst.msk [vmem:[%s1089_s3 + $0x80] sm:$0xff] %vm458_vm2, %v340_v55  ;;  %495 = vst.msk [vmem:[%s1089_s3 + $0x120] sm:$0xff] %vm458_vm2, %v440_v56  ;;  %v355_v59 = vadd.f32 %v635_v57, %v884_v47  ;;  %v455_v60 = vadd.f32 %v665_v58, %v884_v47 }
  0xf7   :  { %v349_v61 = vpop.f32.mrf.mxu0  ;;  %v449_v62 = vpop.f32.mrf.mxu1 }
  0xf8   :  { %478 = vst.msk [vmem:[%s1089_s3 + $0x98] sm:$0xff] %vm458_vm2, %v355_v59  ;;  %498 = vst.msk [vmem:[%s1089_s3 + $0x138] sm:$0xff] %vm458_vm2, %v455_v60  ;;  %v350_v63 = vadd.f32 %v884_v47, %v349_v61  ;;  %v450_v0 = vadd.f32 %v884_v47, %v449_v62 }
  0xfa   :  { %477 = vst.msk [vmem:[%s1089_s3 + $0x90] sm:$0xff] %vm458_vm2, %v350_v63  ;;  %497 = vst.msk [vmem:[%s1089_s3 + $0x130] sm:$0xff] %vm458_vm2, %v450_v0 }

// kernel: kl_autoencoder_forward.10
= control target key start
LH: loop header
LB: loop body
LE: loop exit
PB: predicated region body
PF: predicated region fallthrough
CT: control target
= control target key end

     0   :  { %vm31_vm0 = vcmask 130048   ;;  %vm161_vm1 = vcmask 523264   ;;  %s306_s1 = inlined_call_operand.vmem [shape: f32[16,64], index: 1, kind: input, shape index: {}]   ;;  %s307_s0 = inlined_call_operand.vmem [shape: f32[64,16], index: 0, kind: input, shape index: {}]   ;;  %s308_s2 = inlined_call_operand.vmem [shape: f32[1,64], index: 2, kind: input, shape index: {}]   ;;  %s309_s3 = inlined_call_operand.vmem [shape: f32[64,64], index: 3, kind: output, shape index: {}]  }
   0x1   :  { %v23_v0 = vld [vmem:[%s306_s1 + $0x8] sm:$0xff]  ;;  %v22_v1 = vld [vmem:[%s306_s1] sm:$0xff]  ;;  %v16_v6 = vld [vmem:[%s307_s0 + $0x10] sm:$0xff] }
   0x2   :  { %193 = vmatprep.subr.mxu0 %v23_v0  ;;  %209 = vmatprep.subr.mxu1 %v23_v0  ;;  %v14_v2 = vld [vmem:[%s307_s0] sm:$0xff]  ;;  %v15_v4 = vld [vmem:[%s307_s0 + $0x8] sm:$0xff]  ;;  %v20_v7 = vld [vmem:[%s307_s0 + $0x30] sm:$0xff] }
   0x3   :  { %194 = vmatpush3.msra.mxu0 %v23_v0  ;;  %211 = vmatpush3.msra.mxu1 %v23_v0  ;;  %v18_v3 = vld [vmem:[%s307_s0 + $0x20] sm:$0xff]  ;;  %v19_v5 = vld [vmem:[%s307_s0 + $0x28] sm:$0xff]  ;;  %v17_v8 = vld [vmem:[%s307_s0 + $0x18] sm:$0xff] }
   0x4   :  { %195 = vmatprep.subr.mxu0 %v22_v1  ;;  %210 = vmatprep.subr.mxu1 %v22_v1  ;;  %v21_v9 = vld [vmem:[%s307_s0 + $0x38] sm:$0xff]  ;;  %v174_v10 = vld [vmem:[%s308_s2] ss:$0 sm:$0xff] }
   0x5   :  { %196 = vmatpush3.msra.mxu0 %v22_v1  ;;  %212 = vmatpush3.msra.mxu1 %v22_v1 }
   0x6   :  { %197 = vmatprep.mubr.msk.f32.mxu0 %vm31_vm0, %v14_v2  ;;  %203 = vmatprep.mubr.msk.f32.mxu1 %vm31_vm0, %v18_v3 }
   0x7   :  { %198 = vmatmul.mubr.msk.f32.vlgmr.msra.gmra.mxu0 %vm31_vm0, %v15_v4  ;;  %204 = vmatmul.mubr.msk.f32.vlgmr.msra.gmra.mxu1 %vm31_vm0, %v19_v5 }
   0x8   :  { %200 = vmatprep.mubr.msk.f32.mxu0 %vm31_vm0, %v16_v6  ;;  %206 = vmatprep.mubr.msk.f32.mxu1 %vm31_vm0, %v20_v7 }
   0xb   :  { %201 = vmatmul.mubr.msk.f32.gmra.mxu0 %vm31_vm0, %v17_v8  ;;  %207 = vmatmul.mubr.msk.f32.gmra.mxu1 %vm31_vm0, %v21_v9 }
  0xc7   :  { %v199_v11 = vpop.f32.mrf.mxu0  ;;  %v205_v12 = vpop.f32.mrf.mxu1 }
  0xc8   :  { %v128_v13 = vadd.f32 %v199_v11, %v174_v10  ;;  %v148_v14 = vadd.f32 %v205_v12, %v174_v10 }
  0xc9   :  { %v122_v15 = vpop.f32.mrf.mxu0  ;;  %v142_v16 = vpop.f32.mrf.mxu1 }
  0xca   :  { %163 = vst.msk [vmem:[%s309_s3 + $0x8] sm:$0xff] %vm161_vm1, %v128_v13  ;;  %167 = vst.msk [vmem:[%s309_s3 + $0x28] sm:$0xff] %vm161_vm1, %v148_v14  ;;  %v123_v17 = vadd.f32 %v174_v10, %v122_v15  ;;  %v143_v18 = vadd.f32 %v174_v10, %v142_v16 }
  0xcb   :  { %v202_v19 = vpop.f32.mrf.mxu0  ;;  %v208_v20 = vpop.f32.mrf.mxu1 }
  0xcc   :  { %162 = vst.msk [vmem:[%s309_s3] sm:$0xff] %vm161_vm1, %v123_v17  ;;  %166 = vst.msk [vmem:[%s309_s3 + $0x20] sm:$0xff] %vm161_vm1, %v143_v18  ;;  %v138_v21 = vadd.f32 %v202_v19, %v174_v10  ;;  %v158_v22 = vadd.f32 %v208_v20, %v174_v10 }
  0xcd   :  { %v132_v23 = vpop.f32.mrf.mxu0  ;;  %v152_v24 = vpop.f32.mrf.mxu1 }
  0xce   :  { %165 = vst.msk [vmem:[%s309_s3 + $0x18] sm:$0xff] %vm161_vm1, %v138_v21  ;;  %169 = vst.msk [vmem:[%s309_s3 + $0x38] sm:$0xff] %vm161_vm1, %v158_v22  ;;  %v133_v25 = vadd.f32 %v174_v10, %v132_v23  ;;  %v153_v26 = vadd.f32 %v174_v10, %v152_v24 }
  0xd0   :  { %164 = vst.msk [vmem:[%s309_s3 + $0x10] sm:$0xff] %vm161_vm1, %v133_v25  ;;  %168 = vst.msk [vmem:[%s309_s3 + $0x30] sm:$0xff] %vm161_vm1, %v153_v26 }

// kernel: kl_autoencoder_forward.8
= control target key start
LH: loop header
LB: loop body
LE: loop exit
PB: predicated region body
PF: predicated region fallthrough
CT: control target
= control target key end

     0   :  { %s4341_s0 = inlined_call_operand.vmem [shape: f32[2,32,64], index: 0, kind: input, shape index: {}]   ;;  %s4342_s1 = inlined_call_operand.vmem [shape: f32[2,128,64], index: 1, kind: input, shape index: {}]   ;;  %s4343_s2 = inlined_call_operand.vmem [shape: f32[1,64], index: 2, kind: input, shape index: {}]   ;;  %s4344_s3 = inlined_call_operand.vmem [shape: f32[1,64], index: 3, kind: input, shape index: {}]   ;;  %s4345_s4 = inlined_call_operand.vmem [shape: f32[1,64], index: 4, kind: input, shape index: {}]   ;;  %s4346_s5 = inlined_call_operand.vmem [shape: f32[1,64], index: 5, kind: input, shape index: {}]   ;;  %s4347_s6 = inlined_call_operand.vmem [shape: f32[64,64], index: 6, kind: input, shape index: {}]   ;;  %s4348_s7 = inlined_call_operand.vmem [shape: f32[64,128], index: 7, kind: input, shape index: {}]   ;;  %s4349_s8 = inlined_call_operand.vmem [shape: f32[64,64], index: 8, kind: input, shape index: {}]   ;;  %s4350_s9 = inlined_call_operand.vmem [shape: f32[1,64], index: 9, kind: input, shape index: {}]   ;;  %s4351_s10 = inlined_call_operand.vmem [shape: f32[1,64], index: 10, kind: input, shape index: {}]   ;;  %s4352_s11 = inlined_call_operand.vmem [shape: f32[1,64], index: 11, kind: input, shape index: {}]   ;;  %s4353_s12 = inlined_call_operand.vmem [shape: f32[64,512], index: 12, kind: input, shape index: {}]   ;;  %s4354_s13 = inlined_call_operand.vmem [shape: f32[1,512], index: 13, kind: input, shape index: {}]   ;;  %s4355_s14 = inlined_call_operand.vmem [shape: f32[256,64], index: 14, kind: input, shape index: {}]   ;;  %s4356_s15 = inlined_call_operand.vmem [shape: f32[1,64], index: 15, kind: input, shape index: {}]   ;;  %s4357_s16 = inlined_call_operand.vmem [shape: f32[64,32], index: 16, kind: input, shape index: {}]   ;;  %s4358_s17 = inlined_call_operand.vmem [shape: f32[1,32], index: 17, kind: input, shape index: {}]   ;;  %s4359_s18 = inlined_call_operand.vmem [shape: f32[2,32,32], index: 18, kind: output, shape index: {0}]   ;;  %s4360_s19 = inlined_call_operand.vmem [shape: f32[2,1,128], index: 19, kind: output, shape index: {1}]  }
   0x1   :  { %4361 = sst [smem:[#allocation2_spill]] %s4341_s0  ;;  %s3330_s0 = smov 0  }
   0x2   :  { %4362 = sst [smem:[#allocation3_spill]] %s4342_s1 }
   0x3   :  { %4363 = sst [smem:[#allocation4_spill]] %s4343_s2 }
   0x4   :  { %4364 = sst [smem:[#allocation5_spill]] %s4344_s3 }
   0x5 LB: > { %s2689_s30 = sadd.s32 4294967295, %s3225_s0   ;;  %p2693_p0 = scmp.ge.s32.totalorder %s3225_s0, 1  ;;  %s3225_s0 = sphi %s3330_s0, %s30_s0  }
   0x6   : > { %p550_p1 = scmp.lt.s32.totalorder %s3225_s0, 3 }
   0x8   : > { %p551_p2 = pnand %p2693_p0, %p550_p1 }
   0x9   : > { %p614_p3 = scmp.lt.s32.totalorder (!%p551_p2), %s2689_s30, 1  ;;  %s4365_s22 = sld [smem:[#allocation3_spill]] (!%p551_p2) }
   0xa   : > { %554 = sbr.rel (%p551_p2) target bundleno = 2863 (0xb2f), region = 92  ;;  %s4366_s3 = sld [smem:[#allocation2_spill]] (!%p551_p2) }
   0xb   : > { %s4367_s1 = sld [smem:[#allocation4_spill]] (!%p551_p2)  ;;  %s3227_s25 = smov (!%p551_p2), 64  }
   0xc   : > { %s4368_s24 = sld [smem:[#allocation5_spill]] (!%p551_p2) }
   0xf   : > { %s4370_s30 = smov (!%p614_p3, %s2689_s30), 1  ;;  %vm654_vm0 = vcmask 523264   ;;  %vm2504_vm9 = vcmask 261120   ;;  %vm2573_vm10 = vcmask 130048  }
  0x10   : > { %s2772_s20 = sshll.u32 %s4370_s30, 7  ;;  %s2771_s23 = sshll.u32 %s4370_s30, 5 }
  0x11   : > { %s3344_s2 = scalar_lea.vmem %s4365_s22, %s2772_s20  ;;  %s3422_s26 = scalar_lea.vmem %s4366_s3, %s2771_s23 }
  0x12   : > { %v636_v0 = vld [vmem:[%s3344_s2] sm:$0xff]  ;;  %v638_v1 = vld [vmem:[%s3344_s2 + $0x10] sm:$0xff]  ;;  %v3349_v2 = vld [vmem:[%s3344_s2 + $0x8] sm:$0xff] }
  0x13   : > { %v730_v3 = vsel %vm654_vm0, %v636_v0, 0.0  ;;  %v736_v4 = vsel %vm654_vm0, %v638_v1, 0.0  ;;  %v3354_v5 = vld [vmem:[%s3344_s2 + $0x18] sm:$0xff]  ;;  %v733_v6 = vsel %vm654_vm0, %v3349_v2, 0.0  ;;  %v3361_v8 = vld [vmem:[%s3344_s2 + $0x20] sm:$0xff]  ;;  %v3364_v9 = vld [vmem:[%s3344_s2 + $0x28] sm:$0xff] }
  0x14   : > { %731 = vadd.xlane.f32.xlu0 %v730_v3  ;;  %737 = vadd.xlane.f32.xlu1 %v736_v4  ;;  %v739_v7 = vsel %vm654_vm0, %v3354_v5, 0.0  ;;  %v742_v10 = vsel %vm654_vm0, %v3361_v8, 0.0  ;;  %v745_v11 = vsel %vm654_vm0, %v3364_v9, 0.0  ;;  %v3371_v12 = vld [vmem:[%s3344_s2 + $0x30] sm:$0xff]  ;;  %v3374_v13 = vld [vmem:[%s3344_s2 + $0x38] sm:$0xff]  ;;  %v3381_v16 = vld [vmem:[%s3344_s2 + $0x40] sm:$0xff] }
  0x15   : > { %v748_v14 = vsel %vm654_vm0, %v3371_v12, 0.0  ;;  %v751_v15 = vsel %vm654_vm0, %v3374_v13, 0.0  ;;  %v3384_v17 = vld [vmem:[%s3344_s2 + $0x48] sm:$0xff]  ;;  %v754_v18 = vsel %vm654_vm0, %v3381_v16, 0.0  ;;  %v3391_v20 = vld [vmem:[%s3344_s2 + $0x50] sm:$0xff]  ;;  %v3394_v21 = vld [vmem:[%s3344_s2 + $0x58] sm:$0xff] }
  0x16   : > { %v757_v19 = vsel %vm654_vm0, %v3384_v17, 0.0  ;;  %v760_v22 = vsel %vm654_vm0, %v3391_v20, 0.0  ;;  %v763_v23 = vsel %vm654_vm0, %v3394_v21, 0.0  ;;  %v3401_v24 = vld [vmem:[%s3344_s2 + $0x60] sm:$0xff]  ;;  %v3404_v25 = vld [vmem:[%s3344_s2 + $0x68] sm:$0xff]  ;;  %v3412_v28 = vld [vmem:[%s3344_s2 + $0x70] sm:$0xff] }
  0x17   : > { %v766_v26 = vsel %vm654_vm0, %v3401_v24, 0.0  ;;  %v769_v27 = vsel %vm654_vm0, %v3404_v25, 0.0  ;;  %v3415_v29 = vld [vmem:[%s3344_s2 + $0x78] sm:$0xff]  ;;  %v772_v30 = vsel %vm654_vm0, %v3412_v28, 0.0  ;;  %v3429_v32 = vld [vmem:[%s3422_s26] sm:$0xff]  ;;  %v3434_v34 = vld [vmem:[%s3422_s26 + $0x8] sm:$0xff] }
  0x18   : > { %734 = vadd.xlane.f32.xlu0 %v733_v6  ;;  %740 = vadd.xlane.f32.xlu1 %v739_v7  ;;  %v775_v31 = vsel %vm654_vm0, %v3415_v29, 0.0  ;;  %v655_v33 = vsel %vm654_vm0, %v3429_v32, 0.0  ;;  %v658_v35 = vsel %vm654_vm0, %v3434_v34, 0.0  ;;  %v3471_v4 = vld [vmem:[%s3422_s26 + $0x10] sm:$0xff] }
  0x1c   : > { %743 = vadd.xlane.f32.xlu0 %v742_v10  ;;  %746 = vadd.xlane.f32.xlu1 %v745_v11 }
  0x20   : > { %749 = vadd.xlane.f32.xlu0 %v748_v14  ;;  %752 = vadd.xlane.f32.xlu1 %v751_v15 }
  0x24   : > { %755 = vadd.xlane.f32.xlu0 %v754_v18  ;;  %758 = vadd.xlane.f32.xlu1 %v757_v19 }
  0x28   : > { %761 = vadd.xlane.f32.xlu0 %v760_v22  ;;  %764 = vadd.xlane.f32.xlu1 %v763_v23 }
  0x2c   : > { %767 = vadd.xlane.f32.xlu0 %v766_v26  ;;  %770 = vadd.xlane.f32.xlu1 %v769_v27 }
  0x30   : > { %773 = vadd.xlane.f32.xlu0 %v772_v30  ;;  %776 = vadd.xlane.f32.xlu1 %v775_v31  ;;  %v3496_v30 = vld [vmem:[%s3422_s26 + $0x18] sm:$0xff] }
  0x34   : > { %656 = vadd.xlane.f32.xlu0 %v655_v33 }
  0x38   : > { %659 = vadd.xlane.f32.xlu0 %v658_v35  ;;  %v664_v35 = vsel %vm654_vm0, %v3496_v30, 0.0 }
  0x9d   : > { %v732_v36 = vpop.xlane.xlu0 %731  ;;  %v738_v37 = vpop.xlane.xlu1 %737 }
  0x9e   : > { %v778_v38 = vmul.f32 0.015625, %v732_v36  ;;  %v780_v39 = vmul.f32 0.015625, %v738_v37 }
  0xa0   : > { %v3438_v40 = vsub.f32 %v636_v0, %v778_v38  ;;  %v3440_v41 = vsub.f32 %v638_v1, %v780_v39 }
  0xa1   : > { %v735_v42 = vpop.xlane.xlu0 %734  ;;  %v741_v43 = vpop.xlane.xlu1 %740 }
  0xa2   : > { %v779_v44 = vmul.f32 0.015625, %v735_v42  ;;  %v781_v45 = vmul.f32 0.015625, %v741_v43  ;;  %v810_v46 = vmul.f32 %v3438_v40, %v3438_v40  ;;  %v812_v47 = vmul.f32 %v3440_v41, %v3440_v41 }
  0xa4   : > { %v3447_v48 = vsub.f32 %v3349_v2, %v779_v44  ;;  %v3450_v49 = vsub.f32 %v3354_v5, %v781_v45  ;;  %v826_v50 = vsel %vm654_vm0, %v810_v46, 0.0  ;;  %v832_v53 = vsel %vm654_vm0, %v812_v47, 0.0 }
  0xa5   : > { %v744_v51 = vpop.xlane.xlu0 %743  ;;  %827 = vadd.xlane.f32.xlu0 %v826_v50  ;;  %v747_v52 = vpop.xlane.xlu1 %746 }
  0xa6   : > { %v782_v54 = vmul.f32 0.015625, %v744_v51  ;;  %v783_v55 = vmul.f32 0.015625, %v747_v52  ;;  %v811_v56 = vmul.f32 %v3447_v48, %v3447_v48  ;;  %v813_v57 = vmul.f32 %v3450_v49, %v3450_v49 }
  0xa8   : > { %v3459_v58 = vsub.f32 %v3361_v8, %v782_v54  ;;  %v3462_v59 = vsub.f32 %v3364_v9, %v783_v55  ;;  %v829_v60 = vsel %vm654_vm0, %v811_v56, 0.0  ;;  %v835_v62 = vsel %vm654_vm0, %v813_v57, 0.0  ;;  %v1093_v57 = vld [vmem:[%s4348_s7 + $0x30] sm:$0xff] }
  0xa9   : > { %830 = vadd.xlane.f32.xlu1 %v829_v60  ;;  %v750_v61 = vpop.xlane.xlu0 %749  ;;  %833 = vadd.xlane.f32.xlu0 %v832_v53  ;;  %v753_v63 = vpop.xlane.xlu1 %752  ;;  %v661_v8 = vsel %vm654_vm0, %v3471_v4, 0.0 }
  0xaa   : > { %v784_v0 = vmul.f32 0.015625, %v750_v61  ;;  %v814_v1 = vmul.f32 %v3459_v58, %v3459_v58  ;;  %v785_v2 = vmul.f32 0.015625, %v753_v63  ;;  %v815_v3 = vmul.f32 %v3462_v59, %v3462_v59 }
  0xac   : > { %v3474_v5 = vsub.f32 %v3371_v12, %v784_v0  ;;  %v838_v6 = vsel %vm654_vm0, %v814_v1, 0.0  ;;  %v3480_v11 = vsub.f32 %v3374_v13, %v785_v2  ;;  %v841_v14 = vsel %vm654_vm0, %v815_v3, 0.0  ;;  %v1091_v3 = vld [vmem:[%s4348_s7 + $0x20] sm:$0xff] }
  0xad   : > { %836 = vadd.xlane.f32.xlu1 %v835_v62  ;;  %v756_v7 = vpop.xlane.xlu0 %755  ;;  %839 = vadd.xlane.f32.xlu0 %v838_v6  ;;  %v759_v9 = vpop.xlane.xlu1 %758 }
  0xae   : > { %v786_v10 = vmul.f32 0.015625, %v756_v7  ;;  %v787_v15 = vmul.f32 0.015625, %v759_v9  ;;  %v816_v18 = vmul.f32 %v3474_v5, %v3474_v5  ;;  %v817_v27 = vmul.f32 %v3480_v11, %v3480_v11 }
  0xb0   : > { %v3484_v12 = vsub.f32 %v3381_v16, %v786_v10  ;;  %v3489_v26 = vsub.f32 %v3384_v17, %v787_v15  ;;  %v844_v16 = vsel %vm654_vm0, %v816_v18, 0.0  ;;  %v847_v39 = vsel %vm654_vm0, %v817_v27, 0.0  ;;  %v1090_v10 = vld [vmem:[%s4348_s7 + $0x18] sm:$0xff]  ;;  %v1089_v18 = vld [vmem:[%s4348_s7 + $0x10] sm:$0xff] }
  0xb1   : > { %842 = vadd.xlane.f32.xlu1 %v841_v14  ;;  %v762_v19 = vpop.xlane.xlu0 %761  ;;  %662 = vadd.xlane.f32.xlu0 %v661_v8  ;;  %v765_v22 = vpop.xlane.xlu1 %764  ;;  %v989_v27 = vld [vmem:[%s4347_s6 + $0x38] sm:$0xff] }
  0xb2   : > { %v788_v23 = vmul.f32 0.015625, %v762_v19  ;;  %v818_v13 = vmul.f32 %v3484_v12, %v3484_v12  ;;  %v789_v17 = vmul.f32 0.015625, %v765_v22  ;;  %v819_v42 = vmul.f32 %v3489_v26, %v3489_v26  ;;  %v1088_v19 = vld [vmem:[%s4348_s7 + $0x8] sm:$0xff]  ;;  %2918 = vmatprep.subr.mxu0 %v989_v27 }
  0xb3   : > { %2919 = vmatpush3.msra.mxu0 %v989_v27 }
  0xb4   : > { %v850_v31 = vsel %vm654_vm0, %v818_v13, 0.0  ;;  %v3503_v37 = vsub.f32 %v3391_v20, %v788_v23  ;;  %v3512_v45 = vsub.f32 %v3394_v21, %v789_v17  ;;  %v853_v20 = vsel %vm654_vm0, %v819_v42, 0.0  ;;  %v1087_v23 = vld [vmem:[%s4348_s7] sm:$0xff]  ;;  %v984_v17 = vld [vmem:[%s4347_s6 + $0x10] sm:$0xff] }
  0xb5   : > { %845 = vadd.xlane.f32.xlu1 %v844_v16  ;;  %v768_v33 = vpop.xlane.xlu0 %767  ;;  %851 = vadd.xlane.f32.xlu0 %v850_v31  ;;  %v771_v36 = vpop.xlane.xlu1 %770  ;;  %v988_v16 = vld [vmem:[%s4347_s6 + $0x30] sm:$0xff]  ;;  %v987_v31 = vld [vmem:[%s4347_s6 + $0x28] sm:$0xff] }
  0xb6   : > { %v790_v38 = vmul.f32 0.015625, %v768_v33  ;;  %v791_v46 = vmul.f32 0.015625, %v771_v36  ;;  %v820_v51 = vmul.f32 %v3503_v37, %v3503_v37  ;;  %v821_v56 = vmul.f32 %v3512_v45, %v3512_v45  ;;  %2920 = vmatprep.subr.mxu0 %v988_v16  ;;  %v986_v33 = vld [vmem:[%s4347_s6 + $0x20] sm:$0xff]  ;;  %v983_v36 = vld [vmem:[%s4347_s6 + $0x8] sm:$0xff] }
  0xb7   : > { %2921 = vmatpush3.msra.mxu0 %v988_v16 }
  0xb8   : > { %v3509_v43 = vsub.f32 %v3401_v24, %v790_v38  ;;  %v1094_v24 = vld [vmem:[%s4348_s7 + $0x38] sm:$0xff]  ;;  %v3527_v55 = vsub.f32 %v3404_v25, %v791_v46  ;;  %v1092_v25 = vld [vmem:[%s4348_s7 + $0x28] sm:$0xff]  ;;  %v859_v1 = vsel %vm654_vm0, %v821_v56, 0.0  ;;  %2922 = vmatprep.subr.mxu0 %v987_v31  ;;  %v982_v38 = vld [vmem:[%s4347_s6] sm:$0xff] }
  0xb9   : > { %848 = vadd.xlane.f32.xlu1 %v847_v39  ;;  %v774_v44 = vpop.xlane.xlu0 %773  ;;  %665 = vadd.xlane.f32.xlu0 %v664_v35  ;;  %v777_v52 = vpop.xlane.xlu1 %776  ;;  %v985_v35 = vld [vmem:[%s4347_s6 + $0x18] sm:$0xff] }
  0xba   : > { %v792_v47 = vmul.f32 0.015625, %v774_v44  ;;  %v822_v50 = vmul.f32 %v3509_v43, %v3509_v43  ;;  %2940 = vmatprep.subr.mxu1 %v1094_v24  ;;  %v793_v62 = vmul.f32 0.015625, %v777_v52  ;;  %2923 = vmatpush3.msra.mxu0 %v987_v31 }
  0xbb   : > { %2941 = vmatpush3.msra.mxu1 %v1094_v24  ;;  %2924 = vmatprep.subr.mxu0 %v986_v33 }
  0xbc   : > { %v3523_v53 = vsub.f32 %v3412_v28, %v792_v47  ;;  %v862_v21 = vsel %vm654_vm0, %v822_v50, 0.0  ;;  %v856_v28 = vsel %vm654_vm0, %v820_v51, 0.0  ;;  %2942 = vmatprep.subr.mxu1 %v1093_v57  ;;  %v3549_v6 = vsub.f32 %v3415_v29, %v793_v62  ;;  %2925 = vmatpush3.msra.mxu0 %v986_v33 }
  0xbd   : > { %854 = vadd.xlane.f32.xlu1 %v853_v20  ;;  %863 = vadd.xlane.f32.xlu0 %v862_v21  ;;  %v657_v54 = vpop.xlane.xlu0 %656 }
  0xbe   : > { %v668_v60 = vmul.f32 0.015625, %v657_v54  ;;  %v824_v61 = vmul.f32 %v3523_v53, %v3523_v53  ;;  %2943 = vmatpush3.msra.mxu1 %v1093_v57  ;;  %v825_v15 = vmul.f32 %v3549_v6, %v3549_v6  ;;  %2926 = vmatprep.subr.mxu0 %v985_v35 }
  0xbf   : > { %2944 = vmatprep.subr.mxu1 %v1092_v25  ;;  %2927 = vmatpush3.msra.mxu0 %v985_v35 }
  0xc0   : > { %v3541_v63 = vsub.f32 %v3429_v32, %v668_v60  ;;  %v868_v0 = vsel %vm654_vm0, %v824_v61, 0.0  ;;  %v823_v32 = vmul.f32 %v3527_v55, %v3527_v55  ;;  %2945 = vmatpush3.msra.mxu1 %v1092_v25  ;;  %v871_v22 = vsel %vm654_vm0, %v825_v15, 0.0  ;;  %2928 = vmatprep.subr.mxu0 %v984_v17 }
  0xc1   : > { %857 = vadd.xlane.f32.xlu1 %v856_v28  ;;  %869 = vadd.xlane.f32.xlu0 %v868_v0  ;;  %v660_v2 = vpop.xlane.xlu0 %659 }
  0xc2   : > { %v676_v7 = vmul.f32 %v3541_v63, %v3541_v63  ;;  %v669_v8 = vmul.f32 0.015625, %v660_v2  ;;  %2946 = vmatprep.subr.mxu1 %v1091_v3  ;;  %v865_v29 = vsel %vm654_vm0, %v823_v32, 0.0  ;;  %2929 = vmatpush3.msra.mxu0 %v984_v17 }
  0xc3   : > { %2947 = vmatpush3.msra.mxu1 %v1091_v3  ;;  %2930 = vmatprep.subr.mxu0 %v983_v36 }
  0xc4   : > { %v680_v9 = vsel %vm654_vm0, %v676_v7, 0.0  ;;  %v3561_v14 = vsub.f32 %v3434_v34, %v669_v8  ;;  %2948 = vmatprep.subr.mxu1 %v1090_v10  ;;  %2931 = vmatpush3.msra.mxu0 %v983_v36 }
  0xc5   : > { %860 = vadd.xlane.f32.xlu1 %v859_v1  ;;  %681 = vadd.xlane.f32.xlu0 %v680_v9 }
  0xc6   : > { %2949 = vmatpush3.msra.mxu1 %v1090_v10  ;;  %v677_v34 = vmul.f32 %v3561_v14, %v3561_v14  ;;  %2932 = vmatprep.subr.mxu0 %v982_v38  ;;  %v3610_v10 = vld [vmem:[%s4345_s4] ss:$0 sm:$0xff] }
  0xc7   : > { %2950 = vmatprep.subr.mxu1 %v1089_v18  ;;  %2933 = vmatpush3.msra.mxu0 %v982_v38 }
  0xc8   : > { %2951 = vmatpush3.msra.mxu1 %v1089_v18  ;;  %v683_v13 = vsel %vm654_vm0, %v677_v34, 0.0  ;;  %v3617_v34 = vld [vmem:[%s4346_s5] ss:$0 sm:$0xff] }
  0xc9   : > { %866 = vadd.xlane.f32.xlu1 %v865_v29  ;;  %2952 = vmatprep.subr.mxu1 %v1088_v19 }
  0xca   : > { %2953 = vmatpush3.msra.mxu1 %v1088_v19 }
  0xcb   : > { %2954 = vmatprep.subr.mxu1 %v1087_v23 }
  0xcc   : > { %2955 = vmatpush3.msra.mxu1 %v1087_v23 }
  0xcd   : > { %872 = vadd.xlane.f32.xlu1 %v871_v22 }
  0xd1   : > { %684 = vadd.xlane.f32.xlu1 %v683_v13 }
 0x12e   : > { %v828_v39 = vpop.xlane.xlu0 %827 }
 0x12f   : > { %v874_v42 = vmul.f32 0.015625, %v828_v39 }
 0x131   : > { %v890_v44 = vadd.f32 1e-05, %v874_v42 }
 0x132   : > { %v831_v46 = vpop.xlane.xlu1 %830  ;;  %v834_v47 = vpop.xlane.xlu0 %833 }
 0x133   : > { %3111 = vrsqrt.f32 %v890_v44  ;;  %v875_v20 = vmul.f32 0.015625, %v831_v46  ;;  %v876_v50 = vmul.f32 0.015625, %v834_v47 }
 0x135   : > { %v891_v51 = vadd.f32 1e-05, %v875_v20  ;;  %v892_v52 = vadd.f32 1e-05, %v876_v50 }
 0x136   : > { %v837_v24 = vpop.xlane.xlu1 %836  ;;  %v840_v21 = vpop.xlane.xlu0 %839 }
 0x137   : > { %3113 = vrsqrt.f32 %v891_v51  ;;  %v877_v54 = vmul.f32 0.015625, %v837_v24  ;;  %v878_v56 = vmul.f32 0.015625, %v840_v21 }
 0x138   : > { %3115 = vrsqrt.f32 %v892_v52 }
 0x139   : > { %v893_v57 = vadd.f32 1e-05, %v877_v54  ;;  %v894_v60 = vadd.f32 1e-05, %v878_v56 }
 0x13a   : > { %v843_v28 = vpop.xlane.xlu1 %842  ;;  %v663_v61 = vpop.xlane.xlu0 %662 }
 0x13b   : > { %3117 = vrsqrt.f32 %v893_v57  ;;  %v879_v62 = vmul.f32 0.015625, %v843_v28  ;;  %v670_v25 = vmul.f32 0.015625, %v663_v61 }
 0x13c   : > { %3119 = vrsqrt.f32 %v894_v60 }
 0x13d   : > { %v895_v0 = vadd.f32 1e-05, %v879_v62  ;;  %v3603_v1 = vsub.f32 %v3471_v4, %v670_v25 }
 0x13e   : > { %v846_v2 = vpop.xlane.xlu1 %845  ;;  %v852_v3 = vpop.xlane.xlu0 %851 }
 0x13f   : > { %3121 = vrsqrt.f32 %v895_v0  ;;  %v880_v7 = vmul.f32 0.015625, %v846_v2  ;;  %v882_v32 = vmul.f32 0.015625, %v852_v3  ;;  %v678_v8 = vmul.f32 %v3603_v1, %v3603_v1 }
 0x140   : > { %v3112_v9 = vpop.eup %3111 }
 0x141   : > { %v896_v29 = vadd.f32 1e-05, %v880_v7  ;;  %v898_v15 = vadd.f32 1e-05, %v882_v32  ;;  %v686_v18 = vsel %vm654_vm0, %v678_v8, 0.0  ;;  %v922_v4 = vmul.f32 %v3112_v9, %v3438_v40 }
 0x142   : > { %v849_v19 = vpop.xlane.xlu1 %848  ;;  %687 = vadd.xlane.f32.xlu0 %v686_v18  ;;  %v666_v22 = vpop.xlane.xlu0 %665 }
 0x143   : > { %3123 = vrsqrt.f32 %v896_v29  ;;  %v881_v23 = vmul.f32 0.015625, %v849_v19  ;;  %v671_v13 = vmul.f32 0.015625, %v666_v22  ;;  %v944_v27 = vmul.f32 %v3610_v10, %v922_v4 }
 0x144   : > { %v3114_v16 = vpop.eup %3113  ;;  %3125 = vrsqrt.f32 %v898_v15 }
 0x145   : > { %v3116_v31 = vpop.eup %3115  ;;  %v897_v33 = vadd.f32 1e-05, %v881_v23  ;;  %v3621_v35 = vsub.f32 %v3496_v30, %v671_v13  ;;  %v966_v40 = vadd.f32 %v3617_v34, %v944_v27  ;;  %v923_v17 = vmul.f32 %v3114_v16, %v3447_v48 }
 0x146   : > { %v855_v36 = vpop.xlane.xlu1 %854  ;;  %v864_v38 = vpop.xlane.xlu0 %863  ;;  %v924_v39 = vmul.f32 %v3116_v31, %v3440_v41 }
 0x147   : > { %3127 = vrsqrt.f32 %v897_v33  ;;  %v883_v42 = vmul.f32 0.015625, %v855_v36  ;;  %v886_v44 = vmul.f32 0.015625, %v864_v38  ;;  %2956 = vmatprep.mubr.msk.f32.mxu1 %vm654_vm0, %v966_v40  ;;  %v679_v46 = vmul.f32 %v3621_v35, %v3621_v35 }
 0x148   : > { %v3118_v47 = vpop.eup %3117  ;;  %v945_v30 = vmul.f32 %v3610_v10, %v923_v17  ;;  %v946_v20 = vmul.f32 %v3610_v10, %v924_v39 }
 0x149   : > { %v3120_v50 = vpop.eup %3119  ;;  %v899_v51 = vadd.f32 1e-05, %v883_v42  ;;  %v689_v48 = vsel %vm654_vm0, %v679_v46, 0.0  ;;  %v925_v52 = vmul.f32 %v3118_v47, %v3450_v49  ;;  %v902_v41 = vadd.f32 1e-05, %v886_v44 }
 0x14a   : > { %v858_v24 = vpop.xlane.xlu1 %857  ;;  %690 = vadd.xlane.f32.xlu1 %v689_v48  ;;  %v870_v21 = vpop.xlane.xlu0 %869  ;;  %v967_v54 = vadd.f32 %v3617_v34, %v945_v30  ;;  %v968_v56 = vadd.f32 %v3617_v34, %v946_v20  ;;  %v926_v57 = vmul.f32 %v3120_v50, %v3459_v58 }
 0x14b   : > { %3129 = vrsqrt.f32 %v899_v51  ;;  %v884_v60 = vmul.f32 0.015625, %v858_v24  ;;  %v888_v28 = vmul.f32 0.015625, %v870_v21  ;;  %v947_v61 = vmul.f32 %v3610_v10, %v925_v52 }
 0x14c   : > { %v3122_v62 = vpop.eup %3121  ;;  %2957 = vmatmul.mubr.msk.f32.vlgmr.msra.gmra.mxu1 %vm654_vm0, %v967_v54  ;;  %v948_v49 = vmul.f32 %v3610_v10, %v926_v57  ;;  %3131 = vrsqrt.f32 %v902_v41 }
 0x14d   : > { %v900_v25 = vadd.f32 1e-05, %v884_v60  ;;  %2959 = vmatprep.mubr.msk.f32.mxu1 %vm654_vm0, %v968_v56  ;;  %v969_v0 = vadd.f32 %v3617_v34, %v947_v61  ;;  %v927_v2 = vmul.f32 %v3122_v62, %v3462_v59  ;;  %v904_v3 = vadd.f32 1e-05, %v888_v28  ;;  %v2700_v60 = vld [vmem:[%s4367_s1] ss:$0 sm:$0xff] }
 0x14e   : > { %v861_v58 = vpop.xlane.xlu1 %860  ;;  %v682_v7 = vpop.xlane.xlu0 %681  ;;  %v970_v32 = vadd.f32 %v3617_v34, %v948_v49  ;;  %v2701_v62 = vld [vmem:[%s4368_s24] ss:$0 sm:$0xff]  ;;  %s631_s24 = scalar_lea.vmem %s4360_s19, %s4370_s30 }
 0x14f   : > { %3133 = vrsqrt.f32 %v900_v25  ;;  %v885_v8 = vmul.f32 0.015625, %v861_v58  ;;  %v692_v9 = vmul.f32 0.015625, %v682_v7  ;;  %v949_v29 = vmul.f32 %v3610_v10, %v927_v2 }
 0x150   : > { %v3124_v15 = vpop.eup %3123  ;;  %2960 = vmatmul.mubr.msk.f32.gmra.mxu1 %vm654_vm0, %v969_v0  ;;  %3135 = vrsqrt.f32 %v904_v3 }
 0x151   : > { %v3126_v18 = vpop.eup %3125  ;;  %v901_v4 = vadd.f32 1e-05, %v885_v8  ;;  %v696_v19 = vadd.f32 1e-05, %v692_v9  ;;  %2962 = vmatprep.mubr.msk.f32.mxu1 %vm654_vm0, %v970_v32  ;;  %v971_v59 = vadd.f32 %v3617_v34, %v949_v29  ;;  %v928_v22 = vmul.f32 %v3124_v15, %v3474_v5 }
 0x152   : > { %v867_v23 = vpop.xlane.xlu1 %866  ;;  %v930_v13 = vmul.f32 %v3126_v18, %v3484_v12 }
 0x153   : > { %3137 = vrsqrt.f32 %v901_v4  ;;  %v887_v27 = vmul.f32 0.015625, %v867_v23  ;;  %v950_v16 = vmul.f32 %v3610_v10, %v928_v22 }
 0x154   : > { %v3128_v31 = vpop.eup %3127  ;;  %3139 = vrsqrt.f32 %v696_v19  ;;  %2963 = vmatmul.mubr.msk.f32.gmra.mxu1 %vm654_vm0, %v971_v59  ;;  %v952_v5 = vmul.f32 %v3610_v10, %v930_v13 }
 0x155   : > { %v903_v33 = vadd.f32 1e-05, %v887_v27  ;;  %v972_v40 = vadd.f32 %v3617_v34, %v950_v16  ;;  %v929_v17 = vmul.f32 %v3128_v31, %v3480_v11 }
 0x156   : > { %v873_v36 = vpop.xlane.xlu1 %872  ;;  %v974_v30 = vadd.f32 %v3617_v34, %v952_v5 }
 0x157   : > { %3141 = vrsqrt.f32 %v903_v33  ;;  %v889_v38 = vmul.f32 0.015625, %v873_v36  ;;  %2965 = vmatprep.mubr.msk.f32.mxu1 %vm654_vm0, %v972_v40  ;;  %v951_v12 = vmul.f32 %v3610_v10, %v929_v17 }
 0x158   : > { %v3130_v39 = vpop.eup %3129 }
 0x159   : > { %v905_v42 = vadd.f32 1e-05, %v889_v38  ;;  %v973_v44 = vadd.f32 %v3617_v34, %v951_v12  ;;  %v931_v46 = vmul.f32 %v3130_v39, %v3489_v26  ;;  %v3132_v20 = vpop.eup %3131 }
 0x15a   : > { %v685_v47 = vpop.xlane.xlu1 %684  ;;  %v934_v26 = vmul.f32 %v3132_v20, %v3509_v43 }
 0x15b   : > { %3143 = vrsqrt.f32 %v905_v42  ;;  %v693_v11 = vmul.f32 0.015625, %v685_v47  ;;  %2966 = vmatmul.mubr.msk.f32.gmra.mxu1 %vm654_vm0, %v973_v44  ;;  %v953_v50 = vmul.f32 %v3610_v10, %v931_v46 }
 0x15c   : > { %v3134_v51 = vpop.eup %3133  ;;  %2968 = vmatprep.mubr.msk.f32.mxu1 %vm654_vm0, %v974_v30  ;;  %v956_v43 = vmul.f32 %v3610_v10, %v934_v26 }
 0x15d   : > { %v697_v48 = vadd.f32 1e-05, %v693_v11  ;;  %v975_v52 = vadd.f32 %v3617_v34, %v953_v50  ;;  %v932_v41 = vmul.f32 %v3134_v51, %v3503_v37  ;;  %v3136_v24 = vpop.eup %3135 }
 0x15e   : > { %v936_v61 = vmul.f32 %v3136_v24, %v3523_v53 }
 0x15f   : > { %3145 = vrsqrt.f32 %v697_v48  ;;  %2969 = vmatmul.mubr.msk.f32.gmra.mxu1 %vm654_vm0, %v975_v52  ;;  %v954_v21 = vmul.f32 %v3610_v10, %v932_v41 }
 0x160   : > { %v3138_v54 = vpop.eup %3137  ;;  %v958_v58 = vmul.f32 %v3610_v10, %v936_v61 }
 0x161   : > { %v3140_v56 = vpop.eup %3139  ;;  %v976_v57 = vadd.f32 %v3617_v34, %v954_v21  ;;  %v933_v28 = vmul.f32 %v3138_v54, %v3512_v45 }
 0x162   : > { %v704_v37 = vmul.f32 %v3140_v56, %v3541_v63  ;;  %v978_v63 = vadd.f32 %v3617_v34, %v956_v43 }
 0x163   : > { %2971 = vmatprep.mubr.msk.f32.mxu1 %vm654_vm0, %v976_v57  ;;  %v955_v49 = vmul.f32 %v3610_v10, %v933_v28 }
 0x164   : > { %v3142_v25 = vpop.eup %3141  ;;  %v714_v0 = vmul.f32 %v2700_v60, %v704_v37 }
 0x165   : > { %v977_v2 = vadd.f32 %v3617_v34, %v955_v49  ;;  %v935_v45 = vmul.f32 %v3142_v25, %v3527_v55  ;;  %v980_v55 = vadd.f32 %v3617_v34, %v958_v58 }
 0x166   : > { %v724_v3 = vadd.f32 %v2701_v62, %v714_v0 }
 0x167   : > { %2972 = vmatmul.mubr.msk.f32.gmra.mxu1 %vm654_vm0, %v977_v2  ;;  %v957_v53 = vmul.f32 %v3610_v10, %v935_v45 }
 0x168   : > { %v3144_v7 = vpop.eup %3143  ;;  %2934 = vmatprep.mubr.msk.f32.mxu0 %vm654_vm0, %v724_v3  ;;  %2974 = vmatprep.mubr.msk.f32.mxu1 %vm654_vm0, %v978_v63 }
 0x169   : > { %v979_v32 = vadd.f32 %v3617_v34, %v957_v53  ;;  %v937_v8 = vmul.f32 %v3144_v7, %v3549_v6 }
 0x16b   : > { %2975 = vmatmul.mubr.msk.f32.gmra.mxu1 %vm654_vm0, %v979_v32  ;;  %v959_v9 = vmul.f32 %v3610_v10, %v937_v8 }
 0x16c   : > { %v3146_v29 = vpop.eup %3145  ;;  %2977 = vmatprep.mubr.msk.f32.mxu1 %vm654_vm0, %v980_v55 }
 0x16d   : > { %v981_v15 = vadd.f32 %v3617_v34, %v959_v9  ;;  %v705_v18 = vmul.f32 %v3146_v29, %v3561_v14 }
 0x16f   : > { %2978 = vmatmul.mubr.msk.f32.gmra.mxu1 %vm654_vm0, %v981_v15  ;;  %v715_v4 = vmul.f32 %v2700_v60, %v705_v18 }
 0x171   : > { %v725_v19 = vadd.f32 %v2701_v62, %v715_v4 }
 0x173   : > { %2935 = vmatmul.mubr.msk.f32.vlgmr.msra.gmra.mxu0 %vm654_vm0, %v725_v19 }
 0x1cb   : > { %v688_v6 = vpop.xlane.xlu0 %687 }
 0x1cc   : > { %v694_v59 = vmul.f32 0.015625, %v688_v6 }
 0x1ce   : > { %v698_v22 = vadd.f32 1e-05, %v694_v59 }
 0x1d0   : > { %3147 = vrsqrt.f32 %v698_v22 }
 0x1d3   : > { %v691_v23 = vpop.xlane.xlu1 %690 }
 0x1d4   : > { %v695_v13 = vmul.f32 0.015625, %v691_v23 }
 0x1d6   : > { %v699_v10 = vadd.f32 1e-05, %v695_v13 }
 0x1d8   : > { %3149 = vrsqrt.f32 %v699_v10 }
 0x1dd   : > { %v3148_v27 = vpop.eup %3147 }
 0x1de   : > { %v706_v16 = vmul.f32 %v3148_v27, %v3603_v1 }
 0x1e0   : > { %v716_v34 = vmul.f32 %v2700_v60, %v706_v16 }
 0x1e2   : > { %v726_v31 = vadd.f32 %v2701_v62, %v716_v34 }
 0x1e4   : > { %2937 = vmatprep.mubr.msk.f32.mxu0 %vm654_vm0, %v726_v31 }
 0x1e5   : > { %v3150_v14 = vpop.eup %3149 }
 0x1e6   : > { %v707_v33 = vmul.f32 %v3150_v14, %v3621_v35 }
 0x1e8   : > { %v717_v40 = vmul.f32 %v2700_v60, %v707_v33 }
 0x1ea   : > { %v727_v17 = vadd.f32 %v2701_v62, %v717_v40 }
 0x1ec   : > { %2938 = vmatmul.mubr.msk.f32.gmra.mxu0 %vm654_vm0, %v727_v17 }
 0x20c   : > { %v3702_v36 = vpop.f32.mrf.mxu1 }
 0x20e   : > { %v3704_v5 = vpop.f32.mrf.mxu1 }
 0x210   : > { %v3706_v38 = vpop.f32.mrf.mxu1 }
 0x212   : > { %v3708_v12 = vpop.f32.mrf.mxu1 }
 0x214   : > { %v3710_v1 = vpop.f32.mrf.mxu1 }
 0x216   : > { %v3712_v39 = vpop.f32.mrf.mxu1 }
 0x21b   : > { %v3714_v42 = vpop.f32.mrf.mxu1 }
 0x21d   : > { %v3716_v44 = vpop.f32.mrf.mxu1 }
 0x21f   : > { %v3718_v35 = vpop.f32.mrf.mxu1 }
 0x221   : > { %v3720_v46 = vpop.f32.mrf.mxu1 }
 0x227   : > { %v2973_v47 = vpop.f32.mrf.mxu1 }
 0x229   : > { %v1259_v30 = vpop.f32.mrf.mxu1 }
 0x22b   : > { %v2976_v20 = vpop.f32.mrf.mxu1 }
 0x22d   : > { %v1269_v11 = vpop.f32.mrf.mxu1 }
 0x22f   : > { %v2979_v50 = vpop.f32.mrf.mxu1 }
 0x230   : > { %2980 = vmatprep.subr.msk.mxu0 %vm654_vm0, %v2979_v50 }
 0x231   : > { %v1279_v51 = vpop.f32.mrf.mxu1  ;;  %2981 = vmatpush3.xpose.msk.msra.mxu0 %vm654_vm0, %v2979_v50 }
 0x232   : > { %2982 = vmatprep.subr.msk.mxu0 %vm654_vm0, %v1279_v51 }
 0x233   : > { %v2936_v48 = vpop.f32.mrf.mxu0 }
 0x235   : > { %v1068_v52 = vpop.f32.mrf.mxu0  ;;  %2983 = vmatpush3.xpose.msk.msra.mxu0 %vm654_vm0, %v1279_v51 }
 0x236   : > { %2984 = vmatprep.subr.msk.mxu0 %vm654_vm0, %v2976_v20  ;;  %3012 = vmatprep.mubr.msk.f32.mxu0 %vm654_vm0, %v1068_v52 }
 0x239   : > { %2985 = vmatpush3.xpose.msk.msra.mxu0 %vm654_vm0, %v2976_v20 }
 0x23a   : > { %2986 = vmatprep.subr.msk.mxu0 %vm654_vm0, %v1269_v11 }
 0x23d   : > { %2987 = vmatpush3.xpose.msk.msra.mxu0 %vm654_vm0, %v1269_v11 }
 0x23e   : > { %2988 = vmatprep.subr.msk.mxu0 %vm654_vm0, %v2973_v47 }
 0x241   : > { %2989 = vmatpush3.xpose.msk.msra.mxu0 %vm654_vm0, %v2973_v47 }
 0x242   : > { %2990 = vmatprep.subr.msk.mxu0 %vm654_vm0, %v1259_v30 }
 0x245   : > { %2991 = vmatpush3.xpose.msk.msra.mxu0 %vm654_vm0, %v1259_v30 }
 0x246   : > { %2992 = vmatprep.subr.msk.mxu0 %vm654_vm0, %v3718_v35 }
 0x249   : > { %2993 = vmatpush3.xpose.msk.msra.mxu0 %vm654_vm0, %v3718_v35 }
 0x24a   : > { %2994 = vmatprep.subr.msk.mxu0 %vm654_vm0, %v3720_v46 }
 0x24d   : > { %2995 = vmatpush3.xpose.msk.msra.mxu0 %vm654_vm0, %v3720_v46 }
 0x24e   : > { %2996 = vmatprep.subr.msk.mxu0 %vm654_vm0, %v3714_v42 }
 0x251   : > { %2997 = vmatpush3.xpose.msk.msra.mxu0 %vm654_vm0, %v3714_v42 }
 0x252   : > { %2998 = vmatprep.subr.msk.mxu0 %vm654_vm0, %v3716_v44 }
 0x255   : > { %2999 = vmatpush3.xpose.msk.msra.mxu0 %vm654_vm0, %v3716_v44 }
 0x256   : > { %3000 = vmatprep.subr.msk.mxu0 %vm654_vm0, %v3710_v1 }
 0x259   : > { %3001 = vmatpush3.xpose.msk.msra.mxu0 %vm654_vm0, %v3710_v1 }
 0x25a   : > { %3002 = vmatprep.subr.msk.mxu0 %vm654_vm0, %v3712_v39 }
 0x25d   : > { %3003 = vmatpush3.xpose.msk.msra.mxu0 %vm654_vm0, %v3712_v39 }
 0x25e   : > { %3004 = vmatprep.subr.msk.mxu0 %vm654_vm0, %v3706_v38 }
 0x261   : > { %3005 = vmatpush3.xpose.msk.msra.mxu0 %vm654_vm0, %v3706_v38 }
 0x262   : > { %3006 = vmatprep.subr.msk.mxu0 %vm654_vm0, %v3708_v12 }
 0x265   : > { %3007 = vmatpush3.xpose.msk.msra.mxu0 %vm654_vm0, %v3708_v12 }
 0x266   : > { %3008 = vmatprep.subr.msk.mxu0 %vm654_vm0, %v3702_v36 }
 0x269   : > { %3009 = vmatpush3.xpose.msk.msra.mxu0 %vm654_vm0, %v3702_v36 }
 0x26a   : > { %3010 = vmatprep.subr.msk.mxu0 %vm654_vm0, %v3704_v5 }
 0x26d   : > { %3011 = vmatpush3.xpose.msk.msra.mxu0 %vm654_vm0, %v3704_v5 }
 0x270   : > { %3013 = vmatmul.mubr.msk.f32.vlgmr.msra.gmra.mxu0 %vm654_vm0, %v2936_v48 }
 0x2ac   : > { %v2939_v41 = vpop.f32.mrf.mxu0 }
 0x2ae   : > { %v1078_v26 = vpop.f32.mrf.mxu0 }
 0x2af   : > { %3015 = vmatprep.mubr.msk.f32.mxu0 %vm654_vm0, %v1078_v26 }
 0x2b0   : > { %3016 = vmatmul.mubr.msk.f32.gmra.mxu0 %vm654_vm0, %v2939_v41 }
 0x330   : > { %v3014_v24 = vpop.f32.mrf.mxu0 }
 0x331   : > { %v1443_v21 = vmul.f32 0.125, %v3014_v24  ;;  %v2744_v24 = vld [vmem:[%s4350_s9] ss:$0 sm:$0xff] }
 0x332   : > { %v1423_v54 = vpop.f32.mrf.mxu0 }
 0x333   : > { %v1442_v56 = vmul.f32 0.125, %v1423_v54  ;;  %1448 = vmax.xlane.f32.xlu1 %v1443_v21 }
 0x335   : > { %1446 = vmax.xlane.f32.xlu0 %v1442_v56 }
 0x370   : > { %v3017_v57 = vpop.f32.mrf.mxu0 }
 0x371   : > { %v1445_v60 = vmul.f32 0.125, %v3017_v57  ;;  %v3215_v57 = vld [vmem:[%s3422_s26 + $0x8] sm:$0xff] }
 0x372   : > { %v1433_v28 = vpop.f32.mrf.mxu0 }
 0x373   : > { %v1444_v37 = vmul.f32 0.125, %v1433_v28  ;;  %1452 = vmax.xlane.f32.xlu1 %v1445_v60 }
 0x375   : > { %1450 = vmax.xlane.f32.xlu0 %v1444_v37 }
 0x384   : > { %1510 = vrot.lane.b32.xlu1 %v1279_v51, %s3227_s25  ;;  %v1288_v51 = vld [vmem:[%s4349_s8] sm:$0xff] }
 0x388   : > { %1506 = vrot.lane.b32.xlu1 %v1269_v11, %s3227_s25  ;;  %v1290_v11 = vld [vmem:[%s4349_s8 + $0x10] sm:$0xff] }
 0x38b   : > { %1512 = vrot.lane.b32.xlu0 %v2979_v50, %s3227_s25  ;;  %v1289_v50 = vld [vmem:[%s4349_s8 + $0x8] sm:$0xff] }
 0x38c   : > { %1504 = vrot.lane.b32.xlu1 %v2973_v47, %s3227_s25  ;;  %v1291_v47 = vld [vmem:[%s4349_s8 + $0x18] sm:$0xff] }
 0x38f   : > { %1508 = vrot.lane.b32.xlu0 %v2976_v20, %s3227_s25 }
 0x390   : > { %1502 = vrot.lane.b32.xlu1 %v1259_v30, %s3227_s25 }
 0x393   : > { %1500 = vrot.lane.b32.xlu0 %v3718_v35, %s3227_s25 }
 0x394   : > { %1498 = vrot.lane.b32.xlu1 %v3720_v46, %s3227_s25 }
 0x397   : > { %1496 = vrot.lane.b32.xlu0 %v3714_v42, %s3227_s25  ;;  %v1293_v42 = vld [vmem:[%s4349_s8 + $0x28] sm:$0xff] }
 0x398   : > { %1494 = vrot.lane.b32.xlu1 %v3716_v44, %s3227_s25  ;;  %v1292_v44 = vld [vmem:[%s4349_s8 + $0x20] sm:$0xff] }
 0x39b   : > { %1492 = vrot.lane.b32.xlu0 %v3710_v1, %s3227_s25 }
 0x39c   : > { %1490 = vrot.lane.b32.xlu1 %v3712_v39, %s3227_s25  ;;  %v1294_v39 = vld [vmem:[%s4349_s8 + $0x30] sm:$0xff] }
 0x39f   : > { %1488 = vrot.lane.b32.xlu0 %v3706_v38, %s3227_s25 }
 0x3a0   : > { %1486 = vrot.lane.b32.xlu1 %v3708_v12, %s3227_s25 }
 0x3bc   : > { %v1449_v43 = vpop.xlane.xlu1 %1448 }
 0x3bd   : > { %v1455_v61 = vsub.f32 %v1443_v21, %v1449_v43 }
 0x3be   : > { %v1447_v62 = vpop.xlane.xlu0 %1446 }
 0x3bf   : > { %v1460_v49 = vmul.f32 1.442695, %v1455_v61  ;;  %v1454_v25 = vsub.f32 %v1442_v56, %v1447_v62 }
 0x3c1   : > { %3151 = vpow2.f32 %v1460_v49  ;;  %v1458_v0 = vmul.f32 1.442695, %v1454_v25 }
 0x3c3   : > { %3153 = vpow2.f32 %v1458_v0 }
 0x3ce   : > { %v3800_v2 = vpop.eup %3151 }
 0x3cf   : > { %1468 = vadd.xlane.f32.xlu0 %v3800_v2 }
 0x3d0   : > { %v3154_v45 = vpop.eup %3153 }
 0x3d1   : > { %1466 = vadd.xlane.f32.xlu1 %v3154_v45 }
 0x3fc   : > { %v1453_v3 = vpop.xlane.xlu1 %1452 }
 0x3fd   : > { %v1457_v63 = vsub.f32 %v1445_v60, %v1453_v3 }
 0x3fe   : > { %v1451_v58 = vpop.xlane.xlu0 %1450 }
 0x3ff   : > { %v1464_v53 = vmul.f32 1.442695, %v1457_v63  ;;  %v1456_v7 = vsub.f32 %v1444_v37, %v1451_v58  ;;  %v3216_v37 = vld [vmem:[%s3422_s26] sm:$0xff]  ;;  %v3218_v63 = vld [vmem:[%s3422_s26 + $0x18] sm:$0xff] }
 0x400   : > { %v1511_v32 = vpop.permute.xlu1 %1510 }
 0x401   : > { %3155 = vpow2.f32 %v1464_v53  ;;  %v1462_v8 = vmul.f32 1.442695, %v1456_v7 }
 0x402   : > { %v1513_v55 = vpop.permute.xlu0 %1512 }
 0x403   : > { %3157 = vpow2.f32 %v1462_v8  ;;  %3018 = vmatprep.subr.mxu1 %v1513_v55 }
 0x404   : > { %v1507_v9 = vpop.permute.xlu1 %1506  ;;  %3019 = vmatpush3.msra.mxu1 %v1513_v55 }
 0x405   : > { %3020 = vmatprep.subr.mxu1 %v1511_v32 }
 0x406   : > { %3021 = vmatpush3.msra.mxu1 %v1511_v32  ;;  %v1509_v29 = vpop.permute.xlu0 %1508 }
 0x407   : > { %3022 = vmatprep.subr.mxu1 %v1509_v29 }
 0x408   : > { %v1505_v15 = vpop.permute.xlu1 %1504  ;;  %3023 = vmatpush3.msra.mxu1 %v1509_v29 }
 0x409   : > { %3024 = vmatprep.subr.mxu1 %v1507_v9 }
 0x40a   : > { %3025 = vmatpush3.msra.mxu1 %v1507_v9  ;;  %v1501_v18 = vpop.permute.xlu0 %1500 }
 0x40b   : > { %3026 = vmatprep.subr.mxu1 %v1505_v15 }
 0x40c   : > { %v1503_v4 = vpop.permute.xlu1 %1502  ;;  %3027 = vmatpush3.msra.mxu1 %v1505_v15 }
 0x40d   : > { %3028 = vmatprep.subr.mxu1 %v1503_v4 }
 0x40e   : > { %v3803_v19 = vpop.eup %3155  ;;  %3029 = vmatpush3.msra.mxu1 %v1503_v4  ;;  %v1497_v6 = vpop.permute.xlu0 %1496 }
 0x40f   : > { %1472 = vadd.xlane.f32.xlu1 %v3803_v19  ;;  %3030 = vmatprep.subr.mxu1 %v1501_v18 }
 0x410   : > { %v3158_v59 = vpop.eup %3157  ;;  %v1499_v22 = vpop.permute.xlu1 %1498  ;;  %3031 = vmatpush3.msra.mxu1 %v1501_v18 }
 0x411   : > { %1470 = vadd.xlane.f32.xlu0 %v3158_v59  ;;  %3032 = vmatprep.subr.mxu1 %v1499_v22 }
 0x412   : > { %3033 = vmatpush3.msra.mxu1 %v1499_v22  ;;  %v1493_v23 = vpop.permute.xlu0 %1492 }
 0x413   : > { %3034 = vmatprep.subr.mxu1 %v1497_v6 }
 0x414   : > { %v1495_v13 = vpop.permute.xlu1 %1494  ;;  %3035 = vmatpush3.msra.mxu1 %v1497_v6 }
 0x415   : > { %3036 = vmatprep.subr.mxu1 %v1495_v13 }
 0x416   : > { %3037 = vmatpush3.msra.mxu1 %v1495_v13  ;;  %v1489_v27 = vpop.permute.xlu0 %1488 }
 0x417   : > { %3038 = vmatprep.subr.mxu1 %v1493_v23 }
 0x418   : > { %v1491_v10 = vpop.permute.xlu1 %1490  ;;  %3039 = vmatpush3.msra.mxu1 %v1493_v23 }
 0x419   : > { %3040 = vmatprep.subr.mxu1 %v1491_v10 }
 0x41a   : > { %3041 = vmatpush3.msra.mxu1 %v1491_v10 }
 0x41b   : > { %3042 = vmatprep.subr.mxu1 %v1489_v27 }
 0x41c   : > { %v1487_v16 = vpop.permute.xlu1 %1486  ;;  %3043 = vmatpush3.msra.mxu1 %v1489_v27 }
 0x41d   : > { %3044 = vmatprep.subr.mxu1 %v1487_v16 }
 0x41e   : > { %3045 = vmatpush3.msra.mxu1 %v1487_v16 }
 0x420   : > { %1482 = vrot.lane.b32.xlu1 %v3704_v5, %s3227_s25 }
 0x427   : > { %1484 = vrot.lane.b32.xlu0 %v3702_v36, %s3227_s25  ;;  %v1295_v36 = vld [vmem:[%s4349_s8 + $0x38] sm:$0xff] }
 0x458   : > { %v1469_v33 = vpop.xlane.xlu0 %1468 }
 0x45a   : > { %v1467_v34 = vpop.xlane.xlu1 %1466 }
 0x45b   : > { %3159 = vrcp.f32 %v1467_v34 }
 0x45c   : > { %3161 = vrcp.f32 %v1469_v33  ;;  %v1753_v33 = vld [vmem:[%s4353_s12 + $0xe8] sm:$0xff] }
 0x468   : > { %v3160_v31 = vpop.eup %3159 }
 0x469   : > { %v1475_v14 = vmul.f32 %v3160_v31, %v3154_v45  ;;  %v3162_v38 = vpop.eup %3161  ;;  %v3217_v45 = vld [vmem:[%s3422_s26 + $0x10] sm:$0xff]  ;;  %s628_s26 = scalar_lea.vmem %s4359_s18, %s2771_s23  ;;  %s3229_s23 = smov 112  }
 0x46a   : > { %v1477_v5 = vmul.f32 %v3162_v38, %v3800_v2  ;;  %v1754_v38 = vld [vmem:[%s4353_s12 + $0xf0] sm:$0xff] }
 0x46b   : > { %3050 = vmatprep.mubr.f32.mxu1 %v1475_v14 }
 0x498   : > { %v1473_v40 = vpop.xlane.xlu1 %1472 }
 0x499   : > { %3163 = vrcp.f32 %v1473_v40  ;;  %v1755_v40 = vld [vmem:[%s4353_s12 + $0xf8] sm:$0xff] }
 0x49a   : > { %v1471_v17 = vpop.xlane.xlu0 %1470  ;;  %2000 = vmatprep.subr.mxu0 %v1755_v40 }
 0x49b   : > { %3165 = vrcp.f32 %v1471_v17  ;;  %v1752_v17 = vld [vmem:[%s4353_s12 + $0xe0] sm:$0xff]  ;;  %2001 = vmatpush1.msra.mxu0 %v1754_v38 }
 0x49c   : > { %v1483_v1 = vpop.permute.xlu1 %1482 }
 0x49e   : > { %v1485_v12 = vpop.permute.xlu0 %1484 }
 0x49f   : > { %3046 = vmatprep.subr.mxu1 %v1485_v12 }
 0x4a0   : > { %3047 = vmatpush3.msra.mxu1 %v1485_v12  ;;  %v1749_v12 = vld [vmem:[%s4353_s12 + $0xc8] sm:$0xff] }
 0x4a1   : > { %3048 = vmatprep.subr.mxu1 %v1483_v1 }
 0x4a2   : > { %3049 = vmatpush3.msra.mxu1 %v1483_v1  ;;  %v1751_v1 = vld [vmem:[%s4353_s12 + $0xd8] sm:$0xff] }
 0x4a3   : > { %3051 = vmatmul.mubr.f32.vlgmr.msra.gmra.mxu1 %v1477_v5  ;;  %3056 = vmatprep.subr.mxu1 %v1295_v36  ;;  %v1750_v5 = vld [vmem:[%s4353_s12 + $0xd0] sm:$0xff] }
 0x4a4   : > { %3057 = vmatpush3.msra.mxu1 %v1295_v36  ;;  %2002 = vmatprep.subr.mxu0 %v1751_v1  ;;  %v1748_v36 = vld [vmem:[%s4353_s12 + $0xc0] sm:$0xff]  ;;  %v1787_v1 = vld [vmem:[%s4355_s14 + $0xf0] sm:$0xff] }
 0x4a5   : > { %3058 = vmatprep.subr.mxu1 %v1294_v39  ;;  %2003 = vmatpush1.msra.mxu0 %v1750_v5  ;;  %v1786_v5 = vld [vmem:[%s4355_s14 + $0xe8] sm:$0xff] }
 0x4a6   : > { %3059 = vmatpush3.msra.mxu1 %v1294_v39  ;;  %v3164_v35 = vpop.eup %3163  ;;  %v1745_v39 = vld [vmem:[%s4353_s12 + $0xa8] sm:$0xff] }
 0x4a7   : > { %3060 = vmatprep.subr.mxu1 %v1293_v42  ;;  %v1481_v20 = vmul.f32 %v3164_v35, %v3803_v19  ;;  %v1746_v35 = vld [vmem:[%s4353_s12 + $0xb0] sm:$0xff] }
 0x4a8   : > { %v3166_v46 = vpop.eup %3165  ;;  %3061 = vmatpush3.msra.mxu1 %v1293_v42  ;;  %v1747_v42 = vld [vmem:[%s4353_s12 + $0xb8] sm:$0xff] }
 0x4a9   : > { %v1479_v30 = vmul.f32 %v3166_v46, %v3158_v59  ;;  %3062 = vmatprep.subr.mxu1 %v1292_v44  ;;  %2004 = vmatprep.subr.mxu0 %v1747_v42  ;;  %v1741_v46 = vld [vmem:[%s4353_s12 + $0x88] sm:$0xff]  ;;  %v1785_v42 = vld [vmem:[%s4355_s14 + $0xe0] sm:$0xff] }
 0x4aa   : > { %3063 = vmatpush3.msra.mxu1 %v1292_v44  ;;  %v1744_v44 = vld [vmem:[%s4353_s12 + $0xa0] sm:$0xff]  ;;  %2005 = vmatpush1.msra.mxu0 %v1746_v35  ;;  %v1784_v35 = vld [vmem:[%s4355_s14 + $0xd8] sm:$0xff] }
 0x4ab   : > { %3053 = vmatprep.mubr.f32.mxu1 %v1479_v30  ;;  %3064 = vmatprep.subr.mxu1 %v1291_v47  ;;  %v1740_v30 = vld [vmem:[%s4353_s12 + $0x80] sm:$0xff] }
 0x4ac   : > { %3054 = vmatmul.mubr.f32.gmra.mxu1 %v1481_v20  ;;  %v1742_v20 = vld [vmem:[%s4353_s12 + $0x90] sm:$0xff] }
 0x4ad   : > { %3065 = vmatpush3.msra.mxu1 %v1291_v47  ;;  %v1743_v47 = vld [vmem:[%s4353_s12 + $0x98] sm:$0xff] }
 0x4ae   : > { %3066 = vmatprep.subr.mxu1 %v1290_v11  ;;  %2006 = vmatprep.subr.mxu0 %v1743_v47  ;;  %v1783_v47 = vld [vmem:[%s4355_s14 + $0xd0] sm:$0xff] }
 0x4af   : > { %3067 = vmatpush3.msra.mxu1 %v1290_v11  ;;  %2007 = vmatpush1.msra.mxu0 %v1742_v20  ;;  %v1737_v11 = vld [vmem:[%s4353_s12 + $0x68] sm:$0xff] }
 0x4b0   : > { %3068 = vmatprep.subr.mxu1 %v1289_v50  ;;  %v1782_v20 = vld [vmem:[%s4355_s14 + $0xc8] sm:$0xff] }
 0x4b1   : > { %3069 = vmatpush3.msra.mxu1 %v1289_v50  ;;  %v1739_v50 = vld [vmem:[%s4353_s12 + $0x78] sm:$0xff] }
 0x4b2   : > { %3070 = vmatprep.subr.mxu1 %v1288_v51  ;;  %2008 = vmatprep.subr.mxu0 %v1739_v50  ;;  %v1781_v50 = vld [vmem:[%s4355_s14 + $0xc0] sm:$0xff] }
 0x4b3   : > { %3071 = vmatpush3.msra.mxu1 %v1288_v51  ;;  %v1736_v51 = vld [vmem:[%s4353_s12 + $0x60] sm:$0xff] }
 0x4b4   : > { %1911 = vmatprep.subr.mxu1 %v1753_v33 }
 0x563   : > { %v3052_v48 = vpop.f32.mrf.mxu1 }
 0x565   : > { %v1596_v52 = vpop.f32.mrf.mxu1 }
 0x566   : > { %3072 = vmatprep.mubr.msk.f32.mxu1 %vm654_vm0, %v1596_v52  ;;  %v1733_v52 = vld [vmem:[%s4353_s12 + $0x48] sm:$0xff] }
 0x567   : > { %3073 = vmatmul.mubr.msk.f32.vlgmr.msra.gmra.mxu1 %vm654_vm0, %v3052_v48  ;;  %v1738_v48 = vld [vmem:[%s4353_s12 + $0x70] sm:$0xff] }
 0x568   : > { %1912 = vmatpush1.msra.mxu1 %v1752_v17  ;;  %2009 = vmatpush1.msra.mxu0 %v1738_v48  ;;  %v1780_v48 = vld [vmem:[%s4355_s14 + $0xb8] sm:$0xff] }
 0x569   : > { %1913 = vmatprep.subr.mxu1 %v1749_v12 }
 0x56a   : > { %1914 = vmatpush1.msra.mxu1 %v1748_v36  ;;  %v1771_v36 = vld [vmem:[%s4355_s14 + $0x70] sm:$0xff] }
 0x56b   : > { %1915 = vmatprep.subr.mxu1 %v1745_v39  ;;  %v1770_v39 = vld [vmem:[%s4355_s14 + $0x68] sm:$0xff] }
 0x56c   : > { %v3055_v41 = vpop.f32.mrf.mxu1  ;;  %1916 = vmatpush1.msra.mxu1 %v1744_v44  ;;  %v1769_v44 = vld [vmem:[%s4355_s14 + $0x60] sm:$0xff] }
 0x56d   : > { %1917 = vmatprep.subr.mxu1 %v1741_v46  ;;  %v1768_v46 = vld [vmem:[%s4355_s14 + $0x58] sm:$0xff] }
 0x56e   : > { %v1606_v26 = vpop.f32.mrf.mxu1  ;;  %1918 = vmatpush1.msra.mxu1 %v1740_v30  ;;  %v1767_v30 = vld [vmem:[%s4355_s14 + $0x50] sm:$0xff] }
 0x56f   : > { %3075 = vmatprep.mubr.msk.f32.mxu1 %vm654_vm0, %v1606_v26  ;;  %1919 = vmatprep.subr.mxu1 %v1737_v11  ;;  %v1732_v26 = vld [vmem:[%s4353_s12 + $0x40] sm:$0xff]  ;;  %v1766_v11 = vld [vmem:[%s4355_s14 + $0x48] sm:$0xff] }
 0x570   : > { %3076 = vmatmul.mubr.msk.f32.gmra.mxu1 %vm654_vm0, %v3055_v41  ;;  %v1735_v41 = vld [vmem:[%s4353_s12 + $0x58] sm:$0xff] }
 0x571   : > { %1920 = vmatpush1.msra.mxu1 %v1736_v51  ;;  %2010 = vmatprep.subr.mxu0 %v1735_v41  ;;  %v1765_v51 = vld [vmem:[%s4355_s14 + $0x40] sm:$0xff]  ;;  %v1779_v41 = vld [vmem:[%s4355_s14 + $0xb0] sm:$0xff] }
 0x572   : > { %1921 = vmatprep.subr.mxu1 %v1733_v52  ;;  %v1764_v52 = vld [vmem:[%s4355_s14 + $0x38] sm:$0xff] }
 0x573   : > { %1922 = vmatpush1.msra.mxu1 %v1732_v26  ;;  %v1763_v26 = vld [vmem:[%s4355_s14 + $0x30] sm:$0xff] }
 0x627   : > { %v3074_v21 = vpop.f32.mrf.mxu1 }
 0x628   : > { %v1705_v54 = vadd.f32 %v3074_v21, %v2744_v24  ;;  %v1729_v21 = vld [vmem:[%s4353_s12 + $0x28] sm:$0xff] }
 0x629   : > { %v1699_v56 = vpop.f32.mrf.mxu1  ;;  %1923 = vmatprep.subr.mxu1 %v1729_v21  ;;  %v1762_v21 = vld [vmem:[%s4355_s14 + $0x28] sm:$0xff] }
 0x62a   : > { %v3844_v60 = vadd.f32 %v3215_v57, %v1705_v54  ;;  %v1700_v28 = vadd.f32 %v2744_v24, %v1699_v56  ;;  %v1731_v54 = vld [vmem:[%s4353_s12 + $0x38] sm:$0xff]  ;;  %v1728_v56 = vld [vmem:[%s4353_s12 + $0x20] sm:$0xff]  ;;  %v1730_v57 = vld [vmem:[%s4353_s12 + $0x30] sm:$0xff] }
 0x62b   : > { %1924 = vmatpush1.msra.mxu1 %v1728_v56  ;;  %v1761_v56 = vld [vmem:[%s4355_s14 + $0x20] sm:$0xff] }
 0x62c   : > { %v3847_v43 = vadd.f32 %v3216_v37, %v1700_v28  ;;  %v1793_v61 = vsel %vm654_vm0, %v3844_v60, 0.0  ;;  %v1725_v28 = vld [vmem:[%s4353_s12 + $0x8] sm:$0xff]  ;;  %v1727_v37 = vld [vmem:[%s4353_s12 + $0x18] sm:$0xff] }
 0x62d   : > { %1794 = vadd.xlane.f32.xlu1 %v1793_v61  ;;  %v1724_v61 = vld [vmem:[%s4353_s12] sm:$0xff]  ;;  %1925 = vmatprep.subr.mxu1 %v1725_v28  ;;  %v1760_v28 = vld [vmem:[%s4355_s14 + $0x18] sm:$0xff] }
 0x62e   : > { %v1790_v62 = vsel %vm654_vm0, %v3847_v43, 0.0  ;;  %1926 = vmatpush1.msra.mxu1 %v1724_v61  ;;  %v1759_v61 = vld [vmem:[%s4355_s14 + $0x10] sm:$0xff] }
 0x62f   : > { %1791 = vadd.xlane.f32.xlu0 %v1790_v62  ;;  %v1726_v62 = vld [vmem:[%s4353_s12 + $0x10] sm:$0xff] }
 0x630   : > { %v3077_v49 = vpop.f32.mrf.mxu1 }
 0x631   : > { %v1715_v0 = vadd.f32 %v3077_v49, %v2744_v24  ;;  %v3228_v49 = vmov 0.0  }
 0x632   : > { %v1709_v25 = vpop.f32.mrf.mxu1  ;;  %1959 = vmatprep.mubr.f32.mxu1 %v3228_v49  ;;  %2048 = vmatprep.mubr.f32.mxu0 %v3228_v49 }
 0x633   : > { %v1710_v2 = vadd.f32 %v2744_v24, %v1709_v25  ;;  %v3857_v58 = vadd.f32 %v3218_v63, %v1715_v0  ;;  %v1734_v24 = vld [vmem:[%s4353_s12 + $0x50] sm:$0xff] }
 0x634   : > { %2011 = vmatpush1.msra.mxu0 %v1734_v24  ;;  %v1778_v24 = vld [vmem:[%s4355_s14 + $0xa8] sm:$0xff] }
 0x635   : > { %v3854_v3 = vadd.f32 %v3217_v45, %v1710_v2  ;;  %v1799_v7 = vsel %vm654_vm0, %v3857_v58, 0.0  ;;  %2012 = vmatprep.subr.mxu0 %v1731_v54  ;;  %v1777_v54 = vld [vmem:[%s4355_s14 + $0xa0] sm:$0xff] }
 0x636   : > { %2013 = vmatpush1.msra.mxu0 %v1730_v57  ;;  %v1776_v57 = vld [vmem:[%s4355_s14 + $0x98] sm:$0xff] }
 0x637   : > { %v1796_v53 = vsel %vm654_vm0, %v3854_v3, 0.0  ;;  %2014 = vmatprep.subr.mxu0 %v1727_v37  ;;  %v1775_v37 = vld [vmem:[%s4355_s14 + $0x90] sm:$0xff] }
 0x638   : > { %1797 = vadd.xlane.f32.xlu0 %v1796_v53  ;;  %2015 = vmatpush1.msra.mxu0 %v1726_v62  ;;  %v1774_v62 = vld [vmem:[%s4355_s14 + $0x88] sm:$0xff] }
 0x63c   : > { %1800 = vadd.xlane.f32.xlu0 %v1799_v7 }
 0x6b6   : > { %v1795_v32 = vpop.xlane.xlu1 %1794 }
 0x6b7   : > { %v1803_v8 = vmul.f32 0.015625, %v1795_v32 }
 0x6b8   : > { %v1792_v55 = vpop.xlane.xlu0 %1791 }
 0x6b9   : > { %v3864_v9 = vsub.f32 %v3844_v60, %v1803_v8  ;;  %v1802_v29 = vmul.f32 0.015625, %v1792_v55 }
 0x6bb   : > { %v3867_v15 = vsub.f32 %v3847_v43, %v1802_v29  ;;  %v1811_v18 = vmul.f32 %v3864_v9, %v3864_v9 }
 0x6bd   : > { %v1817_v4 = vsel %vm654_vm0, %v1811_v18, 0.0  ;;  %v1810_v19 = vmul.f32 %v3867_v15, %v3867_v15 }
 0x6be   : > { %1818 = vadd.xlane.f32.xlu1 %v1817_v4 }
 0x6bf   : > { %v1814_v6 = vsel %vm654_vm0, %v1810_v19, 0.0 }
 0x6c0   : > { %1815 = vadd.xlane.f32.xlu0 %v1814_v6 }
 0x6c1   : > { %v1798_v59 = vpop.xlane.xlu0 %1797 }
 0x6c2   : > { %v1804_v22 = vmul.f32 0.015625, %v1798_v59 }
 0x6c4   : > { %v3876_v23 = vsub.f32 %v3854_v3, %v1804_v22  ;;  %v2749_v22 = vld [vmem:[%s4351_s10] ss:$0 sm:$0xff] }
 0x6c5   : > { %v1801_v13 = vpop.xlane.xlu0 %1800 }
 0x6c6   : > { %v1805_v10 = vmul.f32 0.015625, %v1801_v13  ;;  %v1812_v27 = vmul.f32 %v3876_v23, %v3876_v23 }
 0x6c8   : > { %v3881_v16 = vsub.f32 %v3857_v58, %v1805_v10  ;;  %v1820_v34 = vsel %vm654_vm0, %v1812_v27, 0.0  ;;  %v2750_v10 = vld [vmem:[%s4352_s11] ss:$0 sm:$0xff] }
 0x6c9   : > { %1821 = vadd.xlane.f32.xlu0 %v1820_v34 }
 0x6ca   : > { %v1813_v31 = vmul.f32 %v3881_v16, %v3881_v16 }
 0x6cc   : > { %v1823_v14 = vsel %vm654_vm0, %v1813_v31, 0.0 }
 0x6cd   : > { %1824 = vadd.xlane.f32.xlu1 %v1823_v14 }
 0x747   : > { %v1819_v25 = vpop.xlane.xlu1 %1818 }
 0x748   : > { %v1827_v0 = vmul.f32 0.015625, %v1819_v25  ;;  %v1773_v25 = vld [vmem:[%s4355_s14 + $0x80] sm:$0xff] }
 0x749   : > { %v1816_v2 = vpop.xlane.xlu0 %1815 }
 0x74a   : > { %v1831_v45 = vadd.f32 1e-05, %v1827_v0  ;;  %v1826_v63 = vmul.f32 0.015625, %v1816_v2  ;;  %v1757_v0 = vld [vmem:[%s4355_s14] sm:$0xff]  ;;  %v2399_v2 = vld [vmem:[%s4357_s16 + $0x38] sm:$0xff] }
 0x74b   : > { %3078 = vmatprep.subr.mxu0 %v2399_v2 }
 0x74c   : > { %3167 = vrsqrt.f32 %v1831_v45  ;;  %v1830_v53 = vadd.f32 1e-05, %v1826_v63  ;;  %v2398_v45 = vld [vmem:[%s4357_s16 + $0x30] sm:$0xff]  ;;  %v1863_v63 = vlaneseq }
 0x74e   : > { %3169 = vrsqrt.f32 %v1830_v53  ;;  %v4103_v53 = vshrl.u32 %v1863_v63, 7 }
 0x752   : > { %v1822_v7 = vpop.xlane.xlu0 %1821 }
 0x753   : > { %v1828_v32 = vmul.f32 0.015625, %v1822_v7  ;;  %v1873_v7 = vsub.s32 2, %v4103_v53 }
 0x755   : > { %v1832_v8 = vadd.f32 1e-05, %v1828_v32  ;;  %v4109_v32 = vld [vmem:[%s4354_s13] sm:$0xf] }
 0x756   : > { %v1825_v55 = vpop.xlane.xlu1 %1824 }
 0x757   : > { %3171 = vrsqrt.f32 %v1832_v8  ;;  %v1829_v29 = vmul.f32 0.015625, %v1825_v55  ;;  %v1877_v8 = vsub.s32 3, %v4103_v53  ;;  %v1874_v55 = vrot.slane %v4109_v32, %v1873_v7 }
 0x759   : > { %v3168_v18 = vpop.eup %3167  ;;  %v1833_v4 = vadd.f32 1e-05, %v1829_v29  ;;  %v1878_v29 = vrot.slane %v4109_v32, %v1877_v8 }
 0x75a   : > { %v1839_v59 = vmul.f32 %v3168_v18, %v3864_v9 }
 0x75b   : > { %v3170_v19 = vpop.eup %3169  ;;  %3173 = vrsqrt.f32 %v1833_v4 }
 0x75c   : > { %v1838_v6 = vmul.f32 %v3170_v19, %v3867_v15  ;;  %v1849_v34 = vmul.f32 %v2749_v22, %v1839_v59 }
 0x75e   : > { %v1848_v13 = vmul.f32 %v2749_v22, %v1838_v6  ;;  %v1859_v31 = vadd.f32 %v2750_v10, %v1849_v34 }
 0x760   : > { %v1858_v27 = vadd.f32 %v2750_v10, %v1848_v13 }
 0x762   : > { %2751 = vmatmul.mubr.msk.f32.vlgmr.msra.gmra.mxu1 %vm654_vm0, %v1858_v27  ;;  %2755 = vmatmul.mubr.msk.f32.vlgmr.msra.gmra.mxu0 %vm654_vm0, %v1858_v27 }
 0x763   : > { %1965 = vmatprep.mubr.f32.mxu1 %v3228_v49  ;;  %2054 = vmatprep.mubr.f32.mxu0 %v3228_v49 }
 0x764   : > { %v3172_v15 = vpop.eup %3171  ;;  %3079 = vmatpush3.msra.mxu0 %v2399_v2 }
 0x765   : > { %v1840_v9 = vmul.f32 %v3172_v15, %v3876_v23  ;;  %v1788_v23 = vld [vmem:[%s4355_s14 + $0xf8] sm:$0xff]  ;;  %3080 = vmatprep.subr.mxu0 %v2398_v45 }
 0x766   : > { %2752 = vmatmul.mubr.msk.f32.gmra.mxu1 %vm654_vm0, %v1859_v31  ;;  %2756 = vmatmul.mubr.msk.f32.gmra.mxu0 %vm654_vm0, %v1859_v31 }
 0x767   : > { %1971 = vmatprep.mubr.f32.mxu1 %v3228_v49  ;;  %2060 = vmatprep.mubr.f32.mxu0 %v3228_v49  ;;  %v1850_v14 = vmul.f32 %v2749_v22, %v1840_v9 }
 0x768   : > { %v3174_v33 = vpop.eup %3173  ;;  %2862 = vmatprep.subr.mxu1 %v1788_v23  ;;  %3081 = vmatpush3.msra.mxu0 %v2398_v45  ;;  %v1869_v45 = vsub.s32 1, %v4103_v53 }
 0x769   : > { %v1860_v40 = vadd.f32 %v2750_v10, %v1850_v14  ;;  %v1841_v17 = vmul.f32 %v3174_v33, %v3881_v16  ;;  %v1772_v16 = vld [vmem:[%s4355_s14 + $0x78] sm:$0xff] }
 0x76a   : > { %2863 = vmatpush3.msra.mxu1 %v1772_v16 }
 0x76b   : > { %2753 = vmatmul.mubr.msk.f32.gmra.mxu1 %vm654_vm0, %v1860_v40  ;;  %2757 = vmatmul.mubr.msk.f32.gmra.mxu0 %vm654_vm0, %v1860_v40  ;;  %v1851_v38 = vmul.f32 %v2749_v22, %v1841_v17 }
 0x76c   : > { %1977 = vmatprep.mubr.f32.mxu1 %v3228_v49  ;;  %2066 = vmatprep.mubr.f32.mxu0 %v3228_v49  ;;  %v1758_v49 = vld [vmem:[%s4355_s14 + $0x8] sm:$0xff] }
 0x76d   : > { %v1861_v12 = vadd.f32 %v2750_v10, %v1851_v38  ;;  %2864 = vmatprep.subr.mxu1 %v1787_v1 }
 0x76e   : > { %2865 = vmatpush3.msra.mxu1 %v1771_v36 }
 0x76f   : > { %2754 = vmatmul.mubr.msk.f32.gmra.mxu1 %vm654_vm0, %v1861_v12  ;;  %2758 = vmatmul.mubr.msk.f32.gmra.mxu0 %vm654_vm0, %v1861_v12 }
 0x770   : > { %2866 = vmatprep.subr.mxu1 %v1786_v5 }
 0x771   : > { %2867 = vmatpush3.msra.mxu1 %v1770_v39 }
 0x772   : > { %2868 = vmatprep.subr.mxu1 %v1785_v42 }
 0x773   : > { %2869 = vmatpush3.msra.mxu1 %v1769_v44 }
 0x774   : > { %2870 = vmatprep.subr.mxu1 %v1784_v35 }
 0x775   : > { %2871 = vmatpush3.msra.mxu1 %v1768_v46 }
 0x776   : > { %2872 = vmatprep.subr.mxu1 %v1783_v47 }
 0x777   : > { %2873 = vmatpush3.msra.mxu1 %v1767_v30 }
 0x778   : > { %2874 = vmatprep.subr.mxu1 %v1782_v20 }
 0x779   : > { %2875 = vmatpush3.msra.mxu1 %v1766_v11 }
 0x77a   : > { %2876 = vmatprep.subr.mxu1 %v1781_v50 }
 0x77b   : > { %2877 = vmatpush3.msra.mxu1 %v1765_v51 }
 0x77c   : > { %2878 = vmatprep.subr.mxu1 %v1780_v48 }
 0x77d   : > { %2879 = vmatpush3.msra.mxu1 %v1764_v52 }
 0x77e   : > { %2880 = vmatprep.subr.mxu1 %v1779_v41 }
 0x77f   : > { %2881 = vmatpush3.msra.mxu1 %v1763_v26 }
 0x780   : > { %2882 = vmatprep.subr.mxu1 %v1778_v24 }
 0x781   : > { %2883 = vmatpush3.msra.mxu1 %v1762_v21  ;;  %v1865_v21 = vsub.s32 0, %v4103_v53 }
 0x782   : > { %2884 = vmatprep.subr.mxu1 %v1777_v54 }
 0x783   : > { %2885 = vmatpush3.msra.mxu1 %v1761_v56  ;;  %v4170_v7 = vrot.slane %v4109_v32, %v1865_v21 }
 0x784   : > { %2886 = vmatprep.subr.mxu1 %v1776_v57 }
 0x785   : > { %2887 = vmatpush3.msra.mxu1 %v1760_v28 }
 0x786   : > { %2888 = vmatprep.subr.mxu1 %v1775_v37 }
 0x787   : > { %2889 = vmatpush3.msra.mxu1 %v1759_v61 }
 0x788   : > { %2890 = vmatprep.subr.mxu1 %v1774_v62 }
 0x789   : > { %2891 = vmatpush3.msra.mxu1 %v1758_v49 }
 0x78a   : > { %2892 = vmatprep.subr.mxu1 %v1773_v25 }
 0x78b   : > { %2893 = vmatpush3.msra.mxu1 %v1757_v0 }
 0x822   : > { %v2050_v18 = vpop.f32.mrf.mxu0 }
 0x823   : > { %v4114_v4 = vadd.f32 %v2050_v18, %v1874_v55 }
 0x824   : > { %v2052_v19 = vpop.f32.mrf.mxu0 }
 0x825   : > { %v4117_v6 = vmul.f32 0.70710677, %v4114_v4  ;;  %v4119_v59 = vadd.f32 %v2052_v19, %v1878_v29  ;;  %v1961_v19 = vpop.f32.mrf.mxu1 }
 0x826   : > { %v2056_v22 = vpop.f32.mrf.mxu0 }
 0x827   : > { %v2089_v13 = vand.u32 2147483647, %v4117_v6  ;;  %v4123_v10 = vmul.f32 0.70710677, %v4119_v59  ;;  %v4125_v27 = vadd.f32 %v2056_v22, %v1874_v55  ;;  %v2201_v35 = vsub.f32 0.0, %v4117_v6 }
 0x828   : > { %v2058_v34 = vpop.f32.mrf.mxu0  ;;  %vm2249_vm1 = vcmp.ge.f32.partialorder %v4117_v6, 0.0 }
 0x829   : > { %v2097_v15 = vmul.f32 0.3275911, %v2089_v13  ;;  %v4127_v31 = vadd.f32 %v2058_v34, %v1878_v29  ;;  %v2090_v9 = vand.u32 2147483647, %v4123_v10  ;;  %v4131_v33 = vmul.f32 0.70710677, %v4125_v27 }
 0x82a   : > { %v2202_v50 = vsub.f32 0.0, %v4123_v10  ;;  %v2209_v48 = vmul.f32 %v2201_v35, %v4117_v6  ;;  %vm2250_vm2 = vcmp.ge.f32.partialorder %v4123_v10, 0.0 }
 0x82b   : > { %v2105_v14 = vadd.f32 1.0, %v2097_v15  ;;  %v2062_v40 = vpop.f32.mrf.mxu0  ;;  %v2098_v17 = vmul.f32 0.3275911, %v2090_v9  ;;  %v4134_v38 = vmul.f32 0.70710677, %v4127_v31  ;;  %v2203_v54 = vsub.f32 0.0, %v4131_v33 }
 0x82c   : > { %v2091_v12 = vand.u32 2147483647, %v4131_v33  ;;  %v4138_v39 = vadd.f32 %v2062_v40, %v1874_v55  ;;  %v2210_v28 = vmul.f32 %v2202_v50, %v4123_v10  ;;  %v2217_v25 = vmul.f32 1.442695, %v2209_v48 }
 0x82d   : > { %3175 = vrcp.f32 %v2105_v14  ;;  %v2064_v23 = vpop.f32.mrf.mxu0  ;;  %v2106_v16 = vadd.f32 1.0, %v2098_v17  ;;  %v2092_v1 = vand.u32 2147483647, %v4134_v38  ;;  %v2204_v37 = vsub.f32 0.0, %v4134_v38 }
 0x82e   : > { %v2099_v36 = vmul.f32 0.3275911, %v2091_v12  ;;  %v4142_v47 = vmul.f32 0.70710677, %v4138_v39  ;;  %v4144_v30 = vadd.f32 %v2064_v23, %v1878_v29  ;;  %v2211_v8 = vmul.f32 %v2203_v54, %v4131_v33 }
 0x82f   : > { %3177 = vrcp.f32 %v2106_v16  ;;  %v2100_v5 = vmul.f32 0.3275911, %v2092_v1  ;;  %v2068_v42 = vpop.f32.mrf.mxu0  ;;  %v2219_v13 = vmul.f32 1.442695, %v2210_v28  ;;  %v2212_v34 = vmul.f32 %v2204_v37, %v4134_v38 }
 0x830   : > { %v2107_v44 = vadd.f32 1.0, %v2099_v36  ;;  %v4146_v20 = vadd.f32 %v2068_v42, %v1874_v55  ;;  %v2093_v11 = vand.u32 2147483647, %v4142_v47  ;;  %v4151_v51 = vmul.f32 0.70710677, %v4144_v30  ;;  %v1963_v42 = vpop.f32.mrf.mxu1 }
 0x831   : > { %v2108_v46 = vadd.f32 1.0, %v2100_v5  ;;  %v2070_v26 = vpop.f32.mrf.mxu0  ;;  %v2205_v15 = vsub.f32 0.0, %v4142_v47  ;;  %v4184_v40 = vrot.slane %v4109_v32, %v1869_v45  ;;  %v4190_v23 = vadd.f32 %v1961_v19, %v4170_v7 }
 0x832   : > { %3179 = vrcp.f32 %v2107_v44  ;;  %v2101_v52 = vmul.f32 0.3275911, %v2093_v11  ;;  %v4155_v41 = vmul.f32 0.70710677, %v4146_v20  ;;  %v2094_v24 = vand.u32 2147483647, %v4151_v51 }
 0x833   : > { %3181 = vrcp.f32 %v2108_v46  ;;  %v4163_v62 = vadd.f32 %v2070_v26, %v1878_v29  ;;  %v2206_v17 = vsub.f32 0.0, %v4151_v51  ;;  %v2221_v1 = vmul.f32 1.442695, %v2211_v8 }
 0x834   : > { %v2109_v56 = vadd.f32 1.0, %v2101_v52  ;;  %v2095_v57 = vand.u32 2147483647, %v4155_v41  ;;  %v2102_v61 = vmul.f32 0.3275911, %v2094_v24  ;;  %v2213_v11 = vmul.f32 %v2205_v15, %v4142_v47 }
 0x835   : > { %v4174_v18 = vmul.f32 0.70710677, %v4163_v62  ;;  %v2223_v35 = vmul.f32 1.442695, %v2212_v34  ;;  %v2207_v50 = vsub.f32 0.0, %v4155_v41  ;;  %v2214_v21 = vmul.f32 %v2206_v17, %v4151_v51 }
 0x836   : > { %3183 = vrcp.f32 %v2109_v56  ;;  %v2103_v0 = vmul.f32 0.3275911, %v2095_v57  ;;  %v2110_v63 = vadd.f32 1.0, %v2102_v61  ;;  %v4202_v54 = vmul.f32 0.5, %v4114_v4 }
 0x837   : > { %v2096_v9 = vand.u32 2147483647, %v4174_v18  ;;  %v4205_v56 = vadd.f32 %v1963_v42, %v4184_v40  ;;  %v4215_v19 = vmul.f32 0.5, %v4119_v59  ;;  %v2208_v34 = vsub.f32 0.0, %v4174_v18 }
 0x838   : > { %v2111_v55 = vadd.f32 1.0, %v2103_v0  ;;  %3185 = vrcp.f32 %v2110_v63  ;;  %v2225_v0 = vmul.f32 1.442695, %v2213_v11  ;;  %v4220_v15 = vmul.f32 0.5, %v4125_v27 }
 0x839   : > { %3187 = vpow2.f32 %v2217_v25  ;;  %v2104_v36 = vmul.f32 0.3275911, %v2096_v9  ;;  %vm2251_vm3 = vcmp.ge.f32.partialorder %v4131_v33, 0.0  ;;  %vm2252_vm4 = vcmp.ge.f32.partialorder %v4134_v38, 0.0 }
 0x83a   : > { %v4165_v49 = vpop.eup %3175  ;;  %3189 = vrcp.f32 %v2111_v55  ;;  %v2227_v55 = vmul.f32 1.442695, %v2214_v21  ;;  %vm2253_vm5 = vcmp.ge.f32.partialorder %v4142_v47, 0.0  ;;  %vm2254_vm6 = vcmp.ge.f32.partialorder %v4151_v51, 0.0 }
 0x83b   : > { %v2129_v2 = vmul.f32 1.0614054, %v4165_v49  ;;  %3191 = vpow2.f32 %v2219_v13  ;;  %v2112_v48 = vadd.f32 1.0, %v2104_v36  ;;  %vm2255_vm7 = vcmp.ge.f32.partialorder %v4155_v41, 0.0 }
 0x83c   : > { %v4176_v29 = vpop.eup %3177  ;;  %vm2256_vm8 = vcmp.ge.f32.partialorder %v4174_v18, 0.0 }
 0x83d   : > { %v2137_v22 = vadd.f32 -1.4531521, %v2129_v2  ;;  %v2130_v53 = vmul.f32 1.0614054, %v4176_v29  ;;  %3193 = vrcp.f32 %v2112_v48  ;;  %v2215_v2 = vmul.f32 %v2207_v50, %v4155_v41 }
 0x83e   : > { %3195 = vpow2.f32 %v2221_v1  ;;  %v2216_v50 = vmul.f32 %v2208_v34, %v4174_v18  ;;  %v2397_v18 = vld [vmem:[%s4357_s16 + $0x28] sm:$0xff] }
 0x83f   : > { %v2145_v14 = vmul.f32 %v4165_v49, %v2137_v22  ;;  %v4187_v12 = vpop.eup %3179  ;;  %v2138_v16 = vadd.f32 -1.4531521, %v2130_v53  ;;  %3197 = vpow2.f32 %v2223_v35  ;;  %v2229_v1 = vmul.f32 1.442695, %v2215_v2  ;;  %3082 = vmatprep.subr.mxu0 %v2397_v18 }
 0x840   : > { %v2131_v44 = vmul.f32 1.0614054, %v4187_v12  ;;  %v4193_v46 = vpop.eup %3181  ;;  %3199 = vpow2.f32 %v2225_v0  ;;  %3083 = vmatpush3.msra.mxu0 %v2397_v18 }
 0x841   : > { %v2153_v5 = vadd.f32 1.4214138, %v2145_v14  ;;  %v2146_v32 = vmul.f32 %v4176_v29, %v2138_v16  ;;  %v2132_v24 = vmul.f32 1.0614054, %v4193_v46  ;;  %3201 = vpow2.f32 %v2227_v55 }
 0x842   : > { %v2139_v26 = vadd.f32 -1.4531521, %v2131_v44  ;;  %3203 = vpow2.f32 %v2229_v1 }
 0x843   : > { %v2161_v52 = vmul.f32 %v4165_v49, %v2153_v5  ;;  %v2154_v57 = vadd.f32 1.4214138, %v2146_v32  ;;  %v2140_v61 = vadd.f32 -1.4531521, %v2132_v24  ;;  %v4210_v45 = vpop.eup %3183 }
 0x844   : > { %v2147_v37 = vmul.f32 %v4187_v12, %v2139_v26  ;;  %v2133_v13 = vmul.f32 1.0614054, %v4210_v45 }
 0x845   : > { %v2169_v28 = vadd.f32 -0.28449672, %v2161_v52  ;;  %v2162_v25 = vmul.f32 %v4176_v29, %v2154_v57  ;;  %v2148_v8 = vmul.f32 %v4193_v46, %v2140_v61  ;;  %v4223_v17 = vpop.eup %3185 }
 0x846   : > { %v2155_v63 = vadd.f32 1.4214138, %v2147_v37  ;;  %v2141_v59 = vadd.f32 -1.4531521, %v2133_v13  ;;  %v3188_v36 = vpop.eup %3187  ;;  %v2134_v27 = vmul.f32 1.0614054, %v4223_v17 }
 0x847   : > { %v2177_v4 = vmul.f32 %v4165_v49, %v2169_v28  ;;  %v2170_v22 = vadd.f32 -0.28449672, %v2162_v25  ;;  %v2156_v14 = vadd.f32 1.4214138, %v2148_v8  ;;  %v4230_v35 = vpop.eup %3189  ;;  %v2231_v8 = vmul.f32 1.442695, %v2216_v50 }
 0x848   : > { %v2163_v9 = vmul.f32 %v4187_v12, %v2155_v63  ;;  %v2149_v11 = vmul.f32 %v4210_v45, %v2141_v59  ;;  %v3192_v24 = vpop.eup %3191  ;;  %v2135_v28 = vmul.f32 1.0614054, %v4230_v35 }
 0x849   : > { %v2185_v53 = vadd.f32 0.2548296, %v2177_v4  ;;  %v2178_v16 = vmul.f32 %v4176_v29, %v2170_v22  ;;  %v2164_v44 = vmul.f32 %v4193_v46, %v2156_v14  ;;  %3205 = vpow2.f32 %v2231_v8 }
 0x84a   : > { %v2171_v42 = vadd.f32 -0.28449672, %v2163_v9  ;;  %v2157_v57 = vadd.f32 1.4214138, %v2149_v11  ;;  %v2143_v63 = vadd.f32 -1.4531521, %v2135_v28  ;;  %v4242_v55 = vpop.eup %3193 }
 0x84b   : > { %v2193_v5 = vmul.f32 %v4165_v49, %v2185_v53  ;;  %v2186_v32 = vadd.f32 0.2548296, %v2178_v16  ;;  %v2172_v26 = vadd.f32 -0.28449672, %v2164_v44  ;;  %v2142_v49 = vadd.f32 -1.4531521, %v2134_v27  ;;  %v3196_v53 = vpop.eup %3195 }
 0x84c   : > { %v2179_v52 = vmul.f32 %v4187_v12, %v2171_v42  ;;  %v2165_v4 = vmul.f32 %v4210_v45, %v2157_v57  ;;  %v2151_v16 = vmul.f32 %v4230_v35, %v2143_v63  ;;  %v2136_v59 = vmul.f32 1.0614054, %v4242_v55  ;;  %v3198_v1 = vpop.eup %3197  ;;  %v1967_v57 = vpop.f32.mrf.mxu1 }
 0x84d   : > { %v2233_v48 = vmul.f32 %v3188_v36, %v2193_v5  ;;  %v2194_v21 = vmul.f32 %v4176_v29, %v2186_v32  ;;  %v2180_v25 = vmul.f32 %v4193_v46, %v2172_v26  ;;  %v2150_v0 = vmul.f32 %v4223_v17, %v2142_v49 }
 0x84e   : > { %v2187_v61 = vadd.f32 0.2548296, %v2179_v52  ;;  %v2173_v14 = vadd.f32 -0.28449672, %v2165_v4  ;;  %v2159_v11 = vadd.f32 1.4214138, %v2151_v16 }
 0x84f   : > { %v2241_v37 = vsub.f32 1.0, %v2233_v48  ;;  %v2234_v2 = vmul.f32 %v3192_v24, %v2194_v21  ;;  %v2188_v13 = vadd.f32 0.2548296, %v2180_v25  ;;  %v2158_v34 = vadd.f32 1.4214138, %v2150_v0  ;;  %v3200_v21 = vpop.eup %3199 }
 0x850   : > { %v2195_v22 = vmul.f32 %v4187_v12, %v2187_v61  ;;  %v2181_v32 = vmul.f32 %v4210_v45, %v2173_v14  ;;  %v2144_v26 = vadd.f32 -1.4531521, %v2136_v59  ;;  %v2167_v6 = vmul.f32 %v4230_v35, %v2159_v11  ;;  %v3202_v10 = vpop.eup %3201 }
 0x851   : > { %v2257_v29 = vsub.f32 0.0, %v2241_v37  ;;  %v2242_v9 = vsub.f32 1.0, %v2234_v2  ;;  %v2196_v42 = vmul.f32 %v4193_v46, %v2188_v13  ;;  %v2166_v12 = vmul.f32 %v4223_v17, %v2158_v34  ;;  %v3204_v14 = vpop.eup %3203 }
 0x852   : > { %v2235_v5 = vmul.f32 %v3196_v53, %v2195_v22  ;;  %v2189_v24 = vadd.f32 0.2548296, %v2181_v32  ;;  %v2175_v2 = vadd.f32 -0.28449672, %v2167_v6  ;;  %v2152_v4 = vmul.f32 %v4242_v55, %v2144_v26 }
 0x853   : > { %v2265_v36 = vsel %vm2249_vm1, %v2241_v37, %v2257_v29  ;;  %v2258_v27 = vsub.f32 0.0, %v2242_v9  ;;  %v2236_v48 = vmul.f32 %v3198_v1, %v2196_v42  ;;  %v2174_v52 = vadd.f32 -0.28449672, %v2166_v12 }
 0x854   : > { %v2273_v44 = vadd.f32 1.0, %v2265_v36  ;;  %v2243_v50 = vsub.f32 1.0, %v2235_v5  ;;  %v2197_v0 = vmul.f32 %v4210_v45, %v2189_v24  ;;  %v2183_v53 = vmul.f32 %v4230_v35, %v2175_v2 }
 0x855   : > { %v2266_v49 = vsel %vm2250_vm2, %v2242_v9, %v2258_v27  ;;  %v2244_v37 = vsub.f32 1.0, %v2236_v48  ;;  %v2182_v61 = vmul.f32 %v4223_v17, %v2174_v52  ;;  %v2160_v9 = vadd.f32 1.4214138, %v2152_v4 }
 0x856   : > { %v2274_v46 = vadd.f32 1.0, %v2266_v49  ;;  %v2259_v28 = vsub.f32 0.0, %v2243_v50  ;;  %v2281_v25 = vmul.f32 %v2273_v44, %v4202_v54  ;;  %v2237_v34 = vmul.f32 %v3200_v21, %v2197_v0  ;;  %v1969_v54 = vpop.f32.mrf.mxu1 }
 0x857   : > { %v2260_v29 = vsub.f32 0.0, %v2244_v37  ;;  %v2190_v22 = vadd.f32 0.2548296, %v2182_v61  ;;  %v2076_v45 = vmul.f32 0.5, %v4127_v31  ;;  %v2191_v5 = vadd.f32 0.2548296, %v2183_v53 }
 0x858   : > { %v2282_v63 = vmul.f32 %v2274_v46, %v4215_v19  ;;  %v2267_v8 = vsel %vm2251_vm3, %v2243_v50, %v2259_v28  ;;  %v2289_v33 = vmul.f32 %v2281_v25, %v4190_v23  ;;  %v2245_v36 = vsub.f32 1.0, %v2237_v34 }
 0x859   : > { %v2275_v13 = vadd.f32 1.0, %v2267_v8  ;;  %v2268_v16 = vsel %vm2252_vm4, %v2244_v37, %v2260_v29  ;;  %v2198_v59 = vmul.f32 %v4223_v17, %v2190_v22  ;;  %v2168_v44 = vmul.f32 %v4242_v55, %v2160_v9  ;;  %v1973_v17 = vpop.f32.mrf.mxu1 }
 0x85a   : > { %v2290_v19 = vmul.f32 %v2282_v63, %v4205_v56  ;;  %v2276_v1 = vadd.f32 1.0, %v2268_v16  ;;  %v1970_v31 = vadd.f32 %v1969_v54, %v4184_v40  ;;  %v2261_v38 = vsub.f32 0.0, %v2245_v36 }
 0x85b   : > { %v2283_v42 = vmul.f32 %v2275_v13, %v4220_v15  ;;  %v2238_v12 = vmul.f32 %v3202_v10, %v2198_v59  ;;  %v2199_v32 = vmul.f32 %v4230_v35, %v2191_v5  ;;  %v1968_v56 = vadd.f32 %v1967_v57, %v4170_v7  ;;  %v3206_v35 = vpop.eup %3205  ;;  %v1975_v46 = vpop.f32.mrf.mxu1 }
 0x85c   : > { %2367 = vmatprep.mubr.f32.mxu1 %v2290_v19  ;;  %v2284_v27 = vmul.f32 %v2276_v1, %v2076_v45  ;;  %v2176_v11 = vadd.f32 -0.28449672, %v2168_v44  ;;  %v2269_v50 = vsel %vm2253_vm5, %v2245_v36, %v2261_v38  ;;  %v2077_v21 = vmul.f32 0.5, %v4138_v39  ;;  %v2759_v36 = vld [vmem:[%s4356_s15] ss:$0 sm:$0xff] }
 0x85d   : > { %2368 = vmatmul.mubr.f32.vlgmr.msra.gmra.mxu1 %v2289_v33  ;;  %v2246_v23 = vsub.f32 1.0, %v2238_v12  ;;  %v2239_v15 = vmul.f32 %v3204_v14, %v2199_v32  ;;  %v2277_v52 = vadd.f32 1.0, %v2269_v50  ;;  %v2291_v24 = vmul.f32 %v2283_v42, %v1968_v56  ;;  %v1979_v8 = vpop.f32.mrf.mxu1  ;;  %v2392_v33 = vld [vmem:[%s4357_s16] sm:$0xff] }
 0x85e   : > { %v2292_v48 = vmul.f32 %v2284_v27, %v1970_v31  ;;  %v2184_v49 = vmul.f32 %v4242_v55, %v2176_v11  ;;  %v2078_v28 = vmul.f32 0.5, %v4144_v30  ;;  %v1976_v2 = vadd.f32 %v1975_v46, %v4184_v40 }
 0x85f   : > { %v2262_v26 = vsub.f32 0.0, %v2246_v23  ;;  %v2247_v6 = vsub.f32 1.0, %v2239_v15  ;;  %v2285_v25 = vmul.f32 %v2277_v52, %v2077_v21  ;;  %v1974_v51 = vadd.f32 %v1973_v17, %v4170_v7  ;;  %v1981_v34 = vpop.f32.mrf.mxu1 }
 0x860   : > { %2372 = vmatprep.mubr.f32.mxu1 %v2292_v48  ;;  %v2192_v47 = vadd.f32 0.2548296, %v2184_v49  ;;  %v2080_v9 = vmul.f32 0.5, %v4163_v62  ;;  %v1982_v54 = vadd.f32 %v1981_v34, %v4184_v40  ;;  %v1980_v16 = vadd.f32 %v1979_v8, %v4170_v7  ;;  %v2395_v62 = vld [vmem:[%s4357_s16 + $0x18] sm:$0xff]  ;;  %v2394_v7 = vld [vmem:[%s4357_s16 + $0x10] sm:$0xff]  ;;  %v2393_v40 = vld [vmem:[%s4357_s16 + $0x8] sm:$0xff] }
 0x861   : > { %v2270_v57 = vsel %vm2254_vm6, %v2246_v23, %v2262_v26  ;;  %2373 = vmatmul.mubr.f32.gmra.mxu1 %v2291_v24  ;;  %v2263_v61 = vsub.f32 0.0, %v2247_v6  ;;  %v2293_v22 = vmul.f32 %v2285_v25, %v1974_v51 }
 0x862   : > { %v2278_v37 = vadd.f32 1.0, %v2270_v57  ;;  %v2200_v0 = vmul.f32 %v4242_v55, %v2192_v47  ;;  %v2079_v55 = vmul.f32 0.5, %v4146_v20  ;;  %v2396_v20 = vld [vmem:[%s4357_s16 + $0x20] sm:$0xff] }
 0x863   : > { %v2271_v39 = vsel %vm2255_vm7, %v2247_v6, %v2263_v61  ;;  %3084 = vmatprep.subr.mxu0 %v2396_v20 }
 0x864   : > { %v2286_v4 = vmul.f32 %v2278_v37, %v2078_v28  ;;  %v2240_v10 = vmul.f32 %v3206_v35, %v2200_v0  ;;  %v2279_v30 = vadd.f32 1.0, %v2271_v39  ;;  %3085 = vmatpush3.msra.mxu0 %v2396_v20 }
 0x865   : > { %3086 = vmatprep.subr.mxu0 %v2395_v62 }
 0x866   : > { %v2294_v63 = vmul.f32 %v2286_v4, %v1976_v2  ;;  %v2248_v29 = vsub.f32 1.0, %v2240_v10  ;;  %v2287_v41 = vmul.f32 %v2279_v30, %v2079_v55  ;;  %3087 = vmatpush3.msra.mxu0 %v2395_v62 }
 0x867   : > { %3088 = vmatprep.subr.mxu0 %v2394_v7 }
 0x868   : > { %2377 = vmatprep.mubr.f32.mxu1 %v2294_v63  ;;  %v2264_v13 = vsub.f32 0.0, %v2248_v29  ;;  %v2295_v19 = vmul.f32 %v2287_v41, %v1980_v16  ;;  %3089 = vmatpush3.msra.mxu0 %v2394_v7 }
 0x869   : > { %2378 = vmatmul.mubr.f32.gmra.mxu1 %v2293_v22  ;;  %3090 = vmatprep.subr.mxu0 %v2393_v40 }
 0x86a   : > { %v2272_v53 = vsel %vm2256_vm8, %v2248_v29, %v2264_v13  ;;  %3091 = vmatpush3.msra.mxu0 %v2393_v40 }
 0x86b   : > { %v2280_v14 = vadd.f32 1.0, %v2272_v53  ;;  %3092 = vmatprep.subr.mxu0 %v2392_v33 }
 0x86c   : > { %3093 = vmatpush3.msra.mxu0 %v2392_v33 }
 0x86d   : > { %v2288_v45 = vmul.f32 %v2280_v14, %v2080_v9 }
 0x86f   : > { %v2296_v59 = vmul.f32 %v2288_v45, %v1982_v54 }
 0x871   : > { %2382 = vmatprep.mubr.f32.mxu1 %v2296_v59 }
 0x872   : > { %2383 = vmatmul.mubr.f32.gmra.mxu1 %v2295_v19 }
 0x91d   : > { %v2894_v1 = vpop.f32.mrf.mxu1 }
 0x91f   : > { %v2895_v5 = vpop.f32.mrf.mxu1 }
 0x920   : > { %v2896_v42 = vadd.f32 %v2895_v5, %v2894_v1 }
 0x921   : > { %v2897_v44 = vpop.f32.mrf.mxu1 }
 0x922   : > { %v2370_v12 = vadd.f32 %v2896_v42, %v2759_v36 }
 0x923   : > { %v2898_v27 = vpop.f32.mrf.mxu1 }
 0x924   : > { %v2388_v31 = vadd.f32 %v2370_v12, %v3847_v43  ;;  %v2899_v38 = vadd.f32 %v2898_v27, %v2897_v44 }
 0x926   : > { %3094 = vmatprep.mubr.msk.f32.mxu0 %vm654_vm0, %v2388_v31  ;;  %v2375_v32 = vadd.f32 %v2899_v38, %v2759_v36 }
 0x928   : > { %v2389_v56 = vadd.f32 %v2375_v32, %v3844_v60  ;;  %v2760_v60 = vld [vmem:[%s4358_s17] ss:$0 sm:$0xff] }
 0x929   : > { %v2900_v17 = vpop.f32.mrf.mxu1 }
 0x92a   : > { %3095 = vmatmul.mubr.msk.f32.vlgmr.msra.gmra.mxu0 %vm654_vm0, %v2389_v56 }
 0x92b   : > { %v2901_v23 = vpop.f32.mrf.mxu1 }
 0x92c   : > { %v2902_v11 = vadd.f32 %v2901_v23, %v2900_v17 }
 0x92e   : > { %v2380_v50 = vadd.f32 %v2902_v11, %v2759_v36 }
 0x930   : > { %v2390_v15 = vadd.f32 %v2380_v50, %v3854_v3 }
 0x932   : > { %3097 = vmatprep.mubr.msk.f32.mxu0 %vm654_vm0, %v2390_v15  ;;  %v2903_v48 = vpop.f32.mrf.mxu1 }
 0x934   : > { %v2904_v43 = vpop.f32.mrf.mxu1 }
 0x935   : > { %v2905_v52 = vadd.f32 %v2904_v43, %v2903_v48 }
 0x937   : > { %v2385_v26 = vadd.f32 %v2905_v52, %v2759_v36 }
 0x939   : > { %v2391_v49 = vadd.f32 %v2385_v26, %v3857_v58 }
 0x93b   : > { %3098 = vmatmul.mubr.msk.f32.gmra.mxu0 %vm654_vm0, %v2391_v49 }
 0x9ea   : > { %v3096_v3 = vpop.f32.mrf.mxu0 }
 0x9eb   : > { %v2491_v24 = vadd.f32 %v3096_v3, %v2760_v60 }
 0x9ec   : > { %v2485_v6 = vpop.f32.mrf.mxu0 }
 0x9ed   : > { %2506 = vst.msk [vmem:[%s628_s26 + $0x8] sm:$0xff] %vm2504_vm9, %v2491_v24  ;;  %v2510_v35 = vmax.f32 %v2491_v24, -30.0  ;;  %v2486_v21 = vadd.f32 %v2760_v60, %v2485_v6  ;;  %v2518_v16 = vmul.f32 %v2491_v24, %v2491_v24 }
 0x9ef   : > { %v2514_v58 = vmin.f32 %v2510_v35, 20.0  ;;  %2505 = vst.msk [vmem:[%s628_s26] sm:$0xff] %vm2504_vm9, %v2486_v21  ;;  %v2509_v46 = vmax.f32 %v2486_v21, -30.0  ;;  %v2517_v13 = vmul.f32 %v2486_v21, %v2486_v21 }
 0x9f1   : > { %v2523_v57 = vmul.f32 1.442695, %v2514_v58  ;;  %v2513_v47 = vmin.f32 %v2509_v46, 20.0 }
 0x9f3   : > { %3207 = vpow2.f32 %v2523_v57  ;;  %v2521_v28 = vmul.f32 1.442695, %v2513_v47 }
 0x9f5   : > { %3209 = vpow2.f32 %v2521_v28 }
 0x9fb   : > { %v3099_v37 = vpop.f32.mrf.mxu0 }
 0x9fc   : > { %v2501_v61 = vadd.f32 %v3099_v37, %v2760_v60 }
 0x9fd   : > { %v2495_v25 = vpop.f32.mrf.mxu0 }
 0x9fe   : > { %2508 = vst.msk [vmem:[%s628_s26 + $0x18] sm:$0xff] %vm2504_vm9, %v2501_v61  ;;  %v2512_v0 = vmax.f32 %v2501_v61, -30.0  ;;  %v2496_v2 = vadd.f32 %v2760_v60, %v2495_v25  ;;  %v2520_v20 = vmul.f32 %v2501_v61, %v2501_v61 }
 0xa00   : > { %v3208_v4 = vpop.eup %3207  ;;  %v2516_v51 = vmin.f32 %v2512_v0, 20.0  ;;  %2507 = vst.msk [vmem:[%s628_s26 + $0x10] sm:$0xff] %vm2504_vm9, %v2496_v2  ;;  %v2511_v10 = vmax.f32 %v2496_v2, -30.0  ;;  %v2519_v19 = vmul.f32 %v2496_v2, %v2496_v2 }
 0xa01   : > { %2535 = vrot.lane.b32.xlu1 %v3208_v4, %s3229_s23 }
 0xa02   : > { %v3210_v39 = vpop.eup %3209  ;;  %v2527_v63 = vmul.f32 1.442695, %v2516_v51  ;;  %v2515_v8 = vmin.f32 %v2511_v10, 20.0 }
 0xa03   : > { %2533 = vrot.lane.b32.xlu0 %v3210_v39, %s3229_s23 }
 0xa04   : > { %3211 = vpow2.f32 %v2527_v63  ;;  %v2525_v29 = vmul.f32 1.442695, %v2515_v8 }
 0xa06   : > { %3213 = vpow2.f32 %v2525_v29 }
 0xa07   : > { %2557 = vrot.lane.b32.xlu0 %v2513_v47, %s3229_s23 }
 0xa0b   : > { %2561 = vrot.lane.b32.xlu0 %v2515_v8, %s3229_s23 }
 0xa11   : > { %v3212_v22 = vpop.eup %3211 }
 0xa12   : > { %2539 = vrot.lane.b32.xlu1 %v3212_v22, %s3229_s23 }
 0xa13   : > { %v3214_v30 = vpop.eup %3213 }
 0xa16   : > { %2537 = vrot.lane.b32.xlu1 %v3214_v30, %s3229_s23 }
 0xa1a   : > { %2559 = vrot.lane.b32.xlu1 %v2514_v58, %s3229_s23 }
 0xa1e   : > { %2563 = vrot.lane.b32.xlu1 %v2516_v51, %s3229_s23 }
 0xa73   : > { %v2536_v54 = vpop.permute.xlu1 %2535 }
 0xa74   : > { %v2546_v59 = vadd.f32 %v2536_v54, %v2518_v16 }
 0xa75   : > { %v2534_v55 = vpop.permute.xlu0 %2533 }
 0xa76   : > { %v2545_v34 = vadd.f32 %v2534_v55, %v2517_v13  ;;  %v2766_v7 = vadd.f32 -1.0, %v2546_v59 }
 0xa78   : > { %v2765_v53 = vadd.f32 -1.0, %v2545_v34 }
 0xa79   : > { %v2558_v9 = vpop.permute.xlu0 %2557 }
 0xa7a   : > { %v2569_v14 = vsub.f32 %v2765_v53, %v2558_v9 }
 0xa7c   : > { %v2574_v41 = vsel %vm2573_vm10, %v2569_v14, 0.0 }
 0xa7d   : > { %2575 = vadd.xlane.f32.xlu0 %v2574_v41  ;;  %v2562_v1 = vpop.permute.xlu0 %2561 }
 0xa84   : > { %v2540_v45 = vpop.permute.xlu1 %2539 }
 0xa85   : > { %v2548_v40 = vadd.f32 %v2540_v45, %v2520_v20 }
 0xa87   : > { %v2768_v12 = vadd.f32 -1.0, %v2548_v40 }
 0xa88   : > { %v2538_v18 = vpop.permute.xlu1 %2537 }
 0xa89   : > { %v2547_v62 = vadd.f32 %v2538_v18, %v2519_v19 }
 0xa8b   : > { %v2767_v33 = vadd.f32 -1.0, %v2547_v62 }
 0xa8c   : > { %v2560_v36 = vpop.permute.xlu1 %2559 }
 0xa8d   : > { %v2570_v5 = vsub.f32 %v2766_v7, %v2560_v36  ;;  %v2571_v42 = vsub.f32 %v2767_v33, %v2562_v1 }
 0xa8f   : > { %v2580_v44 = vsel %vm2573_vm10, %v2571_v42, 0.0  ;;  %v2577_v31 = vsel %vm2573_vm10, %v2570_v5, 0.0 }
 0xa90   : > { %2581 = vadd.xlane.f32.xlu0 %v2580_v44  ;;  %2578 = vadd.xlane.f32.xlu1 %v2577_v31  ;;  %v2564_v27 = vpop.permute.xlu1 %2563 }
 0xa91   : > { %v2572_v38 = vsub.f32 %v2768_v12, %v2564_v27 }
 0xa93   : > { %v2583_v32 = vsel %vm2573_vm10, %v2572_v38, 0.0 }
 0xa94   : > { %2584 = vadd.xlane.f32.xlu0 %v2583_v32 }
 0xb06   : > { %v2576_v56 = vpop.xlane.xlu0 %2575 }
 0xb19   : > { %v2582_v17 = vpop.xlane.xlu0 %2581  ;;  %v2579_v23 = vpop.xlane.xlu1 %2578 }
 0xb1a   : > { %v2586_v11 = vadd.f32 %v2579_v23, %v2576_v56 }
 0xb1c   : > { %v2587_v50 = vadd.f32 %v2586_v11, %v2582_v17 }
 0xb1d   : > { %v2585_v15 = vpop.xlane.xlu0 %2584 }
 0xb1e   : > { %v2588_v48 = vadd.f32 %v2587_v50, %v2585_v15 }
 0xb20   : > { %v2589_v43 = vrot.slane %v2588_v48, 4 }
 0xb22   : > { %v2590_v52 = vadd.f32 %v2589_v43, %v2588_v48 }
 0xb24   : > { %v2591_v26 = vrot.slane %v2590_v52, 2 }
 0xb26   : > { %v2592_v49 = vadd.f32 %v2591_v26, %v2590_v52 }
 0xb28   : > { %v2593_v60 = vrot.slane %v2592_v49, 1 }
 0xb2a   : > { %v2594_v3 = vadd.f32 %v2593_v60, %v2592_v49 }
 0xb2c   : > { %v2595_v24 = vmul.f32 0.0009765625, %v2594_v3 }
 0xb2e   : > { %2596 = vst [vmem:[%s631_s24] sm:$0x1] %v2595_v24 }
 0xb2f PF: > { %s30_s0 = sadd.s32 1, %s3225_s0  }
 0xb30   : > { %p27_p4 = scmp.ge.s32.totalorder %s30_s0, 4  }
 0xb32   :  { %29 = sbr.rel (!%p27_p4) target bundleno = 5 (0x5), region = 137 }

// kernel: kl_autoencoder_forward.9
= control target key start
LH: loop header
LB: loop body
LE: loop exit
PB: predicated region body
PF: predicated region fallthrough
CT: control target
= control target key end

     0   :  { %vm93_vm0 = vcmask 1042432   ;;  %vm44_vm1 = vcmask 416768   ;;  %vm242_vm2 = vcmask 523264   ;;  %s528_s1 = inlined_call_operand.vmem [shape: f32[51,64], index: 1, kind: input, shape index: {}]   ;;  %s529_s0 = inlined_call_operand.vmem [shape: f32[128,51], index: 0, kind: input, shape index: {}]   ;;  %s530_s2 = inlined_call_operand.vmem [shape: f32[1,64], index: 2, kind: input, shape index: {}]   ;;  %s531_s3 = inlined_call_operand.vmem [shape: f32[128,64], index: 3, kind: output, shape index: {}]  }
   0x1   :  { %v36_v0 = vld [vmem:[%s528_s1 + $0x30] sm:$0x7]  ;;  %v35_v1 = vld [vmem:[%s528_s1 + $0x28] sm:$0xff]  ;;  %v34_v2 = vld [vmem:[%s528_s1 + $0x20] sm:$0xff] }
   0x2   :  { %304 = vmatprep.subr.msk.mxu0 %vm93_vm0, %v36_v0  ;;  %342 = vmatprep.subr.msk.mxu1 %vm93_vm0, %v36_v0  ;;  %v33_v3 = vld [vmem:[%s528_s1 + $0x18] sm:$0xff]  ;;  %v32_v4 = vld [vmem:[%s528_s1 + $0x10] sm:$0xff]  ;;  %v31_v5 = vld [vmem:[%s528_s1 + $0x8] sm:$0xff] }
   0x3   :  { %305 = vmatpush3.msk.msra.mxu0 %vm93_vm0, %v36_v0  ;;  %349 = vmatpush3.msk.msra.mxu1 %vm93_vm0, %v36_v0  ;;  %v30_v6 = vld [vmem:[%s528_s1] sm:$0xff]  ;;  %v15_v9 = vld [vmem:[%s529_s0 + $0x8] sm:$0xff]  ;;  %v16_v11 = vld [vmem:[%s529_s0 + $0x10] sm:$0xff] }
   0x4   :  { %306 = vmatprep.subr.mxu0 %v35_v1  ;;  %343 = vmatprep.subr.mxu1 %v35_v1  ;;  %v14_v7 = vld [vmem:[%s529_s0] sm:$0xff]  ;;  %v23_v10 = vld [vmem:[%s529_s0 + $0x48] sm:$0xff]  ;;  %v24_v12 = vld [vmem:[%s529_s0 + $0x50] sm:$0xff] }
   0x5   :  { %307 = vmatpush3.msra.mxu0 %v35_v1  ;;  %350 = vmatpush3.msra.mxu1 %v35_v1  ;;  %v22_v8 = vld [vmem:[%s529_s0 + $0x40] sm:$0xff]  ;;  %v17_v13 = vld [vmem:[%s529_s0 + $0x18] sm:$0xff]  ;;  %v19_v17 = vld [vmem:[%s529_s0 + $0x28] sm:$0xff] }
   0x6   :  { %308 = vmatprep.subr.mxu0 %v34_v2  ;;  %344 = vmatprep.subr.mxu1 %v34_v2  ;;  %v25_v14 = vld [vmem:[%s529_s0 + $0x58] sm:$0xff]  ;;  %v18_v15 = vld [vmem:[%s529_s0 + $0x20] sm:$0xff]  ;;  %v27_v18 = vld [vmem:[%s529_s0 + $0x68] sm:$0xff] }
   0x7   :  { %309 = vmatpush3.msra.mxu0 %v34_v2  ;;  %351 = vmatpush3.msra.mxu1 %v34_v2  ;;  %v26_v16 = vld [vmem:[%s529_s0 + $0x60] sm:$0xff]  ;;  %v20_v19 = vld [vmem:[%s529_s0 + $0x30] sm:$0xff]  ;;  %v21_v21 = vld [vmem:[%s529_s0 + $0x38] sm:$0xff] }
   0x8   :  { %310 = vmatprep.subr.mxu0 %v33_v3  ;;  %345 = vmatprep.subr.mxu1 %v33_v3  ;;  %v28_v20 = vld [vmem:[%s529_s0 + $0x70] sm:$0xff]  ;;  %v29_v22 = vld [vmem:[%s529_s0 + $0x78] sm:$0xff]  ;;  %v263_v23 = vld [vmem:[%s530_s2] ss:$0 sm:$0xff] }
   0x9   :  { %311 = vmatpush3.msra.mxu0 %v33_v3  ;;  %352 = vmatpush3.msra.mxu1 %v33_v3 }
   0xa   :  { %312 = vmatprep.subr.mxu0 %v32_v4  ;;  %346 = vmatprep.subr.mxu1 %v32_v4 }
   0xb   :  { %313 = vmatpush3.msra.mxu0 %v32_v4  ;;  %353 = vmatpush3.msra.mxu1 %v32_v4 }
   0xc   :  { %314 = vmatprep.subr.mxu0 %v31_v5  ;;  %347 = vmatprep.subr.mxu1 %v31_v5 }
   0xd   :  { %315 = vmatpush3.msra.mxu0 %v31_v5  ;;  %354 = vmatpush3.msra.mxu1 %v31_v5 }
   0xe   :  { %316 = vmatprep.subr.mxu0 %v30_v6  ;;  %348 = vmatprep.subr.mxu1 %v30_v6 }
   0xf   :  { %317 = vmatpush3.msra.mxu0 %v30_v6  ;;  %355 = vmatpush3.msra.mxu1 %v30_v6 }
  0x10   :  { %318 = vmatprep.mubr.msk.f32.mxu0 %vm44_vm1, %v14_v7  ;;  %330 = vmatprep.mubr.msk.f32.mxu1 %vm44_vm1, %v22_v8 }
  0x11   :  { %319 = vmatmul.mubr.msk.f32.vlgmr.msra.gmra.mxu0 %vm44_vm1, %v15_v9  ;;  %331 = vmatmul.mubr.msk.f32.vlgmr.msra.gmra.mxu1 %vm44_vm1, %v23_v10 }
  0x12   :  { %321 = vmatprep.mubr.msk.f32.mxu0 %vm44_vm1, %v16_v11  ;;  %333 = vmatprep.mubr.msk.f32.mxu1 %vm44_vm1, %v24_v12 }
  0x15   :  { %322 = vmatmul.mubr.msk.f32.gmra.mxu0 %vm44_vm1, %v17_v13  ;;  %334 = vmatmul.mubr.msk.f32.gmra.mxu1 %vm44_vm1, %v25_v14 }
  0x16   :  { %324 = vmatprep.mubr.msk.f32.mxu0 %vm44_vm1, %v18_v15  ;;  %336 = vmatprep.mubr.msk.f32.mxu1 %vm44_vm1, %v26_v16 }
  0x19   :  { %325 = vmatmul.mubr.msk.f32.gmra.mxu0 %vm44_vm1, %v19_v17  ;;  %337 = vmatmul.mubr.msk.f32.gmra.mxu1 %vm44_vm1, %v27_v18 }
  0x1a   :  { %327 = vmatprep.mubr.msk.f32.mxu0 %vm44_vm1, %v20_v19  ;;  %339 = vmatprep.mubr.msk.f32.mxu1 %vm44_vm1, %v28_v20 }
  0x1d   :  { %328 = vmatmul.mubr.msk.f32.gmra.mxu0 %vm44_vm1, %v21_v21  ;;  %340 = vmatmul.mubr.msk.f32.gmra.mxu1 %vm44_vm1, %v29_v22 }
  0xd1   :  { %v320_v24 = vpop.f32.mrf.mxu0  ;;  %v332_v25 = vpop.f32.mrf.mxu1 }
  0xd2   :  { %v169_v26 = vadd.f32 %v320_v24, %v263_v23  ;;  %v209_v27 = vadd.f32 %v332_v25, %v263_v23 }
  0xd3   :  { %v163_v28 = vpop.f32.mrf.mxu0  ;;  %v203_v29 = vpop.f32.mrf.mxu1 }
  0xd4   :  { %244 = vst.msk [vmem:[%s531_s3 + $0x8] sm:$0xff] %vm242_vm2, %v169_v26  ;;  %252 = vst.msk [vmem:[%s531_s3 + $0x48] sm:$0xff] %vm242_vm2, %v209_v27  ;;  %v164_v30 = vadd.f32 %v263_v23, %v163_v28  ;;  %v204_v31 = vadd.f32 %v263_v23, %v203_v29 }
  0xd5   :  { %v323_v32 = vpop.f32.mrf.mxu0  ;;  %v335_v33 = vpop.f32.mrf.mxu1 }
  0xd6   :  { %243 = vst.msk [vmem:[%s531_s3] sm:$0xff] %vm242_vm2, %v164_v30  ;;  %251 = vst.msk [vmem:[%s531_s3 + $0x40] sm:$0xff] %vm242_vm2, %v204_v31  ;;  %v179_v34 = vadd.f32 %v323_v32, %v263_v23  ;;  %v219_v35 = vadd.f32 %v335_v33, %v263_v23 }
  0xd7   :  { %v173_v36 = vpop.f32.mrf.mxu0  ;;  %v213_v37 = vpop.f32.mrf.mxu1 }
  0xd8   :  { %246 = vst.msk [vmem:[%s531_s3 + $0x18] sm:$0xff] %vm242_vm2, %v179_v34  ;;  %254 = vst.msk [vmem:[%s531_s3 + $0x58] sm:$0xff] %vm242_vm2, %v219_v35  ;;  %v174_v38 = vadd.f32 %v263_v23, %v173_v36  ;;  %v214_v39 = vadd.f32 %v263_v23, %v213_v37 }
  0xd9   :  { %v326_v40 = vpop.f32.mrf.mxu0  ;;  %v338_v41 = vpop.f32.mrf.mxu1 }
  0xda   :  { %245 = vst.msk [vmem:[%s531_s3 + $0x10] sm:$0xff] %vm242_vm2, %v174_v38  ;;  %253 = vst.msk [vmem:[%s531_s3 + $0x50] sm:$0xff] %vm242_vm2, %v214_v39  ;;  %v189_v42 = vadd.f32 %v326_v40, %v263_v23  ;;  %v229_v43 = vadd.f32 %v338_v41, %v263_v23 }
  0xdb   :  { %v183_v44 = vpop.f32.mrf.mxu0  ;;  %v223_v45 = vpop.f32.mrf.mxu1 }
  0xdc   :  { %248 = vst.msk [vmem:[%s531_s3 + $0x28] sm:$0xff] %vm242_vm2, %v189_v42  ;;  %256 = vst.msk [vmem:[%s531_s3 + $0x68] sm:$0xff] %vm242_vm2, %v229_v43  ;;  %v184_v46 = vadd.f32 %v263_v23, %v183_v44  ;;  %v224_v47 = vadd.f32 %v263_v23, %v223_v45 }
  0xdd   :  { %v329_v48 = vpop.f32.mrf.mxu0  ;;  %v341_v49 = vpop.f32.mrf.mxu1 }
  0xde   :  { %247 = vst.msk [vmem:[%s531_s3 + $0x20] sm:$0xff] %vm242_vm2, %v184_v46  ;;  %255 = vst.msk [vmem:[%s531_s3 + $0x60] sm:$0xff] %vm242_vm2, %v224_v47  ;;  %v199_v50 = vadd.f32 %v329_v48, %v263_v23  ;;  %v239_v51 = vadd.f32 %v341_v49, %v263_v23 }
  0xdf   :  { %v193_v52 = vpop.f32.mrf.mxu0  ;;  %v233_v53 = vpop.f32.mrf.mxu1 }
  0xe0   :  { %250 = vst.msk [vmem:[%s531_s3 + $0x38] sm:$0xff] %vm242_vm2, %v199_v50  ;;  %258 = vst.msk [vmem:[%s531_s3 + $0x78] sm:$0xff] %vm242_vm2, %v239_v51  ;;  %v194_v54 = vadd.f32 %v263_v23, %v193_v52  ;;  %v234_v55 = vadd.f32 %v263_v23, %v233_v53 }
  0xe2   :  { %249 = vst.msk [vmem:[%s531_s3 + $0x30] sm:$0xff] %vm242_vm2, %v194_v54  ;;  %257 = vst.msk [vmem:[%s531_s3 + $0x70] sm:$0xff] %vm242_vm2, %v234_v55 }

// kernel: kl_autoencoder_forward.11
= control target key start
LH: loop header
LB: loop body
LE: loop exit
PB: predicated region body
PF: predicated region fallthrough
CT: control target
= control target key end

     0   :  { %s4637_s21 = smov 0   ;;  %s5780_s0 = inlined_call_operand.vmem [shape: f32[2,32,64], index: 0, kind: input, shape index: {}]   ;;  %s5781_s1 = inlined_call_operand.vmem [shape: f32[1,64], index: 1, kind: input, shape index: {}]   ;;  %s5782_s2 = inlined_call_operand.vmem [shape: f32[1,64], index: 2, kind: input, shape index: {}]   ;;  %s5783_s3 = inlined_call_operand.vmem [shape: f32[64,192], index: 3, kind: input, shape index: {}]   ;;  %s5784_s4 = inlined_call_operand.vmem [shape: f32[64,64], index: 4, kind: input, shape index: {}]   ;;  %s5785_s5 = inlined_call_operand.vmem [shape: f32[1,64], index: 5, kind: input, shape index: {}]   ;;  %s5786_s6 = inlined_call_operand.vmem [shape: f32[1,64], index: 6, kind: input, shape index: {}]   ;;  %s5787_s7 = inlined_call_operand.vmem [shape: f32[1,64], index: 7, kind: input, shape index: {}]   ;;  %s5788_s8 = inlined_call_operand.vmem [shape: f32[64,512], index: 8, kind: input, shape index: {}]   ;;  %s5789_s9 = inlined_call_operand.vmem [shape: f32[1,512], index: 9, kind: input, shape index: {}]   ;;  %s5790_s10 = inlined_call_operand.vmem [shape: f32[256,64], index: 10, kind: input, shape index: {}]   ;;  %s5791_s11 = inlined_call_operand.vmem [shape: f32[1,64], index: 11, kind: input, shape index: {}]   ;;  %s5792_s12 = inlined_call_operand.vmem [shape: f32[2,32,64], index: 12, kind: output, shape index: {}]  }
   0x1 LB: > { %s3783_s22 = sadd.s32 4294967295, %s4554_s21   ;;  %p3787_p0 = scmp.ge.s32.totalorder %s4554_s21, 1  ;;  %s4554_s21 = sphi %s4637_s21, %s22_s21  }
   0x2   : > { %p362_p1 = scmp.lt.s32.totalorder %s4554_s21, 3 }
   0x4   : > { %p363_p2 = pnand %p3787_p0, %p362_p1 }
   0x5   : > { %p404_p3 = scmp.lt.s32.totalorder (!%p363_p2), %s3783_s22, 1  ;;  %s4557_s17 = smov (!%p363_p2), 56  }
   0x6   : > { %366 = sbr.rel (%p363_p2) target bundleno = 5971 (0x1753), region = 68  ;;  %s4558_s18 = smov (!%p363_p2), 120  }
   0x7   : > { %s4559_s19 = smov (!%p363_p2), 64   ;;  %s4560_s20 = smov (!%p363_p2), 48  }
   0x8   : > { %s4561_s24 = smov (!%p363_p2), 112   ;;  %s4562_s25 = smov (!%p363_p2), 40  }
   0x9   : > { %s4563_s27 = smov (!%p363_p2), 104   ;;  %s4564_s28 = smov (!%p363_p2), 32  }
   0xa   : > { %s4565_s29 = smov (!%p363_p2), 96   ;;  %s4566_s30 = smov (!%p363_p2), 24  }
   0xb   : > { %s5794_s22 = smov (!%p404_p3, %s3783_s22), 1  ;;  %vm420_vm0 = vcmask 523264   ;;  %v509_v28 = vld [vmem:[%s5783_s3 + $0x78] sm:$0xff]  ;;  %v508_v29 = vld [vmem:[%s5783_s3 + $0x70] sm:$0xff]  ;;  %v507_v30 = vld [vmem:[%s5783_s3 + $0x68] sm:$0xff]  ;;  %v4556_v36 = vmov 0.0  }
   0xc   : > { %s3912_s23 = sshll.u32 %s5794_s22, 5  ;;  %538 = vmatprep.subr.mxu0 %v509_v28  ;;  %v506_v31 = vld [vmem:[%s5783_s3 + $0x60] sm:$0xff]  ;;  %v505_v32 = vld [vmem:[%s5783_s3 + $0x58] sm:$0xff]  ;;  %v504_v33 = vld [vmem:[%s5783_s3 + $0x50] sm:$0xff]  ;;  %586 = vmatprep.mubr.f32.mxu0 %v4556_v36  ;;  %vm632_vm1 = vcmask 64512   ;;  %vm738_vm2 = vcmask 261120  }
   0xd   : > { %s4653_s26 = scalar_lea.vmem %s5780_s0, %s3912_s23  ;;  %539 = vmatpush1.msra.mxu0 %v508_v29  ;;  %v503_v34 = vld [vmem:[%s5783_s3 + $0x48] sm:$0xff]  ;;  %v502_v35 = vld [vmem:[%s5783_s3 + $0x40] sm:$0xff]  ;;  %v501_v37 = vld [vmem:[%s5783_s3 + $0x38] sm:$0xff]  ;;  %s4567_s13 = smov 88   ;;  %vm2918_vm3 = vcmask 130048   ;;  %vm2923_vm4 = vcmask 195584  }
   0xe   : > { %v414_v0 = vld [vmem:[%s4653_s26] sm:$0xff]  ;;  %v416_v1 = vld [vmem:[%s4653_s26 + $0x10] sm:$0xff]  ;;  %v415_v2 = vld [vmem:[%s4653_s26 + $0x8] sm:$0xff]  ;;  %540 = vmatprep.subr.mxu0 %v507_v30  ;;  %s4568_s14 = smov 16   ;;  %s4569_s15 = smov 80   ;;  %vm2932_vm5 = vcmask 326656  }
   0xf   : > { %v421_v3 = vsel %vm420_vm0, %v414_v0, 0.0  ;;  %v427_v4 = vsel %vm420_vm0, %v416_v1, 0.0  ;;  %v417_v5 = vld [vmem:[%s4653_s26 + $0x18] sm:$0xff]  ;;  %v424_v6 = vsel %vm420_vm0, %v415_v2, 0.0  ;;  %541 = vmatpush1.msra.mxu0 %v506_v31  ;;  %v500_v38 = vld [vmem:[%s5783_s3 + $0x30] sm:$0xff]  ;;  %v499_v39 = vld [vmem:[%s5783_s3 + $0x28] sm:$0xff] }
  0x10   : > { %422 = vadd.xlane.f32.xlu0 %v421_v3  ;;  %428 = vadd.xlane.f32.xlu1 %v427_v4  ;;  %v430_v7 = vsel %vm420_vm0, %v417_v5, 0.0  ;;  %v498_v40 = vld [vmem:[%s5783_s3 + $0x20] sm:$0xff]  ;;  %v497_v41 = vld [vmem:[%s5783_s3 + $0x18] sm:$0xff]  ;;  %v496_v42 = vld [vmem:[%s5783_s3 + $0x10] sm:$0xff]  ;;  %s4570_s16 = smov 8   ;;  %vm2937_vm6 = vcmask 392192  }
  0x11   : > { %542 = vmatprep.subr.mxu0 %v505_v32  ;;  %v495_v43 = vld [vmem:[%s5783_s3 + $0x8] sm:$0xff]  ;;  %v494_v44 = vld [vmem:[%s5783_s3] sm:$0xff]  ;;  %vm2942_vm7 = vcmask 457728  }
  0x12   : > { %543 = vmatpush1.msra.mxu0 %v504_v33  ;;  %v3792_v58 = vld [vmem:[%s5781_s1] ss:$0 sm:$0xff] }
  0x13   : > { %544 = vmatprep.subr.mxu0 %v503_v34  ;;  %v3793_v60 = vld [vmem:[%s5782_s2] ss:$0 sm:$0xff] }
  0x14   : > { %425 = vadd.xlane.f32.xlu0 %v424_v6  ;;  %431 = vadd.xlane.f32.xlu1 %v430_v7 }
  0x15   : > { %545 = vmatpush1.msra.mxu0 %v502_v35 }
  0x16   : > { %546 = vmatprep.subr.mxu0 %v501_v37 }
  0x17   : > { %547 = vmatpush1.msra.mxu0 %v500_v38 }
  0x18   : > { %548 = vmatprep.subr.mxu0 %v499_v39 }
  0x19   : > { %549 = vmatpush1.msra.mxu0 %v498_v40 }
  0x1a   : > { %550 = vmatprep.subr.mxu0 %v497_v41 }
  0x1b   : > { %551 = vmatpush1.msra.mxu0 %v496_v42 }
  0x1c   : > { %552 = vmatprep.subr.mxu0 %v495_v43 }
  0x1d   : > { %553 = vmatpush1.msra.mxu0 %v494_v44 }
  0x99   : > { %v423_v8 = vpop.xlane.xlu0 %422  ;;  %v429_v9 = vpop.xlane.xlu1 %428 }
  0x9a   : > { %v434_v10 = vmul.f32 0.015625, %v423_v8  ;;  %v436_v11 = vmul.f32 0.015625, %v429_v9 }
  0x9c   : > { %v4663_v12 = vsub.f32 %v414_v0, %v434_v10  ;;  %v4665_v13 = vsub.f32 %v416_v1, %v436_v11 }
  0x9d   : > { %v426_v14 = vpop.xlane.xlu0 %425  ;;  %v432_v15 = vpop.xlane.xlu1 %431 }
  0x9e   : > { %v435_v16 = vmul.f32 0.015625, %v426_v14  ;;  %v437_v17 = vmul.f32 0.015625, %v432_v15  ;;  %v442_v18 = vmul.f32 %v4663_v12, %v4663_v12  ;;  %v444_v19 = vmul.f32 %v4665_v13, %v4665_v13 }
  0xa0   : > { %v4671_v20 = vsub.f32 %v415_v2, %v435_v16  ;;  %v4673_v21 = vsub.f32 %v417_v5, %v437_v17  ;;  %v446_v22 = vsel %vm420_vm0, %v442_v18, 0.0  ;;  %v452_v23 = vsel %vm420_vm0, %v444_v19, 0.0 }
  0xa1   : > { %447 = vadd.xlane.f32.xlu0 %v446_v22 }
  0xa2   : > { %v443_v24 = vmul.f32 %v4671_v20, %v4671_v20  ;;  %v445_v25 = vmul.f32 %v4673_v21, %v4673_v21 }
  0xa4   : > { %v449_v26 = vsel %vm420_vm0, %v443_v24, 0.0  ;;  %v455_v27 = vsel %vm420_vm0, %v445_v25, 0.0 }
  0xa5   : > { %453 = vadd.xlane.f32.xlu0 %v452_v23  ;;  %450 = vadd.xlane.f32.xlu1 %v449_v26 }
  0xa9   : > { %456 = vadd.xlane.f32.xlu1 %v455_v27 }
 0x12a   : > { %v448_v45 = vpop.xlane.xlu0 %447 }
 0x12b   : > { %v458_v46 = vmul.f32 0.015625, %v448_v45 }
 0x12d   : > { %v462_v47 = vadd.f32 1e-05, %v458_v46 }
 0x12e   : > { %v451_v48 = vpop.xlane.xlu1 %450  ;;  %v454_v49 = vpop.xlane.xlu0 %453 }
 0x12f   : > { %4368 = vrsqrt.f32 %v462_v47  ;;  %v459_v50 = vmul.f32 0.015625, %v451_v48  ;;  %v460_v51 = vmul.f32 0.015625, %v454_v49 }
 0x131   : > { %v463_v52 = vadd.f32 1e-05, %v459_v50  ;;  %v464_v53 = vadd.f32 1e-05, %v460_v51 }
 0x132   : > { %v457_v54 = vpop.xlane.xlu1 %456 }
 0x133   : > { %4370 = vrsqrt.f32 %v463_v52  ;;  %v461_v55 = vmul.f32 0.015625, %v457_v54 }
 0x134   : > { %4372 = vrsqrt.f32 %v464_v53 }
 0x135   : > { %v465_v56 = vadd.f32 1e-05, %v461_v55 }
 0x137   : > { %4374 = vrsqrt.f32 %v465_v56 }
 0x13c   : > { %v4369_v57 = vpop.eup %4368 }
 0x13d   : > { %v470_v59 = vmul.f32 %v4369_v57, %v4663_v12 }
 0x13f   : > { %v480_v61 = vmul.f32 %v3792_v58, %v470_v59 }
 0x140   : > { %v4371_v62 = vpop.eup %4370 }
 0x141   : > { %v4373_v63 = vpop.eup %4372  ;;  %v490_v0 = vadd.f32 %v3793_v60, %v480_v61  ;;  %v471_v1 = vmul.f32 %v4371_v62, %v4671_v20 }
 0x142   : > { %v472_v2 = vmul.f32 %v4373_v63, %v4665_v13 }
 0x143   : > { %3794 = vmatmul.mubr.msk.f32.vlgmr.msra.gmra.mxu0 %vm420_vm0, %v490_v0  ;;  %v481_v3 = vmul.f32 %v3792_v58, %v471_v1 }
 0x144   : > { %v4375_v4 = vpop.eup %4374  ;;  %592 = vmatprep.mubr.f32.mxu0 %v4556_v36  ;;  %v482_v6 = vmul.f32 %v3792_v58, %v472_v2 }
 0x145   : > { %v491_v5 = vadd.f32 %v3793_v60, %v481_v3  ;;  %v473_v7 = vmul.f32 %v4375_v4, %v4673_v21 }
 0x146   : > { %v492_v8 = vadd.f32 %v3793_v60, %v482_v6 }
 0x147   : > { %3795 = vmatmul.mubr.msk.f32.gmra.mxu0 %vm420_vm0, %v491_v5  ;;  %v483_v9 = vmul.f32 %v3792_v58, %v473_v7 }
 0x148   : > { %598 = vmatprep.mubr.f32.mxu0 %v4556_v36 }
 0x149   : > { %v493_v10 = vadd.f32 %v3793_v60, %v483_v9 }
 0x14b   : > { %3796 = vmatmul.mubr.msk.f32.gmra.mxu0 %vm420_vm0, %v492_v8 }
 0x14c   : > { %604 = vmatprep.mubr.f32.mxu0 %v4556_v36 }
 0x14f   : > { %3797 = vmatmul.mubr.msk.f32.gmra.mxu0 %vm420_vm0, %v493_v10 }
 0x203   : > { %v4749_v11 = vpop.f32.mrf.mxu0 }
 0x204   : > { %4106 = vmatprep.mubr.msk.f32.mxu1 %vm632_vm1, %v4749_v11 }
 0x205   : > { %v4753_v12 = vpop.f32.mrf.mxu0 }
 0x207   : > { %v4755_v13 = vpop.f32.mrf.mxu0 }
 0x209   : > { %v4757_v14 = vpop.f32.mrf.mxu0 }
 0x20b   : > { %v4759_v15 = vpop.f32.mrf.mxu0 }
 0x20c   : > { %892 = vrot.lane.b32.xlu1 %v4759_v15, %s4557_s17 }
 0x20d   : > { %v4763_v16 = vpop.f32.mrf.mxu0 }
 0x20f   : > { %v4765_v17 = vpop.f32.mrf.mxu0 }
 0x210   : > { %890 = vrot.lane.b32.xlu1 %v4755_v13, %s4557_s17  ;;  %894 = vrot.lane.b32.xlu0 %v4765_v17, %s4557_s17 }
 0x211   : > { %v4784_v18 = vpop.f32.mrf.mxu0 }
 0x214   : > { %888 = vrot.lane.b32.xlu1 %v4749_v11, %s4557_s17  ;;  %880 = vrot.lane.b32.xlu0 %v4749_v11, %s4558_s18 }
 0x218   : > { %882 = vrot.lane.b32.xlu1 %v4755_v13, %s4558_s18  ;;  %884 = vrot.lane.b32.xlu0 %v4759_v15, %s4558_s18 }
 0x21c   : > { %886 = vrot.lane.b32.xlu1 %v4765_v17, %s4558_s18  ;;  %1051 = vrot.lane.b32.xlu0 %v4757_v14, %s4558_s18 }
 0x220   : > { %1053 = vrot.lane.b32.xlu1 %v4763_v16, %s4558_s18  ;;  %630 = vrot.lane.b32.xlu0 %v4765_v17, %s4559_s19 }
 0x224   : > { %628 = vrot.lane.b32.xlu1 %v4759_v15, %s4559_s19 }
 0x228   : > { %1049 = vrot.lane.b32.xlu1 %v4753_v12, %s4558_s18 }
 0x22c   : > { %1055 = vrot.lane.b32.xlu1 %v4784_v18, %s4558_s18  ;;  %s4571_s18 = smov 72  }
 0x27e   : > { %v893_v19 = vpop.permute.xlu1 %892 }
 0x282   : > { %v891_v20 = vpop.permute.xlu1 %890  ;;  %v895_v21 = vpop.permute.xlu0 %894 }
 0x283   : > { %4126 = vmatprep.subr.msk.mxu0 %vm632_vm1, %v895_v21 }
 0x284   : > { %4127 = vmatpush3.xpose.msk.msra.mxu0 %vm632_vm1, %v895_v21 }
 0x285   : > { %4128 = vmatprep.subr.msk.mxu0 %vm632_vm1, %v893_v19 }
 0x286   : > { %v889_v22 = vpop.permute.xlu1 %888  ;;  %v881_v23 = vpop.permute.xlu0 %880 }
 0x287   : > { %4134 = vmatprep.mubr.msk.f32.mxu0 %vm632_vm1, %v881_v23 }
 0x288   : > { %4129 = vmatpush3.xpose.msk.msra.mxu0 %vm632_vm1, %v893_v19 }
 0x289   : > { %4130 = vmatprep.subr.msk.mxu0 %vm632_vm1, %v891_v20 }
 0x28a   : > { %v883_v24 = vpop.permute.xlu1 %882  ;;  %v885_v25 = vpop.permute.xlu0 %884 }
 0x28c   : > { %4131 = vmatpush3.xpose.msk.msra.mxu0 %vm632_vm1, %v891_v20 }
 0x28d   : > { %4132 = vmatprep.subr.msk.mxu0 %vm632_vm1, %v889_v22 }
 0x28e   : > { %v887_v26 = vpop.permute.xlu1 %886  ;;  %v1052_v27 = vpop.permute.xlu0 %1051 }
 0x290   : > { %4133 = vmatpush3.xpose.msk.msra.mxu0 %vm632_vm1, %v889_v22 }
 0x292   : > { %v1054_v28 = vpop.permute.xlu1 %1053  ;;  %v631_v29 = vpop.permute.xlu0 %630 }
 0x293   : > { %4098 = vmatprep.subr.msk.mxu1 %vm632_vm1, %v631_v29  ;;  %4135 = vmatmul.mubr.msk.f32.vlgmr.msra.gmra.mxu0 %vm632_vm1, %v883_v24 }
 0x294   : > { %4099 = vmatpush3.xpose.msk.msra.mxu1 %vm632_vm1, %v631_v29  ;;  %4137 = vmatprep.mubr.msk.f32.mxu0 %vm632_vm1, %v885_v25 }
 0x296   : > { %v629_v30 = vpop.permute.xlu1 %628 }
 0x297   : > { %4100 = vmatprep.subr.msk.mxu1 %vm632_vm1, %v629_v30  ;;  %4138 = vmatmul.mubr.msk.f32.gmra.mxu0 %vm632_vm1, %v887_v26 }
 0x298   : > { %4101 = vmatpush3.xpose.msk.msra.mxu1 %vm632_vm1, %v629_v30 }
 0x29a   : > { %v1050_v31 = vpop.permute.xlu1 %1049 }
 0x29e   : > { %v1056_v32 = vpop.permute.xlu1 %1055 }
 0x29f   : > { %4140 = vmatprep.subr.mxu0 %v1056_v32 }
 0x2a0   : > { %4141 = vmatpush3.msra.mxu0 %v1056_v32 }
 0x2a1   : > { %4142 = vmatprep.subr.mxu0 %v1054_v28 }
 0x2a2   : > { %4143 = vmatpush3.msra.mxu0 %v1054_v28 }
 0x2a3   : > { %4144 = vmatprep.subr.mxu0 %v1052_v27 }
 0x2a4   : > { %4145 = vmatpush3.msra.mxu0 %v1052_v27 }
 0x2a5   : > { %4146 = vmatprep.subr.mxu0 %v1050_v31 }
 0x2a6   : > { %4147 = vmatpush3.msra.mxu0 %v1050_v31 }
 0x353   : > { %v4136_v33 = vpop.f32.mrf.mxu0 }
 0x354   : > { %v998_v34 = vmul.f32 0.35355338, %v4136_v33 }
 0x355   : > { %v978_v35 = vpop.f32.mrf.mxu0 }
 0x356   : > { %v997_v37 = vmul.f32 0.35355338, %v978_v35  ;;  %v1004_v38 = vsel %vm738_vm2, %v998_v34, -inf }
 0x357   : > { %1005 = vmax.xlane.f32.xlu1 %v1004_v38  ;;  %v4139_v39 = vpop.f32.mrf.mxu0 }
 0x358   : > { %v1000_v40 = vmul.f32 0.35355338, %v4139_v39  ;;  %v1001_v41 = vsel %vm738_vm2, %v997_v37, -inf }
 0x359   : > { %1002 = vmax.xlane.f32.xlu0 %v1001_v41  ;;  %v988_v42 = vpop.f32.mrf.mxu0 }
 0x35a   : > { %v999_v43 = vmul.f32 0.35355338, %v988_v42  ;;  %v1010_v44 = vsel %vm738_vm2, %v1000_v40, -inf }
 0x35c   : > { %v1007_v45 = vsel %vm738_vm2, %v999_v43, -inf }
 0x35d   : > { %1011 = vmax.xlane.f32.xlu0 %v1010_v44 }
 0x361   : > { %1008 = vmax.xlane.f32.xlu0 %v1007_v45 }
 0x368   : > { %1172 = vrot.lane.b32.xlu1 %v4765_v17, %s4560_s20 }
 0x377   : > { %626 = vrot.lane.b32.xlu0 %v4755_v13, %s4559_s19 }
 0x3e0   : > { %v1006_v46 = vpop.xlane.xlu1 %1005 }
 0x3e1   : > { %v1014_v47 = vsub.f32 %v998_v34, %v1006_v46 }
 0x3e2   : > { %v1003_v48 = vpop.xlane.xlu0 %1002 }
 0x3e3   : > { %v1019_v49 = vmul.f32 1.442695, %v1014_v47  ;;  %v1013_v50 = vsub.f32 %v997_v37, %v1003_v48 }
 0x3e4   : > { %v1173_v51 = vpop.permute.xlu1 %1172 }
 0x3e5   : > { %4376 = vpow2.f32 %v1019_v49  ;;  %v1017_v52 = vmul.f32 1.442695, %v1013_v50  ;;  %4154 = vmatprep.subr.msk.mxu0 %vm632_vm1, %v1173_v51 }
 0x3e6   : > { %v1012_v53 = vpop.xlane.xlu0 %1011 }
 0x3e7   : > { %4378 = vpow2.f32 %v1017_v52  ;;  %v1016_v60 = vsub.f32 %v1000_v40, %v1012_v53 }
 0x3e9   : > { %v1023_v62 = vmul.f32 1.442695, %v1016_v60 }
 0x3ea   : > { %v1009_v54 = vpop.xlane.xlu0 %1008 }
 0x3eb   : > { %v1015_v61 = vsub.f32 %v999_v43, %v1009_v54  ;;  %4380 = vpow2.f32 %v1023_v62 }
 0x3ed   : > { %v1021_v63 = vmul.f32 1.442695, %v1015_v61 }
 0x3ee   : > { %v627_v55 = vpop.permute.xlu0 %626 }
 0x3ef   : > { %4102 = vmatprep.subr.msk.mxu1 %vm632_vm1, %v627_v55  ;;  %4382 = vpow2.f32 %v1021_v63 }
 0x3f0   : > { %4103 = vmatpush3.xpose.msk.msra.mxu1 %vm632_vm1, %v627_v55 }
 0x3f2   : > { %v4377_v56 = vpop.eup %4376 }
 0x3f3   : > { %v1028_v57 = vsel %vm738_vm2, %v4377_v56, 0.0 }
 0x3f4   : > { %v4379_v58 = vpop.eup %4378  ;;  %1029 = vadd.xlane.f32.xlu1 %v1028_v57 }
 0x3f5   : > { %v1025_v59 = vsel %vm738_vm2, %v4379_v58, 0.0 }
 0x3f6   : > { %1026 = vadd.xlane.f32.xlu0 %v1025_v59 }
 0x3f8   : > { %v4381_v0 = vpop.eup %4380 }
 0x3f9   : > { %v1034_v2 = vsel %vm738_vm2, %v4381_v0, 0.0 }
 0x3fc   : > { %v4383_v1 = vpop.eup %4382 }
 0x3fd   : > { %v1031_v3 = vsel %vm738_vm2, %v4383_v1, 0.0 }
 0x405   : > { %1170 = vrot.lane.b32.xlu1 %v4759_v15, %s4560_s20 }
 0x40c   : > { %624 = vrot.lane.b32.xlu0 %v4749_v11, %s4559_s19 }
 0x429   : > { %1035 = vadd.xlane.f32.xlu1 %v1034_v2 }
 0x42b   : > { %1032 = vadd.xlane.f32.xlu0 %v1031_v3 }
 0x43a   : > { %1166 = vrot.lane.b32.xlu1 %v4749_v11, %s4560_s20 }
 0x43e   : > { %1160 = vrot.lane.b32.xlu1 %v4755_v13, %s4561_s24 }
 0x441   : > { %1168 = vrot.lane.b32.xlu0 %v4755_v13, %s4560_s20 }
 0x442   : > { %1164 = vrot.lane.b32.xlu1 %v4765_v17, %s4561_s24 }
 0x445   : > { %1158 = vrot.lane.b32.xlu0 %v4749_v11, %s4561_s24 }
 0x449   : > { %1162 = vrot.lane.b32.xlu0 %v4759_v15, %s4561_s24 }
 0x47d   : > { %v1030_v4 = vpop.xlane.xlu1 %1029 }
 0x47e   : > { %4384 = vrcp.f32 %v1030_v4 }
 0x47f   : > { %v1027_v5 = vpop.xlane.xlu0 %1026 }
 0x480   : > { %4386 = vrcp.f32 %v1027_v5 }
 0x481   : > { %v1171_v19 = vpop.permute.xlu1 %1170 }
 0x483   : > { %v625_v6 = vpop.permute.xlu0 %624 }
 0x484   : > { %4104 = vmatprep.subr.msk.mxu1 %vm632_vm1, %v625_v6 }
 0x485   : > { %4105 = vmatpush3.xpose.msk.msra.mxu1 %vm632_vm1, %v625_v6 }
 0x486   : > { %4112 = vmatprep.subr.mxu1 %v4784_v18 }
 0x488   : > { %4107 = vmatmul.mubr.msk.f32.vlgmr.msra.gmra.mxu1 %vm632_vm1, %v4755_v13 }
 0x489   : > { %4109 = vmatprep.mubr.msk.f32.mxu1 %vm632_vm1, %v4759_v15  ;;  %4113 = vmatpush3.msra.mxu1 %v4784_v18 }
 0x48a   : > { %4114 = vmatprep.subr.mxu1 %v4763_v16 }
 0x48b   : > { %4115 = vmatpush3.msra.mxu1 %v4763_v16  ;;  %v4385_v7 = vpop.eup %4384 }
 0x48c   : > { %4110 = vmatmul.mubr.msk.f32.gmra.mxu1 %vm632_vm1, %v4765_v17  ;;  %4116 = vmatprep.subr.mxu1 %v4757_v14  ;;  %v1040_v10 = vmul.f32 %v4385_v7, %v4377_v56 }
 0x48d   : > { %v4387_v8 = vpop.eup %4386  ;;  %4117 = vmatpush3.msra.mxu1 %v4757_v14 }
 0x48e   : > { %4118 = vmatprep.subr.mxu1 %v4753_v12  ;;  %v1038_v9 = vmul.f32 %v4387_v8, %v4379_v58 }
 0x48f   : > { %4119 = vmatpush3.msra.mxu1 %v4753_v12 }
 0x490   : > { %4148 = vmatprep.mubr.msk.f32.mxu0 %vm738_vm2, %v1038_v9 }
 0x491   : > { %4149 = vmatmul.mubr.msk.f32.vlgmr.msra.gmra.mxu0 %vm738_vm2, %v1040_v10 }
 0x492   : > { %4155 = vmatpush3.xpose.msk.msra.mxu0 %vm632_vm1, %v1173_v51 }
 0x493   : > { %4156 = vmatprep.subr.msk.mxu0 %vm632_vm1, %v1171_v19 }
 0x496   : > { %4157 = vmatpush3.xpose.msk.msra.mxu0 %vm632_vm1, %v1171_v19 }
 0x4b2   : > { %v1036_v20 = vpop.xlane.xlu1 %1035 }
 0x4b3   : > { %4388 = vrcp.f32 %v1036_v20 }
 0x4b4   : > { %v1033_v21 = vpop.xlane.xlu0 %1032 }
 0x4b5   : > { %4390 = vrcp.f32 %v1033_v21 }
 0x4b6   : > { %v1167_v23 = vpop.permute.xlu1 %1166 }
 0x4b8   : > { %v1169_v22 = vpop.permute.xlu0 %1168 }
 0x4b9   : > { %4158 = vmatprep.subr.msk.mxu0 %vm632_vm1, %v1169_v22 }
 0x4ba   : > { %4159 = vmatpush3.xpose.msk.msra.mxu0 %vm632_vm1, %v1169_v22  ;;  %v1161_v29 = vpop.permute.xlu1 %1160 }
 0x4bb   : > { %4160 = vmatprep.subr.msk.mxu0 %vm632_vm1, %v1167_v23 }
 0x4bc   : > { %v1159_v27 = vpop.permute.xlu0 %1158 }
 0x4be   : > { %4161 = vmatpush3.xpose.msk.msra.mxu0 %vm632_vm1, %v1167_v23  ;;  %v1165_v31 = vpop.permute.xlu1 %1164 }
 0x4c0   : > { %v4389_v24 = vpop.eup %4388  ;;  %v1163_v30 = vpop.permute.xlu0 %1162 }
 0x4c1   : > { %v1044_v28 = vmul.f32 %v4389_v24, %v4381_v0 }
 0x4c2   : > { %v4391_v25 = vpop.eup %4390 }
 0x4c3   : > { %v1042_v26 = vmul.f32 %v4391_v25, %v4383_v1 }
 0x4c5   : > { %4151 = vmatprep.mubr.msk.f32.mxu0 %vm738_vm2, %v1042_v26 }
 0x4c6   : > { %4152 = vmatmul.mubr.msk.f32.gmra.mxu0 %vm738_vm2, %v1044_v28 }
 0x4c7   : > { %4162 = vmatprep.mubr.msk.f32.mxu0 %vm632_vm1, %v1159_v27 }
 0x4ca   : > { %4163 = vmatmul.mubr.msk.f32.vlgmr.msra.gmra.mxu0 %vm632_vm1, %v1161_v29 }
 0x4cb   : > { %4165 = vmatprep.mubr.msk.f32.mxu0 %vm632_vm1, %v1163_v30 }
 0x4ce   : > { %4166 = vmatmul.mubr.msk.f32.gmra.mxu0 %vm632_vm1, %v1165_v31 }
 0x548   : > { %v4108_v32 = vpop.f32.mrf.mxu1 }
 0x549   : > { %v735_v33 = vmul.f32 0.35355338, %v4108_v32 }
 0x54a   : > { %v715_v34 = vpop.f32.mrf.mxu1 }
 0x54b   : > { %v734_v35 = vmul.f32 0.35355338, %v715_v34  ;;  %v742_v37 = vsel %vm738_vm2, %v735_v33, -inf }
 0x54c   : > { %743 = vmax.xlane.f32.xlu1 %v742_v37  ;;  %v4111_v38 = vpop.f32.mrf.mxu1 }
 0x54d   : > { %v739_v39 = vsel %vm738_vm2, %v734_v35, -inf  ;;  %v737_v42 = vmul.f32 0.35355338, %v4111_v38 }
 0x54e   : > { %740 = vmax.xlane.f32.xlu0 %v739_v39  ;;  %v725_v40 = vpop.f32.mrf.mxu1 }
 0x54f   : > { %v736_v41 = vmul.f32 0.35355338, %v725_v40  ;;  %v748_v44 = vsel %vm738_vm2, %v737_v42, -inf }
 0x551   : > { %v745_v43 = vsel %vm738_vm2, %v736_v41, -inf  ;;  %v4869_v45 = vpop.f32.mrf.mxu0 }
 0x552   : > { %746 = vmax.xlane.f32.xlu0 %v745_v43 }
 0x553   : > { %v4871_v51 = vpop.f32.mrf.mxu0 }
 0x556   : > { %749 = vmax.xlane.f32.xlu0 %v748_v44 }
 0x586   : > { %v4873_v53 = vpop.f32.mrf.mxu0 }
 0x588   : > { %v4875_v57 = vpop.f32.mrf.mxu0 }
 0x58a   : > { %v4164_v61 = vpop.f32.mrf.mxu0 }
 0x58b   : > { %v1276_v9 = vmul.f32 0.35355338, %v4164_v61 }
 0x58c   : > { %v1256_v63 = vpop.f32.mrf.mxu0 }
 0x58d   : > { %v1275_v5 = vmul.f32 0.35355338, %v1256_v63  ;;  %v1282_v23 = vsel %vm738_vm2, %v1276_v9, -inf }
 0x58e   : > { %v4167_v3 = vpop.f32.mrf.mxu0 }
 0x58f   : > { %v1279_v19 = vsel %vm738_vm2, %v1275_v5, -inf  ;;  %v4884_v21 = vmul.f32 0.35355338, %v4167_v3 }
 0x590   : > { %v1266_v7 = vpop.f32.mrf.mxu0 }
 0x591   : > { %v4880_v10 = vmul.f32 0.35355338, %v1266_v7  ;;  %v1288_v24 = vsel %vm738_vm2, %v4884_v21, -inf }
 0x593   : > { %v1285_v22 = vsel %vm738_vm2, %v4880_v10, -inf }
 0x5d5   : > { %v744_v46 = vpop.xlane.xlu1 %743 }
 0x5d6   : > { %v752_v47 = vsub.f32 %v735_v33, %v744_v46 }
 0x5d7   : > { %v741_v48 = vpop.xlane.xlu0 %740 }
 0x5d8   : > { %v757_v49 = vmul.f32 1.442695, %v752_v47  ;;  %v751_v50 = vsub.f32 %v734_v35, %v741_v48 }
 0x5da   : > { %4392 = vpow2.f32 %v757_v49  ;;  %v755_v52 = vmul.f32 1.442695, %v751_v50 }
 0x5db   : > { %v747_v54 = vpop.xlane.xlu0 %746 }
 0x5dc   : > { %4394 = vpow2.f32 %v755_v52  ;;  %v753_v55 = vsub.f32 %v736_v41, %v747_v54 }
 0x5de   : > { %v759_v56 = vmul.f32 1.442695, %v753_v55 }
 0x5df   : > { %v750_v58 = vpop.xlane.xlu0 %749 }
 0x5e0   : > { %4396 = vpow2.f32 %v759_v56  ;;  %v754_v59 = vsub.f32 %v737_v42, %v750_v58 }
 0x5e2   : > { %v761_v60 = vmul.f32 1.442695, %v754_v59 }
 0x5e4   : > { %4398 = vpow2.f32 %v761_v60 }
 0x5e7   : > { %v4393_v62 = vpop.eup %4392 }
 0x5e8   : > { %v766_v0 = vsel %vm738_vm2, %v4393_v62, 0.0 }
 0x5e9   : > { %v4395_v1 = vpop.eup %4394  ;;  %767 = vadd.xlane.f32.xlu1 %v766_v0 }
 0x5ea   : > { %v763_v2 = vsel %vm738_vm2, %v4395_v1, 0.0 }
 0x5eb   : > { %764 = vadd.xlane.f32.xlu0 %v763_v2 }
 0x5ed   : > { %v4397_v4 = vpop.eup %4396 }
 0x5ee   : > { %v769_v6 = vsel %vm738_vm2, %v4397_v4, 0.0 }
 0x5ef   : > { %770 = vadd.xlane.f32.xlu0 %v769_v6 }
 0x5f1   : > { %v4399_v8 = vpop.eup %4398 }
 0x5f2   : > { %v772_v20 = vsel %vm738_vm2, %v4399_v8, 0.0 }
 0x5f3   : > { %1280 = vmax.xlane.f32.xlu0 %v1279_v19  ;;  %773 = vadd.xlane.f32.xlu1 %v772_v20 }
 0x5f7   : > { %1286 = vmax.xlane.f32.xlu0 %v1285_v22  ;;  %1283 = vmax.xlane.f32.xlu1 %v1282_v23 }
 0x5fb   : > { %1289 = vmax.xlane.f32.xlu1 %v1288_v24 }
 0x60c   : > { %1327 = vrot.lane.b32.xlu1 %v4763_v16, %s4561_s24 }
 0x60d   : > { %1329 = vrot.lane.b32.xlu0 %v4784_v18, %s4561_s24 }
 0x610   : > { %1325 = vrot.lane.b32.xlu1 %v4757_v14, %s4561_s24 }
 0x614   : > { %1323 = vrot.lane.b32.xlu1 %v4753_v12, %s4561_s24 }
 0x672   : > { %v768_v25 = vpop.xlane.xlu1 %767 }
 0x673   : > { %4400 = vrcp.f32 %v768_v25 }
 0x674   : > { %v765_v26 = vpop.xlane.xlu0 %764 }
 0x675   : > { %4402 = vrcp.f32 %v765_v26 }
 0x678   : > { %v771_v27 = vpop.xlane.xlu0 %770 }
 0x679   : > { %4404 = vrcp.f32 %v771_v27 }
 0x67c   : > { %v774_v28 = vpop.xlane.xlu1 %773  ;;  %v1281_v29 = vpop.xlane.xlu0 %1280 }
 0x67d   : > { %4406 = vrcp.f32 %v774_v28  ;;  %v1291_v30 = vsub.f32 %v1275_v5, %v1281_v29 }
 0x67f   : > { %v1295_v31 = vmul.f32 1.442695, %v1291_v30 }
 0x680   : > { %v1284_v32 = vpop.xlane.xlu1 %1283  ;;  %v1287_v33 = vpop.xlane.xlu0 %1286 }
 0x681   : > { %v4401_v34 = vpop.eup %4400  ;;  %4408 = vpow2.f32 %v1295_v31  ;;  %v1292_v35 = vsub.f32 %v1276_v9, %v1284_v32  ;;  %v1293_v58 = vsub.f32 %v4880_v10, %v1287_v33 }
 0x682   : > { %v4403_v37 = vpop.eup %4402  ;;  %v778_v40 = vmul.f32 %v4401_v34, %v4393_v62 }
 0x683   : > { %v1297_v38 = vmul.f32 1.442695, %v1292_v35  ;;  %v776_v39 = vmul.f32 %v4403_v37, %v4395_v1  ;;  %v1299_v59 = vmul.f32 1.442695, %v1293_v58 }
 0x684   : > { %v1290_v41 = vpop.xlane.xlu1 %1289  ;;  %v1330_v42 = vpop.permute.xlu0 %1329 }
 0x685   : > { %4410 = vpow2.f32 %v1297_v38  ;;  %4120 = vmatprep.mubr.msk.f32.mxu1 %vm738_vm2, %v776_v39  ;;  %4168 = vmatprep.subr.mxu1 %v1330_v42  ;;  %v1294_v60 = vsub.f32 %v4884_v21, %v1290_v41 }
 0x686   : > { %v4405_v43 = vpop.eup %4404  ;;  %4121 = vmatmul.mubr.msk.f32.vlgmr.msra.gmra.mxu1 %vm738_vm2, %v778_v40  ;;  %4412 = vpow2.f32 %v1299_v59 }
 0x687   : > { %4169 = vmatpush3.msra.mxu1 %v1330_v42  ;;  %v780_v44 = vmul.f32 %v4405_v43, %v4397_v4  ;;  %v1301_v61 = vmul.f32 1.442695, %v1294_v60 }
 0x688   : > { %v1328_v46 = vpop.permute.xlu1 %1327 }
 0x689   : > { %4123 = vmatprep.mubr.msk.f32.mxu1 %vm738_vm2, %v780_v44  ;;  %4170 = vmatprep.subr.mxu1 %v1328_v46  ;;  %4414 = vpow2.f32 %v1301_v61 }
 0x68a   : > { %v4407_v47 = vpop.eup %4406  ;;  %4171 = vmatpush3.msra.mxu1 %v1328_v46 }
 0x68b   : > { %v782_v48 = vmul.f32 %v4407_v47, %v4399_v8 }
 0x68c   : > { %v1326_v49 = vpop.permute.xlu1 %1325 }
 0x68d   : > { %4124 = vmatmul.mubr.msk.f32.gmra.mxu1 %vm738_vm2, %v782_v48  ;;  %4172 = vmatprep.subr.mxu1 %v1326_v49 }
 0x68e   : > { %v4409_v50 = vpop.eup %4408  ;;  %4173 = vmatpush3.msra.mxu1 %v1326_v49 }
 0x68f   : > { %v1303_v52 = vsel %vm738_vm2, %v4409_v50, 0.0 }
 0x690   : > { %v1324_v54 = vpop.permute.xlu1 %1323  ;;  %1304 = vadd.xlane.f32.xlu0 %v1303_v52 }
 0x691   : > { %4174 = vmatprep.subr.mxu1 %v1324_v54 }
 0x692   : > { %v4411_v55 = vpop.eup %4410  ;;  %4175 = vmatpush3.msra.mxu1 %v1324_v54 }
 0x693   : > { %v1306_v56 = vsel %vm738_vm2, %v4411_v55, 0.0  ;;  %v4413_v62 = vpop.eup %4412 }
 0x694   : > { %1307 = vadd.xlane.f32.xlu1 %v1306_v56  ;;  %v1309_v63 = vsel %vm738_vm2, %v4413_v62, 0.0 }
 0x696   : > { %v4415_v0 = vpop.eup %4414 }
 0x697   : > { %v1312_v1 = vsel %vm738_vm2, %v4415_v0, 0.0 }
 0x6a5   : > { %1444 = vrot.lane.b32.xlu1 %v4759_v15, %s4562_s25 }
 0x6a6   : > { %1446 = vrot.lane.b32.xlu0 %v4765_v17, %s4562_s25 }
 0x6c5   : > { %1310 = vadd.xlane.f32.xlu0 %v1309_v63 }
 0x6c9   : > { %1313 = vadd.xlane.f32.xlu1 %v1312_v1 }
 0x6da   : > { %1440 = vrot.lane.b32.xlu1 %v4749_v11, %s4562_s25 }
 0x6db   : > { %1442 = vrot.lane.b32.xlu0 %v4755_v13, %s4562_s25 }
 0x6de   : > { %1434 = vrot.lane.b32.xlu1 %v4755_v13, %s4563_s27 }
 0x6df   : > { %1432 = vrot.lane.b32.xlu0 %v4749_v11, %s4563_s27 }
 0x6e2   : > { %1438 = vrot.lane.b32.xlu1 %v4765_v17, %s4563_s27 }
 0x6e3   : > { %1436 = vrot.lane.b32.xlu0 %v4759_v15, %s4563_s27 }
 0x719   : > { %v1305_v2 = vpop.xlane.xlu0 %1304 }
 0x71a   : > { %4416 = vrcp.f32 %v1305_v2 }
 0x71d   : > { %v1308_v3 = vpop.xlane.xlu1 %1307  ;;  %v1447_v4 = vpop.permute.xlu0 %1446 }
 0x71e   : > { %4418 = vrcp.f32 %v1308_v3  ;;  %4182 = vmatprep.subr.msk.mxu1 %vm632_vm1, %v1447_v4 }
 0x721   : > { %v1445_v9 = vpop.permute.xlu1 %1444 }
 0x727   : > { %v4417_v5 = vpop.eup %4416 }
 0x728   : > { %v1316_v6 = vmul.f32 %v4417_v5, %v4409_v50 }
 0x72a   : > { %4176 = vmatprep.mubr.msk.f32.mxu1 %vm738_vm2, %v1316_v6 }
 0x72b   : > { %v4419_v7 = vpop.eup %4418 }
 0x72c   : > { %v1318_v8 = vmul.f32 %v4419_v7, %v4411_v55 }
 0x72e   : > { %4177 = vmatmul.mubr.msk.f32.vlgmr.msra.gmra.mxu1 %vm738_vm2, %v1318_v8 }
 0x72f   : > { %4183 = vmatpush3.xpose.msk.msra.mxu1 %vm632_vm1, %v1447_v4 }
 0x730   : > { %4184 = vmatprep.subr.msk.mxu1 %vm632_vm1, %v1445_v9 }
 0x733   : > { %4185 = vmatpush3.xpose.msk.msra.mxu1 %vm632_vm1, %v1445_v9 }
 0x746   : > { %v4941_v30 = vpop.f32.mrf.mxu1 }
 0x748   : > { %v4943_v31 = vpop.f32.mrf.mxu1 }
 0x74d   : > { %v4945_v32 = vpop.f32.mrf.mxu1 }
 0x74e   : > { %v1311_v10 = vpop.xlane.xlu0 %1310 }
 0x74f   : > { %4420 = vrcp.f32 %v1311_v10  ;;  %v4947_v33 = vpop.f32.mrf.mxu1 }
 0x752   : > { %v1314_v19 = vpop.xlane.xlu1 %1313  ;;  %v1443_v20 = vpop.permute.xlu0 %1442 }
 0x753   : > { %4422 = vrcp.f32 %v1314_v19  ;;  %4186 = vmatprep.subr.msk.mxu1 %vm632_vm1, %v1443_v20 }
 0x754   : > { %4187 = vmatpush3.xpose.msk.msra.mxu1 %vm632_vm1, %v1443_v20 }
 0x756   : > { %v1441_v21 = vpop.permute.xlu1 %1440  ;;  %v1433_v25 = vpop.permute.xlu0 %1432 }
 0x757   : > { %4188 = vmatprep.subr.msk.mxu1 %vm632_vm1, %v1441_v21 }
 0x758   : > { %4189 = vmatpush3.xpose.msk.msra.mxu1 %vm632_vm1, %v1441_v21 }
 0x75a   : > { %v1435_v27 = vpop.permute.xlu1 %1434  ;;  %v1437_v28 = vpop.permute.xlu0 %1436 }
 0x75c   : > { %v4421_v22 = vpop.eup %4420 }
 0x75d   : > { %v1320_v23 = vmul.f32 %v4421_v22, %v4413_v62 }
 0x75e   : > { %v1439_v29 = vpop.permute.xlu1 %1438 }
 0x75f   : > { %4179 = vmatprep.mubr.msk.f32.mxu1 %vm738_vm2, %v1320_v23 }
 0x760   : > { %v4423_v24 = vpop.eup %4422 }
 0x761   : > { %v1322_v26 = vmul.f32 %v4423_v24, %v4415_v0 }
 0x763   : > { %4180 = vmatmul.mubr.msk.f32.gmra.mxu1 %vm738_vm2, %v1322_v26 }
 0x764   : > { %4190 = vmatprep.mubr.msk.f32.mxu1 %vm632_vm1, %v1433_v25 }
 0x767   : > { %4191 = vmatmul.mubr.msk.f32.vlgmr.msra.gmra.mxu1 %vm632_vm1, %v1435_v27 }
 0x768   : > { %4193 = vmatprep.mubr.msk.f32.mxu1 %vm632_vm1, %v1437_v28 }
 0x76b   : > { %4194 = vmatmul.mubr.msk.f32.gmra.mxu1 %vm632_vm1, %v1439_v29 }
 0x7ee   : > { %v4949_v34 = vpop.f32.mrf.mxu1 }
 0x7f0   : > { %v4951_v35 = vpop.f32.mrf.mxu1 }
 0x823   : > { %v4953_v37 = vpop.f32.mrf.mxu1 }
 0x825   : > { %v4955_v38 = vpop.f32.mrf.mxu1 }
 0x827   : > { %v4192_v39 = vpop.f32.mrf.mxu1 }
 0x828   : > { %v1550_v40 = vmul.f32 0.35355338, %v4192_v39 }
 0x829   : > { %v1530_v41 = vpop.f32.mrf.mxu1 }
 0x82a   : > { %v1549_v42 = vmul.f32 0.35355338, %v1530_v41  ;;  %v1556_v43 = vsel %vm738_vm2, %v1550_v40, -inf }
 0x82b   : > { %1557 = vmax.xlane.f32.xlu1 %v1556_v43  ;;  %v4195_v44 = vpop.f32.mrf.mxu1 }
 0x82c   : > { %v1552_v46 = vmul.f32 0.35355338, %v4195_v44  ;;  %v1553_v47 = vsel %vm738_vm2, %v1549_v42, -inf }
 0x82d   : > { %1554 = vmax.xlane.f32.xlu0 %v1553_v47  ;;  %v1540_v48 = vpop.f32.mrf.mxu1 }
 0x82e   : > { %v1551_v49 = vmul.f32 0.35355338, %v1540_v48  ;;  %v1562_v50 = vsel %vm738_vm2, %v1552_v46, -inf }
 0x830   : > { %v1559_v52 = vsel %vm738_vm2, %v1551_v49, -inf }
 0x831   : > { %1563 = vmax.xlane.f32.xlu0 %v1562_v50 }
 0x835   : > { %1560 = vmax.xlane.f32.xlu0 %v1559_v52 }
 0x83c   : > { %1601 = vrot.lane.b32.xlu1 %v4763_v16, %s4563_s27 }
 0x840   : > { %1599 = vrot.lane.b32.xlu1 %v4757_v14, %s4563_s27 }
 0x844   : > { %1597 = vrot.lane.b32.xlu1 %v4753_v12, %s4563_s27 }
 0x84b   : > { %1603 = vrot.lane.b32.xlu0 %v4784_v18, %s4563_s27 }
 0x8b4   : > { %v1558_v54 = vpop.xlane.xlu1 %1557 }
 0x8b5   : > { %v1566_v55 = vsub.f32 %v1550_v40, %v1558_v54 }
 0x8b6   : > { %v1555_v56 = vpop.xlane.xlu0 %1554 }
 0x8b7   : > { %v1571_v58 = vmul.f32 1.442695, %v1566_v55  ;;  %v1565_v59 = vsub.f32 %v1549_v42, %v1555_v56 }
 0x8b8   : > { %v1602_v62 = vpop.permute.xlu1 %1601 }
 0x8b9   : > { %4424 = vpow2.f32 %v1571_v58  ;;  %v1569_v60 = vmul.f32 1.442695, %v1565_v59 }
 0x8ba   : > { %v1564_v61 = vpop.xlane.xlu0 %1563 }
 0x8bb   : > { %4426 = vpow2.f32 %v1569_v60  ;;  %v1568_v7 = vsub.f32 %v1552_v46, %v1564_v61 }
 0x8bc   : > { %v1600_v0 = vpop.permute.xlu1 %1599 }
 0x8bd   : > { %v1575_v9 = vmul.f32 1.442695, %v1568_v7 }
 0x8be   : > { %v1561_v63 = vpop.xlane.xlu0 %1560 }
 0x8bf   : > { %v1567_v8 = vsub.f32 %v1551_v49, %v1561_v63  ;;  %4428 = vpow2.f32 %v1575_v9 }
 0x8c0   : > { %v1598_v5 = vpop.permute.xlu1 %1597 }
 0x8c1   : > { %v1573_v10 = vmul.f32 1.442695, %v1567_v8 }
 0x8c2   : > { %v1604_v1 = vpop.permute.xlu0 %1603 }
 0x8c3   : > { %4196 = vmatprep.subr.mxu0 %v1604_v1  ;;  %4430 = vpow2.f32 %v1573_v10 }
 0x8c4   : > { %4197 = vmatpush3.msra.mxu0 %v1604_v1 }
 0x8c5   : > { %4198 = vmatprep.subr.mxu0 %v1602_v62 }
 0x8c6   : > { %v4425_v2 = vpop.eup %4424  ;;  %4199 = vmatpush3.msra.mxu0 %v1602_v62 }
 0x8c7   : > { %4200 = vmatprep.subr.mxu0 %v1600_v0  ;;  %v1580_v3 = vsel %vm738_vm2, %v4425_v2, 0.0 }
 0x8c8   : > { %v4427_v4 = vpop.eup %4426  ;;  %1581 = vadd.xlane.f32.xlu1 %v1580_v3  ;;  %4201 = vmatpush3.msra.mxu0 %v1600_v0 }
 0x8c9   : > { %4202 = vmatprep.subr.mxu0 %v1598_v5  ;;  %v1577_v6 = vsel %vm738_vm2, %v4427_v4, 0.0 }
 0x8ca   : > { %1578 = vadd.xlane.f32.xlu0 %v1577_v6  ;;  %4203 = vmatpush3.msra.mxu0 %v1598_v5 }
 0x8cc   : > { %v4429_v19 = vpop.eup %4428 }
 0x8cd   : > { %v1586_v21 = vsel %vm738_vm2, %v4429_v19, 0.0 }
 0x8d0   : > { %v4431_v20 = vpop.eup %4430 }
 0x8d1   : > { %v1583_v22 = vsel %vm738_vm2, %v4431_v20, 0.0 }
 0x8d9   : > { %1718 = vrot.lane.b32.xlu1 %v4759_v15, %s4564_s28 }
 0x8e0   : > { %1720 = vrot.lane.b32.xlu0 %v4765_v17, %s4564_s28 }
 0x8fd   : > { %1587 = vadd.xlane.f32.xlu1 %v1586_v21 }
 0x8ff   : > { %1584 = vadd.xlane.f32.xlu0 %v1583_v22 }
 0x90e   : > { %1714 = vrot.lane.b32.xlu1 %v4749_v11, %s4564_s28 }
 0x912   : > { %1708 = vrot.lane.b32.xlu1 %v4755_v13, %s4565_s29 }
 0x915   : > { %1716 = vrot.lane.b32.xlu0 %v4755_v13, %s4564_s28 }
 0x916   : > { %1712 = vrot.lane.b32.xlu1 %v4765_v17, %s4565_s29 }
 0x919   : > { %1706 = vrot.lane.b32.xlu0 %v4749_v11, %s4565_s29 }
 0x91d   : > { %1710 = vrot.lane.b32.xlu0 %v4759_v15, %s4565_s29 }
 0x951   : > { %v1582_v23 = vpop.xlane.xlu1 %1581 }
 0x952   : > { %4432 = vrcp.f32 %v1582_v23 }
 0x953   : > { %v1579_v24 = vpop.xlane.xlu0 %1578 }
 0x954   : > { %4434 = vrcp.f32 %v1579_v24 }
 0x955   : > { %v1719_v39 = vpop.permute.xlu1 %1718 }
 0x957   : > { %v1721_v25 = vpop.permute.xlu0 %1720 }
 0x958   : > { %4210 = vmatprep.subr.msk.mxu0 %vm632_vm1, %v1721_v25 }
 0x95f   : > { %v4433_v26 = vpop.eup %4432 }
 0x960   : > { %v1592_v29 = vmul.f32 %v4433_v26, %v4425_v2 }
 0x961   : > { %v4435_v27 = vpop.eup %4434 }
 0x962   : > { %v1590_v28 = vmul.f32 %v4435_v27, %v4427_v4 }
 0x964   : > { %4204 = vmatprep.mubr.msk.f32.mxu0 %vm738_vm2, %v1590_v28 }
 0x965   : > { %4205 = vmatmul.mubr.msk.f32.vlgmr.msra.gmra.mxu0 %vm738_vm2, %v1592_v29 }
 0x966   : > { %4211 = vmatpush3.xpose.msk.msra.mxu0 %vm632_vm1, %v1721_v25 }
 0x967   : > { %4212 = vmatprep.subr.msk.mxu0 %vm632_vm1, %v1719_v39 }
 0x96a   : > { %4213 = vmatpush3.xpose.msk.msra.mxu0 %vm632_vm1, %v1719_v39 }
 0x986   : > { %v1588_v40 = vpop.xlane.xlu1 %1587 }
 0x987   : > { %4436 = vrcp.f32 %v1588_v40 }
 0x988   : > { %v1585_v41 = vpop.xlane.xlu0 %1584 }
 0x989   : > { %4438 = vrcp.f32 %v1585_v41 }
 0x98a   : > { %v1715_v43 = vpop.permute.xlu1 %1714 }
 0x98c   : > { %v1717_v42 = vpop.permute.xlu0 %1716 }
 0x98d   : > { %4214 = vmatprep.subr.msk.mxu0 %vm632_vm1, %v1717_v42 }
 0x98e   : > { %4215 = vmatpush3.xpose.msk.msra.mxu0 %vm632_vm1, %v1717_v42  ;;  %v1709_v50 = vpop.permute.xlu1 %1708 }
 0x98f   : > { %4216 = vmatprep.subr.msk.mxu0 %vm632_vm1, %v1715_v43 }
 0x990   : > { %v1707_v48 = vpop.permute.xlu0 %1706 }
 0x992   : > { %4217 = vmatpush3.xpose.msk.msra.mxu0 %vm632_vm1, %v1715_v43  ;;  %v1713_v54 = vpop.permute.xlu1 %1712 }
 0x994   : > { %v4437_v44 = vpop.eup %4436  ;;  %v1711_v52 = vpop.permute.xlu0 %1710 }
 0x995   : > { %v1596_v49 = vmul.f32 %v4437_v44, %v4429_v19 }
 0x996   : > { %v4439_v46 = vpop.eup %4438 }
 0x997   : > { %v1594_v47 = vmul.f32 %v4439_v46, %v4431_v20 }
 0x999   : > { %4207 = vmatprep.mubr.msk.f32.mxu0 %vm738_vm2, %v1594_v47 }
 0x99a   : > { %4208 = vmatmul.mubr.msk.f32.gmra.mxu0 %vm738_vm2, %v1596_v49 }
 0x99b   : > { %4218 = vmatprep.mubr.msk.f32.mxu0 %vm632_vm1, %v1707_v48 }
 0x99e   : > { %4219 = vmatmul.mubr.msk.f32.vlgmr.msra.gmra.mxu0 %vm632_vm1, %v1709_v50 }
 0x99f   : > { %4221 = vmatprep.mubr.msk.f32.mxu0 %vm632_vm1, %v1711_v52 }
 0x9a2   : > { %4222 = vmatmul.mubr.msk.f32.gmra.mxu0 %vm632_vm1, %v1713_v54 }
 0xa25   : > { %v5005_v55 = vpop.f32.mrf.mxu0 }
 0xa27   : > { %v5007_v56 = vpop.f32.mrf.mxu0 }
 0xa5a   : > { %v5009_v58 = vpop.f32.mrf.mxu0 }
 0xa5c   : > { %v5011_v59 = vpop.f32.mrf.mxu0 }
 0xa5e   : > { %v4220_v60 = vpop.f32.mrf.mxu0 }
 0xa5f   : > { %v1824_v61 = vmul.f32 0.35355338, %v4220_v60 }
 0xa60   : > { %v1804_v62 = vpop.f32.mrf.mxu0 }
 0xa61   : > { %v1823_v63 = vmul.f32 0.35355338, %v1804_v62  ;;  %v1830_v0 = vsel %vm738_vm2, %v1824_v61, -inf }
 0xa62   : > { %1831 = vmax.xlane.f32.xlu1 %v1830_v0  ;;  %v4223_v1 = vpop.f32.mrf.mxu0 }
 0xa63   : > { %v1826_v2 = vmul.f32 0.35355338, %v4223_v1  ;;  %v1827_v3 = vsel %vm738_vm2, %v1823_v63, -inf }
 0xa64   : > { %1828 = vmax.xlane.f32.xlu0 %v1827_v3  ;;  %v1814_v4 = vpop.f32.mrf.mxu0 }
 0xa65   : > { %v1825_v5 = vmul.f32 0.35355338, %v1814_v4  ;;  %v1836_v6 = vsel %vm738_vm2, %v1826_v2, -inf }
 0xa67   : > { %v1833_v7 = vsel %vm738_vm2, %v1825_v5, -inf }
 0xa68   : > { %1837 = vmax.xlane.f32.xlu0 %v1836_v6 }
 0xa6c   : > { %1834 = vmax.xlane.f32.xlu0 %v1833_v7 }
 0xa73   : > { %1875 = vrot.lane.b32.xlu1 %v4763_v16, %s4565_s29 }
 0xa77   : > { %1873 = vrot.lane.b32.xlu1 %v4757_v14, %s4565_s29 }
 0xa7b   : > { %1871 = vrot.lane.b32.xlu1 %v4753_v12, %s4565_s29 }
 0xa82   : > { %1877 = vrot.lane.b32.xlu0 %v4784_v18, %s4565_s29 }
 0xaeb   : > { %v1832_v8 = vpop.xlane.xlu1 %1831 }
 0xaec   : > { %v1840_v9 = vsub.f32 %v1824_v61, %v1832_v8 }
 0xaed   : > { %v1829_v10 = vpop.xlane.xlu0 %1828 }
 0xaee   : > { %v1845_v19 = vmul.f32 1.442695, %v1840_v9  ;;  %v1839_v20 = vsub.f32 %v1823_v63, %v1829_v10 }
 0xaef   : > { %v1876_v23 = vpop.permute.xlu1 %1875 }
 0xaf0   : > { %4440 = vpow2.f32 %v1845_v19  ;;  %v1843_v21 = vmul.f32 1.442695, %v1839_v20 }
 0xaf1   : > { %v1838_v22 = vpop.xlane.xlu0 %1837 }
 0xaf2   : > { %4442 = vpow2.f32 %v1843_v21  ;;  %v1842_v41 = vsub.f32 %v1826_v2, %v1838_v22 }
 0xaf3   : > { %v1874_v25 = vpop.permute.xlu1 %1873 }
 0xaf4   : > { %v1849_v43 = vmul.f32 1.442695, %v1842_v41 }
 0xaf5   : > { %v1835_v24 = vpop.xlane.xlu0 %1834 }
 0xaf6   : > { %v1841_v42 = vsub.f32 %v1825_v5, %v1835_v24  ;;  %4444 = vpow2.f32 %v1849_v43 }
 0xaf7   : > { %v1872_v39 = vpop.permute.xlu1 %1871 }
 0xaf8   : > { %v1847_v44 = vmul.f32 1.442695, %v1841_v42 }
 0xaf9   : > { %v1878_v26 = vpop.permute.xlu0 %1877 }
 0xafa   : > { %4224 = vmatprep.subr.mxu1 %v1878_v26  ;;  %4446 = vpow2.f32 %v1847_v44 }
 0xafb   : > { %4225 = vmatpush3.msra.mxu1 %v1878_v26 }
 0xafc   : > { %4226 = vmatprep.subr.mxu1 %v1876_v23 }
 0xafd   : > { %v4441_v27 = vpop.eup %4440  ;;  %4227 = vmatpush3.msra.mxu1 %v1876_v23 }
 0xafe   : > { %4228 = vmatprep.subr.mxu1 %v1874_v25  ;;  %v1854_v28 = vsel %vm738_vm2, %v4441_v27, 0.0 }
 0xaff   : > { %v4443_v29 = vpop.eup %4442  ;;  %1855 = vadd.xlane.f32.xlu1 %v1854_v28  ;;  %4229 = vmatpush3.msra.mxu1 %v1874_v25 }
 0xb00   : > { %4230 = vmatprep.subr.mxu1 %v1872_v39  ;;  %v1851_v40 = vsel %vm738_vm2, %v4443_v29, 0.0 }
 0xb01   : > { %1852 = vadd.xlane.f32.xlu0 %v1851_v40  ;;  %4231 = vmatpush3.msra.mxu1 %v1872_v39 }
 0xb03   : > { %v4445_v46 = vpop.eup %4444 }
 0xb04   : > { %v1860_v48 = vsel %vm738_vm2, %v4445_v46, 0.0 }
 0xb07   : > { %v4447_v47 = vpop.eup %4446 }
 0xb08   : > { %v1857_v49 = vsel %vm738_vm2, %v4447_v47, 0.0 }
 0xb10   : > { %1992 = vrot.lane.b32.xlu1 %v4759_v15, %s4566_s30 }
 0xb17   : > { %1994 = vrot.lane.b32.xlu0 %v4765_v17, %s4566_s30 }
 0xb34   : > { %1861 = vadd.xlane.f32.xlu1 %v1860_v48 }
 0xb36   : > { %1858 = vadd.xlane.f32.xlu0 %v1857_v49 }
 0xb45   : > { %1988 = vrot.lane.b32.xlu1 %v4749_v11, %s4566_s30 }
 0xb49   : > { %1982 = vrot.lane.b32.xlu1 %v4755_v13, %s4567_s13 }
 0xb4c   : > { %1990 = vrot.lane.b32.xlu0 %v4755_v13, %s4566_s30 }
 0xb4d   : > { %1986 = vrot.lane.b32.xlu1 %v4765_v17, %s4567_s13 }
 0xb50   : > { %1980 = vrot.lane.b32.xlu0 %v4749_v11, %s4567_s13 }
 0xb54   : > { %1984 = vrot.lane.b32.xlu0 %v4759_v15, %s4567_s13 }
 0xb88   : > { %v1856_v50 = vpop.xlane.xlu1 %1855 }
 0xb89   : > { %4448 = vrcp.f32 %v1856_v50 }
 0xb8a   : > { %v1853_v52 = vpop.xlane.xlu0 %1852 }
 0xb8b   : > { %4450 = vrcp.f32 %v1853_v52 }
 0xb8c   : > { %v1993_v0 = vpop.permute.xlu1 %1992 }
 0xb8e   : > { %v1995_v54 = vpop.permute.xlu0 %1994 }
 0xb8f   : > { %4238 = vmatprep.subr.msk.mxu1 %vm632_vm1, %v1995_v54 }
 0xb96   : > { %v4449_v60 = vpop.eup %4448 }
 0xb97   : > { %v1866_v63 = vmul.f32 %v4449_v60, %v4441_v27 }
 0xb98   : > { %v4451_v61 = vpop.eup %4450 }
 0xb99   : > { %v1864_v62 = vmul.f32 %v4451_v61, %v4443_v29 }
 0xb9b   : > { %4232 = vmatprep.mubr.msk.f32.mxu1 %vm738_vm2, %v1864_v62 }
 0xb9c   : > { %4233 = vmatmul.mubr.msk.f32.vlgmr.msra.gmra.mxu1 %vm738_vm2, %v1866_v63 }
 0xb9d   : > { %4239 = vmatpush3.xpose.msk.msra.mxu1 %vm632_vm1, %v1995_v54 }
 0xb9e   : > { %4240 = vmatprep.subr.msk.mxu1 %vm632_vm1, %v1993_v0 }
 0xba1   : > { %4241 = vmatpush3.xpose.msk.msra.mxu1 %vm632_vm1, %v1993_v0 }
 0xbbd   : > { %v1862_v1 = vpop.xlane.xlu1 %1861 }
 0xbbe   : > { %4452 = vrcp.f32 %v1862_v1 }
 0xbbf   : > { %v1859_v2 = vpop.xlane.xlu0 %1858 }
 0xbc0   : > { %4454 = vrcp.f32 %v1859_v2 }
 0xbc1   : > { %v1989_v4 = vpop.permute.xlu1 %1988 }
 0xbc3   : > { %v1991_v3 = vpop.permute.xlu0 %1990 }
 0xbc4   : > { %4242 = vmatprep.subr.msk.mxu1 %vm632_vm1, %v1991_v3 }
 0xbc5   : > { %4243 = vmatpush3.xpose.msk.msra.mxu1 %vm632_vm1, %v1991_v3  ;;  %v1983_v10 = vpop.permute.xlu1 %1982 }
 0xbc6   : > { %4244 = vmatprep.subr.msk.mxu1 %vm632_vm1, %v1989_v4 }
 0xbc7   : > { %v1981_v8 = vpop.permute.xlu0 %1980 }
 0xbc9   : > { %4245 = vmatpush3.xpose.msk.msra.mxu1 %vm632_vm1, %v1989_v4  ;;  %v1987_v20 = vpop.permute.xlu1 %1986 }
 0xbcb   : > { %v4453_v5 = vpop.eup %4452  ;;  %v1985_v19 = vpop.permute.xlu0 %1984 }
 0xbcc   : > { %v1870_v9 = vmul.f32 %v4453_v5, %v4445_v46 }
 0xbcd   : > { %v4455_v6 = vpop.eup %4454 }
 0xbce   : > { %v1868_v7 = vmul.f32 %v4455_v6, %v4447_v47 }
 0xbd0   : > { %4235 = vmatprep.mubr.msk.f32.mxu1 %vm738_vm2, %v1868_v7 }
 0xbd1   : > { %4236 = vmatmul.mubr.msk.f32.gmra.mxu1 %vm738_vm2, %v1870_v9 }
 0xbd2   : > { %4246 = vmatprep.mubr.msk.f32.mxu1 %vm632_vm1, %v1981_v8 }
 0xbd5   : > { %4247 = vmatmul.mubr.msk.f32.vlgmr.msra.gmra.mxu1 %vm632_vm1, %v1983_v10 }
 0xbd6   : > { %4249 = vmatprep.mubr.msk.f32.mxu1 %vm632_vm1, %v1985_v19 }
 0xbd9   : > { %4250 = vmatmul.mubr.msk.f32.gmra.mxu1 %vm632_vm1, %v1987_v20 }
 0xc5c   : > { %v5061_v21 = vpop.f32.mrf.mxu1 }
 0xc5e   : > { %v5063_v22 = vpop.f32.mrf.mxu1 }
 0xc91   : > { %v5065_v23 = vpop.f32.mrf.mxu1 }
 0xc93   : > { %v5067_v24 = vpop.f32.mrf.mxu1 }
 0xc95   : > { %v4248_v25 = vpop.f32.mrf.mxu1 }
 0xc96   : > { %v2098_v26 = vmul.f32 0.35355338, %v4248_v25 }
 0xc97   : > { %v2078_v27 = vpop.f32.mrf.mxu1 }
 0xc98   : > { %v2097_v28 = vmul.f32 0.35355338, %v2078_v27  ;;  %v2104_v29 = vsel %vm738_vm2, %v2098_v26, -inf }
 0xc99   : > { %2105 = vmax.xlane.f32.xlu1 %v2104_v29  ;;  %v4251_v39 = vpop.f32.mrf.mxu1 }
 0xc9a   : > { %v2100_v40 = vmul.f32 0.35355338, %v4251_v39  ;;  %v2101_v41 = vsel %vm738_vm2, %v2097_v28, -inf }
 0xc9b   : > { %2102 = vmax.xlane.f32.xlu0 %v2101_v41  ;;  %v2088_v42 = vpop.f32.mrf.mxu1 }
 0xc9c   : > { %v2099_v43 = vmul.f32 0.35355338, %v2088_v42  ;;  %v2110_v44 = vsel %vm738_vm2, %v2100_v40, -inf }
 0xc9e   : > { %v2107_v46 = vsel %vm738_vm2, %v2099_v43, -inf }
 0xc9f   : > { %2111 = vmax.xlane.f32.xlu0 %v2110_v44 }
 0xca3   : > { %2108 = vmax.xlane.f32.xlu0 %v2107_v46 }
 0xcaa   : > { %2149 = vrot.lane.b32.xlu1 %v4763_v16, %s4567_s13 }
 0xcae   : > { %2147 = vrot.lane.b32.xlu1 %v4757_v14, %s4567_s13 }
 0xcb2   : > { %2145 = vrot.lane.b32.xlu1 %v4753_v12, %s4567_s13 }
 0xcb9   : > { %2151 = vrot.lane.b32.xlu0 %v4784_v18, %s4567_s13 }
 0xd22   : > { %v2106_v47 = vpop.xlane.xlu1 %2105 }
 0xd23   : > { %v2114_v48 = vsub.f32 %v2098_v26, %v2106_v47 }
 0xd24   : > { %v2103_v49 = vpop.xlane.xlu0 %2102 }
 0xd25   : > { %v2119_v50 = vmul.f32 1.442695, %v2114_v48  ;;  %v2113_v52 = vsub.f32 %v2097_v28, %v2103_v49 }
 0xd26   : > { %v2150_v61 = vpop.permute.xlu1 %2149 }
 0xd27   : > { %4456 = vpow2.f32 %v2119_v50  ;;  %v2117_v54 = vmul.f32 1.442695, %v2113_v52 }
 0xd28   : > { %v2112_v60 = vpop.xlane.xlu0 %2111 }
 0xd29   : > { %4458 = vpow2.f32 %v2117_v54  ;;  %v2116_v6 = vsub.f32 %v2100_v40, %v2112_v60 }
 0xd2a   : > { %v2148_v63 = vpop.permute.xlu1 %2147 }
 0xd2b   : > { %v2123_v8 = vmul.f32 1.442695, %v2116_v6 }
 0xd2c   : > { %v2109_v62 = vpop.xlane.xlu0 %2108 }
 0xd2d   : > { %v2115_v7 = vsub.f32 %v2099_v43, %v2109_v62  ;;  %4460 = vpow2.f32 %v2123_v8 }
 0xd2e   : > { %v2146_v4 = vpop.permute.xlu1 %2145 }
 0xd2f   : > { %v2121_v9 = vmul.f32 1.442695, %v2115_v7 }
 0xd30   : > { %v2152_v0 = vpop.permute.xlu0 %2151 }
 0xd31   : > { %4252 = vmatprep.subr.mxu0 %v2152_v0  ;;  %4462 = vpow2.f32 %v2121_v9 }
 0xd32   : > { %4253 = vmatpush3.msra.mxu0 %v2152_v0 }
 0xd33   : > { %4254 = vmatprep.subr.mxu0 %v2150_v61 }
 0xd34   : > { %v4457_v1 = vpop.eup %4456  ;;  %4255 = vmatpush3.msra.mxu0 %v2150_v61 }
 0xd35   : > { %4256 = vmatprep.subr.mxu0 %v2148_v63  ;;  %v2128_v2 = vsel %vm738_vm2, %v4457_v1, 0.0 }
 0xd36   : > { %v4459_v3 = vpop.eup %4458  ;;  %2129 = vadd.xlane.f32.xlu1 %v2128_v2  ;;  %4257 = vmatpush3.msra.mxu0 %v2148_v63 }
 0xd37   : > { %4258 = vmatprep.subr.mxu0 %v2146_v4  ;;  %v2125_v5 = vsel %vm738_vm2, %v4459_v3, 0.0 }
 0xd38   : > { %2126 = vadd.xlane.f32.xlu0 %v2125_v5  ;;  %4259 = vmatpush3.msra.mxu0 %v2146_v4 }
 0xd3a   : > { %v4461_v10 = vpop.eup %4460 }
 0xd3b   : > { %v2134_v20 = vsel %vm738_vm2, %v4461_v10, 0.0 }
 0xd3e   : > { %v4463_v19 = vpop.eup %4462 }
 0xd3f   : > { %v2131_v25 = vsel %vm738_vm2, %v4463_v19, 0.0 }
 0xd47   : > { %2266 = vrot.lane.b32.xlu1 %v4759_v15, %s4568_s14 }
 0xd4e   : > { %2268 = vrot.lane.b32.xlu0 %v4765_v17, %s4568_s14 }
 0xd6b   : > { %2135 = vadd.xlane.f32.xlu1 %v2134_v20 }
 0xd6d   : > { %2132 = vadd.xlane.f32.xlu0 %v2131_v25 }
 0xd7c   : > { %2262 = vrot.lane.b32.xlu1 %v4749_v11, %s4568_s14 }
 0xd80   : > { %2256 = vrot.lane.b32.xlu1 %v4755_v13, %s4569_s15 }
 0xd83   : > { %2264 = vrot.lane.b32.xlu0 %v4755_v13, %s4568_s14 }
 0xd84   : > { %2260 = vrot.lane.b32.xlu1 %v4765_v17, %s4569_s15 }
 0xd87   : > { %2254 = vrot.lane.b32.xlu0 %v4749_v11, %s4569_s15 }
 0xd8b   : > { %2258 = vrot.lane.b32.xlu0 %v4759_v15, %s4569_s15 }
 0xdbf   : > { %v2130_v26 = vpop.xlane.xlu1 %2129 }
 0xdc0   : > { %4464 = vrcp.f32 %v2130_v26 }
 0xdc1   : > { %v2127_v27 = vpop.xlane.xlu0 %2126 }
 0xdc2   : > { %4466 = vrcp.f32 %v2127_v27 }
 0xdc3   : > { %v2267_v42 = vpop.permute.xlu1 %2266 }
 0xdc5   : > { %v2269_v28 = vpop.permute.xlu0 %2268 }
 0xdc6   : > { %4266 = vmatprep.subr.msk.mxu0 %vm632_vm1, %v2269_v28 }
 0xdcd   : > { %v4465_v29 = vpop.eup %4464 }
 0xdce   : > { %v2140_v41 = vmul.f32 %v4465_v29, %v4457_v1 }
 0xdcf   : > { %v4467_v39 = vpop.eup %4466 }
 0xdd0   : > { %v2138_v40 = vmul.f32 %v4467_v39, %v4459_v3 }
 0xdd2   : > { %4260 = vmatprep.mubr.msk.f32.mxu0 %vm738_vm2, %v2138_v40 }
 0xdd3   : > { %4261 = vmatmul.mubr.msk.f32.vlgmr.msra.gmra.mxu0 %vm738_vm2, %v2140_v41 }
 0xdd4   : > { %4267 = vmatpush3.xpose.msk.msra.mxu0 %vm632_vm1, %v2269_v28 }
 0xdd5   : > { %4268 = vmatprep.subr.msk.mxu0 %vm632_vm1, %v2267_v42 }
 0xdd8   : > { %4269 = vmatpush3.xpose.msk.msra.mxu0 %vm632_vm1, %v2267_v42 }
 0xdf4   : > { %v2136_v43 = vpop.xlane.xlu1 %2135 }
 0xdf5   : > { %4468 = vrcp.f32 %v2136_v43 }
 0xdf6   : > { %v2133_v44 = vpop.xlane.xlu0 %2132 }
 0xdf7   : > { %4470 = vrcp.f32 %v2133_v44 }
 0xdf8   : > { %v2263_v47 = vpop.permute.xlu1 %2262 }
 0xdfa   : > { %v2265_v46 = vpop.permute.xlu0 %2264 }
 0xdfb   : > { %4270 = vmatprep.subr.msk.mxu0 %vm632_vm1, %v2265_v46 }
 0xdfc   : > { %4271 = vmatpush3.xpose.msk.msra.mxu0 %vm632_vm1, %v2265_v46  ;;  %v2257_v60 = vpop.permute.xlu1 %2256 }
 0xdfd   : > { %4272 = vmatprep.subr.msk.mxu0 %vm632_vm1, %v2263_v47 }
 0xdfe   : > { %v2255_v52 = vpop.permute.xlu0 %2254 }
 0xe00   : > { %4273 = vmatpush3.xpose.msk.msra.mxu0 %vm632_vm1, %v2263_v47  ;;  %v2261_v62 = vpop.permute.xlu1 %2260 }
 0xe02   : > { %v4469_v48 = vpop.eup %4468  ;;  %v2259_v61 = vpop.permute.xlu0 %2258 }
 0xe03   : > { %v2144_v54 = vmul.f32 %v4469_v48, %v4461_v10 }
 0xe04   : > { %v4471_v49 = vpop.eup %4470 }
 0xe05   : > { %v2142_v50 = vmul.f32 %v4471_v49, %v4463_v19 }
 0xe07   : > { %4263 = vmatprep.mubr.msk.f32.mxu0 %vm738_vm2, %v2142_v50 }
 0xe08   : > { %4264 = vmatmul.mubr.msk.f32.gmra.mxu0 %vm738_vm2, %v2144_v54 }
 0xe09   : > { %4274 = vmatprep.mubr.msk.f32.mxu0 %vm632_vm1, %v2255_v52 }
 0xe0c   : > { %4275 = vmatmul.mubr.msk.f32.vlgmr.msra.gmra.mxu0 %vm632_vm1, %v2257_v60 }
 0xe0d   : > { %4277 = vmatprep.mubr.msk.f32.mxu0 %vm632_vm1, %v2259_v61 }
 0xe10   : > { %4278 = vmatmul.mubr.msk.f32.gmra.mxu0 %vm632_vm1, %v2261_v62 }
 0xe93   : > { %v5117_v63 = vpop.f32.mrf.mxu0 }
 0xe95   : > { %v5119_v0 = vpop.f32.mrf.mxu0 }
 0xec8   : > { %v5121_v1 = vpop.f32.mrf.mxu0 }
 0xeca   : > { %v5123_v2 = vpop.f32.mrf.mxu0 }
 0xecc   : > { %v4276_v3 = vpop.f32.mrf.mxu0 }
 0xecd   : > { %v2372_v4 = vmul.f32 0.35355338, %v4276_v3 }
 0xece   : > { %v2352_v5 = vpop.f32.mrf.mxu0 }
 0xecf   : > { %v2371_v6 = vmul.f32 0.35355338, %v2352_v5  ;;  %v2378_v7 = vsel %vm738_vm2, %v2372_v4, -inf }
 0xed0   : > { %2379 = vmax.xlane.f32.xlu1 %v2378_v7  ;;  %v4279_v8 = vpop.f32.mrf.mxu0 }
 0xed1   : > { %v2374_v9 = vmul.f32 0.35355338, %v4279_v8  ;;  %v2375_v10 = vsel %vm738_vm2, %v2371_v6, -inf }
 0xed2   : > { %2376 = vmax.xlane.f32.xlu0 %v2375_v10  ;;  %v2362_v19 = vpop.f32.mrf.mxu0 }
 0xed3   : > { %v2373_v20 = vmul.f32 0.35355338, %v2362_v19  ;;  %v2384_v25 = vsel %vm738_vm2, %v2374_v9, -inf }
 0xed5   : > { %v2381_v26 = vsel %vm738_vm2, %v2373_v20, -inf }
 0xed6   : > { %2385 = vmax.xlane.f32.xlu0 %v2384_v25 }
 0xeda   : > { %2382 = vmax.xlane.f32.xlu0 %v2381_v26 }
 0xee1   : > { %2423 = vrot.lane.b32.xlu1 %v4763_v16, %s4569_s15 }
 0xee5   : > { %2421 = vrot.lane.b32.xlu1 %v4757_v14, %s4569_s15 }
 0xee9   : > { %2419 = vrot.lane.b32.xlu1 %v4753_v12, %s4569_s15 }
 0xef0   : > { %2425 = vrot.lane.b32.xlu0 %v4784_v18, %s4569_s15 }
 0xf59   : > { %v2380_v27 = vpop.xlane.xlu1 %2379 }
 0xf5a   : > { %v2388_v28 = vsub.f32 %v2372_v4, %v2380_v27 }
 0xf5b   : > { %v2377_v29 = vpop.xlane.xlu0 %2376 }
 0xf5c   : > { %v2393_v39 = vmul.f32 1.442695, %v2388_v28  ;;  %v2387_v40 = vsub.f32 %v2371_v6, %v2377_v29 }
 0xf5d   : > { %v2424_v43 = vpop.permute.xlu1 %2423 }
 0xf5e   : > { %4472 = vpow2.f32 %v2393_v39  ;;  %v2391_v41 = vmul.f32 1.442695, %v2387_v40 }
 0xf5f   : > { %v2386_v42 = vpop.xlane.xlu0 %2385 }
 0xf60   : > { %4474 = vpow2.f32 %v2391_v41  ;;  %v2390_v60 = vsub.f32 %v2374_v9, %v2386_v42 }
 0xf61   : > { %v2422_v46 = vpop.permute.xlu1 %2421 }
 0xf62   : > { %v2397_v62 = vmul.f32 1.442695, %v2390_v60 }
 0xf63   : > { %v2383_v44 = vpop.xlane.xlu0 %2382 }
 0xf64   : > { %v2389_v61 = vsub.f32 %v2373_v20, %v2383_v44  ;;  %4476 = vpow2.f32 %v2397_v62 }
 0xf65   : > { %v2420_v52 = vpop.permute.xlu1 %2419 }
 0xf66   : > { %v2395_v3 = vmul.f32 1.442695, %v2389_v61 }
 0xf67   : > { %v2426_v47 = vpop.permute.xlu0 %2425 }
 0xf68   : > { %4280 = vmatprep.subr.mxu1 %v2426_v47  ;;  %4478 = vpow2.f32 %v2395_v3 }
 0xf69   : > { %4281 = vmatpush3.msra.mxu1 %v2426_v47 }
 0xf6a   : > { %4282 = vmatprep.subr.mxu1 %v2424_v43 }
 0xf6b   : > { %v4473_v48 = vpop.eup %4472  ;;  %4283 = vmatpush3.msra.mxu1 %v2424_v43 }
 0xf6c   : > { %4284 = vmatprep.subr.mxu1 %v2422_v46  ;;  %v2402_v49 = vsel %vm738_vm2, %v4473_v48, 0.0 }
 0xf6d   : > { %v4475_v50 = vpop.eup %4474  ;;  %2403 = vadd.xlane.f32.xlu1 %v2402_v49  ;;  %4285 = vmatpush3.msra.mxu1 %v2422_v46 }
 0xf6e   : > { %4286 = vmatprep.subr.mxu1 %v2420_v52  ;;  %v2399_v54 = vsel %vm738_vm2, %v4475_v50, 0.0 }
 0xf6f   : > { %2400 = vadd.xlane.f32.xlu0 %v2399_v54  ;;  %4287 = vmatpush3.msra.mxu1 %v2420_v52 }
 0xf71   : > { %v4477_v4 = vpop.eup %4476 }
 0xf72   : > { %v2408_v6 = vsel %vm738_vm2, %v4477_v4, 0.0 }
 0xf75   : > { %v4479_v5 = vpop.eup %4478 }
 0xf76   : > { %v2405_v7 = vsel %vm738_vm2, %v4479_v5, 0.0 }
 0xf7e   : > { %2540 = vrot.lane.b32.xlu1 %v4759_v15, %s4570_s16 }
 0xf85   : > { %2542 = vrot.lane.b32.xlu0 %v4765_v17, %s4570_s16 }
 0xfa2   : > { %2409 = vadd.xlane.f32.xlu1 %v2408_v6 }
 0xfa4   : > { %2406 = vadd.xlane.f32.xlu0 %v2405_v7 }
 0xfb3   : > { %2536 = vrot.lane.b32.xlu1 %v4749_v11, %s4570_s16 }
 0xfb7   : > { %2530 = vrot.lane.b32.xlu1 %v4755_v13, %s4571_s18 }
 0xfba   : > { %2538 = vrot.lane.b32.xlu0 %v4755_v13, %s4570_s16 }
 0xfbb   : > { %2534 = vrot.lane.b32.xlu1 %v4765_v17, %s4571_s18 }
 0xfbe   : > { %2528 = vrot.lane.b32.xlu0 %v4749_v11, %s4571_s18 }
 0xfc2   : > { %2532 = vrot.lane.b32.xlu0 %v4759_v15, %s4571_s18 }
 0xff6   : > { %v2404_v8 = vpop.xlane.xlu1 %2403 }
 0xff7   : > { %4480 = vrcp.f32 %v2404_v8 }
 0xff8   : > { %v2401_v9 = vpop.xlane.xlu0 %2400 }
 0xff9   : > { %4482 = vrcp.f32 %v2401_v9 }
 0xffa   : > { %v2541_v17 = vpop.permute.xlu1 %2540 }
 0xffc   : > { %v2543_v10 = vpop.permute.xlu0 %2542 }
 0xffd   : > { %4294 = vmatprep.subr.msk.mxu1 %vm632_vm1, %v2543_v10 }
0x1004   : > { %v4481_v19 = vpop.eup %4480 }
0x1005   : > { %v2414_v13 = vmul.f32 %v4481_v19, %v4473_v48 }
0x1006   : > { %v4483_v20 = vpop.eup %4482 }
0x1007   : > { %v2412_v25 = vmul.f32 %v4483_v20, %v4475_v50 }
0x1009   : > { %4288 = vmatprep.mubr.msk.f32.mxu1 %vm738_vm2, %v2412_v25 }
0x100a   : > { %4289 = vmatmul.mubr.msk.f32.vlgmr.msra.gmra.mxu1 %vm738_vm2, %v2414_v13 }
0x100b   : > { %4295 = vmatpush3.xpose.msk.msra.mxu1 %vm632_vm1, %v2543_v10 }
0x100c   : > { %4296 = vmatprep.subr.msk.mxu1 %vm632_vm1, %v2541_v17 }
0x100f   : > { %4297 = vmatpush3.xpose.msk.msra.mxu1 %vm632_vm1, %v2541_v17 }
0x102b   : > { %v2410_v11 = vpop.xlane.xlu1 %2409 }
0x102c   : > { %4484 = vrcp.f32 %v2410_v11 }
0x102d   : > { %v2407_v15 = vpop.xlane.xlu0 %2406 }
0x102e   : > { %4486 = vrcp.f32 %v2407_v15 }
0x102f   : > { %v2537_v27 = vpop.permute.xlu1 %2536 }
0x1031   : > { %v2539_v26 = vpop.permute.xlu0 %2538 }
0x1032   : > { %4298 = vmatprep.subr.msk.mxu1 %vm632_vm1, %v2539_v26 }
0x1033   : > { %4299 = vmatpush3.xpose.msk.msra.mxu1 %vm632_vm1, %v2539_v26  ;;  %v2531_v42 = vpop.permute.xlu1 %2530 }
0x1034   : > { %4300 = vmatprep.subr.msk.mxu1 %vm632_vm1, %v2537_v27 }
0x1035   : > { %v2529_v40 = vpop.permute.xlu0 %2528 }
0x1037   : > { %4301 = vmatpush3.xpose.msk.msra.mxu1 %vm632_vm1, %v2537_v27  ;;  %v2535_v44 = vpop.permute.xlu1 %2534 }
0x1039   : > { %v4485_v28 = vpop.eup %4484  ;;  %v2533_v43 = vpop.permute.xlu0 %2532 }
0x103a   : > { %v2418_v41 = vmul.f32 %v4485_v28, %v4477_v4 }
0x103b   : > { %v4487_v29 = vpop.eup %4486 }
0x103c   : > { %v2416_v39 = vmul.f32 %v4487_v29, %v4479_v5 }
0x103e   : > { %4291 = vmatprep.mubr.msk.f32.mxu1 %vm738_vm2, %v2416_v39 }
0x103f   : > { %4292 = vmatmul.mubr.msk.f32.gmra.mxu1 %vm738_vm2, %v2418_v41 }
0x1040   : > { %4302 = vmatprep.mubr.msk.f32.mxu1 %vm632_vm1, %v2529_v40 }
0x1043   : > { %4303 = vmatmul.mubr.msk.f32.vlgmr.msra.gmra.mxu1 %vm632_vm1, %v2531_v42 }
0x1044   : > { %4305 = vmatprep.mubr.msk.f32.mxu1 %vm632_vm1, %v2533_v43 }
0x1047   : > { %4306 = vmatmul.mubr.msk.f32.gmra.mxu1 %vm632_vm1, %v2535_v44 }
0x1048   : > { %3291 = vmatprep.mubr.f32.mxu1 %v4556_v36 }
0x10ca   : > { %v5174_v46 = vpop.f32.mrf.mxu1 }
0x10cc   : > { %v2509_v47 = vpop.f32.mrf.mxu1 }
0x10ff   : > { %v5176_v48 = vpop.f32.mrf.mxu1 }
0x1101   : > { %v5178_v49 = vpop.f32.mrf.mxu1 }
0x1103   : > { %v4304_v50 = vpop.f32.mrf.mxu1 }
0x1104   : > { %v2646_v52 = vmul.f32 0.35355338, %v4304_v50 }
0x1105   : > { %v2626_v54 = vpop.f32.mrf.mxu1 }
0x1106   : > { %v2645_v60 = vmul.f32 0.35355338, %v2626_v54  ;;  %v2652_v61 = vsel %vm738_vm2, %v2646_v52, -inf }
0x1107   : > { %2653 = vmax.xlane.f32.xlu1 %v2652_v61  ;;  %v4307_v62 = vpop.f32.mrf.mxu1 }
0x1108   : > { %v2649_v3 = vsel %vm738_vm2, %v2645_v60, -inf  ;;  %v2648_v6 = vmul.f32 0.35355338, %v4307_v62 }
0x1109   : > { %2650 = vmax.xlane.f32.xlu0 %v2649_v3  ;;  %v2636_v4 = vpop.f32.mrf.mxu1 }
0x110a   : > { %v2647_v5 = vmul.f32 0.35355338, %v2636_v4  ;;  %v2658_v8 = vsel %vm738_vm2, %v2648_v6, -inf }
0x110c   : > { %v2655_v7 = vsel %vm738_vm2, %v2647_v5, -inf }
0x110d   : > { %2656 = vmax.xlane.f32.xlu0 %v2655_v7 }
0x1111   : > { %2659 = vmax.xlane.f32.xlu0 %v2658_v8 }
0x1190   : > { %v2654_v9 = vpop.xlane.xlu1 %2653 }
0x1191   : > { %v2662_v10 = vsub.f32 %v2646_v52, %v2654_v9 }
0x1192   : > { %v2651_v19 = vpop.xlane.xlu0 %2650 }
0x1193   : > { %v2667_v20 = vmul.f32 1.442695, %v2662_v10  ;;  %v2661_v25 = vsub.f32 %v2645_v60, %v2651_v19 }
0x1195   : > { %4488 = vpow2.f32 %v2667_v20  ;;  %v2665_v13 = vmul.f32 1.442695, %v2661_v25 }
0x1196   : > { %v2657_v17 = vpop.xlane.xlu0 %2656 }
0x1197   : > { %4490 = vpow2.f32 %v2665_v13  ;;  %v2663_v11 = vsub.f32 %v2647_v5, %v2657_v17 }
0x1199   : > { %v2669_v15 = vmul.f32 1.442695, %v2663_v11 }
0x119a   : > { %v2660_v26 = vpop.xlane.xlu0 %2659 }
0x119b   : > { %4492 = vpow2.f32 %v2669_v15  ;;  %v2664_v27 = vsub.f32 %v2648_v6, %v2660_v26 }
0x119d   : > { %v2671_v28 = vmul.f32 1.442695, %v2664_v27 }
0x119f   : > { %4494 = vpow2.f32 %v2671_v28 }
0x11a2   : > { %v4489_v29 = vpop.eup %4488 }
0x11a3   : > { %v2676_v39 = vsel %vm738_vm2, %v4489_v29, 0.0 }
0x11a4   : > { %v4491_v40 = vpop.eup %4490  ;;  %2677 = vadd.xlane.f32.xlu1 %v2676_v39 }
0x11a5   : > { %v2673_v41 = vsel %vm738_vm2, %v4491_v40, 0.0 }
0x11a6   : > { %2674 = vadd.xlane.f32.xlu0 %v2673_v41 }
0x11a8   : > { %v4493_v42 = vpop.eup %4492 }
0x11a9   : > { %v2679_v43 = vsel %vm738_vm2, %v4493_v42, 0.0 }
0x11aa   : > { %2680 = vadd.xlane.f32.xlu0 %v2679_v43 }
0x11ac   : > { %v4495_v44 = vpop.eup %4494 }
0x11ad   : > { %v2682_v50 = vsel %vm738_vm2, %v4495_v44, 0.0 }
0x11ae   : > { %2683 = vadd.xlane.f32.xlu1 %v2682_v50 }
0x11bf   : > { %2697 = vrot.lane.b32.xlu1 %v4763_v16, %s4571_s18 }
0x11c0   : > { %2699 = vrot.lane.b32.xlu0 %v4784_v18, %s4571_s18 }
0x11c3   : > { %2695 = vrot.lane.b32.xlu1 %v4757_v14, %s4571_s18 }
0x11c4   : > { %2806 = vrot.lane.b32.xlu0 %v4871_v51, %s4570_s16 }
0x11c7   : > { %2693 = vrot.lane.b32.xlu1 %v4753_v12, %s4571_s18 }
0x11c8   : > { %2822 = vrot.lane.b32.xlu0 %v4951_v35, %s4568_s14 }
0x11cb   : > { %2808 = vrot.lane.b32.xlu1 %v4869_v45, %s4570_s16 }
0x11cc   : > { %2838 = vrot.lane.b32.xlu0 %v5007_v56, %s4566_s30 }
0x11cf   : > { %2824 = vrot.lane.b32.xlu1 %v4949_v34, %s4568_s14 }
0x11d0   : > { %2854 = vrot.lane.b32.xlu0 %v5063_v22, %s4564_s28  ;;  %v617_v22 = vld [vmem:[%s5784_s4 + $0x30] sm:$0xff] }
0x11d3   : > { %2840 = vrot.lane.b32.xlu1 %v5005_v55, %s4566_s30 }
0x11d4   : > { %2870 = vrot.lane.b32.xlu0 %v5119_v0, %s4562_s25  ;;  %v613_v0 = vld [vmem:[%s5784_s4 + $0x10] sm:$0xff] }
0x11d7   : > { %2856 = vrot.lane.b32.xlu1 %v5061_v21, %s4564_s28  ;;  %v618_v21 = vld [vmem:[%s5784_s4 + $0x38] sm:$0xff] }
0x11d8   : > { %2886 = vrot.lane.b32.xlu0 %v2509_v47, %s4560_s20 }
0x11db   : > { %2872 = vrot.lane.b32.xlu1 %v5117_v63, %s4562_s25  ;;  %v614_v63 = vld [vmem:[%s5784_s4 + $0x18] sm:$0xff] }
0x11dc   : > { %2810 = vrot.lane.b32.xlu0 %v4875_v57, %s4570_s16 }
0x11df   : > { %2888 = vrot.lane.b32.xlu1 %v5174_v46, %s4560_s20 }
0x11e0   : > { %2826 = vrot.lane.b32.xlu0 %v4955_v38, %s4568_s14 }
0x11e3   : > { %2812 = vrot.lane.b32.xlu1 %v4873_v53, %s4570_s16 }
0x11e4   : > { %2842 = vrot.lane.b32.xlu0 %v5011_v59, %s4566_s30 }
0x11e7   : > { %2828 = vrot.lane.b32.xlu1 %v4953_v37, %s4568_s14 }
0x11e8   : > { %2858 = vrot.lane.b32.xlu0 %v5067_v24, %s4564_s28  ;;  %v615_v24 = vld [vmem:[%s5784_s4 + $0x20] sm:$0xff] }
0x11eb   : > { %2844 = vrot.lane.b32.xlu1 %v5009_v58, %s4566_s30  ;;  %s413_s30 = scalar_lea.vmem %s5792_s12, %s3912_s23 }
0x11ec   : > { %2874 = vrot.lane.b32.xlu0 %v5123_v2, %s4562_s25  ;;  %v611_v2 = vld [vmem:[%s5784_s4] sm:$0xff] }
0x11ef   : > { %2860 = vrot.lane.b32.xlu1 %v5065_v23, %s4564_s28  ;;  %v616_v23 = vld [vmem:[%s5784_s4 + $0x28] sm:$0xff] }
0x11f3   : > { %2876 = vrot.lane.b32.xlu1 %v5121_v1, %s4562_s25  ;;  %v612_v1 = vld [vmem:[%s5784_s4 + $0x8] sm:$0xff] }
0x122d   : > { %v2678_v14 = vpop.xlane.xlu1 %2677 }
0x122f   : > { %v2675_v12 = vpop.xlane.xlu0 %2674 }
0x1230   : > { %4496 = vrcp.f32 %v2675_v12 }
0x1231   : > { %4498 = vrcp.f32 %v2678_v14 }
0x1233   : > { %v2681_v16 = vpop.xlane.xlu0 %2680 }
0x1234   : > { %4500 = vrcp.f32 %v2681_v16 }
0x1237   : > { %v2684_v18 = vpop.xlane.xlu1 %2683  ;;  %v2700_v45 = vpop.permute.xlu0 %2699 }
0x1238   : > { %4502 = vrcp.f32 %v2684_v18  ;;  %4308 = vmatprep.subr.mxu0 %v2700_v45 }
0x1239   : > { %4309 = vmatpush3.msra.mxu0 %v2700_v45 }
0x123b   : > { %v2698_v51 = vpop.permute.xlu1 %2697  ;;  %v2807_v61 = vpop.permute.xlu0 %2806 }
0x123c   : > { %4310 = vmatprep.subr.mxu0 %v2698_v51  ;;  %v2914_v27 = vsel %vm632_vm1, %v4943_v31, %v2807_v61 }
0x123d   : > { %v4497_v53 = vpop.eup %4496  ;;  %4311 = vmatpush3.msra.mxu0 %v2698_v51 }
0x123e   : > { %v2686_v57 = vmul.f32 %v4497_v53, %v4491_v40  ;;  %v4499_v35 = vpop.eup %4498 }
0x123f   : > { %v2696_v34 = vpop.permute.xlu1 %2695  ;;  %v2688_v55 = vmul.f32 %v4499_v35, %v4489_v29  ;;  %v2823_v3 = vpop.permute.xlu0 %2822 }
0x1240   : > { %4312 = vmatprep.subr.mxu0 %v2696_v34  ;;  %4316 = vmatprep.mubr.msk.f32.mxu0 %vm738_vm2, %v2686_v57  ;;  %v2919_v28 = vsel %vm2918_vm3, %v2914_v27, %v2823_v3 }
0x1241   : > { %4313 = vmatpush3.msra.mxu0 %v2696_v34  ;;  %v4501_v37 = vpop.eup %4500 }
0x1242   : > { %v2690_v58 = vmul.f32 %v4501_v37, %v4493_v42 }
0x1243   : > { %v2694_v38 = vpop.permute.xlu1 %2693  ;;  %v2839_v5 = vpop.permute.xlu0 %2838 }
0x1244   : > { %4314 = vmatprep.subr.mxu0 %v2694_v38  ;;  %v2924_v40 = vsel %vm2923_vm4, %v2919_v28, %v2839_v5 }
0x1245   : > { %v4503_v56 = vpop.eup %4502  ;;  %4315 = vmatpush3.msra.mxu0 %v2694_v38 }
0x1246   : > { %4317 = vmatmul.mubr.msk.f32.vlgmr.msra.gmra.mxu0 %vm738_vm2, %v2688_v55  ;;  %v2692_v59 = vmul.f32 %v4503_v56, %v4495_v44  ;;  %4322 = vmatprep.subr.mxu0 %v618_v21 }
0x1247   : > { %4319 = vmatprep.mubr.msk.f32.mxu0 %vm738_vm2, %v2690_v58  ;;  %4323 = vmatpush3.msra.mxu0 %v618_v21  ;;  %v2809_v60 = vpop.permute.xlu1 %2808  ;;  %v2855_v7 = vpop.permute.xlu0 %2854 }
0x1248   : > { %4324 = vmatprep.subr.mxu0 %v617_v22  ;;  %v2915_v29 = vsel %vm632_vm1, %v4941_v30, %v2809_v60  ;;  %v2928_v42 = vsel %vm738_vm2, %v2924_v40, %v2855_v7  ;;  %v4545_v60 = vld [vmem:[%s4653_s26] sm:$0xff] }
0x1249   : > { %4325 = vmatpush3.msra.mxu0 %v617_v22 }
0x124a   : > { %4320 = vmatmul.mubr.msk.f32.gmra.mxu0 %vm738_vm2, %v2692_v59  ;;  %4326 = vmatprep.subr.mxu0 %v616_v23 }
0x124b   : > { %4327 = vmatpush3.msra.mxu0 %v616_v23  ;;  %v2825_v62 = vpop.permute.xlu1 %2824  ;;  %v2871_v9 = vpop.permute.xlu0 %2870 }
0x124c   : > { %4328 = vmatprep.subr.mxu0 %v615_v24  ;;  %v2920_v41 = vsel %vm2918_vm3, %v2915_v29, %v2825_v62  ;;  %v2933_v50 = vsel %vm2932_vm5, %v2928_v42, %v2871_v9 }
0x124d   : > { %4329 = vmatpush3.msra.mxu0 %v615_v24 }
0x124e   : > { %4330 = vmatprep.subr.mxu0 %v614_v63 }
0x124f   : > { %4331 = vmatpush3.msra.mxu0 %v614_v63  ;;  %v2841_v4 = vpop.permute.xlu1 %2840  ;;  %v2887_v10 = vpop.permute.xlu0 %2886 }
0x1250   : > { %4332 = vmatprep.subr.mxu0 %v613_v0  ;;  %v2925_v43 = vsel %vm2923_vm4, %v2920_v41, %v2841_v4  ;;  %v2938_v12 = vsel %vm2937_vm6, %v2933_v50, %v2887_v10 }
0x1251   : > { %4333 = vmatpush3.msra.mxu0 %v613_v0  ;;  %v3894_v0 = vld [vmem:[%s5785_s5] ss:$0 sm:$0xff] }
0x1252   : > { %4334 = vmatprep.subr.mxu0 %v612_v1 }
0x1253   : > { %4335 = vmatpush3.msra.mxu0 %v612_v1  ;;  %v2857_v6 = vpop.permute.xlu1 %2856  ;;  %v2811_v20 = vpop.permute.xlu0 %2810 }
0x1254   : > { %4336 = vmatprep.subr.mxu0 %v611_v2  ;;  %v2929_v31 = vsel %vm738_vm2, %v2925_v43, %v2857_v6  ;;  %v2916_v53 = vsel %vm632_vm1, %v4947_v33, %v2811_v20 }
0x1255   : > { %4337 = vmatpush3.msra.mxu0 %v611_v2 }
0x1257   : > { %v2873_v8 = vpop.permute.xlu1 %2872  ;;  %v2827_v25 = vpop.permute.xlu0 %2826 }
0x1258   : > { %v2934_v30 = vsel %vm2932_vm5, %v2929_v31, %v2873_v8  ;;  %v2921_v57 = vsel %vm2918_vm3, %v2916_v53, %v2827_v25  ;;  %v4546_v8 = vld [vmem:[%s4653_s26 + $0x10] sm:$0xff]  ;;  %v3083_v53 = vld [vmem:[%s5788_s8 + $0xd8] sm:$0xff] }
0x125b   : > { %v2843_v17 = vpop.permute.xlu0 %2842 }
0x125c   : > { %v2926_v37 = vsel %vm2923_vm4, %v2921_v57, %v2843_v17  ;;  %v3080_v57 = vld [vmem:[%s5788_s8 + $0xc0] sm:$0xff] }
0x125f   : > { %v2859_v15 = vpop.permute.xlu0 %2858 }
0x1260   : > { %v2930_v55 = vsel %vm738_vm2, %v2926_v37, %v2859_v15  ;;  %v3079_v37 = vld [vmem:[%s5788_s8 + $0xb8] sm:$0xff] }
0x1263   : > { %v2875_v39 = vpop.permute.xlu0 %2874 }
0x1264   : > { %v2935_v58 = vsel %vm2932_vm5, %v2930_v55, %v2875_v39  ;;  %v3078_v55 = vld [vmem:[%s5788_s8 + $0xb0] sm:$0xff] }
0x1306   : > { %v4318_v46 = vpop.f32.mrf.mxu0 }
0x1307   : > { %2904 = vrot.lane.b32.xlu1 %v4318_v46, %s4557_s17 }
0x1308   : > { %v2783_v47 = vpop.f32.mrf.mxu0 }
0x1309   : > { %2902 = vrot.lane.b32.xlu0 %v2783_v47, %s4557_s17  ;;  %v4544_v47 = vld [vmem:[%s4653_s26 + $0x8] sm:$0xff] }
0x130a   : > { %v4321_v52 = vpop.f32.mrf.mxu0 }
0x130b   : > { %2892 = vrot.lane.b32.xlu1 %v5176_v48, %s4560_s20  ;;  %v2889_v48 = vpop.permute.xlu1 %2888 }
0x130c   : > { %v2793_v54 = vpop.f32.mrf.mxu0  ;;  %v2939_v16 = vsel %vm2937_vm6, %v2934_v30, %v2889_v48  ;;  %v4547_v48 = vld [vmem:[%s4653_s26 + $0x18] sm:$0xff] }
0x130d   : > { %2890 = vrot.lane.b32.xlu0 %v5178_v49, %s4560_s20 }
0x130f   : > { %2908 = vrot.lane.b32.xlu1 %v4321_v52, %s4557_s17  ;;  %v2813_v19 = vpop.permute.xlu1 %2812 }
0x1310   : > { %v2917_v34 = vsel %vm632_vm1, %v4945_v32, %v2813_v19 }
0x1311   : > { %2906 = vrot.lane.b32.xlu0 %v2793_v54, %s4557_s17 }
0x1313   : > { %v2829_v49 = vpop.permute.xlu1 %2828 }
0x1314   : > { %v2922_v38 = vsel %vm2918_vm3, %v2917_v34, %v2829_v49  ;;  %v3082_v34 = vld [vmem:[%s5788_s8 + $0xd0] sm:$0xff] }
0x1317   : > { %v2845_v13 = vpop.permute.xlu1 %2844 }
0x1318   : > { %v2927_v56 = vsel %vm2923_vm4, %v2922_v38, %v2845_v13  ;;  %v3076_v38 = vld [vmem:[%s5788_s8 + $0xa0] sm:$0xff] }
0x131b   : > { %v2861_v11 = vpop.permute.xlu1 %2860 }
0x131c   : > { %v2931_v33 = vsel %vm738_vm2, %v2927_v56, %v2861_v11  ;;  %v3073_v56 = vld [vmem:[%s5788_s8 + $0x88] sm:$0xff] }
0x131f   : > { %v2877_v26 = vpop.permute.xlu1 %2876 }
0x1320   : > { %v2936_v21 = vsel %vm2932_vm5, %v2931_v33, %v2877_v26  ;;  %v3072_v33 = vld [vmem:[%s5788_s8 + $0x80] sm:$0xff] }
0x1379   : > { %v2905_v44 = vpop.permute.xlu1 %2904 }
0x137a   : > { %v2944_v45 = vsel %vm2942_vm7, %v2939_v16, %v2905_v44  ;;  %v3087_v16 = vld [vmem:[%s5788_s8 + $0xf8] sm:$0xff] }
0x137b   : > { %v2903_v14 = vpop.permute.xlu0 %2902  ;;  %3332 = vmatprep.subr.mxu0 %v3087_v16 }
0x137c   : > { %v2943_v18 = vsel %vm2942_vm7, %v2938_v12, %v2903_v14  ;;  %v3085_v14 = vld [vmem:[%s5788_s8 + $0xe8] sm:$0xff] }
0x137d   : > { %v2893_v51 = vpop.permute.xlu1 %2892  ;;  %4338 = vmatprep.mubr.msk.f32.mxu0 %vm420_vm0, %v2943_v18  ;;  %3243 = vmatprep.subr.mxu1 %v3085_v14  ;;  %v3084_v18 = vld [vmem:[%s5788_s8 + $0xe0] sm:$0xff] }
0x137e   : > { %4339 = vmatmul.mubr.msk.f32.vlgmr.msra.gmra.mxu0 %vm420_vm0, %v2944_v45  ;;  %v2941_v23 = vsel %vm2937_vm6, %v2936_v21, %v2893_v51  ;;  %v3086_v45 = vld [vmem:[%s5788_s8 + $0xf0] sm:$0xff]  ;;  %3244 = vmatpush1.msra.mxu1 %v3084_v18  ;;  %v3081_v51 = vld [vmem:[%s5788_s8 + $0xc8] sm:$0xff] }
0x137f   : > { %v2891_v35 = vpop.permute.xlu0 %2890  ;;  %3333 = vmatpush1.msra.mxu0 %v3086_v45  ;;  %3245 = vmatprep.subr.mxu1 %v3081_v51  ;;  %v3069_v21 = vld [vmem:[%s5788_s8 + $0x68] sm:$0xff]  ;;  %v3120_v51 = vld [vmem:[%s5790_s10 + $0xf8] sm:$0xff] }
0x1380   : > { %v2940_v32 = vsel %vm2937_vm6, %v2935_v58, %v2891_v35  ;;  %3334 = vmatprep.subr.mxu0 %v3083_v53  ;;  %3246 = vmatpush1.msra.mxu1 %v3080_v57  ;;  %v3077_v35 = vld [vmem:[%s5788_s8 + $0xa8] sm:$0xff]  ;;  %v3075_v58 = vld [vmem:[%s5788_s8 + $0x98] sm:$0xff]  ;;  %v3119_v53 = vld [vmem:[%s5790_s10 + $0xf0] sm:$0xff] }
0x1381   : > { %v2909_v59 = vpop.permute.xlu1 %2908  ;;  %3335 = vmatpush1.msra.mxu0 %v3082_v34  ;;  %3247 = vmatprep.subr.mxu1 %v3077_v35  ;;  %v3118_v57 = vld [vmem:[%s5790_s10 + $0xe8] sm:$0xff]  ;;  %v3117_v35 = vld [vmem:[%s5790_s10 + $0xe0] sm:$0xff] }
0x1382   : > { %v2946_v63 = vsel %vm2942_vm7, %v2941_v23, %v2909_v59  ;;  %3336 = vmatprep.subr.mxu0 %v3079_v37  ;;  %3248 = vmatpush1.msra.mxu1 %v3076_v38  ;;  %v3074_v59 = vld [vmem:[%s5788_s8 + $0x90] sm:$0xff]  ;;  %v3102_v34 = vld [vmem:[%s5790_s10 + $0x68] sm:$0xff]  ;;  %v3101_v37 = vld [vmem:[%s5790_s10 + $0x60] sm:$0xff] }
0x1383   : > { %v2907_v22 = vpop.permute.xlu0 %2906  ;;  %3337 = vmatpush1.msra.mxu0 %v3078_v55  ;;  %3249 = vmatprep.subr.mxu1 %v3073_v56  ;;  %v3070_v23 = vld [vmem:[%s5788_s8 + $0x70] sm:$0xff]  ;;  %v3116_v38 = vld [vmem:[%s5790_s10 + $0xd8] sm:$0xff] }
0x1384   : > { %v2945_v24 = vsel %vm2942_vm7, %v2940_v32, %v2907_v22  ;;  %3338 = vmatprep.subr.mxu0 %v3075_v58  ;;  %3250 = vmatpush1.msra.mxu1 %v3072_v33  ;;  %v3071_v32 = vld [vmem:[%s5788_s8 + $0x78] sm:$0xff]  ;;  %v3068_v22 = vld [vmem:[%s5788_s8 + $0x60] sm:$0xff]  ;;  %v3115_v56 = vld [vmem:[%s5790_s10 + $0xd0] sm:$0xff] }
0x1385   : > { %4341 = vmatprep.mubr.msk.f32.mxu0 %vm420_vm0, %v2945_v24  ;;  %3339 = vmatpush1.msra.mxu0 %v3074_v59  ;;  %v3065_v24 = vld [vmem:[%s5788_s8 + $0x48] sm:$0xff]  ;;  %v3100_v55 = vld [vmem:[%s5790_s10 + $0x58] sm:$0xff]  ;;  %v3099_v58 = vld [vmem:[%s5790_s10 + $0x50] sm:$0xff] }
0x1386   : > { %4342 = vmatmul.mubr.msk.f32.gmra.mxu0 %vm420_vm0, %v2946_v63  ;;  %3251 = vmatprep.subr.mxu1 %v3069_v21  ;;  %v3067_v63 = vld [vmem:[%s5788_s8 + $0x58] sm:$0xff]  ;;  %v3114_v33 = vld [vmem:[%s5790_s10 + $0xc8] sm:$0xff]  ;;  %v3113_v21 = vld [vmem:[%s5790_s10 + $0xc0] sm:$0xff] }
0x1387   : > { %3380 = vmatprep.mubr.f32.mxu0 %v4556_v36  ;;  %3340 = vmatprep.subr.mxu0 %v3071_v32  ;;  %v3098_v59 = vld [vmem:[%s5790_s10 + $0x48] sm:$0xff]  ;;  %v3097_v32 = vld [vmem:[%s5790_s10 + $0x40] sm:$0xff] }
0x1388   : > { %3252 = vmatpush1.msra.mxu1 %v3068_v22  ;;  %3341 = vmatpush1.msra.mxu0 %v3070_v23  ;;  %v3112_v22 = vld [vmem:[%s5790_s10 + $0xb8] sm:$0xff] }
0x1389   : > { %3253 = vmatprep.subr.mxu1 %v3065_v24  ;;  %3342 = vmatprep.subr.mxu0 %v3067_v63  ;;  %v3096_v23 = vld [vmem:[%s5790_s10 + $0x38] sm:$0xff]  ;;  %v3111_v24 = vld [vmem:[%s5790_s10 + $0xb0] sm:$0xff] }
0x138a   : > { %v3095_v63 = vld [vmem:[%s5790_s10 + $0x30] sm:$0xff] }
0x143e   : > { %v4340_v1 = vpop.f32.mrf.mxu0 }
0x143f   : > { %v3037_v2 = vadd.f32 %v4340_v1, %v3894_v0  ;;  %v3066_v1 = vld [vmem:[%s5788_s8 + $0x50] sm:$0xff] }
0x1440   : > { %v3031_v46 = vpop.f32.mrf.mxu0  ;;  %3343 = vmatpush1.msra.mxu0 %v3066_v1  ;;  %v3094_v1 = vld [vmem:[%s5790_s10 + $0x28] sm:$0xff] }
0x1441   : > { %v5316_v52 = vadd.f32 %v4544_v47, %v3037_v2  ;;  %v3032_v54 = vadd.f32 %v3894_v0, %v3031_v46  ;;  %v3061_v2 = vld [vmem:[%s5788_s8 + $0x28] sm:$0xff]  ;;  %v3063_v46 = vld [vmem:[%s5788_s8 + $0x38] sm:$0xff]  ;;  %v3060_v47 = vld [vmem:[%s5788_s8 + $0x20] sm:$0xff] }
0x1442   : > { %3344 = vmatprep.subr.mxu0 %v3063_v46  ;;  %v3093_v46 = vld [vmem:[%s5790_s10 + $0x20] sm:$0xff] }
0x1443   : > { %v5319_v61 = vadd.f32 %v4545_v60, %v3032_v54  ;;  %v3125_v62 = vsel %vm420_vm0, %v5316_v52, 0.0  ;;  %v3062_v54 = vld [vmem:[%s5788_s8 + $0x30] sm:$0xff]  ;;  %v3057_v60 = vld [vmem:[%s5788_s8 + $0x8] sm:$0xff] }
0x1444   : > { %3126 = vadd.xlane.f32.xlu1 %v3125_v62  ;;  %v3059_v62 = vld [vmem:[%s5788_s8 + $0x18] sm:$0xff]  ;;  %3345 = vmatpush1.msra.mxu0 %v3062_v54 }
0x1445   : > { %v3122_v3 = vsel %vm420_vm0, %v5319_v61, 0.0  ;;  %3346 = vmatprep.subr.mxu0 %v3059_v62  ;;  %v3092_v54 = vld [vmem:[%s5790_s10 + $0x18] sm:$0xff]  ;;  %v3091_v62 = vld [vmem:[%s5790_s10 + $0x10] sm:$0xff] }
0x1446   : > { %3123 = vadd.xlane.f32.xlu0 %v3122_v3  ;;  %v4343_v4 = vpop.f32.mrf.mxu0  ;;  %v3056_v3 = vld [vmem:[%s5788_s8] sm:$0xff] }
0x1447   : > { %v3047_v6 = vadd.f32 %v4343_v4, %v3894_v0  ;;  %v3058_v4 = vld [vmem:[%s5788_s8 + $0x10] sm:$0xff] }
0x1448   : > { %v3041_v5 = vpop.f32.mrf.mxu0  ;;  %3347 = vmatpush1.msra.mxu0 %v3058_v4  ;;  %v3090_v4 = vld [vmem:[%s5790_s10 + $0x8] sm:$0xff] }
0x1449   : > { %v3042_v7 = vadd.f32 %v3894_v0, %v3041_v5  ;;  %v5329_v10 = vadd.f32 %v4547_v48, %v3047_v6  ;;  %v3064_v0 = vld [vmem:[%s5788_s8 + $0x40] sm:$0xff] }
0x144a   : > { %3254 = vmatpush1.msra.mxu1 %v3064_v0  ;;  %v3110_v0 = vld [vmem:[%s5790_s10 + $0xa8] sm:$0xff] }
0x144b   : > { %v5326_v9 = vadd.f32 %v4546_v8, %v3042_v7  ;;  %v3131_v20 = vsel %vm420_vm0, %v5329_v10, 0.0  ;;  %3255 = vmatprep.subr.mxu1 %v3061_v2  ;;  %v3109_v2 = vld [vmem:[%s5790_s10 + $0xa0] sm:$0xff] }
0x144c   : > { %3256 = vmatpush1.msra.mxu1 %v3060_v47  ;;  %v3108_v47 = vld [vmem:[%s5790_s10 + $0x98] sm:$0xff] }
0x144d   : > { %v3128_v19 = vsel %vm420_vm0, %v5326_v9, 0.0  ;;  %3257 = vmatprep.subr.mxu1 %v3057_v60  ;;  %v3107_v60 = vld [vmem:[%s5790_s10 + $0x90] sm:$0xff] }
0x144e   : > { %3129 = vadd.xlane.f32.xlu0 %v3128_v19  ;;  %3258 = vmatpush1.msra.mxu1 %v3056_v3  ;;  %v3106_v3 = vld [vmem:[%s5790_s10 + $0x88] sm:$0xff] }
0x144f   : > { %4054 = vmatprep.subr.mxu1 %v3120_v51 }
0x1452   : > { %3132 = vadd.xlane.f32.xlu0 %v3131_v20 }
0x14cd   : > { %v3127_v49 = vpop.xlane.xlu1 %3126 }
0x14ce   : > { %v3135_v25 = vmul.f32 0.015625, %v3127_v49 }
0x14cf   : > { %v3124_v13 = vpop.xlane.xlu0 %3123 }
0x14d0   : > { %v5336_v17 = vsub.f32 %v5316_v52, %v3135_v25  ;;  %v3134_v11 = vmul.f32 0.015625, %v3124_v13 }
0x14d2   : > { %v5339_v15 = vsub.f32 %v5319_v61, %v3134_v11  ;;  %v3143_v26 = vmul.f32 %v5336_v17, %v5336_v17 }
0x14d4   : > { %v3149_v27 = vsel %vm420_vm0, %v3143_v26, 0.0  ;;  %v3142_v28 = vmul.f32 %v5339_v15, %v5339_v15 }
0x14d5   : > { %3150 = vadd.xlane.f32.xlu1 %v3149_v27 }
0x14d6   : > { %v3146_v29 = vsel %vm420_vm0, %v3142_v28, 0.0 }
0x14d7   : > { %3147 = vadd.xlane.f32.xlu0 %v3146_v29  ;;  %v3130_v39 = vpop.xlane.xlu0 %3129 }
0x14d8   : > { %v3136_v40 = vmul.f32 0.015625, %v3130_v39 }
0x14da   : > { %v5348_v41 = vsub.f32 %v5326_v9, %v3136_v40  ;;  %v3899_v40 = vld [vmem:[%s5786_s6] ss:$0 sm:$0xff] }
0x14db   : > { %v3133_v42 = vpop.xlane.xlu0 %3132 }
0x14dc   : > { %v3137_v43 = vmul.f32 0.015625, %v3133_v42  ;;  %v3144_v44 = vmul.f32 %v5348_v41, %v5348_v41 }
0x14de   : > { %v5353_v50 = vsub.f32 %v5329_v10, %v3137_v43  ;;  %v3152_v31 = vsel %vm420_vm0, %v3144_v44, 0.0  ;;  %v3900_v43 = vld [vmem:[%s5787_s7] ss:$0 sm:$0xff] }
0x14df   : > { %3153 = vadd.xlane.f32.xlu0 %v3152_v31 }
0x14e0   : > { %v3145_v12 = vmul.f32 %v5353_v50, %v5353_v50 }
0x14e2   : > { %v3155_v30 = vsel %vm420_vm0, %v3145_v12, 0.0 }
0x14e3   : > { %3156 = vadd.xlane.f32.xlu1 %v3155_v30 }
0x155e   : > { %v3151_v5 = vpop.xlane.xlu1 %3150 }
0x155f   : > { %v3159_v6 = vmul.f32 0.015625, %v3151_v5  ;;  %v3105_v5 = vld [vmem:[%s5790_s10 + $0x80] sm:$0xff] }
0x1560   : > { %v3148_v7 = vpop.xlane.xlu0 %3147 }
0x1561   : > { %v3163_v8 = vadd.f32 1e-05, %v3159_v6  ;;  %v3158_v48 = vmul.f32 0.015625, %v3148_v7  ;;  %v3089_v6 = vld [vmem:[%s5790_s10] sm:$0xff]  ;;  %v3195_v7 = vlaneseq }
0x1563   : > { %4504 = vrsqrt.f32 %v3163_v8  ;;  %v3162_v19 = vadd.f32 1e-05, %v3158_v48  ;;  %v5575_v8 = vshrl.u32 %v3195_v7, 7 }
0x1565   : > { %4506 = vrsqrt.f32 %v3162_v19  ;;  %v3205_v48 = vsub.s32 2, %v5575_v8  ;;  %v5581_v19 = vld [vmem:[%s5789_s9] sm:$0xf] }
0x1568   : > { %v3154_v20 = vpop.xlane.xlu0 %3153 }
0x1569   : > { %v3160_v49 = vmul.f32 0.015625, %v3154_v20  ;;  %v3209_v20 = vsub.s32 3, %v5575_v8 }
0x156b   : > { %v3164_v25 = vadd.f32 1e-05, %v3160_v49  ;;  %v3206_v49 = vrot.slane %v5581_v19, %v3205_v48 }
0x156c   : > { %v3157_v13 = vpop.xlane.xlu1 %3156 }
0x156d   : > { %4508 = vrsqrt.f32 %v3164_v25  ;;  %v3161_v11 = vmul.f32 0.015625, %v3157_v13  ;;  %v3210_v25 = vrot.slane %v5581_v19, %v3209_v20 }
0x156f   : > { %v3165_v26 = vadd.f32 1e-05, %v3161_v11 }
0x1570   : > { %v4505_v27 = vpop.eup %4504 }
0x1571   : > { %4510 = vrsqrt.f32 %v3165_v26  ;;  %v3171_v39 = vmul.f32 %v4505_v27, %v5336_v17 }
0x1572   : > { %v4507_v28 = vpop.eup %4506 }
0x1573   : > { %v3170_v29 = vmul.f32 %v4507_v28, %v5339_v15  ;;  %v3181_v31 = vmul.f32 %v3899_v40, %v3171_v39 }
0x1575   : > { %v3180_v42 = vmul.f32 %v3899_v40, %v3170_v29  ;;  %v3191_v17 = vadd.f32 %v3900_v43, %v3181_v31 }
0x1577   : > { %v3190_v44 = vadd.f32 %v3900_v43, %v3180_v42 }
0x1579   : > { %3901 = vmatmul.mubr.msk.f32.vlgmr.msra.gmra.mxu1 %vm420_vm0, %v3190_v44  ;;  %3905 = vmatmul.mubr.msk.f32.vlgmr.msra.gmra.mxu0 %vm420_vm0, %v3190_v44 }
0x157a   : > { %v4509_v12 = vpop.eup %4508  ;;  %3297 = vmatprep.mubr.f32.mxu1 %v4556_v36  ;;  %3386 = vmatprep.mubr.f32.mxu0 %v4556_v36 }
0x157b   : > { %v3172_v15 = vmul.f32 %v4509_v12, %v5348_v41 }
0x157d   : > { %3902 = vmatmul.mubr.msk.f32.gmra.mxu1 %vm420_vm0, %v3191_v17  ;;  %3906 = vmatmul.mubr.msk.f32.gmra.mxu0 %vm420_vm0, %v3191_v17  ;;  %v3182_v30 = vmul.f32 %v3899_v40, %v3172_v15 }
0x157e   : > { %v4511_v14 = vpop.eup %4510  ;;  %3303 = vmatprep.mubr.f32.mxu1 %v4556_v36  ;;  %3392 = vmatprep.mubr.f32.mxu0 %v4556_v36 }
0x157f   : > { %v3192_v16 = vadd.f32 %v3900_v43, %v3182_v30  ;;  %v3173_v18 = vmul.f32 %v4511_v14, %v5353_v50  ;;  %v3104_v50 = vld [vmem:[%s5790_s10 + $0x78] sm:$0xff] }
0x1580   : > { %4055 = vmatpush3.msra.mxu1 %v3104_v50 }
0x1581   : > { %3903 = vmatmul.mubr.msk.f32.gmra.mxu1 %vm420_vm0, %v3192_v16  ;;  %3907 = vmatmul.mubr.msk.f32.gmra.mxu0 %vm420_vm0, %v3192_v16  ;;  %v3183_v45 = vmul.f32 %v3899_v40, %v3173_v18 }
0x1582   : > { %3309 = vmatprep.mubr.f32.mxu1 %v4556_v36  ;;  %3398 = vmatprep.mubr.f32.mxu0 %v4556_v36  ;;  %v3103_v36 = vld [vmem:[%s5790_s10 + $0x70] sm:$0xff] }
0x1583   : > { %v3193_v41 = vadd.f32 %v3900_v43, %v3183_v45  ;;  %4056 = vmatprep.subr.mxu1 %v3119_v53 }
0x1584   : > { %4057 = vmatpush3.msra.mxu1 %v3103_v36 }
0x1585   : > { %3904 = vmatmul.mubr.msk.f32.gmra.mxu1 %vm420_vm0, %v3193_v41  ;;  %3908 = vmatmul.mubr.msk.f32.gmra.mxu0 %vm420_vm0, %v3193_v41 }
0x1586   : > { %4058 = vmatprep.subr.mxu1 %v3118_v57 }
0x1587   : > { %4059 = vmatpush3.msra.mxu1 %v3102_v34 }
0x1588   : > { %4060 = vmatprep.subr.mxu1 %v3117_v35 }
0x1589   : > { %4061 = vmatpush3.msra.mxu1 %v3101_v37 }
0x158a   : > { %4062 = vmatprep.subr.mxu1 %v3116_v38 }
0x158b   : > { %4063 = vmatpush3.msra.mxu1 %v3100_v55 }
0x158c   : > { %4064 = vmatprep.subr.mxu1 %v3115_v56 }
0x158d   : > { %4065 = vmatpush3.msra.mxu1 %v3099_v58 }
0x158e   : > { %4066 = vmatprep.subr.mxu1 %v3114_v33 }
0x158f   : > { %4067 = vmatpush3.msra.mxu1 %v3098_v59 }
0x1590   : > { %4068 = vmatprep.subr.mxu1 %v3113_v21 }
0x1591   : > { %4069 = vmatpush3.msra.mxu1 %v3097_v32 }
0x1592   : > { %4070 = vmatprep.subr.mxu1 %v3112_v22 }
0x1593   : > { %4071 = vmatpush3.msra.mxu1 %v3096_v23 }
0x1594   : > { %4072 = vmatprep.subr.mxu1 %v3111_v24 }
0x1595   : > { %4073 = vmatpush3.msra.mxu1 %v3095_v63  ;;  %v3197_v63 = vsub.s32 0, %v5575_v8 }
0x1596   : > { %4074 = vmatprep.subr.mxu1 %v3110_v0 }
0x1597   : > { %4075 = vmatpush3.msra.mxu1 %v3094_v1  ;;  %v5642_v48 = vrot.slane %v5581_v19, %v3197_v63 }
0x1598   : > { %4076 = vmatprep.subr.mxu1 %v3109_v2 }
0x1599   : > { %4077 = vmatpush3.msra.mxu1 %v3093_v46 }
0x159a   : > { %4078 = vmatprep.subr.mxu1 %v3108_v47 }
0x159b   : > { %4079 = vmatpush3.msra.mxu1 %v3092_v54 }
0x159c   : > { %4080 = vmatprep.subr.mxu1 %v3107_v60 }
0x159d   : > { %4081 = vmatpush3.msra.mxu1 %v3091_v62 }
0x159e   : > { %4082 = vmatprep.subr.mxu1 %v3106_v3 }
0x159f   : > { %4083 = vmatpush3.msra.mxu1 %v3090_v4 }
0x15a0   : > { %4084 = vmatprep.subr.mxu1 %v3105_v5 }
0x15a1   : > { %4085 = vmatpush3.msra.mxu1 %v3089_v6  ;;  %v3201_v6 = vsub.s32 1, %v5575_v8 }
0x1639   : > { %v3382_v13 = vpop.f32.mrf.mxu0 }
0x163a   : > { %v5586_v11 = vadd.f32 %v3382_v13, %v3206_v49 }
0x163b   : > { %v3384_v26 = vpop.f32.mrf.mxu0 }
0x163c   : > { %v5589_v27 = vmul.f32 0.70710677, %v5586_v11  ;;  %v5591_v28 = vadd.f32 %v3384_v26, %v3210_v25  ;;  %v3293_v26 = vpop.f32.mrf.mxu1 }
0x163d   : > { %v3388_v29 = vpop.f32.mrf.mxu0 }
0x163e   : > { %v3421_v39 = vand.u32 2147483647, %v5589_v27  ;;  %v5595_v40 = vmul.f32 0.70710677, %v5591_v28  ;;  %v5597_v42 = vadd.f32 %v3388_v29, %v3206_v49  ;;  %v3533_v35 = vsub.f32 0.0, %v5589_v27 }
0x163f   : > { %v3390_v43 = vpop.f32.mrf.mxu0  ;;  %vm3581_vm8 = vcmp.ge.f32.partialorder %v5589_v27, 0.0 }
0x1640   : > { %v3429_v44 = vmul.f32 0.3275911, %v3421_v39  ;;  %v5599_v31 = vadd.f32 %v3390_v43, %v3210_v25  ;;  %v3422_v12 = vand.u32 2147483647, %v5595_v40  ;;  %v5603_v30 = vmul.f32 0.70710677, %v5597_v42 }
0x1641   : > { %v3394_v17 = vpop.f32.mrf.mxu0  ;;  %v3534_v33 = vsub.f32 0.0, %v5595_v40  ;;  %v3541_v21 = vmul.f32 %v3533_v35, %v5589_v27  ;;  %vm3582_vm9 = vcmp.ge.f32.partialorder %v5595_v40, 0.0 }
0x1642   : > { %v3437_v15 = vadd.f32 1.0, %v3429_v44  ;;  %v3430_v14 = vmul.f32 0.3275911, %v3422_v12  ;;  %v5606_v16 = vmul.f32 0.70710677, %v5599_v31  ;;  %v5610_v36 = vadd.f32 %v3394_v17, %v3206_v49 }
0x1643   : > { %v3396_v18 = vpop.f32.mrf.mxu0  ;;  %v3423_v45 = vand.u32 2147483647, %v5603_v30  ;;  %v3535_v0 = vsub.f32 0.0, %v5603_v30  ;;  %v3542_v46 = vmul.f32 %v3534_v33, %v5595_v40  ;;  %v3549_v3 = vmul.f32 1.442695, %v3541_v21 }
0x1644   : > { %4512 = vrcp.f32 %v3437_v15  ;;  %v3438_v41 = vadd.f32 1.0, %v3430_v14  ;;  %v3424_v51 = vand.u32 2147483647, %v5606_v16  ;;  %v5614_v38 = vmul.f32 0.70710677, %v5610_v36 }
0x1645   : > { %v3431_v50 = vmul.f32 0.3275911, %v3423_v45  ;;  %v3400_v57 = vpop.f32.mrf.mxu0  ;;  %v5616_v55 = vadd.f32 %v3396_v18, %v3210_v25  ;;  %v3536_v47 = vsub.f32 0.0, %v5606_v16  ;;  %v3543_v20 = vmul.f32 %v3535_v0, %v5603_v30 }
0x1646   : > { %4514 = vrcp.f32 %v3438_v41  ;;  %v3432_v53 = vmul.f32 0.3275911, %v3424_v51  ;;  %v5618_v56 = vadd.f32 %v3400_v57, %v3206_v49  ;;  %v3425_v58 = vand.u32 2147483647, %v5614_v38  ;;  %v3295_v57 = vpop.f32.mrf.mxu1 }
0x1647   : > { %v3439_v34 = vadd.f32 1.0, %v3431_v50  ;;  %v5623_v59 = vmul.f32 0.70710677, %v5616_v55  ;;  %v3402_v23 = vpop.f32.mrf.mxu0  ;;  %v3551_v39 = vmul.f32 1.442695, %v3542_v46  ;;  %v3544_v43 = vmul.f32 %v3536_v47, %v5606_v16 }
0x1648   : > { %v3440_v37 = vadd.f32 1.0, %v3432_v53  ;;  %v3433_v32 = vmul.f32 0.3275911, %v3425_v58  ;;  %v5627_v22 = vmul.f32 0.70710677, %v5618_v56  ;;  %v5635_v60 = vadd.f32 %v3402_v23, %v3210_v25 }
0x1649   : > { %4516 = vrcp.f32 %v3439_v34  ;;  %v3426_v24 = vand.u32 2147483647, %v5623_v59  ;;  %v3537_v44 = vsub.f32 0.0, %v5614_v38  ;;  %v5656_v15 = vrot.slane %v5581_v19, %v3201_v6 }
0x164a   : > { %4518 = vrcp.f32 %v3440_v37  ;;  %v3441_v1 = vadd.f32 1.0, %v3433_v32  ;;  %v3427_v2 = vand.u32 2147483647, %v5627_v22  ;;  %v5646_v13 = vmul.f32 0.70710677, %v5635_v60 }
0x164b   : > { %v3434_v54 = vmul.f32 0.3275911, %v3426_v24  ;;  %v3538_v14 = vsub.f32 0.0, %v5623_v59  ;;  %v5662_v45 = vadd.f32 %v3293_v26, %v5642_v48  ;;  %v3553_v51 = vmul.f32 1.442695, %v3543_v20 }
0x164c   : > { %4520 = vrcp.f32 %v3441_v1  ;;  %v3435_v4 = vmul.f32 0.3275911, %v3427_v2  ;;  %v3428_v12 = vand.u32 2147483647, %v5646_v13  ;;  %v3555_v35 = vmul.f32 1.442695, %v3544_v43 }
0x164d   : > { %v3442_v7 = vadd.f32 1.0, %v3434_v54  ;;  %v3545_v58 = vmul.f32 %v3537_v44, %v5614_v38  ;;  %v3539_v33 = vsub.f32 0.0, %v5627_v22  ;;  %v3546_v63 = vmul.f32 %v3538_v14, %v5623_v59 }
0x164e   : > { %v3443_v49 = vadd.f32 1.0, %v3435_v4  ;;  %v3436_v50 = vmul.f32 0.3275911, %v3428_v12  ;;  %v5674_v0 = vmul.f32 0.5, %v5586_v11  ;;  %v5677_v1 = vadd.f32 %v3295_v57, %v5656_v15 }
0x164f   : > { %4522 = vrcp.f32 %v3442_v7  ;;  %v3557_v4 = vmul.f32 1.442695, %v3545_v58  ;;  %v5687_v26 = vmul.f32 0.5, %v5591_v28  ;;  %v3540_v43 = vsub.f32 0.0, %v5646_v13 }
0x1650   : > { %4524 = vpow2.f32 %v3549_v3  ;;  %v3444_v21 = vadd.f32 1.0, %v3436_v50  ;;  %v5692_v44 = vmul.f32 0.5, %v5597_v42  ;;  %vm3583_vm10 = vcmp.ge.f32.partialorder %v5603_v30, 0.0 }
0x1651   : > { %v5637_v62 = vpop.eup %4512  ;;  %4526 = vrcp.f32 %v3443_v49  ;;  %v3559_v49 = vmul.f32 1.442695, %v3546_v63  ;;  %vm3584_vm11 = vcmp.ge.f32.partialorder %v5606_v16, 0.0  ;;  %vm3585_vm12 = vcmp.ge.f32.partialorder %v5614_v38, 0.0 }
0x1652   : > { %v3461_v5 = vmul.f32 1.0614054, %v5637_v62  ;;  %4528 = vpow2.f32 %v3551_v39  ;;  %vm3586_vm13 = vcmp.ge.f32.partialorder %v5623_v59, 0.0  ;;  %vm3587_vm14 = vcmp.ge.f32.partialorder %v5627_v22, 0.0 }
0x1653   : > { %v5648_v25 = vpop.eup %4514  ;;  %4530 = vrcp.f32 %v3444_v21  ;;  %vm3588_vm15 = vcmp.ge.f32.partialorder %v5646_v13, 0.0 }
0x1654   : > { %v3469_v29 = vadd.f32 -1.4531521, %v3461_v5  ;;  %v3462_v8 = vmul.f32 1.0614054, %v5648_v25  ;;  %4532 = vpow2.f32 %v3553_v51  ;;  %v3547_v5 = vmul.f32 %v3539_v33, %v5627_v22 }
0x1655   : > { %4534 = vpow2.f32 %v3555_v35  ;;  %v3548_v33 = vmul.f32 %v3540_v43, %v5646_v13 }
0x1656   : > { %v3477_v17 = vmul.f32 %v5637_v62, %v3469_v29  ;;  %v5659_v18 = vpop.eup %4516  ;;  %v3470_v41 = vadd.f32 -1.4531521, %v3462_v8  ;;  %4536 = vpow2.f32 %v3557_v4  ;;  %v3561_v51 = vmul.f32 1.442695, %v3547_v5 }
0x1657   : > { %v3463_v34 = vmul.f32 1.0614054, %v5659_v18  ;;  %v5665_v37 = vpop.eup %4518  ;;  %4538 = vpow2.f32 %v3559_v49 }
0x1658   : > { %v3485_v53 = vadd.f32 1.4214138, %v3477_v17  ;;  %v3478_v19 = vmul.f32 %v5648_v25, %v3470_v41  ;;  %v3464_v24 = vmul.f32 1.0614054, %v5665_v37  ;;  %4540 = vpow2.f32 %v3561_v51 }
0x1659   : > { %v3471_v23 = vadd.f32 -1.4531521, %v3463_v34  ;;  %v5682_v6 = vpop.eup %4520 }
0x165a   : > { %v3493_v32 = vmul.f32 %v5637_v62, %v3485_v53  ;;  %v3486_v2 = vadd.f32 1.4214138, %v3478_v19  ;;  %v3472_v54 = vadd.f32 -1.4531521, %v3464_v24  ;;  %v3465_v39 = vmul.f32 1.0614054, %v5682_v6 }
0x165b   : > { %v3479_v47 = vmul.f32 %v5659_v18, %v3471_v23 }
0x165c   : > { %v3501_v46 = vadd.f32 -0.28449672, %v3493_v32  ;;  %v3494_v3 = vmul.f32 %v5648_v25, %v3486_v2  ;;  %v3480_v20 = vmul.f32 %v5665_v37, %v3472_v54  ;;  %v5695_v14 = vpop.eup %4522  ;;  %v3473_v28 = vadd.f32 -1.4531521, %v3465_v39 }
0x165d   : > { %v3487_v7 = vadd.f32 1.4214138, %v3479_v47  ;;  %v4525_v50 = vpop.eup %4524  ;;  %v3466_v42 = vmul.f32 1.0614054, %v5695_v14 }
0x165e   : > { %v3509_v11 = vmul.f32 %v5637_v62, %v3501_v46  ;;  %v3502_v29 = vadd.f32 -0.28449672, %v3494_v3  ;;  %v3488_v17 = vadd.f32 1.4214138, %v3480_v20  ;;  %v5702_v35 = vpop.eup %4526  ;;  %v3481_v58 = vmul.f32 %v5682_v6, %v3473_v28 }
0x165f   : > { %v3495_v12 = vmul.f32 %v5659_v18, %v3487_v7  ;;  %v4529_v24 = vpop.eup %4528  ;;  %v3467_v46 = vmul.f32 1.0614054, %v5702_v35  ;;  %v3563_v20 = vmul.f32 1.442695, %v3548_v33 }
0x1660   : > { %v3517_v8 = vadd.f32 0.2548296, %v3509_v11  ;;  %v3510_v41 = vmul.f32 %v5648_v25, %v3502_v29  ;;  %v3496_v34 = vmul.f32 %v5665_v37, %v3488_v17  ;;  %v3489_v2 = vadd.f32 1.4214138, %v3481_v58  ;;  %v5714_v49 = vpop.eup %4530 }
0x1661   : > { %v3503_v57 = vadd.f32 -0.28449672, %v3495_v12  ;;  %v3475_v7 = vadd.f32 -1.4531521, %v3467_v46  ;;  %v3468_v28 = vmul.f32 1.0614054, %v5714_v49  ;;  %4542 = vpow2.f32 %v3563_v20 }
0x1662   : > { %v3525_v53 = vmul.f32 %v5637_v62, %v3517_v8  ;;  %v3518_v19 = vadd.f32 0.2548296, %v3510_v41  ;;  %v3504_v23 = vadd.f32 -0.28449672, %v3496_v34  ;;  %v3474_v62 = vadd.f32 -1.4531521, %v3466_v42  ;;  %v4533_v8 = vpop.eup %4532 }
0x1663   : > { %v3511_v32 = vmul.f32 %v5659_v18, %v3503_v57  ;;  %v3497_v11 = vmul.f32 %v5682_v6, %v3489_v2  ;;  %v3483_v41 = vmul.f32 %v5702_v35, %v3475_v7  ;;  %v4535_v51 = vpop.eup %4534  ;;  %v3299_v2 = vpop.f32.mrf.mxu1 }
0x1664   : > { %v3565_v21 = vmul.f32 %v4525_v50, %v3525_v53  ;;  %v3526_v63 = vmul.f32 %v5648_v25, %v3518_v19  ;;  %v3512_v3 = vmul.f32 %v5665_v37, %v3504_v23  ;;  %v3482_v4 = vmul.f32 %v5695_v14, %v3474_v62 }
0x1665   : > { %v3519_v54 = vadd.f32 0.2548296, %v3511_v32  ;;  %v3505_v17 = vadd.f32 -0.28449672, %v3497_v11  ;;  %v3491_v58 = vadd.f32 1.4214138, %v3483_v41 }
0x1666   : > { %v3573_v47 = vsub.f32 1.0, %v3565_v21  ;;  %v3566_v5 = vmul.f32 %v4529_v24, %v3526_v63  ;;  %v3520_v39 = vadd.f32 0.2548296, %v3512_v3  ;;  %v3490_v43 = vadd.f32 1.4214138, %v3482_v4  ;;  %v4537_v63 = vpop.eup %4536 }
0x1667   : > { %v3527_v29 = vmul.f32 %v5659_v18, %v3519_v54  ;;  %v3513_v19 = vmul.f32 %v5682_v6, %v3505_v17  ;;  %v3476_v23 = vadd.f32 -1.4531521, %v3468_v28  ;;  %v3499_v27 = vmul.f32 %v5702_v35, %v3491_v58  ;;  %v4539_v40 = vpop.eup %4538 }
0x1668   : > { %v3589_v25 = vsub.f32 0.0, %v3573_v47  ;;  %v3574_v12 = vsub.f32 1.0, %v3566_v5  ;;  %v3528_v57 = vmul.f32 %v5665_v37, %v3520_v39  ;;  %v3498_v18 = vmul.f32 %v5695_v14, %v3490_v43  ;;  %v4541_v17 = vpop.eup %4540 }
0x1669   : > { %v3567_v53 = vmul.f32 %v4533_v8, %v3527_v29  ;;  %v3521_v24 = vadd.f32 0.2548296, %v3513_v19  ;;  %v3507_v5 = vadd.f32 -0.28449672, %v3499_v27  ;;  %v3484_v11 = vmul.f32 %v5714_v49, %v3476_v23 }
0x166a   : > { %v3597_v50 = vsel %vm3581_vm8, %v3573_v47, %v3589_v25  ;;  %v3590_v42 = vsub.f32 0.0, %v3574_v12  ;;  %v3568_v21 = vmul.f32 %v4535_v51, %v3528_v57  ;;  %v3506_v32 = vadd.f32 -0.28449672, %v3498_v18 }
0x166b   : > { %v3605_v34 = vadd.f32 1.0, %v3597_v50  ;;  %v3575_v33 = vsub.f32 1.0, %v3567_v53  ;;  %v3529_v4 = vmul.f32 %v5682_v6, %v3521_v24  ;;  %v3515_v8 = vmul.f32 %v5702_v35, %v3507_v5 }
0x166c   : > { %v3598_v62 = vsel %vm3582_vm9, %v3574_v12, %v3590_v42  ;;  %v3576_v47 = vsub.f32 1.0, %v3568_v21  ;;  %v3514_v54 = vmul.f32 %v5695_v14, %v3506_v32  ;;  %v3492_v12 = vadd.f32 1.4214138, %v3484_v11 }
0x166d   : > { %v3606_v37 = vadd.f32 1.0, %v3598_v62  ;;  %v3591_v46 = vsub.f32 0.0, %v3575_v33  ;;  %v3613_v3 = vmul.f32 %v3605_v34, %v5674_v0  ;;  %v3569_v43 = vmul.f32 %v4537_v63, %v3529_v4  ;;  %v3301_v0 = vpop.f32.mrf.mxu1 }
0x166e   : > { %v3592_v25 = vsub.f32 0.0, %v3576_v47  ;;  %v3522_v29 = vadd.f32 0.2548296, %v3514_v54  ;;  %v3408_v6 = vmul.f32 0.5, %v5599_v31  ;;  %v3523_v53 = vadd.f32 0.2548296, %v3515_v8 }
0x166f   : > { %v3614_v7 = vmul.f32 %v3606_v37, %v5687_v26  ;;  %v3599_v20 = vsel %vm3583_vm10, %v3575_v33, %v3591_v46  ;;  %v3621_v30 = vmul.f32 %v3613_v3, %v5662_v45  ;;  %v3577_v50 = vsub.f32 1.0, %v3569_v43 }
0x1670   : > { %v3607_v39 = vadd.f32 1.0, %v3599_v20  ;;  %v3600_v41 = vsel %vm3584_vm11, %v3576_v47, %v3592_v25  ;;  %v3530_v28 = vmul.f32 %v5695_v14, %v3522_v29  ;;  %v3500_v34 = vmul.f32 %v5714_v49, %v3492_v12  ;;  %v3305_v14 = vpop.f32.mrf.mxu1 }
0x1671   : > { %v3622_v26 = vmul.f32 %v3614_v7, %v5677_v1  ;;  %v3608_v51 = vadd.f32 1.0, %v3600_v41  ;;  %v3302_v31 = vadd.f32 %v3301_v0, %v5656_v15  ;;  %v3593_v16 = vsub.f32 0.0, %v3577_v50 }
0x1672   : > { %v3615_v57 = vmul.f32 %v3607_v39, %v5692_v44  ;;  %v3570_v18 = vmul.f32 %v4539_v40, %v3530_v28  ;;  %v3531_v19 = vmul.f32 %v5702_v35, %v3523_v53  ;;  %v3300_v1 = vadd.f32 %v3299_v2, %v5642_v48  ;;  %v4543_v35 = vpop.eup %4542  ;;  %v3307_v37 = vpop.f32.mrf.mxu1 }
0x1673   : > { %3699 = vmatprep.mubr.f32.mxu1 %v3622_v26  ;;  %v3616_v42 = vmul.f32 %v3608_v51, %v3408_v6  ;;  %v3508_v58 = vadd.f32 -0.28449672, %v3500_v34  ;;  %v3601_v33 = vsel %vm3585_vm12, %v3577_v50, %v3593_v16  ;;  %v3409_v63 = vmul.f32 0.5, %v5610_v36 }
0x1674   : > { %3700 = vmatmul.mubr.f32.vlgmr.msra.gmra.mxu1 %v3621_v30  ;;  %v3578_v45 = vsub.f32 1.0, %v3570_v18  ;;  %v3571_v44 = vmul.f32 %v4541_v17, %v3531_v19  ;;  %v3609_v32 = vadd.f32 1.0, %v3601_v33  ;;  %v3623_v24 = vmul.f32 %v3615_v57, %v3300_v1  ;;  %v3311_v20 = vpop.f32.mrf.mxu1 }
0x1675   : > { %v3624_v21 = vmul.f32 %v3616_v42, %v3302_v31  ;;  %v3516_v62 = vmul.f32 %v5714_v49, %v3508_v58  ;;  %v3410_v46 = vmul.f32 0.5, %v5616_v55  ;;  %v3308_v5 = vadd.f32 %v3307_v37, %v5656_v15 }
0x1676   : > { %v3594_v23 = vsub.f32 0.0, %v3578_v45  ;;  %v3579_v27 = vsub.f32 1.0, %v3571_v44  ;;  %v3617_v3 = vmul.f32 %v3609_v32, %v3409_v63  ;;  %v3306_v59 = vadd.f32 %v3305_v14, %v5642_v48  ;;  %v3313_v43 = vpop.f32.mrf.mxu1 }
0x1677   : > { %3704 = vmatprep.mubr.f32.mxu1 %v3624_v21  ;;  %v3524_v38 = vadd.f32 0.2548296, %v3516_v62  ;;  %v3412_v12 = vmul.f32 0.5, %v5635_v60  ;;  %v3314_v0 = vadd.f32 %v3313_v43, %v5656_v15  ;;  %v3312_v41 = vadd.f32 %v3311_v20, %v5642_v48 }
0x1678   : > { %v3602_v2 = vsel %vm3586_vm13, %v3578_v45, %v3594_v23  ;;  %3705 = vmatmul.mubr.f32.gmra.mxu1 %v3623_v24  ;;  %v3595_v54 = vsub.f32 0.0, %v3579_v27  ;;  %v3625_v29 = vmul.f32 %v3617_v3, %v3306_v59 }
0x1679   : > { %v3610_v47 = vadd.f32 1.0, %v3602_v2  ;;  %v3532_v4 = vmul.f32 %v5714_v49, %v3524_v38  ;;  %v3411_v49 = vmul.f32 0.5, %v5618_v56  ;;  %v3909_v56 = vld [vmem:[%s5791_s11] ss:$0 sm:$0xff] }
0x167a   : > { %v3603_v36 = vsel %vm3587_vm14, %v3579_v27, %v3595_v54 }
0x167b   : > { %v3618_v11 = vmul.f32 %v3610_v47, %v3410_v46  ;;  %v3572_v40 = vmul.f32 %v4543_v35, %v3532_v4  ;;  %v3611_v55 = vadd.f32 1.0, %v3603_v36 }
0x167d   : > { %v3626_v7 = vmul.f32 %v3618_v11, %v3308_v5  ;;  %v3580_v25 = vsub.f32 1.0, %v3572_v40  ;;  %v3619_v17 = vmul.f32 %v3611_v55, %v3411_v49 }
0x167f   : > { %3709 = vmatprep.mubr.f32.mxu1 %v3626_v7  ;;  %v3596_v39 = vsub.f32 0.0, %v3580_v25  ;;  %v3627_v26 = vmul.f32 %v3619_v17, %v3312_v41 }
0x1680   : > { %3710 = vmatmul.mubr.f32.gmra.mxu1 %v3625_v29 }
0x1681   : > { %v3604_v8 = vsel %vm3588_vm15, %v3580_v25, %v3596_v39 }
0x1682   : > { %v3612_v22 = vadd.f32 1.0, %v3604_v8 }
0x1684   : > { %v3620_v6 = vmul.f32 %v3612_v22, %v3412_v12 }
0x1686   : > { %v3628_v28 = vmul.f32 %v3620_v6, %v3314_v0 }
0x1688   : > { %3714 = vmatprep.mubr.f32.mxu1 %v3628_v28 }
0x1689   : > { %3715 = vmatmul.mubr.f32.gmra.mxu1 %v3627_v26 }
0x1734   : > { %v4086_v30 = vpop.f32.mrf.mxu1 }
0x1736   : > { %v4087_v13 = vpop.f32.mrf.mxu1 }
0x1737   : > { %v4088_v51 = vadd.f32 %v4087_v13, %v4086_v30 }
0x1738   : > { %v4089_v50 = vpop.f32.mrf.mxu1 }
0x1739   : > { %v3702_v60 = vadd.f32 %v4088_v51, %v3909_v56 }
0x173a   : > { %v4090_v15 = vpop.f32.mrf.mxu1 }
0x173b   : > { %v3720_v48 = vadd.f32 %v3702_v60, %v5319_v61  ;;  %v4091_v53 = vadd.f32 %v4090_v15, %v4089_v50 }
0x173d   : > { %3724 = vst.msk [vmem:[%s413_s30] sm:$0xff] %vm420_vm0, %v3720_v48  ;;  %v3707_v57 = vadd.f32 %v4091_v53, %v3909_v56 }
0x173f   : > { %v3721_v18 = vadd.f32 %v3707_v57, %v5316_v52 }
0x1740   : > { %v4092_v34 = vpop.f32.mrf.mxu1 }
0x1741   : > { %3725 = vst.msk [vmem:[%s413_s30 + $0x8] sm:$0xff] %vm420_vm0, %v3721_v18 }
0x1742   : > { %v4093_v31 = vpop.f32.mrf.mxu1 }
0x1743   : > { %v4094_v42 = vadd.f32 %v4093_v31, %v4092_v34 }
0x1745   : > { %v3712_v16 = vadd.f32 %v4094_v42, %v3909_v56 }
0x1747   : > { %v3722_v19 = vadd.f32 %v3712_v16, %v5326_v9 }
0x1749   : > { %3726 = vst.msk [vmem:[%s413_s30 + $0x10] sm:$0xff] %vm420_vm0, %v3722_v19  ;;  %v4095_v1 = vpop.f32.mrf.mxu1 }
0x174b   : > { %v4096_v14 = vpop.f32.mrf.mxu1 }
0x174c   : > { %v4097_v61 = vadd.f32 %v4096_v14, %v4095_v1 }
0x174e   : > { %v3717_v45 = vadd.f32 %v4097_v61, %v3909_v56 }
0x1750   : > { %v3723_v58 = vadd.f32 %v3717_v45, %v5329_v10 }
0x1752   : > { %3727 = vst.msk [vmem:[%s413_s30 + $0x18] sm:$0xff] %vm420_vm0, %v3723_v58 }
0x1753 PF: > { %s22_s21 = sadd.s32 1, %s4554_s21  }
0x1754   : > { %p19_p4 = scmp.ge.s32.totalorder %s22_s21, 4  }
0x1756   :  { %21 = sbr.rel (!%p19_p4) target bundleno = 1 (0x1), region = 98 }

// kernel: kl_autoencoder_forward.13
= control target key start
LH: loop header
LB: loop body
LE: loop exit
PB: predicated region body
PF: predicated region fallthrough
CT: control target
= control target key end

     0   :  { %s1834_s13 = smov 0   ;;  %s2181_s0 = inlined_call_operand.vmem [shape: f32[2,64,64], index: 0, kind: input, shape index: {}]   ;;  %s2182_s1 = inlined_call_operand.vmem [shape: f32[2,32,64], index: 1, kind: input, shape index: {}]   ;;  %s2183_s2 = inlined_call_operand.vmem [shape: f32[1,64], index: 2, kind: input, shape index: {}]   ;;  %s2184_s3 = inlined_call_operand.vmem [shape: f32[1,64], index: 3, kind: input, shape index: {}]   ;;  %s2185_s4 = inlined_call_operand.vmem [shape: f32[1,64], index: 4, kind: input, shape index: {}]   ;;  %s2186_s5 = inlined_call_operand.vmem [shape: f32[1,64], index: 5, kind: input, shape index: {}]   ;;  %s2187_s6 = inlined_call_operand.vmem [shape: f32[64,64], index: 6, kind: input, shape index: {}]   ;;  %s2188_s7 = inlined_call_operand.vmem [shape: f32[64,128], index: 7, kind: input, shape index: {}]   ;;  %s2189_s8 = inlined_call_operand.vmem [shape: f32[64,64], index: 8, kind: input, shape index: {}]   ;;  %s2190_s9 = inlined_call_operand.vmem [shape: f32[1,64], index: 9, kind: input, shape index: {}]   ;;  %s2191_s10 = inlined_call_operand.vmem [shape: f32[2,64,64], index: 10, kind: output, shape index: {}]  }
   0x1 LB: > { %s1442_s14 = sadd.s32 4294967295, %s1776_s13   ;;  %p1446_p0 = scmp.ge.s32.totalorder %s1776_s13, 1  ;;  %s1776_s13 = sphi %s1834_s13, %s20_s13  }
   0x2   : > { %p322_p1 = scmp.lt.s32.totalorder %s1776_s13, 3 }
   0x4   : > { %p323_p2 = pnand %p1446_p0, %p322_p1 }
   0x5   : > { %p365_p3 = scmp.lt.s32.totalorder (!%p323_p2), %s1442_s14, 1  ;;  %s1778_s29 = smov (!%p323_p2), 64  }
   0x6   : > { %326 = sbr.rel (%p323_p2) target bundleno = 1463 (0x5b7), region = 60 }
   0xb   : > { %s2193_s14 = smov (!%p365_p3, %s1442_s14), 1  ;;  %vm394_vm0 = vcmask 523264   ;;  %vm1002_vm1 = vcmask 261120  }
   0xc   : > { %s1501_s15 = sshll.u32 %s2193_s14, 5  ;;  %s1500_s16 = sshll.u32 %s2193_s14, 6 }
   0xd   : > { %s374_s19 = scalar_lea.vmem %s2182_s1, %s1501_s15  ;;  %s369_s22 = scalar_lea.vmem %s2181_s0, %s1500_s16 }
   0xe   : > { %v388_v0 = vld [vmem:[%s374_s19] sm:$0xff]  ;;  %v390_v1 = vld [vmem:[%s374_s19 + $0x10] sm:$0xff]  ;;  %v389_v2 = vld [vmem:[%s374_s19 + $0x8] sm:$0xff]  ;;  %s379_s15 = scalar_lea.vmem %s2191_s10, %s1500_s16 }
   0xf   : > { %v530_v3 = vsel %vm394_vm0, %v388_v0, 0.0  ;;  %v536_v4 = vsel %vm394_vm0, %v390_v1, 0.0  ;;  %v391_v5 = vld [vmem:[%s374_s19 + $0x18] sm:$0xff]  ;;  %v533_v6 = vsel %vm394_vm0, %v389_v2, 0.0  ;;  %v380_v8 = vld [vmem:[%s369_s22] sm:$0xff]  ;;  %v381_v9 = vld [vmem:[%s369_s22 + $0x8] sm:$0xff] }
  0x10   : > { %531 = vadd.xlane.f32.xlu0 %v530_v3  ;;  %537 = vadd.xlane.f32.xlu1 %v536_v4  ;;  %v539_v7 = vsel %vm394_vm0, %v391_v5, 0.0  ;;  %v395_v10 = vsel %vm394_vm0, %v380_v8, 0.0  ;;  %v398_v11 = vsel %vm394_vm0, %v381_v9, 0.0  ;;  %v382_v12 = vld [vmem:[%s369_s22 + $0x10] sm:$0xff]  ;;  %v383_v13 = vld [vmem:[%s369_s22 + $0x18] sm:$0xff]  ;;  %v384_v16 = vld [vmem:[%s369_s22 + $0x20] sm:$0xff] }
  0x11   : > { %v401_v14 = vsel %vm394_vm0, %v382_v12, 0.0  ;;  %v404_v15 = vsel %vm394_vm0, %v383_v13, 0.0  ;;  %v385_v17 = vld [vmem:[%s369_s22 + $0x28] sm:$0xff]  ;;  %v407_v18 = vsel %vm394_vm0, %v384_v16, 0.0  ;;  %v1864_v20 = vld [vmem:[%s369_s22 + $0x30] sm:$0xff]  ;;  %v1866_v21 = vld [vmem:[%s369_s22 + $0x38] sm:$0xff] }
  0x12   : > { %v410_v19 = vsel %vm394_vm0, %v385_v17, 0.0  ;;  %v413_v22 = vsel %vm394_vm0, %v1864_v20, 0.0  ;;  %v416_v23 = vsel %vm394_vm0, %v1866_v21, 0.0 }
  0x14   : > { %534 = vadd.xlane.f32.xlu0 %v533_v6  ;;  %540 = vadd.xlane.f32.xlu1 %v539_v7 }
  0x18   : > { %396 = vadd.xlane.f32.xlu0 %v395_v10  ;;  %399 = vadd.xlane.f32.xlu1 %v398_v11 }
  0x1c   : > { %402 = vadd.xlane.f32.xlu0 %v401_v14  ;;  %405 = vadd.xlane.f32.xlu1 %v404_v15 }
  0x20   : > { %408 = vadd.xlane.f32.xlu0 %v407_v18  ;;  %411 = vadd.xlane.f32.xlu1 %v410_v19 }
  0x24   : > { %414 = vadd.xlane.f32.xlu0 %v413_v22  ;;  %417 = vadd.xlane.f32.xlu1 %v416_v23  ;;  %v744_v22 = vld [vmem:[%s2188_s7 + $0x28] sm:$0xff]  ;;  %v743_v23 = vld [vmem:[%s2188_s7 + $0x20] sm:$0xff] }
  0x99   : > { %v532_v24 = vpop.xlane.xlu0 %531  ;;  %v538_v25 = vpop.xlane.xlu1 %537 }
  0x9a   : > { %v542_v26 = vmul.f32 0.015625, %v532_v24  ;;  %v544_v27 = vmul.f32 0.015625, %v538_v25  ;;  %v609_v24 = vld [vmem:[%s2187_s6 + $0x38] sm:$0xff] }
  0x9b   : > { %v742_v25 = vld [vmem:[%s2188_s7 + $0x18] sm:$0xff]  ;;  %1571 = vmatprep.subr.mxu0 %v609_v24 }
  0x9c   : > { %v1872_v28 = vsub.f32 %v388_v0, %v542_v26  ;;  %v1874_v29 = vsub.f32 %v390_v1, %v544_v27  ;;  %1572 = vmatpush3.msra.mxu0 %v609_v24  ;;  %v608_v26 = vld [vmem:[%s2187_s6 + $0x30] sm:$0xff] }
  0x9d   : > { %v535_v30 = vpop.xlane.xlu0 %534  ;;  %v541_v31 = vpop.xlane.xlu1 %540  ;;  %v741_v27 = vld [vmem:[%s2188_s7 + $0x10] sm:$0xff]  ;;  %1573 = vmatprep.subr.mxu0 %v608_v26 }
  0x9e   : > { %v543_v32 = vmul.f32 0.015625, %v535_v30  ;;  %v545_v33 = vmul.f32 0.015625, %v541_v31  ;;  %v550_v34 = vmul.f32 %v1872_v28, %v1872_v28  ;;  %v552_v35 = vmul.f32 %v1874_v29, %v1874_v29  ;;  %1574 = vmatpush3.msra.mxu0 %v608_v26  ;;  %v607_v30 = vld [vmem:[%s2187_s6 + $0x28] sm:$0xff] }
  0x9f   : > { %v740_v31 = vld [vmem:[%s2188_s7 + $0x8] sm:$0xff]  ;;  %1575 = vmatprep.subr.mxu0 %v607_v30 }
  0xa0   : > { %v1880_v36 = vsub.f32 %v389_v2, %v543_v32  ;;  %v1882_v37 = vsub.f32 %v391_v5, %v545_v33  ;;  %v554_v38 = vsel %vm394_vm0, %v550_v34, 0.0  ;;  %v560_v41 = vsel %vm394_vm0, %v552_v35, 0.0  ;;  %1576 = vmatpush3.msra.mxu0 %v607_v30  ;;  %v606_v32 = vld [vmem:[%s2187_s6 + $0x20] sm:$0xff]  ;;  %v605_v34 = vld [vmem:[%s2187_s6 + $0x18] sm:$0xff]  ;;  %v604_v35 = vld [vmem:[%s2187_s6 + $0x10] sm:$0xff] }
  0xa1   : > { %555 = vadd.xlane.f32.xlu0 %v554_v38  ;;  %v397_v39 = vpop.xlane.xlu0 %396  ;;  %v400_v40 = vpop.xlane.xlu1 %399  ;;  %v739_v33 = vld [vmem:[%s2188_s7] sm:$0xff]  ;;  %1577 = vmatprep.subr.mxu0 %v606_v32  ;;  %v603_v38 = vld [vmem:[%s2187_s6 + $0x8] sm:$0xff] }
  0xa2   : > { %v420_v42 = vmul.f32 0.015625, %v397_v39  ;;  %v551_v43 = vmul.f32 %v1880_v36, %v1880_v36  ;;  %v421_v44 = vmul.f32 0.015625, %v400_v40  ;;  %v553_v45 = vmul.f32 %v1882_v37, %v1882_v37  ;;  %1578 = vmatpush3.msra.mxu0 %v606_v32  ;;  %v602_v39 = vld [vmem:[%s2187_s6] sm:$0xff] }
  0xa3   : > { %1579 = vmatprep.subr.mxu0 %v605_v34 }
  0xa4   : > { %v1890_v46 = vsub.f32 %v380_v8, %v420_v42  ;;  %v557_v47 = vsel %vm394_vm0, %v551_v43, 0.0  ;;  %v1893_v48 = vsub.f32 %v381_v9, %v421_v44  ;;  %v563_v50 = vsel %vm394_vm0, %v553_v45, 0.0  ;;  %1580 = vmatpush3.msra.mxu0 %v605_v34 }
  0xa5   : > { %558 = vadd.xlane.f32.xlu1 %v557_v47  ;;  %561 = vadd.xlane.f32.xlu0 %v560_v41  ;;  %v403_v49 = vpop.xlane.xlu0 %402  ;;  %v406_v51 = vpop.xlane.xlu1 %405 }
  0xa6   : > { %v422_v52 = vmul.f32 0.015625, %v403_v49  ;;  %v423_v53 = vmul.f32 0.015625, %v406_v51  ;;  %v436_v54 = vmul.f32 %v1890_v46, %v1890_v46  ;;  %v437_v55 = vmul.f32 %v1893_v48, %v1893_v48  ;;  %1581 = vmatprep.subr.mxu0 %v604_v35 }
  0xa7   : > { %1582 = vmatpush3.msra.mxu0 %v604_v35 }
  0xa8   : > { %v1900_v56 = vsub.f32 %v382_v12, %v422_v52  ;;  %v1902_v57 = vsub.f32 %v383_v13, %v423_v53  ;;  %v444_v58 = vsel %vm394_vm0, %v436_v54, 0.0  ;;  %v447_v60 = vsel %vm394_vm0, %v437_v55, 0.0  ;;  %1583 = vmatprep.subr.mxu0 %v603_v38 }
  0xa9   : > { %564 = vadd.xlane.f32.xlu1 %v563_v50  ;;  %445 = vadd.xlane.f32.xlu0 %v444_v58  ;;  %v409_v59 = vpop.xlane.xlu0 %408  ;;  %v412_v61 = vpop.xlane.xlu1 %411 }
  0xaa   : > { %v424_v62 = vmul.f32 0.015625, %v409_v59  ;;  %v425_v63 = vmul.f32 0.015625, %v412_v61  ;;  %v438_v0 = vmul.f32 %v1900_v56, %v1900_v56  ;;  %v439_v1 = vmul.f32 %v1902_v57, %v1902_v57  ;;  %1584 = vmatpush3.msra.mxu0 %v603_v38  ;;  %v1453_v38 = vld [vmem:[%s2183_s2] ss:$0 sm:$0xff] }
  0xab   : > { %1585 = vmatprep.subr.mxu0 %v602_v39 }
  0xac   : > { %v1910_v2 = vsub.f32 %v384_v16, %v424_v62  ;;  %v1912_v3 = vsub.f32 %v385_v17, %v425_v63  ;;  %v450_v4 = vsel %vm394_vm0, %v438_v0, 0.0  ;;  %v453_v6 = vsel %vm394_vm0, %v439_v1, 0.0  ;;  %1586 = vmatpush3.msra.mxu0 %v602_v39 }
  0xad   : > { %448 = vadd.xlane.f32.xlu1 %v447_v60  ;;  %451 = vadd.xlane.f32.xlu0 %v450_v4  ;;  %v415_v5 = vpop.xlane.xlu0 %414  ;;  %v418_v7 = vpop.xlane.xlu1 %417 }
  0xae   : > { %v426_v8 = vmul.f32 0.015625, %v415_v5  ;;  %v427_v9 = vmul.f32 0.015625, %v418_v7  ;;  %v440_v10 = vmul.f32 %v1910_v2, %v1910_v2  ;;  %v441_v11 = vmul.f32 %v1912_v3, %v1912_v3 }
  0xb0   : > { %v1921_v12 = vsub.f32 %v1864_v20, %v426_v8  ;;  %v1924_v13 = vsub.f32 %v1866_v21, %v427_v9  ;;  %v456_v14 = vsel %vm394_vm0, %v440_v10, 0.0  ;;  %v459_v15 = vsel %vm394_vm0, %v441_v11, 0.0  ;;  %v746_v20 = vld [vmem:[%s2188_s7 + $0x38] sm:$0xff]  ;;  %v745_v21 = vld [vmem:[%s2188_s7 + $0x30] sm:$0xff]  ;;  %v1455_v8 = vld [vmem:[%s2185_s4] ss:$0 sm:$0xff] }
  0xb1   : > { %454 = vadd.xlane.f32.xlu1 %v453_v6  ;;  %457 = vadd.xlane.f32.xlu0 %v456_v14 }
  0xb2   : > { %v442_v16 = vmul.f32 %v1921_v12, %v1921_v12  ;;  %v443_v17 = vmul.f32 %v1924_v13, %v1924_v13  ;;  %1599 = vmatprep.subr.mxu1 %v746_v20 }
  0xb3   : > { %1600 = vmatpush3.msra.mxu1 %v746_v20 }
  0xb4   : > { %v462_v18 = vsel %vm394_vm0, %v442_v16, 0.0  ;;  %v465_v19 = vsel %vm394_vm0, %v443_v17, 0.0  ;;  %1601 = vmatprep.subr.mxu1 %v745_v21  ;;  %v1456_v16 = vld [vmem:[%s2186_s5] ss:$0 sm:$0xff] }
  0xb5   : > { %460 = vadd.xlane.f32.xlu1 %v459_v15  ;;  %463 = vadd.xlane.f32.xlu0 %v462_v18 }
  0xb6   : > { %1602 = vmatpush3.msra.mxu1 %v745_v21 }
  0xb7   : > { %1603 = vmatprep.subr.mxu1 %v744_v22 }
  0xb8   : > { %1604 = vmatpush3.msra.mxu1 %v744_v22 }
  0xb9   : > { %466 = vadd.xlane.f32.xlu1 %v465_v19  ;;  %1605 = vmatprep.subr.mxu1 %v743_v23 }
  0xba   : > { %1606 = vmatpush3.msra.mxu1 %v743_v23 }
  0xbb   : > { %1607 = vmatprep.subr.mxu1 %v742_v25 }
  0xbc   : > { %1608 = vmatpush3.msra.mxu1 %v742_v25 }
  0xbd   : > { %1609 = vmatprep.subr.mxu1 %v741_v27 }
  0xbe   : > { %1610 = vmatpush3.msra.mxu1 %v741_v27 }
  0xbf   : > { %1611 = vmatprep.subr.mxu1 %v740_v31 }
  0xc0   : > { %1612 = vmatpush3.msra.mxu1 %v740_v31 }
  0xc1   : > { %1613 = vmatprep.subr.mxu1 %v739_v33 }
  0xc2   : > { %1614 = vmatpush3.msra.mxu1 %v739_v33 }
 0x12a   : > { %v556_v40 = vpop.xlane.xlu0 %555 }
 0x12b   : > { %v566_v41 = vmul.f32 0.015625, %v556_v40  ;;  %v1454_v40 = vld [vmem:[%s2184_s3] ss:$0 sm:$0xff] }
 0x12d   : > { %v570_v42 = vadd.f32 1e-05, %v566_v41 }
 0x12e   : > { %v559_v43 = vpop.xlane.xlu1 %558  ;;  %v562_v44 = vpop.xlane.xlu0 %561 }
 0x12f   : > { %1714 = vrsqrt.f32 %v570_v42  ;;  %v567_v45 = vmul.f32 0.015625, %v559_v43  ;;  %v568_v47 = vmul.f32 0.015625, %v562_v44 }
 0x131   : > { %v571_v49 = vadd.f32 1e-05, %v567_v45  ;;  %v572_v50 = vadd.f32 1e-05, %v568_v47 }
 0x132   : > { %v565_v51 = vpop.xlane.xlu1 %564  ;;  %v446_v52 = vpop.xlane.xlu0 %445 }
 0x133   : > { %1716 = vrsqrt.f32 %v571_v49  ;;  %v569_v53 = vmul.f32 0.015625, %v565_v51  ;;  %v468_v54 = vmul.f32 0.015625, %v446_v52 }
 0x134   : > { %1718 = vrsqrt.f32 %v572_v50 }
 0x135   : > { %v573_v55 = vadd.f32 1e-05, %v569_v53  ;;  %v476_v58 = vadd.f32 1e-05, %v468_v54 }
 0x136   : > { %v449_v59 = vpop.xlane.xlu1 %448  ;;  %v452_v60 = vpop.xlane.xlu0 %451 }
 0x137   : > { %1720 = vrsqrt.f32 %v573_v55  ;;  %v469_v61 = vmul.f32 0.015625, %v449_v59  ;;  %v470_v62 = vmul.f32 0.015625, %v452_v60 }
 0x138   : > { %1722 = vrsqrt.f32 %v476_v58 }
 0x139   : > { %v477_v63 = vadd.f32 1e-05, %v469_v61  ;;  %v478_v0 = vadd.f32 1e-05, %v470_v62 }
 0x13a   : > { %v455_v1 = vpop.xlane.xlu1 %454  ;;  %v458_v4 = vpop.xlane.xlu0 %457 }
 0x13b   : > { %1724 = vrsqrt.f32 %v477_v63  ;;  %v471_v5 = vmul.f32 0.015625, %v455_v1  ;;  %v472_v6 = vmul.f32 0.015625, %v458_v4 }
 0x13c   : > { %v1715_v7 = vpop.eup %1714  ;;  %1726 = vrsqrt.f32 %v478_v0 }
 0x13d   : > { %v479_v9 = vadd.f32 1e-05, %v471_v5  ;;  %v480_v10 = vadd.f32 1e-05, %v472_v6  ;;  %v578_v11 = vmul.f32 %v1715_v7, %v1872_v28 }
 0x13e   : > { %v461_v14 = vpop.xlane.xlu1 %460  ;;  %v464_v15 = vpop.xlane.xlu0 %463 }
 0x13f   : > { %1728 = vrsqrt.f32 %v479_v9  ;;  %v473_v17 = vmul.f32 0.015625, %v461_v14  ;;  %v474_v18 = vmul.f32 0.015625, %v464_v15  ;;  %v588_v19 = vmul.f32 %v1455_v8, %v578_v11 }
 0x140   : > { %v1717_v20 = vpop.eup %1716  ;;  %1730 = vrsqrt.f32 %v480_v10 }
 0x141   : > { %v1719_v21 = vpop.eup %1718  ;;  %v481_v22 = vadd.f32 1e-05, %v473_v17  ;;  %v482_v23 = vadd.f32 1e-05, %v474_v18  ;;  %v598_v24 = vadd.f32 %v1456_v16, %v588_v19  ;;  %v579_v25 = vmul.f32 %v1717_v20, %v1880_v36 }
 0x142   : > { %v467_v26 = vpop.xlane.xlu1 %466  ;;  %v580_v28 = vmul.f32 %v1719_v21, %v1874_v29 }
 0x143   : > { %1732 = vrsqrt.f32 %v481_v22  ;;  %v475_v27 = vmul.f32 0.015625, %v467_v26  ;;  %1615 = vmatprep.mubr.msk.f32.mxu1 %vm394_vm0, %v598_v24  ;;  %v589_v30 = vmul.f32 %v1455_v8, %v579_v25 }
 0x144   : > { %v1721_v31 = vpop.eup %1720  ;;  %1734 = vrsqrt.f32 %v482_v23  ;;  %v590_v32 = vmul.f32 %v1455_v8, %v580_v28 }
 0x145   : > { %v1723_v33 = vpop.eup %1722  ;;  %v483_v34 = vadd.f32 1e-05, %v475_v27  ;;  %v599_v35 = vadd.f32 %v1456_v16, %v589_v30  ;;  %v581_v36 = vmul.f32 %v1721_v31, %v1882_v37 }
 0x146   : > { %v600_v39 = vadd.f32 %v1456_v16, %v590_v32  ;;  %v492_v29 = vmul.f32 %v1723_v33, %v1890_v46 }
 0x147   : > { %1736 = vrsqrt.f32 %v483_v34  ;;  %1616 = vmatmul.mubr.msk.f32.vlgmr.msra.gmra.mxu1 %vm394_vm0, %v599_v35  ;;  %v591_v41 = vmul.f32 %v1455_v8, %v581_v36 }
 0x148   : > { %v1725_v42 = vpop.eup %1724  ;;  %1618 = vmatprep.mubr.msk.f32.mxu1 %vm394_vm0, %v600_v39  ;;  %v506_v43 = vmul.f32 %v1453_v38, %v492_v29 }
 0x149   : > { %v1727_v44 = vpop.eup %1726  ;;  %v601_v45 = vadd.f32 %v1456_v16, %v591_v41  ;;  %v493_v47 = vmul.f32 %v1725_v42, %v1893_v48 }
 0x14a   : > { %v520_v37 = vadd.f32 %v1454_v40, %v506_v43  ;;  %v494_v49 = vmul.f32 %v1727_v44, %v1900_v56 }
 0x14b   : > { %1619 = vmatmul.mubr.msk.f32.gmra.mxu1 %vm394_vm0, %v601_v45  ;;  %v507_v46 = vmul.f32 %v1453_v38, %v493_v47 }
 0x14c   : > { %v1729_v50 = vpop.eup %1728  ;;  %1587 = vmatprep.mubr.msk.f32.mxu0 %vm394_vm0, %v520_v37  ;;  %v508_v51 = vmul.f32 %v1453_v38, %v494_v49 }
 0x14d   : > { %v1731_v52 = vpop.eup %1730  ;;  %v521_v53 = vadd.f32 %v1454_v40, %v507_v46  ;;  %v495_v54 = vmul.f32 %v1729_v50, %v1902_v57 }
 0x14e   : > { %v522_v55 = vadd.f32 %v1454_v40, %v508_v51  ;;  %v496_v58 = vmul.f32 %v1731_v52, %v1910_v2 }
 0x14f   : > { %1588 = vmatmul.mubr.msk.f32.vlgmr.msra.gmra.mxu0 %vm394_vm0, %v521_v53  ;;  %v509_v48 = vmul.f32 %v1453_v38, %v495_v54 }
 0x150   : > { %v1733_v59 = vpop.eup %1732  ;;  %1590 = vmatprep.mubr.msk.f32.mxu0 %vm394_vm0, %v522_v55  ;;  %v510_v56 = vmul.f32 %v1453_v38, %v496_v58 }
 0x151   : > { %v1735_v60 = vpop.eup %1734  ;;  %v523_v61 = vadd.f32 %v1454_v40, %v509_v48  ;;  %v497_v62 = vmul.f32 %v1733_v59, %v1912_v3 }
 0x152   : > { %v524_v63 = vadd.f32 %v1454_v40, %v510_v56  ;;  %v498_v0 = vmul.f32 %v1735_v60, %v1921_v12 }
 0x153   : > { %1591 = vmatmul.mubr.msk.f32.gmra.mxu0 %vm394_vm0, %v523_v61  ;;  %v511_v57 = vmul.f32 %v1453_v38, %v497_v62 }
 0x154   : > { %v1737_v1 = vpop.eup %1736  ;;  %1593 = vmatprep.mubr.msk.f32.mxu0 %vm394_vm0, %v524_v63  ;;  %v512_v2 = vmul.f32 %v1453_v38, %v498_v0 }
 0x155   : > { %v525_v4 = vadd.f32 %v1454_v40, %v511_v57  ;;  %v499_v5 = vmul.f32 %v1737_v1, %v1924_v13 }
 0x156   : > { %v526_v6 = vadd.f32 %v1454_v40, %v512_v2 }
 0x157   : > { %1594 = vmatmul.mubr.msk.f32.gmra.mxu0 %vm394_vm0, %v525_v4  ;;  %v513_v7 = vmul.f32 %v1453_v38, %v499_v5 }
 0x158   : > { %1596 = vmatprep.mubr.msk.f32.mxu0 %vm394_vm0, %v526_v6 }
 0x159   : > { %v527_v3 = vadd.f32 %v1454_v40, %v513_v7 }
 0x15b   : > { %1597 = vmatmul.mubr.msk.f32.gmra.mxu0 %vm394_vm0, %v527_v3 }
 0x207   : > { %v2018_v12 = vpop.f32.mrf.mxu1 }
 0x209   : > { %v2020_v8 = vpop.f32.mrf.mxu1 }
 0x20b   : > { %v2022_v9 = vpop.f32.mrf.mxu1 }
 0x20c   : > { %1621 = vmatprep.subr.msk.mxu0 %vm394_vm0, %v2022_v9 }
 0x20d   : > { %v2026_v10 = vpop.f32.mrf.mxu1  ;;  %1622 = vmatpush3.xpose.msk.msra.mxu0 %vm394_vm0, %v2022_v9 }
 0x20e   : > { %1623 = vmatprep.subr.msk.mxu0 %vm394_vm0, %v2026_v10 }
 0x20f   : > { %v1589_v13 = vpop.f32.mrf.mxu0 }
 0x211   : > { %v700_v11 = vpop.f32.mrf.mxu0  ;;  %1624 = vmatpush3.xpose.msk.msra.mxu0 %vm394_vm0, %v2026_v10 }
 0x212   : > { %1625 = vmatprep.subr.msk.mxu0 %vm394_vm0, %v2018_v12  ;;  %1629 = vmatprep.mubr.msk.f32.mxu0 %vm394_vm0, %v700_v11 }
 0x213   : > { %v1592_v14 = vpop.f32.mrf.mxu0 }
 0x215   : > { %v710_v15 = vpop.f32.mrf.mxu0  ;;  %1626 = vmatpush3.xpose.msk.msra.mxu0 %vm394_vm0, %v2018_v12 }
 0x216   : > { %1627 = vmatprep.subr.msk.mxu0 %vm394_vm0, %v2020_v8 }
 0x217   : > { %v1595_v16 = vpop.f32.mrf.mxu0 }
 0x219   : > { %1628 = vmatpush3.xpose.msk.msra.mxu0 %vm394_vm0, %v2020_v8  ;;  %v720_v17 = vpop.f32.mrf.mxu0 }
 0x21b   : > { %v1598_v18 = vpop.f32.mrf.mxu0 }
 0x21c   : > { %1630 = vmatmul.mubr.msk.f32.vlgmr.msra.gmra.mxu0 %vm394_vm0, %v1589_v13 }
 0x21d   : > { %1632 = vmatprep.mubr.msk.f32.mxu0 %vm394_vm0, %v710_v15  ;;  %v730_v19 = vpop.f32.mrf.mxu0 }
 0x220   : > { %1633 = vmatmul.mubr.msk.f32.gmra.mxu0 %vm394_vm0, %v1592_v14 }
 0x221   : > { %1635 = vmatprep.mubr.msk.f32.mxu0 %vm394_vm0, %v720_v17 }
 0x224   : > { %1636 = vmatmul.mubr.msk.f32.gmra.mxu0 %vm394_vm0, %v1595_v16 }
 0x225   : > { %1638 = vmatprep.mubr.msk.f32.mxu0 %vm394_vm0, %v730_v19 }
 0x228   : > { %1639 = vmatmul.mubr.msk.f32.gmra.mxu0 %vm394_vm0, %v1598_v18 }
 0x2dc   : > { %v1631_v20 = vpop.f32.mrf.mxu0 }
 0x2dd   : > { %v995_v21 = vmul.f32 0.125, %v1631_v20 }
 0x2de   : > { %v955_v22 = vpop.f32.mrf.mxu0 }
 0x2df   : > { %v994_v23 = vmul.f32 0.125, %v955_v22  ;;  %v1006_v24 = vsel %vm1002_vm1, %v995_v21, -inf }
 0x2e0   : > { %1007 = vmax.xlane.f32.xlu1 %v1006_v24  ;;  %v1634_v25 = vpop.f32.mrf.mxu0  ;;  %v851_v24 = vld [vmem:[%s2189_s8 + $0x38] sm:$0xff] }
 0x2e1   : > { %v997_v26 = vmul.f32 0.125, %v1634_v25  ;;  %v1003_v28 = vsel %vm1002_vm1, %v994_v23, -inf  ;;  %v850_v25 = vld [vmem:[%s2189_s8 + $0x30] sm:$0xff]  ;;  %1661 = vmatprep.subr.mxu0 %v851_v24 }
 0x2e2   : > { %1004 = vmax.xlane.f32.xlu0 %v1003_v28  ;;  %v965_v27 = vpop.f32.mrf.mxu0  ;;  %1662 = vmatpush3.msra.mxu0 %v851_v24 }
 0x2e3   : > { %v996_v30 = vmul.f32 0.125, %v965_v27  ;;  %v1012_v31 = vsel %vm1002_vm1, %v997_v26, -inf  ;;  %1663 = vmatprep.subr.mxu0 %v850_v25 }
 0x2e4   : > { %1013 = vmax.xlane.f32.xlu1 %v1012_v31  ;;  %v1637_v32 = vpop.f32.mrf.mxu0  ;;  %1664 = vmatpush3.msra.mxu0 %v850_v25 }
 0x2e5   : > { %v999_v33 = vmul.f32 0.125, %v1637_v32  ;;  %v1009_v34 = vsel %vm1002_vm1, %v996_v30, -inf }
 0x2e6   : > { %1010 = vmax.xlane.f32.xlu0 %v1009_v34  ;;  %v975_v35 = vpop.f32.mrf.mxu0 }
 0x2e7   : > { %v998_v38 = vmul.f32 0.125, %v975_v35  ;;  %v1018_v36 = vsel %vm1002_vm1, %v999_v33, -inf }
 0x2e8   : > { %1019 = vmax.xlane.f32.xlu1 %v1018_v36  ;;  %v1640_v39 = vpop.f32.mrf.mxu0 }
 0x2e9   : > { %v1001_v29 = vmul.f32 0.125, %v1640_v39  ;;  %v1015_v40 = vsel %vm1002_vm1, %v998_v38, -inf }
 0x2ea   : > { %1016 = vmax.xlane.f32.xlu0 %v1015_v40  ;;  %v985_v41 = vpop.f32.mrf.mxu0 }
 0x2eb   : > { %v1000_v42 = vmul.f32 0.125, %v985_v41  ;;  %v1024_v43 = vsel %vm1002_vm1, %v1001_v29, -inf }
 0x2ec   : > { %1025 = vmax.xlane.f32.xlu1 %v1024_v43 }
 0x2ed   : > { %v1021_v44 = vsel %vm1002_vm1, %v1000_v42, -inf }
 0x2ee   : > { %1022 = vmax.xlane.f32.xlu0 %v1021_v44 }
 0x369   : > { %v1008_v45 = vpop.xlane.xlu1 %1007 }
 0x36a   : > { %v1028_v47 = vsub.f32 %v995_v21, %v1008_v45 }
 0x36b   : > { %v1005_v37 = vpop.xlane.xlu0 %1004 }
 0x36c   : > { %v1037_v49 = vmul.f32 1.442695, %v1028_v47  ;;  %v1027_v46 = vsub.f32 %v994_v23, %v1005_v37 }
 0x36d   : > { %v1014_v50 = vpop.xlane.xlu1 %1013 }
 0x36e   : > { %1738 = vpow2.f32 %v1037_v49  ;;  %v1035_v51 = vmul.f32 1.442695, %v1027_v46  ;;  %v1030_v52 = vsub.f32 %v997_v26, %v1014_v50 }
 0x36f   : > { %v1011_v53 = vpop.xlane.xlu0 %1010 }
 0x370   : > { %1740 = vpow2.f32 %v1035_v51  ;;  %v1041_v54 = vmul.f32 1.442695, %v1030_v52  ;;  %v1029_v55 = vsub.f32 %v996_v30, %v1011_v53 }
 0x371   : > { %v1020_v58 = vpop.xlane.xlu1 %1019 }
 0x372   : > { %1742 = vpow2.f32 %v1041_v54  ;;  %v1039_v48 = vmul.f32 1.442695, %v1029_v55  ;;  %v1032_v59 = vsub.f32 %v999_v33, %v1020_v58  ;;  %v845_v55 = vld [vmem:[%s2189_s8 + $0x8] sm:$0xff]  ;;  %v844_v58 = vld [vmem:[%s2189_s8] sm:$0xff] }
 0x373   : > { %v1017_v56 = vpop.xlane.xlu0 %1016 }
 0x374   : > { %1744 = vpow2.f32 %v1039_v48  ;;  %v1045_v60 = vmul.f32 1.442695, %v1032_v59  ;;  %v1031_v61 = vsub.f32 %v998_v38, %v1017_v56 }
 0x375   : > { %v1026_v62 = vpop.xlane.xlu1 %1025 }
 0x376   : > { %1746 = vpow2.f32 %v1045_v60  ;;  %v1043_v63 = vmul.f32 1.442695, %v1031_v61  ;;  %v1034_v0 = vsub.f32 %v1001_v29, %v1026_v62 }
 0x377   : > { %v1023_v57 = vpop.xlane.xlu0 %1022 }
 0x378   : > { %1748 = vpow2.f32 %v1043_v63  ;;  %v1049_v1 = vmul.f32 1.442695, %v1034_v0  ;;  %v1033_v2 = vsub.f32 %v1000_v42, %v1023_v57  ;;  %v1489_v57 = vld [vmem:[%s2190_s9] ss:$0 sm:$0xff] }
 0x37a   : > { %1750 = vpow2.f32 %v1049_v1  ;;  %v1047_v4 = vmul.f32 1.442695, %v1033_v2 }
 0x37b   : > { %v2058_v5 = vpop.eup %1738 }
 0x37c   : > { %1752 = vpow2.f32 %v1047_v4  ;;  %v1054_v6 = vsel %vm1002_vm1, %v2058_v5, 0.0 }
 0x37d   : > { %v1741_v7 = vpop.eup %1740  ;;  %1055 = vadd.xlane.f32.xlu1 %v1054_v6 }
 0x37e   : > { %v1051_v3 = vsel %vm1002_vm1, %v1741_v7, 0.0 }
 0x37f   : > { %v2063_v13 = vpop.eup %1742  ;;  %1052 = vadd.xlane.f32.xlu0 %v1051_v3 }
 0x380   : > { %v1060_v11 = vsel %vm1002_vm1, %v2063_v13, 0.0 }
 0x381   : > { %v2067_v14 = vpop.eup %1744  ;;  %1061 = vadd.xlane.f32.xlu1 %v1060_v11 }
 0x382   : > { %v1057_v15 = vsel %vm1002_vm1, %v2067_v14, 0.0 }
 0x383   : > { %v2071_v16 = vpop.eup %1746  ;;  %1058 = vadd.xlane.f32.xlu0 %v1057_v15 }
 0x384   : > { %v1066_v17 = vsel %vm1002_vm1, %v2071_v16, 0.0 }
 0x385   : > { %v2075_v18 = vpop.eup %1748  ;;  %1067 = vadd.xlane.f32.xlu1 %v1066_v17 }
 0x386   : > { %v1063_v19 = vsel %vm1002_vm1, %v2075_v18, 0.0 }
 0x387   : > { %v2079_v20 = vpop.eup %1750  ;;  %1064 = vadd.xlane.f32.xlu0 %v1063_v19 }
 0x388   : > { %v1072_v21 = vsel %vm1002_vm1, %v2079_v20, 0.0 }
 0x389   : > { %v2083_v22 = vpop.eup %1752  ;;  %1073 = vadd.xlane.f32.xlu1 %v1072_v21 }
 0x38a   : > { %v1069_v23 = vsel %vm1002_vm1, %v2083_v22, 0.0 }
 0x38b   : > { %1070 = vadd.xlane.f32.xlu0 %v1069_v23 }
 0x39a   : > { %1095 = vrot.lane.b32.xlu1 %v2026_v10, %s1778_s29  ;;  %v2100_v10 = vld [vmem:[%s2189_s8 + $0x28] sm:$0xff] }
 0x39b   : > { %1665 = vmatprep.subr.mxu0 %v2100_v10 }
 0x39c   : > { %1666 = vmatpush3.msra.mxu0 %v2100_v10 }
 0x39e   : > { %1093 = vrot.lane.b32.xlu1 %v2018_v12, %s1778_s29  ;;  %v2105_v12 = vld [vmem:[%s2189_s8 + $0x20] sm:$0xff] }
 0x39f   : > { %1667 = vmatprep.subr.mxu0 %v2105_v12 }
 0x3a0   : > { %1668 = vmatpush3.msra.mxu0 %v2105_v12 }
 0x3a1   : > { %1097 = vrot.lane.b32.xlu0 %v2022_v9, %s1778_s29  ;;  %v2119_v9 = vld [vmem:[%s2189_s8 + $0x10] sm:$0xff] }
 0x3a2   : > { %1091 = vrot.lane.b32.xlu1 %v2020_v8, %s1778_s29  ;;  %v2112_v8 = vld [vmem:[%s2189_s8 + $0x18] sm:$0xff] }
 0x3a3   : > { %1669 = vmatprep.subr.mxu0 %v2112_v8 }
 0x3a4   : > { %1670 = vmatpush3.msra.mxu0 %v2112_v8 }
 0x3a5   : > { %1671 = vmatprep.subr.mxu0 %v2119_v9 }
 0x3a6   : > { %1672 = vmatpush3.msra.mxu0 %v2119_v9 }
 0x3a7   : > { %1673 = vmatprep.subr.mxu0 %v845_v55 }
 0x3a8   : > { %1674 = vmatpush3.msra.mxu0 %v845_v55 }
 0x3a9   : > { %1675 = vmatprep.subr.mxu0 %v844_v58 }
 0x3aa   : > { %1676 = vmatpush3.msra.mxu0 %v844_v58 }
 0x406   : > { %v1056_v26 = vpop.xlane.xlu1 %1055 }
 0x408   : > { %v1053_v28 = vpop.xlane.xlu0 %1052 }
 0x409   : > { %1754 = vrcp.f32 %v1053_v28 }
 0x40a   : > { %v1062_v27 = vpop.xlane.xlu1 %1061  ;;  %1756 = vrcp.f32 %v1056_v26 }
 0x40c   : > { %v1059_v30 = vpop.xlane.xlu0 %1058 }
 0x40d   : > { %1758 = vrcp.f32 %v1059_v30 }
 0x40e   : > { %v1068_v31 = vpop.xlane.xlu1 %1067  ;;  %1760 = vrcp.f32 %v1062_v27 }
 0x410   : > { %v1065_v32 = vpop.xlane.xlu0 %1064 }
 0x411   : > { %1762 = vrcp.f32 %v1065_v32 }
 0x412   : > { %v1074_v33 = vpop.xlane.xlu1 %1073  ;;  %1764 = vrcp.f32 %v1068_v31 }
 0x414   : > { %v1071_v34 = vpop.xlane.xlu0 %1070 }
 0x415   : > { %1766 = vrcp.f32 %v1071_v34 }
 0x416   : > { %v1755_v35 = vpop.eup %1754  ;;  %v1096_v38 = vpop.permute.xlu1 %1095  ;;  %1768 = vrcp.f32 %v1074_v33 }
 0x417   : > { %v1076_v36 = vmul.f32 %v1755_v35, %v1741_v7  ;;  %v1757_v40 = vpop.eup %1756 }
 0x418   : > { %v1098_v39 = vpop.permute.xlu0 %1097  ;;  %v1078_v43 = vmul.f32 %v1757_v40, %v2058_v5 }
 0x419   : > { %1641 = vmatprep.subr.mxu1 %v1098_v39  ;;  %1649 = vmatprep.mubr.msk.f32.mxu1 %vm1002_vm1, %v1076_v36 }
 0x41a   : > { %v1094_v29 = vpop.permute.xlu1 %1093  ;;  %1642 = vmatpush3.msra.mxu1 %v1098_v39  ;;  %v1759_v41 = vpop.eup %1758 }
 0x41b   : > { %1643 = vmatprep.subr.mxu1 %v1096_v38  ;;  %v1761_v44 = vpop.eup %1760  ;;  %v1080_v45 = vmul.f32 %v1759_v41, %v2067_v14 }
 0x41c   : > { %1644 = vmatpush3.msra.mxu1 %v1096_v38  ;;  %v1082_v37 = vmul.f32 %v1761_v44, %v2063_v13 }
 0x41d   : > { %1645 = vmatprep.subr.mxu1 %v1094_v29 }
 0x41e   : > { %v1092_v42 = vpop.permute.xlu1 %1091  ;;  %1646 = vmatpush3.msra.mxu1 %v1094_v29  ;;  %v1763_v47 = vpop.eup %1762 }
 0x41f   : > { %1647 = vmatprep.subr.mxu1 %v1092_v42  ;;  %v1765_v49 = vpop.eup %1764  ;;  %v1084_v46 = vmul.f32 %v1763_v47, %v2075_v18 }
 0x420   : > { %1648 = vmatpush3.msra.mxu1 %v1092_v42  ;;  %v1086_v51 = vmul.f32 %v1765_v49, %v2071_v16 }
 0x421   : > { %1650 = vmatmul.mubr.msk.f32.vlgmr.msra.gmra.mxu1 %vm1002_vm1, %v1078_v43  ;;  %1689 = vmatprep.subr.mxu1 %v851_v24 }
 0x422   : > { %1652 = vmatprep.mubr.msk.f32.mxu1 %vm1002_vm1, %v1080_v45  ;;  %1697 = vmatpush3.msra.mxu1 %v851_v24  ;;  %v1767_v50 = vpop.eup %1766 }
 0x423   : > { %1690 = vmatprep.subr.mxu1 %v850_v25  ;;  %v1769_v52 = vpop.eup %1768  ;;  %v1088_v53 = vmul.f32 %v1767_v50, %v2083_v22 }
 0x424   : > { %1698 = vmatpush3.msra.mxu1 %v850_v25  ;;  %v1090_v54 = vmul.f32 %v1769_v52, %v2079_v20 }
 0x425   : > { %1653 = vmatmul.mubr.msk.f32.gmra.mxu1 %vm1002_vm1, %v1082_v37  ;;  %1691 = vmatprep.subr.mxu1 %v2100_v10 }
 0x426   : > { %1655 = vmatprep.mubr.msk.f32.mxu1 %vm1002_vm1, %v1084_v46  ;;  %1699 = vmatpush3.msra.mxu1 %v2100_v10 }
 0x427   : > { %1692 = vmatprep.subr.mxu1 %v2105_v12 }
 0x428   : > { %1700 = vmatpush3.msra.mxu1 %v2105_v12 }
 0x429   : > { %1656 = vmatmul.mubr.msk.f32.gmra.mxu1 %vm1002_vm1, %v1086_v51  ;;  %1693 = vmatprep.subr.mxu1 %v2112_v8 }
 0x42a   : > { %1658 = vmatprep.mubr.msk.f32.mxu1 %vm1002_vm1, %v1088_v53  ;;  %1701 = vmatpush3.msra.mxu1 %v2112_v8 }
 0x42b   : > { %1694 = vmatprep.subr.mxu1 %v2119_v9 }
 0x42c   : > { %1702 = vmatpush3.msra.mxu1 %v2119_v9 }
 0x42d   : > { %1659 = vmatmul.mubr.msk.f32.gmra.mxu1 %vm1002_vm1, %v1090_v54  ;;  %1695 = vmatprep.subr.mxu1 %v845_v55 }
 0x42e   : > { %1703 = vmatpush3.msra.mxu1 %v845_v55 }
 0x42f   : > { %1696 = vmatprep.subr.mxu1 %v844_v58 }
 0x430   : > { %1704 = vmatpush3.msra.mxu1 %v844_v58 }
 0x4e1   : > { %v1651_v48 = vpop.f32.mrf.mxu1 }
 0x4e3   : > { %v1193_v59 = vpop.f32.mrf.mxu1 }
 0x4e4   : > { %1677 = vmatprep.mubr.msk.f32.mxu0 %vm394_vm0, %v1193_v59 }
 0x4e5   : > { %v1654_v56 = vpop.f32.mrf.mxu1  ;;  %1678 = vmatmul.mubr.msk.f32.vlgmr.msra.gmra.mxu0 %vm394_vm0, %v1651_v48 }
 0x4e7   : > { %v1203_v60 = vpop.f32.mrf.mxu1 }
 0x4e8   : > { %1680 = vmatprep.mubr.msk.f32.mxu1 %vm394_vm0, %v1203_v60 }
 0x4e9   : > { %v1657_v61 = vpop.f32.mrf.mxu1  ;;  %1681 = vmatmul.mubr.msk.f32.vlgmr.msra.gmra.mxu1 %vm394_vm0, %v1654_v56 }
 0x4eb   : > { %v1213_v62 = vpop.f32.mrf.mxu1 }
 0x4ec   : > { %1683 = vmatprep.mubr.msk.f32.mxu1 %vm394_vm0, %v1213_v62 }
 0x4ed   : > { %v1660_v63 = vpop.f32.mrf.mxu1  ;;  %1684 = vmatmul.mubr.msk.f32.gmra.mxu1 %vm394_vm0, %v1657_v61 }
 0x4ef   : > { %v1223_v0 = vpop.f32.mrf.mxu1 }
 0x4f0   : > { %1686 = vmatprep.mubr.msk.f32.mxu1 %vm394_vm0, %v1223_v0 }
 0x4f1   : > { %1687 = vmatmul.mubr.msk.f32.gmra.mxu1 %vm394_vm0, %v1660_v63 }
 0x5a5   : > { %v1679_v1 = vpop.f32.mrf.mxu0 }
 0x5a6   : > { %v1334_v2 = vadd.f32 %v1679_v1, %v1489_v57 }
 0x5a7   : > { %v1328_v4 = vpop.f32.mrf.mxu0 }
 0x5a8   : > { %1368 = vst.msk [vmem:[%s379_s15 + $0x8] sm:$0xff] %vm394_vm0, %v1334_v2  ;;  %v1329_v5 = vadd.f32 %v1489_v57, %v1328_v4 }
 0x5a9   : > { %v1682_v6 = vpop.f32.mrf.mxu1 }
 0x5aa   : > { %1367 = vst.msk [vmem:[%s379_s15] sm:$0xff] %vm394_vm0, %v1329_v5  ;;  %v1344_v7 = vadd.f32 %v1682_v6, %v1489_v57 }
 0x5ab   : > { %v1338_v3 = vpop.f32.mrf.mxu1 }
 0x5ac   : > { %1370 = vst.msk [vmem:[%s379_s15 + $0x18] sm:$0xff] %vm394_vm0, %v1344_v7  ;;  %v1339_v13 = vadd.f32 %v1489_v57, %v1338_v3 }
 0x5ad   : > { %v1685_v11 = vpop.f32.mrf.mxu1 }
 0x5ae   : > { %1369 = vst.msk [vmem:[%s379_s15 + $0x10] sm:$0xff] %vm394_vm0, %v1339_v13  ;;  %v1354_v14 = vadd.f32 %v1685_v11, %v1489_v57 }
 0x5af   : > { %v1348_v15 = vpop.f32.mrf.mxu1 }
 0x5b0   : > { %1372 = vst.msk [vmem:[%s379_s15 + $0x28] sm:$0xff] %vm394_vm0, %v1354_v14  ;;  %v1349_v16 = vadd.f32 %v1489_v57, %v1348_v15 }
 0x5b1   : > { %v1688_v17 = vpop.f32.mrf.mxu1 }
 0x5b2   : > { %1371 = vst.msk [vmem:[%s379_s15 + $0x20] sm:$0xff] %vm394_vm0, %v1349_v16  ;;  %v1364_v18 = vadd.f32 %v1688_v17, %v1489_v57 }
 0x5b3   : > { %v1358_v19 = vpop.f32.mrf.mxu1 }
 0x5b4   : > { %1374 = vst.msk [vmem:[%s379_s15 + $0x38] sm:$0xff] %vm394_vm0, %v1364_v18  ;;  %v1359_v20 = vadd.f32 %v1489_v57, %v1358_v19 }
 0x5b6   : > { %1373 = vst.msk [vmem:[%s379_s15 + $0x30] sm:$0xff] %vm394_vm0, %v1359_v20 }
 0x5b7 PF: > { %s20_s13 = sadd.s32 1, %s1776_s13  }
 0x5b8   : > { %p17_p4 = scmp.ge.s32.totalorder %s20_s13, 4  }
 0x5ba   :  { %19 = sbr.rel (!%p17_p4) target bundleno = 1 (0x1), region = 93 }

</bundles_post_ra>
